<compile_context>
chip_gen: v6e
topology: v6e:2x2x1
jax: 0.10.0
libtpu: 0.0.40
codegen_flags: <defaults>
</compile_context>

<pallas_src>
import numpy as np
import jax
import jax.numpy as jnp
from jax.experimental import pallas as pl
from jax.experimental.pallas import tpu as pltpu

_EPS = 1e-5
_PER_LAYER = 10          # A, T, S, B, gamma_b, beta_b, Re, Ro, Pe, Po
_NUM_BLOCKS = 3


def _vmem_spec():
    return pl.BlockSpec(memory_space=pltpu.MemorySpace.VMEM)


# ------------------------------ fused kernel --------------------------------

def _fused_net_kernel(*refs):
    # refs = [x2d] + 3 * [A, T, S, B, gamma_b, beta_b, Re, Ro, Pe, Po]
    #        + [fc_w, fc_b] + [out]
    x = refs[0][...]                                    # (N*H, W*Cin)

    for blk in range(_NUM_BLOCKS):
        base = 1 + blk * _PER_LAYER
        (a_ref, t_ref, s_ref, b_ref, gb_ref, bb_ref,
         re_ref, ro_ref, pe_ref, po_ref) = refs[base:base + _PER_LAYER]

        s_mat = s_ref[...]                              # (Wo*C, C)  channel-sum
        b_mat = b_ref[...]                              # (C, Wo*C)  channel-bcast

        # -- Conv3x3 (VALID): in-kernel im2col as row-shift + width-Toeplitz --
        y = None
        for dh in range(3):
            xs = jnp.dot(a_ref[dh], x, preferred_element_type=jnp.float32)
            term = jnp.dot(xs, t_ref[dh], preferred_element_type=jnp.float32)
            y = term if y is None else y + term         # (N*Ho, Wo*C)

        # -- BatchNorm (training-mode batch stats) + folded affine + ReLU --
        # Conv bias omitted: it is cancelled exactly by the mean subtraction.
        rows, lanes = y.shape
        n_chan = s_mat.shape[1]
        inv_count = 1.0 / float(rows * (lanes // n_chan))    # 1 / (N*Ho*Wo)
        rowsum = jnp.sum(y, axis=0, keepdims=True)           # (1, Wo*C)
        mean_c = jnp.dot(rowsum, s_mat,
                         preferred_element_type=jnp.float32) * inv_count
        yc = y - jnp.dot(mean_c, b_mat, preferred_element_type=jnp.float32)
        sqsum = jnp.sum(yc * yc, axis=0, keepdims=True)
        var_c = jnp.dot(sqsum, s_mat,
                        preferred_element_type=jnp.float32) * inv_count
        inv_b = jnp.dot(jax.lax.rsqrt(var_c + _EPS), b_mat,
                        preferred_element_type=jnp.float32)
        act = jnp.maximum(yc * inv_b * gb_ref[...] + bb_ref[...], 0.0)

        # -- MaxPool 2x2 (fused): exact 0/1 selections + elementwise max --
        row_max = jnp.maximum(
            jnp.dot(re_ref[...], act, preferred_element_type=jnp.float32),
            jnp.dot(ro_ref[...], act, preferred_element_type=jnp.float32))
        x = jnp.maximum(
            jnp.dot(row_max, pe_ref[...], preferred_element_type=jnp.float32),
            jnp.dot(row_max, po_ref[...], preferred_element_type=jnp.float32))
        # x now has rows = (n, hp), lanes = (wp, c): input layout of next block

    fc_w = refs[1 + _NUM_BLOCKS * _PER_LAYER][...]      # (64, 10)
    fc_b = refs[2 + _NUM_BLOCKS * _PER_LAYER][...]      # (1, 10)
    out_ref = refs[-1]
    out_ref[...] = jnp.dot(x, fc_w, preferred_element_type=jnp.float32) + fc_b


# --------------------- constant / operand construction ----------------------

def _row_shift_mats(n, h, ho, k=3):
    # A[dh, n*Ho+ho, n*H+ho+dh] = 1 : selects the dh-shifted image rows.
    a = np.zeros((k, n * ho, n * h), np.float32)
    r = np.arange(ho)
    for dh in range(k):
        for img in range(n):
            a[dh, img * ho + r, img * h + r + dh] = 1.0
    return a


def _pool_row_mats(n, ho, hp):
    re = np.zeros((n * hp, n * ho), np.float32)
    ro = np.zeros((n * hp, n * ho), np.float32)
    r = np.arange(hp)
    for img in range(n):
        re[img * hp + r, img * ho + 2 * r] = 1.0
        ro[img * hp + r, img * ho + 2 * r + 1] = 1.0
    return re, ro


def _pool_lane_mats(wo, wp, c):
    pe = np.zeros((wo * c, wp * c), np.float32)
    po = np.zeros((wo * c, wp * c), np.float32)
    wp_i = np.arange(wp)[:, None]
    c_i = np.arange(c)[None, :]
    pe[(2 * wp_i) * c + c_i, wp_i * c + c_i] = 1.0
    po[(2 * wp_i + 1) * c + c_i, wp_i * c + c_i] = 1.0
    return pe, po


def _chan_sum_mat(wo, c):
    return np.tile(np.eye(c, dtype=np.float32), (wo, 1))    # (Wo*C, C)


def _conv_toeplitz(weight, width):
    # weight: (3, 3, Cin, Cout) -> T: (3, width*Cin, Wo*Cout), Wo = width - 2
    # T[dh, wi*Cin+ci, wo*Cout+co] = weight[dh, wi-wo, ci, co] if 0<=wi-wo<3
    kh, kw, cin, cout = weight.shape
    wo = width - kw + 1
    dw = jnp.arange(width)[:, None] - jnp.arange(wo)[None, :]      # (W, Wo)
    valid = (dw >= 0) & (dw < kw)
    g = weight[:, jnp.clip(dw, 0, kw - 1)]                         # (3,W,Wo,Cin,Cout)
    g = jnp.where(valid[None, :, :, None, None], g, 0.0)
    g = g.transpose(0, 1, 3, 2, 4)                                 # (3,W,Cin,Wo,Cout)
    return g.reshape(kh, width * cin, wo * cout)


def _build_operands(x_nhwc, params):
    n, h, w, cin = x_nhwc.shape
    operands = [x_nhwc.reshape(n * h, w * cin)]
    for name in ("block1", "block2", "block3"):
        wk, _bias, gamma, beta = params[name]     # conv bias cancels inside BN
        cout = wk.shape[3]
        ho, wo = h - 2, w - 2
        hp, wp = ho // 2, wo // 2
        s_mat = _chan_sum_mat(wo, cout)
        re, ro = _pool_row_mats(n, ho, hp)
        pe, po = _pool_lane_mats(wo, wp, cout)
        operands += [
            jnp.asarray(_row_shift_mats(n, h, ho)),      # A  (3, N*Ho, N*H)
            _conv_toeplitz(wk, w),                       # T  (3, W*Cin, Wo*Cout)
            jnp.asarray(s_mat),                          # S  (Wo*C, C)
            jnp.asarray(np.ascontiguousarray(s_mat.T)),  # B  (C, Wo*C)
            jnp.tile(gamma, (1, wo)),                    # gamma broadcast (1, Wo*C)
            jnp.tile(beta, (1, wo)),                     # beta  broadcast (1, Wo*C)
            jnp.asarray(re), jnp.asarray(ro),            # pool row selects
            jnp.asarray(pe), jnp.asarray(po),            # pool lane selects
        ]
        h, w, cin = hp, wp, cout
    operands += [params["fc_w"], params["fc_b"]]
    return operands


def forward(x_nhwc, params):
    operands = _build_operands(x_nhwc, params)
    n = x_nhwc.shape[0]
    n_out = params["fc_w"].shape[1]
    return pl.pallas_call(
        _fused_net_kernel,
        out_shape=jax.ShapeDtypeStruct((n, n_out), jnp.float32),
        in_specs=[_vmem_spec()] * len(operands),
        out_specs=_vmem_spec(),
    )(*operands)


# ----------------------------- pure-JAX reference ---------------------------

def reference_forward(x, params):
    def block(x, p):
        w, b, gamma, beta = p
        y = jax.lax.conv_general_dilated(
            x, w, (1, 1), "VALID",
            dimension_numbers=("NHWC", "HWIO", "NHWC"),
            precision=jax.lax.Precision.HIGHEST) + b
        mean = jnp.mean(y, axis=(0, 1, 2), keepdims=True)
        var = jnp.mean(jnp.square(y - mean), axis=(0, 1, 2), keepdims=True)
        y = (y - mean) * jax.lax.rsqrt(var + _EPS) * gamma + beta
        y = jnp.maximum(y, 0.0)
        N, Ho, Wo, C = y.shape
        Hp, Wp = Ho // 2, Wo // 2
        return y[:, :2 * Hp, :2 * Wp, :].reshape(N, Hp, 2, Wp, 2, C).max(axis=(2, 4))

    h = block(x, params["block1"])
    h = block(h, params["block2"])
    h = block(h, params["block3"])
    feat = h.reshape(h.shape[0], -1)
    return jnp.dot(feat, params["fc_w"],
                   precision=jax.lax.Precision.HIGHEST) + params["fc_b"]


# -------------------------------- parameters --------------------------------

def init_params(key):
    ks = jax.random.split(key, 5)

    def conv_p(k, cin, cout):
        k1, k2 = jax.random.split(k)
        w = jax.random.normal(k1, (3, 3, cin, cout), jnp.float32) / jnp.sqrt(9.0 * cin)
        b = 0.1 * jax.random.normal(k2, (1, cout), jnp.float32)
        gamma = jnp.ones((1, cout), jnp.float32)   # BatchNorm default weight
        beta = jnp.zeros((1, cout), jnp.float32)   # BatchNorm default bias
        return (w, b, gamma, beta)

    return {
        "block1": conv_p(ks[0], 1, 16),
        "block2": conv_p(ks[1], 16, 32),
        "block3": conv_p(ks[2], 32, 64),
        "fc_w": jax.random.normal(ks[3], (64, 10), jnp.float32) / 8.0,
        "fc_b": 0.1 * jax.random.normal(ks[4], (1, 10), jnp.float32),
    }


# ----------------------------------- main ------------------------------------

if __name__ == "__main__":
    key = jax.random.PRNGKey(0)
    pkey, xkey = jax.random.split(key)
    params = init_params(pkey)

    # Linear(64,10) after 3 conv+pool stages implies a 28x28 single-channel
    # input (MNIST-like): NCHW (2, 1, 28, 28) -> NHWC internally.
    x_nchw = jax.random.normal(xkey, (2, 1, 28, 28), jnp.float32)
    x_nhwc = jnp.transpose(x_nchw, (0, 2, 3, 1))

    out = jax.jit(forward)(x_nhwc, params)
    out = jax.block_until_ready(out)
    assert out.shape == (2, 10)

    ref = reference_forward(x_nhwc, params)
    if not jnp.allclose(out, ref, rtol=5e-3, atol=5e-3):
        raise AssertionError("Pallas output does not match JAX reference")

    print("KERNEL_OK")
</pallas_src>

<mosaic_0001>
module attributes {stable_mosaic.version = 11 : i64} {
  func.func @_fused_net_kernel(%arg0: memref<56x28xf32, #tpu.memory_space<vmem>>, %arg1: memref<3x52x56xf32, #tpu.memory_space<vmem>>, %arg2: memref<3x28x416xf32, #tpu.memory_space<vmem>>, %arg3: memref<416x16xf32, #tpu.memory_space<vmem>>, %arg4: memref<16x416xf32, #tpu.memory_space<vmem>>, %arg5: memref<1x416xf32, #tpu.memory_space<vmem>>, %arg6: memref<1x416xf32, #tpu.memory_space<vmem>>, %arg7: memref<26x52xf32, #tpu.memory_space<vmem>>, %arg8: memref<26x52xf32, #tpu.memory_space<vmem>>, %arg9: memref<416x208xf32, #tpu.memory_space<vmem>>, %arg10: memref<416x208xf32, #tpu.memory_space<vmem>>, %arg11: memref<3x22x26xf32, #tpu.memory_space<vmem>>, %arg12: memref<3x208x352xf32, #tpu.memory_space<vmem>>, %arg13: memref<352x32xf32, #tpu.memory_space<vmem>>, %arg14: memref<32x352xf32, #tpu.memory_space<vmem>>, %arg15: memref<1x352xf32, #tpu.memory_space<vmem>>, %arg16: memref<1x352xf32, #tpu.memory_space<vmem>>, %arg17: memref<10x22xf32, #tpu.memory_space<vmem>>, %arg18: memref<10x22xf32, #tpu.memory_space<vmem>>, %arg19: memref<352x160xf32, #tpu.memory_space<vmem>>, %arg20: memref<352x160xf32, #tpu.memory_space<vmem>>, %arg21: memref<3x6x10xf32, #tpu.memory_space<vmem>>, %arg22: memref<3x160x192xf32, #tpu.memory_space<vmem>>, %arg23: memref<192x64xf32, #tpu.memory_space<vmem>>, %arg24: memref<64x192xf32, #tpu.memory_space<vmem>>, %arg25: memref<1x192xf32, #tpu.memory_space<vmem>>, %arg26: memref<1x192xf32, #tpu.memory_space<vmem>>, %arg27: memref<2x6xf32, #tpu.memory_space<vmem>>, %arg28: memref<2x6xf32, #tpu.memory_space<vmem>>, %arg29: memref<192x64xf32, #tpu.memory_space<vmem>>, %arg30: memref<192x64xf32, #tpu.memory_space<vmem>>, %arg31: memref<64x10xf32, #tpu.memory_space<vmem>>, %arg32: memref<1x10xf32, #tpu.memory_space<vmem>>, %arg33: memref<2x10xf32, #tpu.memory_space<vmem>>) attributes {dimension_semantics = [], scalar_prefetch = 0 : i64, scratch_operands = 0 : i64, tpu.core_type = #tpu.core_type<tc>} {
    %c0 = arith.constant 0 : index
    %c0_0 = arith.constant 0 : index
    %0 = vector.load %arg0[%c0, %c0_0] : memref<56x28xf32, #tpu.memory_space<vmem>>, vector<56x28xf32>
    %c0_1 = arith.constant 0 : index
    %c0_2 = arith.constant 0 : index
    %1 = vector.load %arg3[%c0_1, %c0_2] : memref<416x16xf32, #tpu.memory_space<vmem>>, vector<416x16xf32>
    %c0_3 = arith.constant 0 : index
    %c0_4 = arith.constant 0 : index
    %2 = vector.load %arg4[%c0_3, %c0_4] : memref<16x416xf32, #tpu.memory_space<vmem>>, vector<16x416xf32>
    %c0_5 = arith.constant 0 : index
    %c0_6 = arith.constant 0 : index
    %c0_7 = arith.constant 0 : index
    %3 = vector.load %arg1[%c0_5, %c0_6, %c0_7] : memref<3x52x56xf32, #tpu.memory_space<vmem>>, vector<1x52x56xf32>
    %4 = vector.shape_cast %3 : vector<1x52x56xf32> to vector<52x56xf32>
    %cst = arith.constant dense<0.000000e+00> : vector<52x28xf32>
    %5 = tpu.matmul %4, %0, %cst {dimension_numbers = #tpu.dot_dimension_numbers<[1], [0], [0], [1], [0, 0, 1, 1], [], []>} : vector<52x56xf32>, vector<56x28xf32>, vector<52x28xf32> -> vector<52x28xf32>
    %c0_8 = arith.constant 0 : index
    %c0_9 = arith.constant 0 : index
    %c0_10 = arith.constant 0 : index
    %6 = vector.load %arg2[%c0_8, %c0_9, %c0_10] : memref<3x28x416xf32, #tpu.memory_space<vmem>>, vector<1x28x416xf32>
    %7 = vector.shape_cast %6 : vector<1x28x416xf32> to vector<28x416xf32>
    %cst_11 = arith.constant dense<0.000000e+00> : vector<52x416xf32>
    %8 = tpu.matmul %5, %7, %cst_11 {dimension_numbers = #tpu.dot_dimension_numbers<[1], [0], [0], [1], [0, 0, 1, 1], [], []>} : vector<52x28xf32>, vector<28x416xf32>, vector<52x416xf32> -> vector<52x416xf32>
    %c1 = arith.constant 1 : index
    %c0_12 = arith.constant 0 : index
    %c0_13 = arith.constant 0 : index
    %9 = vector.load %arg1[%c1, %c0_12, %c0_13] : memref<3x52x56xf32, #tpu.memory_space<vmem>>, vector<1x52x56xf32>
    %10 = vector.shape_cast %9 : vector<1x52x56xf32> to vector<52x56xf32>
    %cst_14 = arith.constant dense<0.000000e+00> : vector<52x28xf32>
    %11 = tpu.matmul %10, %0, %cst_14 {dimension_numbers = #tpu.dot_dimension_numbers<[1], [0], [0], [1], [0, 0, 1, 1], [], []>} : vector<52x56xf32>, vector<56x28xf32>, vector<52x28xf32> -> vector<52x28xf32>
    %c1_15 = arith.constant 1 : index
    %c0_16 = arith.constant 0 : index
    %c0_17 = arith.constant 0 : index
    %12 = vector.load %arg2[%c1_15, %c0_16, %c0_17] : memref<3x28x416xf32, #tpu.memory_space<vmem>>, vector<1x28x416xf32>
    %13 = vector.shape_cast %12 : vector<1x28x416xf32> to vector<28x416xf32>
    %cst_18 = arith.constant dense<0.000000e+00> : vector<52x416xf32>
    %14 = tpu.matmul %11, %13, %cst_18 {dimension_numbers = #tpu.dot_dimension_numbers<[1], [0], [0], [1], [0, 0, 1, 1], [], []>} : vector<52x28xf32>, vector<28x416xf32>, vector<52x416xf32> -> vector<52x416xf32>
    %15 = arith.addf %8, %14 : vector<52x416xf32>
    %c2 = arith.constant 2 : index
    %c0_19 = arith.constant 0 : index
    %c0_20 = arith.constant 0 : index
    %16 = vector.load %arg1[%c2, %c0_19, %c0_20] : memref<3x52x56xf32, #tpu.memory_space<vmem>>, vector<1x52x56xf32>
    %17 = vector.shape_cast %16 : vector<1x52x56xf32> to vector<52x56xf32>
    %cst_21 = arith.constant dense<0.000000e+00> : vector<52x28xf32>
    %18 = tpu.matmul %17, %0, %cst_21 {dimension_numbers = #tpu.dot_dimension_numbers<[1], [0], [0], [1], [0, 0, 1, 1], [], []>} : vector<52x56xf32>, vector<56x28xf32>, vector<52x28xf32> -> vector<52x28xf32>
    %c2_22 = arith.constant 2 : index
    %c0_23 = arith.constant 0 : index
    %c0_24 = arith.constant 0 : index
    %19 = vector.load %arg2[%c2_22, %c0_23, %c0_24] : memref<3x28x416xf32, #tpu.memory_space<vmem>>, vector<1x28x416xf32>
    %20 = vector.shape_cast %19 : vector<1x28x416xf32> to vector<28x416xf32>
    %cst_25 = arith.constant dense<0.000000e+00> : vector<52x416xf32>
    %21 = tpu.matmul %18, %20, %cst_25 {dimension_numbers = #tpu.dot_dimension_numbers<[1], [0], [0], [1], [0, 0, 1, 1], [], []>} : vector<52x28xf32>, vector<28x416xf32>, vector<52x416xf32> -> vector<52x416xf32>
    %22 = arith.addf %15, %21 : vector<52x416xf32>
    %cst_26 = arith.constant dense<0.000000e+00> : vector<416xf32>
    %23 = vector.multi_reduction <add>, %22, %cst_26 [0] : vector<52x416xf32> to vector<416xf32>
    %24 = vector.shape_cast %23 : vector<416xf32> to vector<1x416xf32>
    %cst_27 = arith.constant dense<0.000000e+00> : vector<1x16xf32>
    %25 = tpu.matmul %24, %1, %cst_27 {dimension_numbers = #tpu.dot_dimension_numbers<[1], [0], [0], [1], [0, 0, 1, 1], [], []>} : vector<1x416xf32>, vector<416x16xf32>, vector<1x16xf32> -> vector<1x16xf32>
    %cst_28 = arith.constant 7.396450e-04 : f32
    %26 = vector.broadcast %cst_28 : f32 to vector<1x16xf32>
    %27 = arith.mulf %25, %26 : vector<1x16xf32>
    %cst_29 = arith.constant dense<0.000000e+00> : vector<1x416xf32>
    %28 = tpu.matmul %27, %2, %cst_29 {dimension_numbers = #tpu.dot_dimension_numbers<[1], [0], [0], [1], [0, 0, 1, 1], [], []>} : vector<1x16xf32>, vector<16x416xf32>, vector<1x416xf32> -> vector<1x416xf32>
    %29 = vector.broadcast %28 : vector<1x416xf32> to vector<52x416xf32>
    %30 = arith.subf %22, %29 : vector<52x416xf32>
    %31 = arith.mulf %30, %30 : vector<52x416xf32>
    %cst_30 = arith.constant dense<0.000000e+00> : vector<416xf32>
    %32 = vector.multi_reduction <add>, %31, %cst_30 [0] : vector<52x416xf32> to vector<416xf32>
    %33 = vector.shape_cast %32 : vector<416xf32> to vector<1x416xf32>
    %cst_31 = arith.constant dense<0.000000e+00> : vector<1x16xf32>
    %34 = tpu.matmul %33, %1, %cst_31 {dimension_numbers = #tpu.dot_dimension_numbers<[1], [0], [0], [1], [0, 0, 1, 1], [], []>} : vector<1x416xf32>, vector<416x16xf32>, vector<1x16xf32> -> vector<1x16xf32>
    %cst_32 = arith.constant 7.396450e-04 : f32
    %35 = vector.broadcast %cst_32 : f32 to vector<1x16xf32>
    %36 = arith.mulf %34, %35 : vector<1x16xf32>
    %cst_33 = arith.constant 9.99999974E-6 : f32
    %37 = vector.broadcast %cst_33 : f32 to vector<1x16xf32>
    %38 = arith.addf %36, %37 : vector<1x16xf32>
    %39 = math.rsqrt %38 : vector<1x16xf32>
    %cst_34 = arith.constant dense<0.000000e+00> : vector<1x416xf32>
    %40 = tpu.matmul %39, %2, %cst_34 {dimension_numbers = #tpu.dot_dimension_numbers<[1], [0], [0], [1], [0, 0, 1, 1], [], []>} : vector<1x16xf32>, vector<16x416xf32>, vector<1x416xf32> -> vector<1x416xf32>
    %41 = vector.broadcast %40 : vector<1x416xf32> to vector<52x416xf32>
    %42 = arith.mulf %30, %41 : vector<52x416xf32>
    %c0_35 = arith.constant 0 : index
    %c0_36 = arith.constant 0 : index
    %43 = vector.load %arg5[%c0_35, %c0_36] : memref<1x416xf32, #tpu.memory_space<vmem>>, vector<1x416xf32>
    %44 = vector.broadcast %43 : vector<1x416xf32> to vector<52x416xf32>
    %45 = arith.mulf %42, %44 : vector<52x416xf32>
    %c0_37 = arith.constant 0 : index
    %c0_38 = arith.constant 0 : index
    %46 = vector.load %arg6[%c0_37, %c0_38] : memref<1x416xf32, #tpu.memory_space<vmem>>, vector<1x416xf32>
    %47 = vector.broadcast %46 : vector<1x416xf32> to vector<52x416xf32>
    %48 = arith.addf %45, %47 : vector<52x416xf32>
    %cst_39 = arith.constant 0.000000e+00 : f32
    %49 = vector.broadcast %cst_39 : f32 to vector<52x416xf32>
    %50 = arith.maximumf %48, %49 : vector<52x416xf32>
    %c0_40 = arith.constant 0 : index
    %c0_41 = arith.constant 0 : index
    %51 = vector.load %arg7[%c0_40, %c0_41] : memref<26x52xf32, #tpu.memory_space<vmem>>, vector<26x52xf32>
    %cst_42 = arith.constant dense<0.000000e+00> : vector<26x416xf32>
    %52 = tpu.matmul %51, %50, %cst_42 {dimension_numbers = #tpu.dot_dimension_numbers<[1], [0], [0], [1], [0, 0, 1, 1], [], []>} : vector<26x52xf32>, vector<52x416xf32>, vector<26x416xf32> -> vector<26x416xf32>
    %c0_43 = arith.constant 0 : index
    %c0_44 = arith.constant 0 : index
    %53 = vector.load %arg8[%c0_43, %c0_44] : memref<26x52xf32, #tpu.memory_space<vmem>>, vector<26x52xf32>
    %cst_45 = arith.constant dense<0.000000e+00> : vector<26x416xf32>
    %54 = tpu.matmul %53, %50, %cst_45 {dimension_numbers = #tpu.dot_dimension_numbers<[1], [0], [0], [1], [0, 0, 1, 1], [], []>} : vector<26x52xf32>, vector<52x416xf32>, vector<26x416xf32> -> vector<26x416xf32>
    %55 = arith.maximumf %52, %54 : vector<26x416xf32>
    %c0_46 = arith.constant 0 : index
    %c0_47 = arith.constant 0 : index
    %56 = vector.load %arg9[%c0_46, %c0_47] : memref<416x208xf32, #tpu.memory_space<vmem>>, vector<416x208xf32>
    %cst_48 = arith.constant dense<0.000000e+00> : vector<26x208xf32>
    %57 = tpu.matmul %55, %56, %cst_48 {dimension_numbers = #tpu.dot_dimension_numbers<[1], [0], [0], [1], [0, 0, 1, 1], [], []>} : vector<26x416xf32>, vector<416x208xf32>, vector<26x208xf32> -> vector<26x208xf32>
    %c0_49 = arith.constant 0 : index
    %c0_50 = arith.constant 0 : index
    %58 = vector.load %arg10[%c0_49, %c0_50] : memref<416x208xf32, #tpu.memory_space<vmem>>, vector<416x208xf32>
    %cst_51 = arith.constant dense<0.000000e+00> : vector<26x208xf32>
    %59 = tpu.matmul %55, %58, %cst_51 {dimension_numbers = #tpu.dot_dimension_numbers<[1], [0], [0], [1], [0, 0, 1, 1], [], []>} : vector<26x416xf32>, vector<416x208xf32>, vector<26x208xf32> -> vector<26x208xf32>
    %60 = arith.maximumf %57, %59 : vector<26x208xf32>
    %c0_52 = arith.constant 0 : index
    %c0_53 = arith.constant 0 : index
    %61 = vector.load %arg13[%c0_52, %c0_53] : memref<352x32xf32, #tpu.memory_space<vmem>>, vector<352x32xf32>
    %c0_54 = arith.constant 0 : index
    %c0_55 = arith.constant 0 : index
    %62 = vector.load %arg14[%c0_54, %c0_55] : memref<32x352xf32, #tpu.memory_space<vmem>>, vector<32x352xf32>
    %c0_56 = arith.constant 0 : index
    %c0_57 = arith.constant 0 : index
    %c0_58 = arith.constant 0 : index
    %63 = vector.load %arg11[%c0_56, %c0_57, %c0_58] : memref<3x22x26xf32, #tpu.memory_space<vmem>>, vector<1x22x26xf32>
    %64 = vector.shape_cast %63 : vector<1x22x26xf32> to vector<22x26xf32>
    %cst_59 = arith.constant dense<0.000000e+00> : vector<22x208xf32>
    %65 = tpu.matmul %64, %60, %cst_59 {dimension_numbers = #tpu.dot_dimension_numbers<[1], [0], [0], [1], [0, 0, 1, 1], [], []>} : vector<22x26xf32>, vector<26x208xf32>, vector<22x208xf32> -> vector<22x208xf32>
    %c0_60 = arith.constant 0 : index
    %c0_61 = arith.constant 0 : index
    %c0_62 = arith.constant 0 : index
    %66 = vector.load %arg12[%c0_60, %c0_61, %c0_62] : memref<3x208x352xf32, #tpu.memory_space<vmem>>, vector<1x208x352xf32>
    %67 = vector.shape_cast %66 : vector<1x208x352xf32> to vector<208x352xf32>
    %cst_63 = arith.constant dense<0.000000e+00> : vector<22x352xf32>
    %68 = tpu.matmul %65, %67, %cst_63 {dimension_numbers = #tpu.dot_dimension_numbers<[1], [0], [0], [1], [0, 0, 1, 1], [], []>} : vector<22x208xf32>, vector<208x352xf32>, vector<22x352xf32> -> vector<22x352xf32>
    %c1_64 = arith.constant 1 : index
    %c0_65 = arith.constant 0 : index
    %c0_66 = arith.constant 0 : index
    %69 = vector.load %arg11[%c1_64, %c0_65, %c0_66] : memref<3x22x26xf32, #tpu.memory_space<vmem>>, vector<1x22x26xf32>
    %70 = vector.shape_cast %69 : vector<1x22x26xf32> to vector<22x26xf32>
    %cst_67 = arith.constant dense<0.000000e+00> : vector<22x208xf32>
    %71 = tpu.matmul %70, %60, %cst_67 {dimension_numbers = #tpu.dot_dimension_numbers<[1], [0], [0], [1], [0, 0, 1, 1], [], []>} : vector<22x26xf32>, vector<26x208xf32>, vector<22x208xf32> -> vector<22x208xf32>
    %c1_68 = arith.constant 1 : index
    %c0_69 = arith.constant 0 : index
    %c0_70 = arith.constant 0 : index
    %72 = vector.load %arg12[%c1_68, %c0_69, %c0_70] : memref<3x208x352xf32, #tpu.memory_space<vmem>>, vector<1x208x352xf32>
    %73 = vector.shape_cast %72 : vector<1x208x352xf32> to vector<208x352xf32>
    %cst_71 = arith.constant dense<0.000000e+00> : vector<22x352xf32>
    %74 = tpu.matmul %71, %73, %cst_71 {dimension_numbers = #tpu.dot_dimension_numbers<[1], [0], [0], [1], [0, 0, 1, 1], [], []>} : vector<22x208xf32>, vector<208x352xf32>, vector<22x352xf32> -> vector<22x352xf32>
    %75 = arith.addf %68, %74 : vector<22x352xf32>
    %c2_72 = arith.constant 2 : index
    %c0_73 = arith.constant 0 : index
    %c0_74 = arith.constant 0 : index
    %76 = vector.load %arg11[%c2_72, %c0_73, %c0_74] : memref<3x22x26xf32, #tpu.memory_space<vmem>>, vector<1x22x26xf32>
    %77 = vector.shape_cast %76 : vector<1x22x26xf32> to vector<22x26xf32>
    %cst_75 = arith.constant dense<0.000000e+00> : vector<22x208xf32>
    %78 = tpu.matmul %77, %60, %cst_75 {dimension_numbers = #tpu.dot_dimension_numbers<[1], [0], [0], [1], [0, 0, 1, 1], [], []>} : vector<22x26xf32>, vector<26x208xf32>, vector<22x208xf32> -> vector<22x208xf32>
    %c2_76 = arith.constant 2 : index
    %c0_77 = arith.constant 0 : index
    %c0_78 = arith.constant 0 : index
    %79 = vector.load %arg12[%c2_76, %c0_77, %c0_78] : memref<3x208x352xf32, #tpu.memory_space<vmem>>, vector<1x208x352xf32>
    %80 = vector.shape_cast %79 : vector<1x208x352xf32> to vector<208x352xf32>
    %cst_79 = arith.constant dense<0.000000e+00> : vector<22x352xf32>
    %81 = tpu.matmul %78, %80, %cst_79 {dimension_numbers = #tpu.dot_dimension_numbers<[1], [0], [0], [1], [0, 0, 1, 1], [], []>} : vector<22x208xf32>, vector<208x352xf32>, vector<22x352xf32> -> vector<22x352xf32>
    %82 = arith.addf %75, %81 : vector<22x352xf32>
    %cst_80 = arith.constant dense<0.000000e+00> : vector<352xf32>
    %83 = vector.multi_reduction <add>, %82, %cst_80 [0] : vector<22x352xf32> to vector<352xf32>
    %84 = vector.shape_cast %83 : vector<352xf32> to vector<1x352xf32>
    %cst_81 = arith.constant dense<0.000000e+00> : vector<1x32xf32>
    %85 = tpu.matmul %84, %61, %cst_81 {dimension_numbers = #tpu.dot_dimension_numbers<[1], [0], [0], [1], [0, 0, 1, 1], [], []>} : vector<1x352xf32>, vector<352x32xf32>, vector<1x32xf32> -> vector<1x32xf32>
    %cst_82 = arith.constant 0.00413223123 : f32
    %86 = vector.broadcast %cst_82 : f32 to vector<1x32xf32>
    %87 = arith.mulf %85, %86 : vector<1x32xf32>
    %cst_83 = arith.constant dense<0.000000e+00> : vector<1x352xf32>
    %88 = tpu.matmul %87, %62, %cst_83 {dimension_numbers = #tpu.dot_dimension_numbers<[1], [0], [0], [1], [0, 0, 1, 1], [], []>} : vector<1x32xf32>, vector<32x352xf32>, vector<1x352xf32> -> vector<1x352xf32>
    %89 = vector.broadcast %88 : vector<1x352xf32> to vector<22x352xf32>
    %90 = arith.subf %82, %89 : vector<22x352xf32>
    %91 = arith.mulf %90, %90 : vector<22x352xf32>
    %cst_84 = arith.constant dense<0.000000e+00> : vector<352xf32>
    %92 = vector.multi_reduction <add>, %91, %cst_84 [0] : vector<22x352xf32> to vector<352xf32>
    %93 = vector.shape_cast %92 : vector<352xf32> to vector<1x352xf32>
    %cst_85 = arith.constant dense<0.000000e+00> : vector<1x32xf32>
    %94 = tpu.matmul %93, %61, %cst_85 {dimension_numbers = #tpu.dot_dimension_numbers<[1], [0], [0], [1], [0, 0, 1, 1], [], []>} : vector<1x352xf32>, vector<352x32xf32>, vector<1x32xf32> -> vector<1x32xf32>
    %cst_86 = arith.constant 0.00413223123 : f32
    %95 = vector.broadcast %cst_86 : f32 to vector<1x32xf32>
    %96 = arith.mulf %94, %95 : vector<1x32xf32>
    %cst_87 = arith.constant 9.99999974E-6 : f32
    %97 = vector.broadcast %cst_87 : f32 to vector<1x32xf32>
    %98 = arith.addf %96, %97 : vector<1x32xf32>
    %99 = math.rsqrt %98 : vector<1x32xf32>
    %cst_88 = arith.constant dense<0.000000e+00> : vector<1x352xf32>
    %100 = tpu.matmul %99, %62, %cst_88 {dimension_numbers = #tpu.dot_dimension_numbers<[1], [0], [0], [1], [0, 0, 1, 1], [], []>} : vector<1x32xf32>, vector<32x352xf32>, vector<1x352xf32> -> vector<1x352xf32>
    %101 = vector.broadcast %100 : vector<1x352xf32> to vector<22x352xf32>
    %102 = arith.mulf %90, %101 : vector<22x352xf32>
    %c0_89 = arith.constant 0 : index
    %c0_90 = arith.constant 0 : index
    %103 = vector.load %arg15[%c0_89, %c0_90] : memref<1x352xf32, #tpu.memory_space<vmem>>, vector<1x352xf32>
    %104 = vector.broadcast %103 : vector<1x352xf32> to vector<22x352xf32>
    %105 = arith.mulf %102, %104 : vector<22x352xf32>
    %c0_91 = arith.constant 0 : index
    %c0_92 = arith.constant 0 : index
    %106 = vector.load %arg16[%c0_91, %c0_92] : memref<1x352xf32, #tpu.memory_space<vmem>>, vector<1x352xf32>
    %107 = vector.broadcast %106 : vector<1x352xf32> to vector<22x352xf32>
    %108 = arith.addf %105, %107 : vector<22x352xf32>
    %cst_93 = arith.constant 0.000000e+00 : f32
    %109 = vector.broadcast %cst_93 : f32 to vector<22x352xf32>
    %110 = arith.maximumf %108, %109 : vector<22x352xf32>
    %c0_94 = arith.constant 0 : index
    %c0_95 = arith.constant 0 : index
    %111 = vector.load %arg17[%c0_94, %c0_95] : memref<10x22xf32, #tpu.memory_space<vmem>>, vector<10x22xf32>
    %cst_96 = arith.constant dense<0.000000e+00> : vector<10x352xf32>
    %112 = tpu.matmul %111, %110, %cst_96 {dimension_numbers = #tpu.dot_dimension_numbers<[1], [0], [0], [1], [0, 0, 1, 1], [], []>} : vector<10x22xf32>, vector<22x352xf32>, vector<10x352xf32> -> vector<10x352xf32>
    %c0_97 = arith.constant 0 : index
    %c0_98 = arith.constant 0 : index
    %113 = vector.load %arg18[%c0_97, %c0_98] : memref<10x22xf32, #tpu.memory_space<vmem>>, vector<10x22xf32>
    %cst_99 = arith.constant dense<0.000000e+00> : vector<10x352xf32>
    %114 = tpu.matmul %113, %110, %cst_99 {dimension_numbers = #tpu.dot_dimension_numbers<[1], [0], [0], [1], [0, 0, 1, 1], [], []>} : vector<10x22xf32>, vector<22x352xf32>, vector<10x352xf32> -> vector<10x352xf32>
    %115 = arith.maximumf %112, %114 : vector<10x352xf32>
    %c0_100 = arith.constant 0 : index
    %c0_101 = arith.constant 0 : index
    %116 = vector.load %arg19[%c0_100, %c0_101] : memref<352x160xf32, #tpu.memory_space<vmem>>, vector<352x160xf32>
    %cst_102 = arith.constant dense<0.000000e+00> : vector<10x160xf32>
    %117 = tpu.matmul %115, %116, %cst_102 {dimension_numbers = #tpu.dot_dimension_numbers<[1], [0], [0], [1], [0, 0, 1, 1], [], []>} : vector<10x352xf32>, vector<352x160xf32>, vector<10x160xf32> -> vector<10x160xf32>
    %c0_103 = arith.constant 0 : index
    %c0_104 = arith.constant 0 : index
    %118 = vector.load %arg20[%c0_103, %c0_104] : memref<352x160xf32, #tpu.memory_space<vmem>>, vector<352x160xf32>
    %cst_105 = arith.constant dense<0.000000e+00> : vector<10x160xf32>
    %119 = tpu.matmul %115, %118, %cst_105 {dimension_numbers = #tpu.dot_dimension_numbers<[1], [0], [0], [1], [0, 0, 1, 1], [], []>} : vector<10x352xf32>, vector<352x160xf32>, vector<10x160xf32> -> vector<10x160xf32>
    %120 = arith.maximumf %117, %119 : vector<10x160xf32>
    %c0_106 = arith.constant 0 : index
    %c0_107 = arith.constant 0 : index
    %121 = vector.load %arg23[%c0_106, %c0_107] : memref<192x64xf32, #tpu.memory_space<vmem>>, vector<192x64xf32>
    %c0_108 = arith.constant 0 : index
    %c0_109 = arith.constant 0 : index
    %122 = vector.load %arg24[%c0_108, %c0_109] : memref<64x192xf32, #tpu.memory_space<vmem>>, vector<64x192xf32>
    %c0_110 = arith.constant 0 : index
    %c0_111 = arith.constant 0 : index
    %c0_112 = arith.constant 0 : index
    %123 = vector.load %arg21[%c0_110, %c0_111, %c0_112] : memref<3x6x10xf32, #tpu.memory_space<vmem>>, vector<1x6x10xf32>
    %124 = vector.shape_cast %123 : vector<1x6x10xf32> to vector<6x10xf32>
    %cst_113 = arith.constant dense<0.000000e+00> : vector<6x160xf32>
    %125 = tpu.matmul %124, %120, %cst_113 {dimension_numbers = #tpu.dot_dimension_numbers<[1], [0], [0], [1], [0, 0, 1, 1], [], []>} : vector<6x10xf32>, vector<10x160xf32>, vector<6x160xf32> -> vector<6x160xf32>
    %c0_114 = arith.constant 0 : index
    %c0_115 = arith.constant 0 : index
    %c0_116 = arith.constant 0 : index
    %126 = vector.load %arg22[%c0_114, %c0_115, %c0_116] : memref<3x160x192xf32, #tpu.memory_space<vmem>>, vector<1x160x192xf32>
    %127 = vector.shape_cast %126 : vector<1x160x192xf32> to vector<160x192xf32>
    %cst_117 = arith.constant dense<0.000000e+00> : vector<6x192xf32>
    %128 = tpu.matmul %125, %127, %cst_117 {dimension_numbers = #tpu.dot_dimension_numbers<[1], [0], [0], [1], [0, 0, 1, 1], [], []>} : vector<6x160xf32>, vector<160x192xf32>, vector<6x192xf32> -> vector<6x192xf32>
    %c1_118 = arith.constant 1 : index
    %c0_119 = arith.constant 0 : index
    %c0_120 = arith.constant 0 : index
    %129 = vector.load %arg21[%c1_118, %c0_119, %c0_120] : memref<3x6x10xf32, #tpu.memory_space<vmem>>, vector<1x6x10xf32>
    %130 = vector.shape_cast %129 : vector<1x6x10xf32> to vector<6x10xf32>
    %cst_121 = arith.constant dense<0.000000e+00> : vector<6x160xf32>
    %131 = tpu.matmul %130, %120, %cst_121 {dimension_numbers = #tpu.dot_dimension_numbers<[1], [0], [0], [1], [0, 0, 1, 1], [], []>} : vector<6x10xf32>, vector<10x160xf32>, vector<6x160xf32> -> vector<6x160xf32>
    %c1_122 = arith.constant 1 : index
    %c0_123 = arith.constant 0 : index
    %c0_124 = arith.constant 0 : index
    %132 = vector.load %arg22[%c1_122, %c0_123, %c0_124] : memref<3x160x192xf32, #tpu.memory_space<vmem>>, vector<1x160x192xf32>
    %133 = vector.shape_cast %132 : vector<1x160x192xf32> to vector<160x192xf32>
    %cst_125 = arith.constant dense<0.000000e+00> : vector<6x192xf32>
    %134 = tpu.matmul %131, %133, %cst_125 {dimension_numbers = #tpu.dot_dimension_numbers<[1], [0], [0], [1], [0, 0, 1, 1], [], []>} : vector<6x160xf32>, vector<160x192xf32>, vector<6x192xf32> -> vector<6x192xf32>
    %135 = arith.addf %128, %134 : vector<6x192xf32>
    %c2_126 = arith.constant 2 : index
    %c0_127 = arith.constant 0 : index
    %c0_128 = arith.constant 0 : index
    %136 = vector.load %arg21[%c2_126, %c0_127, %c0_128] : memref<3x6x10xf32, #tpu.memory_space<vmem>>, vector<1x6x10xf32>
    %137 = vector.shape_cast %136 : vector<1x6x10xf32> to vector<6x10xf32>
    %cst_129 = arith.constant dense<0.000000e+00> : vector<6x160xf32>
    %138 = tpu.matmul %137, %120, %cst_129 {dimension_numbers = #tpu.dot_dimension_numbers<[1], [0], [0], [1], [0, 0, 1, 1], [], []>} : vector<6x10xf32>, vector<10x160xf32>, vector<6x160xf32> -> vector<6x160xf32>
    %c2_130 = arith.constant 2 : index
    %c0_131 = arith.constant 0 : index
    %c0_132 = arith.constant 0 : index
    %139 = vector.load %arg22[%c2_130, %c0_131, %c0_132] : memref<3x160x192xf32, #tpu.memory_space<vmem>>, vector<1x160x192xf32>
    %140 = vector.shape_cast %139 : vector<1x160x192xf32> to vector<160x192xf32>
    %cst_133 = arith.constant dense<0.000000e+00> : vector<6x192xf32>
    %141 = tpu.matmul %138, %140, %cst_133 {dimension_numbers = #tpu.dot_dimension_numbers<[1], [0], [0], [1], [0, 0, 1, 1], [], []>} : vector<6x160xf32>, vector<160x192xf32>, vector<6x192xf32> -> vector<6x192xf32>
    %142 = arith.addf %135, %141 : vector<6x192xf32>
    %cst_134 = arith.constant dense<0.000000e+00> : vector<192xf32>
    %143 = vector.multi_reduction <add>, %142, %cst_134 [0] : vector<6x192xf32> to vector<192xf32>
    %144 = vector.shape_cast %143 : vector<192xf32> to vector<1x192xf32>
    %cst_135 = arith.constant dense<0.000000e+00> : vector<1x64xf32>
    %145 = tpu.matmul %144, %121, %cst_135 {dimension_numbers = #tpu.dot_dimension_numbers<[1], [0], [0], [1], [0, 0, 1, 1], [], []>} : vector<1x192xf32>, vector<192x64xf32>, vector<1x64xf32> -> vector<1x64xf32>
    %cst_136 = arith.constant 0.055555556 : f32
    %146 = vector.broadcast %cst_136 : f32 to vector<1x64xf32>
    %147 = arith.mulf %145, %146 : vector<1x64xf32>
    %cst_137 = arith.constant dense<0.000000e+00> : vector<1x192xf32>
    %148 = tpu.matmul %147, %122, %cst_137 {dimension_numbers = #tpu.dot_dimension_numbers<[1], [0], [0], [1], [0, 0, 1, 1], [], []>} : vector<1x64xf32>, vector<64x192xf32>, vector<1x192xf32> -> vector<1x192xf32>
    %149 = vector.broadcast %148 : vector<1x192xf32> to vector<6x192xf32>
    %150 = arith.subf %142, %149 : vector<6x192xf32>
    %151 = arith.mulf %150, %150 : vector<6x192xf32>
    %cst_138 = arith.constant dense<0.000000e+00> : vector<192xf32>
    %152 = vector.multi_reduction <add>, %151, %cst_138 [0] : vector<6x192xf32> to vector<192xf32>
    %153 = vector.shape_cast %152 : vector<192xf32> to vector<1x192xf32>
    %cst_139 = arith.constant dense<0.000000e+00> : vector<1x64xf32>
    %154 = tpu.matmul %153, %121, %cst_139 {dimension_numbers = #tpu.dot_dimension_numbers<[1], [0], [0], [1], [0, 0, 1, 1], [], []>} : vector<1x192xf32>, vector<192x64xf32>, vector<1x64xf32> -> vector<1x64xf32>
    %cst_140 = arith.constant 0.055555556 : f32
    %155 = vector.broadcast %cst_140 : f32 to vector<1x64xf32>
    %156 = arith.mulf %154, %155 : vector<1x64xf32>
    %cst_141 = arith.constant 9.99999974E-6 : f32
    %157 = vector.broadcast %cst_141 : f32 to vector<1x64xf32>
    %158 = arith.addf %156, %157 : vector<1x64xf32>
    %159 = math.rsqrt %158 : vector<1x64xf32>
    %cst_142 = arith.constant dense<0.000000e+00> : vector<1x192xf32>
    %160 = tpu.matmul %159, %122, %cst_142 {dimension_numbers = #tpu.dot_dimension_numbers<[1], [0], [0], [1], [0, 0, 1, 1], [], []>} : vector<1x64xf32>, vector<64x192xf32>, vector<1x192xf32> -> vector<1x192xf32>
    %161 = vector.broadcast %160 : vector<1x192xf32> to vector<6x192xf32>
    %162 = arith.mulf %150, %161 : vector<6x192xf32>
    %c0_143 = arith.constant 0 : index
    %c0_144 = arith.constant 0 : index
    %163 = vector.load %arg25[%c0_143, %c0_144] : memref<1x192xf32, #tpu.memory_space<vmem>>, vector<1x192xf32>
    %164 = vector.broadcast %163 : vector<1x192xf32> to vector<6x192xf32>
    %165 = arith.mulf %162, %164 : vector<6x192xf32>
    %c0_145 = arith.constant 0 : index
    %c0_146 = arith.constant 0 : index
    %166 = vector.load %arg26[%c0_145, %c0_146] : memref<1x192xf32, #tpu.memory_space<vmem>>, vector<1x192xf32>
    %167 = vector.broadcast %166 : vector<1x192xf32> to vector<6x192xf32>
    %168 = arith.addf %165, %167 : vector<6x192xf32>
    %cst_147 = arith.constant 0.000000e+00 : f32
    %169 = vector.broadcast %cst_147 : f32 to vector<6x192xf32>
    %170 = arith.maximumf %168, %169 : vector<6x192xf32>
    %c0_148 = arith.constant 0 : index
    %c0_149 = arith.constant 0 : index
    %171 = vector.load %arg27[%c0_148, %c0_149] : memref<2x6xf32, #tpu.memory_space<vmem>>, vector<2x6xf32>
    %cst_150 = arith.constant dense<0.000000e+00> : vector<2x192xf32>
    %172 = tpu.matmul %171, %170, %cst_150 {dimension_numbers = #tpu.dot_dimension_numbers<[1], [0], [0], [1], [0, 0, 1, 1], [], []>} : vector<2x6xf32>, vector<6x192xf32>, vector<2x192xf32> -> vector<2x192xf32>
    %c0_151 = arith.constant 0 : index
    %c0_152 = arith.constant 0 : index
    %173 = vector.load %arg28[%c0_151, %c0_152] : memref<2x6xf32, #tpu.memory_space<vmem>>, vector<2x6xf32>
    %cst_153 = arith.constant dense<0.000000e+00> : vector<2x192xf32>
    %174 = tpu.matmul %173, %170, %cst_153 {dimension_numbers = #tpu.dot_dimension_numbers<[1], [0], [0], [1], [0, 0, 1, 1], [], []>} : vector<2x6xf32>, vector<6x192xf32>, vector<2x192xf32> -> vector<2x192xf32>
    %175 = arith.maximumf %172, %174 : vector<2x192xf32>
    %c0_154 = arith.constant 0 : index
    %c0_155 = arith.constant 0 : index
    %176 = vector.load %arg29[%c0_154, %c0_155] : memref<192x64xf32, #tpu.memory_space<vmem>>, vector<192x64xf32>
    %cst_156 = arith.constant dense<0.000000e+00> : vector<2x64xf32>
    %177 = tpu.matmul %175, %176, %cst_156 {dimension_numbers = #tpu.dot_dimension_numbers<[1], [0], [0], [1], [0, 0, 1, 1], [], []>} : vector<2x192xf32>, vector<192x64xf32>, vector<2x64xf32> -> vector<2x64xf32>
    %c0_157 = arith.constant 0 : index
    %c0_158 = arith.constant 0 : index
    %178 = vector.load %arg30[%c0_157, %c0_158] : memref<192x64xf32, #tpu.memory_space<vmem>>, vector<192x64xf32>
    %cst_159 = arith.constant dense<0.000000e+00> : vector<2x64xf32>
    %179 = tpu.matmul %175, %178, %cst_159 {dimension_numbers = #tpu.dot_dimension_numbers<[1], [0], [0], [1], [0, 0, 1, 1], [], []>} : vector<2x192xf32>, vector<192x64xf32>, vector<2x64xf32> -> vector<2x64xf32>
    %180 = arith.maximumf %177, %179 : vector<2x64xf32>
    %c0_160 = arith.constant 0 : index
    %c0_161 = arith.constant 0 : index
    %181 = vector.load %arg31[%c0_160, %c0_161] : memref<64x10xf32, #tpu.memory_space<vmem>>, vector<64x10xf32>
    %c0_162 = arith.constant 0 : index
    %c0_163 = arith.constant 0 : index
    %182 = vector.load %arg32[%c0_162, %c0_163] : memref<1x10xf32, #tpu.memory_space<vmem>>, vector<1x10xf32>
    %cst_164 = arith.constant dense<0.000000e+00> : vector<2x10xf32>
    %183 = tpu.matmul %180, %181, %cst_164 {dimension_numbers = #tpu.dot_dimension_numbers<[1], [0], [0], [1], [0, 0, 1, 1], [], []>} : vector<2x64xf32>, vector<64x10xf32>, vector<2x10xf32> -> vector<2x10xf32>
    %184 = vector.broadcast %182 : vector<1x10xf32> to vector<2x10xf32>
    %185 = arith.addf %183, %184 : vector<2x10xf32>
    %c0_165 = arith.constant 0 : index
    %c0_166 = arith.constant 0 : index
    %186 = vector.load %arg33[%c0_165, %c0_166] : memref<2x10xf32, #tpu.memory_space<vmem>>, vector<2x10xf32>
    tpu.vector_store %arg33[%c0_165, %c0_166], %185 {strides = array<i32>} : memref<2x10xf32, #tpu.memory_space<vmem>>, vector<2x10xf32>,
    return
  }
}

</mosaic_0001>

<bundles_post_ra>
// kernel: forward.1
= control target key start
LH: loop header
LB: loop body
LE: loop exit
PB: predicated region body
PF: predicated region fallthrough
CT: control target
= control target key end

     0   :  { %s8545_s6 = smov 1   ;;  %s8546_s10 = smov 2   ;;  %s11924_s0 = inlined_call_operand.smem [shape: u32[34], index: -1, kind: input, shape index: {}] }
   0x1   :  { %s8589_s5 = sld [smem:[%s11924_s0]]   ;;  %s8547_s14 = smov 3  }
   0x2   :  { %s8594_s9 = sld [smem:[%s11924_s0 + %s8545_s6]]   ;;  %s8548_s18 = smov 4  }
   0x3   :  { %s8599_s13 = sld [smem:[%s11924_s0 + %s8546_s10]]   ;;  %s8549_s22 = smov 5  }
   0x4   :  { %s8604_s17 = sld [smem:[%s11924_s0 + %s8547_s14]]   ;;  %s8550_s26 = smov 6  }
   0x5   :  { %s8609_s21 = sld [smem:[%s11924_s0 + %s8548_s18]]   ;;  %s8551_s30 = smov 7  }
   0x6   :  { %s8614_s25 = sld [smem:[%s11924_s0 + %s8549_s22]]   ;;  %s8552_s4 = smov 8  }
   0x7   :  { %s8619_s29 = sld [smem:[%s11924_s0 + %s8550_s26]]   ;;  %s8553_s10 = smov 9  }
   0x8   :  { %s8624_s3 = sld [smem:[%s11924_s0 + %s8551_s30]]   ;;  %s8554_s15 = smov 10  }
   0x9   :  { %s8629_s8 = sld [smem:[%s11924_s0 + %s8552_s4]]   ;;  %s8555_s20 = smov 11  }
   0xa   :  { %s8634_s14 = sld [smem:[%s11924_s0 + %s8553_s10]]   ;;  %s8556_s26 = smov 12  }
   0xb   :  { %s8639_s19 = sld [smem:[%s11924_s0 + %s8554_s15]]   ;;  %s8557_s1 = smov 13  }
   0xc   :  { %s8644_s24 = sld [smem:[%s11924_s0 + %s8555_s20]]   ;;  %s8558_s7 = smov 14  }
   0xd   :  { %s8649_s30 = sld [smem:[%s11924_s0 + %s8556_s26]]   ;;  %s8559_s15 = smov 15  }
   0xe   :  { %s8654_s6 = sld [smem:[%s11924_s0 + %s8557_s1]]   ;;  %s8560_s22 = smov 16  }
   0xf   :  { %s8659_s12 = sld [smem:[%s11924_s0 + %s8558_s7]]   ;;  %s8561_s28 = smov 17  }
  0x10   :  { %s8664_s20 = sld [smem:[%s11924_s0 + %s8559_s15]]   ;;  %s8562_s7 = smov 18  }
  0x11   :  { %s8669_s27 = sld [smem:[%s11924_s0 + %s8560_s22]]   ;;  %s8563_s15 = smov 19  }
  0x12   :  { %s8674_s4 = sld [smem:[%s11924_s0 + %s8561_s28]]   ;;  %s8564_s22 = smov 20  }
  0x13   :  { %s8565_s28 = smov 21  }
  0x15   :  { %12006 = sst [smem:[#allocation5_spill]] %s8659_s12 }
  0x16   :  { %12007 = sst [smem:[#allocation6_spill]] %s8664_s20 }
  0x17   :  { %12008 = sst [smem:[#allocation7_spill]] %s8669_s27 }
  0x18   :  { %12009 = sst [smem:[#allocation8_spill]] %s8674_s4 }
  0x19   :  { %s8679_s12 = sld [smem:[%s11924_s0 + %s8562_s7]]   ;;  %s8566_s7 = smov 22  }
  0x1a   :  { %s8684_s20 = sld [smem:[%s11924_s0 + %s8563_s15]]   ;;  %s8567_s15 = smov 23  }
  0x1b   :  { %s8689_s27 = sld [smem:[%s11924_s0 + %s8564_s22]]   ;;  %s8568_s22 = smov 24  }
  0x1c   :  { %s8694_s4 = sld [smem:[%s11924_s0 + %s8565_s28]]   ;;  %s8569_s28 = smov 25  }
  0x1f   :  { %12010 = sst [smem:[#allocation9_spill]] %s8679_s12 }
  0x20   :  { %12011 = sst [smem:[#allocation10_spill]] %s8684_s20 }
  0x21   :  { %12012 = sst [smem:[#allocation11_spill]] %s8689_s27 }
  0x22   :  { %12013 = sst [smem:[#allocation12_spill]] %s8694_s4 }
  0x23   :  { %s8699_s12 = sld [smem:[%s11924_s0 + %s8566_s7]]   ;;  %s8570_s7 = smov 26  }
  0x24   :  { %s8704_s20 = sld [smem:[%s11924_s0 + %s8567_s15]]   ;;  %s8571_s15 = smov 27  }
  0x25   :  { %s8709_s27 = sld [smem:[%s11924_s0 + %s8568_s22]]   ;;  %s8572_s22 = smov 28  }
  0x26   :  { %s8714_s4 = sld [smem:[%s11924_s0 + %s8569_s28]]   ;;  %s8573_s28 = smov 29  }
  0x29   :  { %12014 = sst [smem:[#allocation13_spill]] %s8699_s12 }
  0x2a   :  { %12015 = sst [smem:[#allocation14_spill]] %s8704_s20 }
  0x2b   :  { %12016 = sst [smem:[#allocation15_spill]] %s8709_s27 }
  0x2c   :  { %12017 = sst [smem:[#allocation16_spill]] %s8714_s4 }
  0x2d   :  { %s8719_s12 = sld [smem:[%s11924_s0 + %s8570_s7]]   ;;  %s8574_s7 = smov 30  }
  0x2e   :  { %s8724_s20 = sld [smem:[%s11924_s0 + %s8571_s15]]   ;;  %s8575_s15 = smov 31  }
  0x2f   :  { %s8729_s27 = sld [smem:[%s11924_s0 + %s8572_s22]]   ;;  %s8576_s22 = smov 32  }
  0x30   :  { %s8734_s4 = sld [smem:[%s11924_s0 + %s8573_s28]]   ;;  %s8577_s28 = smov 33  }
  0x33   :  { %12018 = sst [smem:[#allocation17_spill]] %s8719_s12 }
  0x34   :  { %12019 = sst [smem:[#allocation18_spill]] %s8724_s20 }
  0x35   :  { %12020 = sst [smem:[#allocation19_spill]] %s8729_s27 }
  0x36   :  { %12021 = sst [smem:[#allocation20_spill]] %s8734_s4 }
  0x37   :  { %s8739_s12 = sld [smem:[%s11924_s0 + %s8574_s7]]  }
  0x38   :  { %s8744_s20 = sld [smem:[%s11924_s0 + %s8575_s15]]  }
  0x39   :  { %s8749_s27 = sld [smem:[%s11924_s0 + %s8576_s22]]  }
  0x3a   :  { %s8754_s4 = sld [smem:[%s11924_s0 + %s8577_s28]]  }
  0x3b   :  { %v8757_v0 = vld [vmem:[%s8589_s5 + $0x30] sm:$0xff]  ;;  %v11970_v1 = vmov 0.0   ;;  %v8761_v2 = vld [vmem:[%s8589_s5 + $0x28] sm:$0xff]  ;;  %vm8579_vm0 = vmmov 0   ;;  %v8769_v3 = vld [vmem:[%s8589_s5 + $0x20] sm:$0xff] }
  0x3c   :  { %8298 = vmatprep.subr.mxu1 %v11970_v1  ;;  %8312 = vmatprep.mubr.msk.f32.mxu1 %vm8579_vm0, %v11970_v1  ;;  %v8776_v4 = vld [vmem:[%s8589_s5 + $0x18] sm:$0xff]  ;;  %v8783_v5 = vld [vmem:[%s8589_s5 + $0x10] sm:$0xff]  ;;  %v8790_v6 = vld [vmem:[%s8589_s5 + $0x8] sm:$0xff] }
  0x3d   :  { %8299 = vmatpush3.msra.mxu1 %v8757_v0  ;;  %8263 = vmatprep.subr.mxu0 %v11970_v1  ;;  %v8797_v7 = vld [vmem:[%s8589_s5] sm:$0xff] }
  0x3e   :  { %8300 = vmatprep.subr.mxu1 %v11970_v1  ;;  %8264 = vmatpush3.msra.mxu0 %v8757_v0 }
  0x3f   :  { %8301 = vmatpush3.msra.mxu1 %v8761_v2  ;;  %8265 = vmatprep.subr.mxu0 %v11970_v1 }
  0x40   :  { %8302 = vmatprep.subr.mxu1 %v11970_v1  ;;  %8266 = vmatpush3.msra.mxu0 %v8761_v2 }
  0x41   :  { %8303 = vmatpush3.msra.mxu1 %v8769_v3  ;;  %8267 = vmatprep.subr.mxu0 %v11970_v1 }
  0x42   :  { %8304 = vmatprep.subr.mxu1 %v11970_v1  ;;  %8268 = vmatpush3.msra.mxu0 %v8769_v3 }
  0x43   :  { %8305 = vmatpush3.msra.mxu1 %v8776_v4  ;;  %8269 = vmatprep.subr.mxu0 %v11970_v1 }
  0x44   :  { %8306 = vmatprep.subr.mxu1 %v11970_v1  ;;  %8270 = vmatpush3.msra.mxu0 %v8776_v4 }
  0x45   :  { %8307 = vmatpush3.msra.mxu1 %v8783_v5  ;;  %8271 = vmatprep.subr.mxu0 %v11970_v1 }
  0x46   :  { %8308 = vmatprep.subr.mxu1 %v11970_v1  ;;  %8272 = vmatpush3.msra.mxu0 %v8783_v5 }
  0x47   :  { %72 = vsyncpa [#allocation3], 0  ;;  %8309 = vmatpush3.msra.mxu1 %v8790_v6  ;;  %vm213_vm1 = vcmask 457728   ;;  %v7547_v8 = vld [vmem:[%s8594_s9 + $0x38] sm:$0xff]  ;;  %8273 = vmatprep.subr.mxu0 %v11970_v1  ;;  %v206_v9 = vld [vmem:[%s8594_s9] sm:$0xff]  ;;  %vm519_vm2 = vcmask 1043456  }
  0x48   :  { %8310 = vmatprep.subr.mxu1 %v11970_v1  ;;  %8274 = vmatpush3.msra.mxu0 %v8790_v6  ;;  %v7574_v10 = vld [vmem:[%s8599_s13 + $0xe8] sm:$0xf]  ;;  %v7573_v11 = vld [vmem:[%s8599_s13 + $0xe0] sm:$0xf]  ;;  %v7576_v16 = vld [vmem:[%s8599_s13 + $0xf8] sm:$0xf] }
  0x49   :  { %8311 = vmatpush3.msra.mxu1 %v8797_v7  ;;  %8275 = vmatprep.subr.mxu0 %v11970_v1  ;;  %v7548_v12 = vld [vmem:[%s8594_s9 + $0x40] sm:$0xff]  ;;  %v7570_v13 = vld [vmem:[%s8599_s13 + $0xc8] sm:$0xff]  ;;  %v7575_v17 = vld [vmem:[%s8599_s13 + $0xf0] sm:$0xf]  ;;  %vm497_vm3 = vcmask 228352   ;;  %vm1453_vm4 = vcmask 261120  }
  0x4a   :  { %8313 = vmatmul.mubr.msk.f32.vlgmr.msra.gmra.mxu1 %vm213_vm1, %v7547_v8  ;;  %8276 = vmatpush3.msra.mxu0 %v8797_v7  ;;  %v7569_v14 = vld [vmem:[%s8599_s13 + $0xc0] sm:$0xff]  ;;  %v207_v15 = vld [vmem:[%s8594_s9 + $0x8] sm:$0xff]  ;;  %v7572_v20 = vld [vmem:[%s8599_s13 + $0xd8] sm:$0xff]  ;;  %vm1465_vm5 = vcmask 257024   ;;  %vm1618_vm6 = vcmask 130048   ;;  %vm2361_vm7 = vcmask 424960  }
  0x4b   :  { %8315 = vmatprep.mubr.msk.f32.mxu1 %vm8579_vm0, %v11970_v1  ;;  %8277 = vmatprep.mubr.msk.f32.mxu0 %vm8579_vm0, %v11970_v1  ;;  %v7549_v18 = vld [vmem:[%s8594_s9 + $0x48] sm:$0xff]  ;;  %v208_v21 = vld [vmem:[%s8594_s9 + $0x10] sm:$0xff]  ;;  %v7565_v23 = vld [vmem:[%s8599_s13 + $0xa0] sm:$0xff]  ;;  %vm3427_vm8 = vcmask 1041408   ;;  %vm3417_vm9 = vcmask 211968   ;;  %vm3770_vm10 = vcmask 654336  }
  0x4c   :  { %8278 = vmatmul.mubr.msk.f32.vlgmr.msra.gmra.mxu0 %vm213_vm1, %v206_v9  ;;  %7577 = vmatprep.subr.msk.mxu0 %vm519_vm2, %v7574_v10  ;;  %v7566_v19 = vld [vmem:[%s8599_s13 + $0xa8] sm:$0xff]  ;;  %v7571_v22 = vld [vmem:[%s8599_s13 + $0xd0] sm:$0xff]  ;;  %v7568_v25 = vld [vmem:[%s8599_s13 + $0xb8] sm:$0xff]  ;;  %vm4490_vm11 = vcmask 785408   ;;  %vm4472_vm12 = vcmask 1045504   ;;  %vm4494_vm13 = vcmask 783360  }
  0x4d   :  { %8280 = vmatprep.mubr.msk.f32.mxu0 %vm8579_vm0, %v11970_v1  ;;  %7578 = vmatpush1.msk.msra.mxu0 %vm519_vm2, %v7573_v11  ;;  %v7550_v24 = vld [vmem:[%s8594_s9 + $0x50] sm:$0xff]  ;;  %v209_v27 = vld [vmem:[%s8594_s9 + $0x18] sm:$0xff]  ;;  %v7562_v28 = vld [vmem:[%s8599_s13 + $0x88] sm:$0xff]  ;;  %s12151_s0 = sld [smem:[#allocation5_spill]]  ;;  %vm5224_vm14 = vcmask 179200   ;;  %vm6093_vm15 = vcmask 80896  }
  0x4e   :  { %8316 = vmatmul.mubr.msk.f32.gmra.mxu1 %vm213_vm1, %v7548_v12  ;;  %558 = vmatprep.subr.mxu0 %v7570_v13  ;;  %v7567_v26 = vld [vmem:[%s8599_s13 + $0xb0] sm:$0xff]  ;;  %v7564_v29 = vld [vmem:[%s8599_s13 + $0x98] sm:$0xff]  ;;  %v210_v31 = vld [vmem:[%s8594_s9 + $0x20] sm:$0xff]  ;;  %s12164_s5 = sld [smem:[#allocation8_spill]] }
  0x4f   :  { %8318 = vmatprep.mubr.msk.f32.mxu1 %vm8579_vm0, %v11970_v1  ;;  %559 = vmatpush1.msra.mxu0 %v7569_v14  ;;  %v7551_v30 = vld [vmem:[%s8594_s9 + $0x58] sm:$0xff]  ;;  %v7552_v32 = vld [vmem:[%s8594_s9 + $0x60] sm:$0xff]  ;;  %v211_v33 = vld [vmem:[%s8594_s9 + $0x28] sm:$0xff]  ;;  %s12180_s7 = sld [smem:[#allocation20_spill]] }
  0x50   :  { %8281 = vmatmul.mubr.msk.f32.gmra.mxu0 %vm213_vm1, %v207_v15  ;;  %7586 = vmatprep.subr.msk.mxu1 %vm519_vm2, %v7576_v16  ;;  %v7553_v34 = vld [vmem:[%s8594_s9 + $0x68] sm:$0xf]  ;;  %v212_v35 = vld [vmem:[%s8594_s9 + $0x30] sm:$0xf]  ;;  %v7561_v36 = vld [vmem:[%s8599_s13 + $0x80] sm:$0xff] }
  0x51   :  { %8283 = vmatprep.mubr.msk.f32.mxu0 %vm8579_vm0, %v11970_v1  ;;  %7587 = vmatpush1.msk.msra.mxu1 %vm519_vm2, %v7575_v17  ;;  %v7563_v37 = vld [vmem:[%s8599_s13 + $0x90] sm:$0xff]  ;;  %v348_v38 = vld [vmem:[%s8599_s13 + $0x68] sm:$0xf]  ;;  %v350_v39 = vld [vmem:[%s8599_s13 + $0x78] sm:$0xf] }
  0x52   :  { %8319 = vmatmul.mubr.msk.f32.gmra.mxu1 %vm213_vm1, %v7549_v18  ;;  %560 = vmatprep.subr.mxu0 %v7566_v19  ;;  %v347_v41 = vld [vmem:[%s8599_s13 + $0x60] sm:$0xf]  ;;  %v349_v42 = vld [vmem:[%s8599_s13 + $0x70] sm:$0xf]  ;;  %v344_v43 = vld [vmem:[%s8599_s13 + $0x48] sm:$0xff] }
  0x53   :  { %8321 = vmatprep.mubr.msk.f32.mxu1 %vm8579_vm0, %v11970_v1  ;;  %665 = vmatprep.subr.mxu1 %v7572_v20  ;;  %v346_v44 = vld [vmem:[%s8599_s13 + $0x58] sm:$0xff]  ;;  %v343_v48 = vld [vmem:[%s8599_s13 + $0x40] sm:$0xff]  ;;  %v345_v49 = vld [vmem:[%s8599_s13 + $0x50] sm:$0xff] }
  0x54   :  { %8284 = vmatmul.mubr.msk.f32.gmra.mxu0 %vm213_vm1, %v208_v21  ;;  %666 = vmatpush1.msra.mxu1 %v7571_v22  ;;  %v340_v51 = vld [vmem:[%s8599_s13 + $0x28] sm:$0xff]  ;;  %v342_v52 = vld [vmem:[%s8599_s13 + $0x38] sm:$0xff]  ;;  %v339_v56 = vld [vmem:[%s8599_s13 + $0x20] sm:$0xff] }
  0x55   :  { %8286 = vmatprep.mubr.msk.f32.mxu0 %vm8579_vm0, %v11970_v1  ;;  %561 = vmatpush1.msra.mxu0 %v7565_v23  ;;  %v341_v57 = vld [vmem:[%s8599_s13 + $0x30] sm:$0xff]  ;;  %v336_v59 = vld [vmem:[%s8599_s13 + $0x8] sm:$0xff]  ;;  %v338_v60 = vld [vmem:[%s8599_s13 + $0x18] sm:$0xff] }
  0x56   :  { %8322 = vmatmul.mubr.msk.f32.gmra.mxu1 %vm213_vm1, %v7550_v24  ;;  %667 = vmatprep.subr.mxu1 %v7568_v25  ;;  %v335_v8 = vld [vmem:[%s8599_s13] sm:$0xff]  ;;  %v337_v9 = vld [vmem:[%s8599_s13 + $0x10] sm:$0xff] }
  0x57   :  { %8324 = vmatprep.mubr.msk.f32.mxu1 %vm8579_vm0, %v11970_v1  ;;  %668 = vmatpush1.msra.mxu1 %v7567_v26  ;;  %v7640_v26 = vld [vmem:[%s8599_s13 + $0x168] sm:$0xf] }
  0x58   :  { %8287 = vmatmul.mubr.msk.f32.gmra.mxu0 %vm213_vm1, %v209_v27  ;;  %562 = vmatprep.subr.mxu0 %v7562_v28  ;;  %v7639_v27 = vld [vmem:[%s8599_s13 + $0x160] sm:$0xf]  ;;  %v7642_v28 = vld [vmem:[%s8599_s13 + $0x178] sm:$0xf] }
  0x59   :  { %8289 = vmatprep.mubr.msk.f32.mxu0 %vm8579_vm0, %v11970_v1  ;;  %669 = vmatprep.subr.mxu1 %v7564_v29  ;;  %v7641_v29 = vld [vmem:[%s8599_s13 + $0x170] sm:$0xf] }
  0x5a   :  { %8325 = vmatmul.mubr.msk.f32.gmra.mxu1 %vm213_vm1, %v7551_v30  ;;  %563 = vmatpush1.msra.mxu0 %v7561_v36  ;;  %v7636_v30 = vld [vmem:[%s8599_s13 + $0x148] sm:$0xff]  ;;  %v7631_v36 = vld [vmem:[%s8599_s13 + $0x120] sm:$0xff] }
  0x5b   :  { %8327 = vmatprep.mubr.msk.f32.mxu1 %vm8579_vm0, %v11970_v1  ;;  %670 = vmatpush1.msra.mxu1 %v7563_v37  ;;  %v7633_v37 = vld [vmem:[%s8599_s13 + $0x130] sm:$0xff] }
  0x5c   :  { %8290 = vmatmul.mubr.msk.f32.gmra.mxu0 %vm213_vm1, %v210_v31  ;;  %7595 = vmatprep.subr.msk.mxu0 %vm519_vm2, %v348_v38  ;;  %v7635_v31 = vld [vmem:[%s8599_s13 + $0x140] sm:$0xff]  ;;  %v7628_v38 = vld [vmem:[%s8599_s13 + $0x108] sm:$0xff] }
  0x5d   :  { %8292 = vmatprep.mubr.msk.f32.mxu0 %vm8579_vm0, %v11970_v1  ;;  %7604 = vmatprep.subr.msk.mxu1 %vm519_vm2, %v350_v39  ;;  %v7630_v39 = vld [vmem:[%s8599_s13 + $0x118] sm:$0xff] }
  0x5e   :  { %8328 = vmatmul.mubr.msk.f32.gmra.mxu1 %vm213_vm1, %v7552_v32  ;;  %v7638_v32 = vld [vmem:[%s8599_s13 + $0x158] sm:$0xff] }
  0x5f   :  { %8330 = vmatprep.mubr.msk.f32.mxu1 %vm8579_vm0, %v11970_v1 }
  0x60   :  { %8293 = vmatmul.mubr.msk.f32.gmra.mxu0 %vm213_vm1, %v211_v33  ;;  %v7637_v33 = vld [vmem:[%s8599_s13 + $0x150] sm:$0xff] }
  0x61   :  { %8295 = vmatprep.mubr.msk.f32.mxu0 %vm8579_vm0, %v11970_v1 }
  0x62   :  { %8331 = vmatmul.mubr.msk.f32.gmra.mxu1 %vm213_vm1, %v7553_v34  ;;  %v7632_v34 = vld [vmem:[%s8599_s13 + $0x128] sm:$0xff] }
  0x63   :  { %703 = vmatprep.mubr.f32.mxu1 %v11970_v1 }
  0x64   :  { %8296 = vmatmul.mubr.msk.f32.gmra.mxu0 %vm213_vm1, %v212_v35  ;;  %v7634_v35 = vld [vmem:[%s8599_s13 + $0x138] sm:$0xff] }
  0x65   :  { %596 = vmatprep.mubr.f32.mxu0 %v11970_v1 }
 0x10a   :  { %v446_v40 = vpop.f32.mrf.mxu1 }
 0x10b   :  { %7579 = vmatmul.mubr.msk.f32.vlgmr.msra.gmra.mxu0 %vm497_vm3, %v446_v40  ;;  %7588 = vmatmul.mubr.msk.f32.vlgmr.msra.gmra.mxu1 %vm497_vm3, %v446_v40  ;;  %v7627_v40 = vld [vmem:[%s8599_s13 + $0x100] sm:$0xff] }
 0x10c   :  { %v8314_v45 = vpop.f32.mrf.mxu1  ;;  %602 = vmatprep.mubr.f32.mxu0 %v11970_v1  ;;  %709 = vmatprep.mubr.f32.mxu1 %v11970_v1  ;;  %v8895_v46 = vpop.f32.mrf.mxu0 }
 0x10d   :  { %7596 = vmatpush1.msk.msra.mxu0 %vm519_vm2, %v347_v41  ;;  %7605 = vmatpush1.msk.msra.mxu1 %vm519_vm2, %v349_v42  ;;  %v7629_v41 = vld [vmem:[%s8599_s13 + $0x110] sm:$0xff]  ;;  %s12166_s13 = sld [smem:[#allocation7_spill]] }
 0x10e   :  { %v451_v47 = vpop.f32.mrf.mxu1  ;;  %805 = vmatprep.subr.mxu0 %v344_v43  ;;  %912 = vmatprep.subr.mxu1 %v346_v44  ;;  %v8279_v50 = vpop.f32.mrf.mxu0 }
 0x10f   :  { %7580 = vmatmul.mubr.msk.f32.gmra.mxu0 %vm497_vm3, %v451_v47  ;;  %7589 = vmatmul.mubr.msk.f32.gmra.mxu1 %vm497_vm3, %v451_v47 }
 0x110   :  { %v8317_v53 = vpop.f32.mrf.mxu1  ;;  %608 = vmatprep.mubr.f32.mxu0 %v11970_v1  ;;  %715 = vmatprep.mubr.f32.mxu1 %v11970_v1  ;;  %v8907_v54 = vpop.f32.mrf.mxu0 }
 0x111   :  { %806 = vmatpush1.msra.mxu0 %v343_v48  ;;  %913 = vmatpush1.msra.mxu1 %v345_v49 }
 0x112   :  { %v456_v55 = vpop.f32.mrf.mxu1  ;;  %807 = vmatprep.subr.mxu0 %v340_v51  ;;  %914 = vmatprep.subr.mxu1 %v342_v52  ;;  %v8282_v58 = vpop.f32.mrf.mxu0 }
 0x113   :  { %7581 = vmatmul.mubr.msk.f32.gmra.mxu0 %vm497_vm3, %v456_v55  ;;  %7590 = vmatmul.mubr.msk.f32.gmra.mxu1 %vm497_vm3, %v456_v55 }
 0x114   :  { %v8320_v61 = vpop.f32.mrf.mxu1  ;;  %614 = vmatprep.mubr.f32.mxu0 %v11970_v1  ;;  %721 = vmatprep.mubr.f32.mxu1 %v11970_v1  ;;  %v311_v62 = vpop.f32.mrf.mxu0 }
 0x115   :  { %808 = vmatpush1.msra.mxu0 %v339_v56  ;;  %915 = vmatpush1.msra.mxu1 %v341_v57 }
 0x116   :  { %v461_v63 = vpop.f32.mrf.mxu1  ;;  %809 = vmatprep.subr.mxu0 %v336_v59  ;;  %916 = vmatprep.subr.mxu1 %v338_v60  ;;  %v8285_v10 = vpop.f32.mrf.mxu0 }
 0x117   :  { %7582 = vmatmul.mubr.msk.f32.gmra.mxu0 %vm497_vm3, %v461_v63  ;;  %7591 = vmatmul.mubr.msk.f32.gmra.mxu1 %vm497_vm3, %v461_v63 }
 0x118   :  { %v8323_v11 = vpop.f32.mrf.mxu1  ;;  %620 = vmatprep.mubr.f32.mxu0 %v11970_v1  ;;  %727 = vmatprep.mubr.f32.mxu1 %v11970_v1  ;;  %v316_v12 = vpop.f32.mrf.mxu0 }
 0x119   :  { %810 = vmatpush1.msra.mxu0 %v335_v8  ;;  %917 = vmatpush1.msra.mxu1 %v337_v9 }
 0x11a   :  { %v466_v13 = vpop.f32.mrf.mxu1  ;;  %8333 = vmatprep.subr.mxu0 %v11970_v1  ;;  %v8288_v14 = vpop.f32.mrf.mxu0  ;;  %7643 = vmatprep.subr.msk.mxu1 %vm519_vm2, %v7640_v26 }
 0x11b   :  { %7583 = vmatmul.mubr.msk.f32.gmra.mxu0 %vm497_vm3, %v466_v13  ;;  %7592 = vmatmul.mubr.msk.f32.gmra.mxu1 %vm497_vm3, %v466_v13 }
 0x11c   :  { %v8326_v15 = vpop.f32.mrf.mxu1  ;;  %626 = vmatprep.mubr.f32.mxu0 %v11970_v1  ;;  %733 = vmatprep.mubr.f32.mxu1 %v11970_v1  ;;  %v321_v16 = vpop.f32.mrf.mxu0 }
 0x11e   :  { %v471_v17 = vpop.f32.mrf.mxu1  ;;  %v8291_v18 = vpop.f32.mrf.mxu0 }
 0x11f   :  { %7584 = vmatmul.mubr.msk.f32.gmra.mxu0 %vm497_vm3, %v471_v17  ;;  %7593 = vmatmul.mubr.msk.f32.gmra.mxu1 %vm497_vm3, %v471_v17 }
 0x120   :  { %v8329_v19 = vpop.f32.mrf.mxu1  ;;  %632 = vmatprep.mubr.f32.mxu0 %v11970_v1  ;;  %739 = vmatprep.mubr.f32.mxu1 %v11970_v1  ;;  %v326_v20 = vpop.f32.mrf.mxu0 }
 0x122   :  { %v476_v21 = vpop.f32.mrf.mxu1  ;;  %v8294_v22 = vpop.f32.mrf.mxu0 }
 0x123   :  { %7585 = vmatmul.mubr.msk.f32.gmra.mxu0 %vm497_vm3, %v476_v21  ;;  %7594 = vmatmul.mubr.msk.f32.gmra.mxu1 %vm497_vm3, %v476_v21 }
 0x124   :  { %v8332_v23 = vpop.f32.mrf.mxu1  ;;  %843 = vmatprep.mubr.f32.mxu0 %v11970_v1  ;;  %950 = vmatprep.mubr.f32.mxu1 %v11970_v1  ;;  %v331_v24 = vpop.f32.mrf.mxu0 }
 0x126   :  { %v8297_v25 = vpop.f32.mrf.mxu0 }
 0x127   :  { %7597 = vmatmul.mubr.msk.f32.vlgmr.msra.gmra.mxu0 %vm497_vm3, %v8895_v46  ;;  %7606 = vmatmul.mubr.msk.f32.vlgmr.msra.gmra.mxu1 %vm497_vm3, %v8895_v46 }
 0x128   :  { %849 = vmatprep.mubr.f32.mxu0 %v11970_v1  ;;  %956 = vmatprep.mubr.f32.mxu1 %v11970_v1 }
 0x129   :  { %8334 = vmatpush3.msra.mxu0 %v8757_v0  ;;  %v7613_v0 = vld [vmem:[%s8594_s9 + $0x70] sm:$0xff]  ;;  %7644 = vmatpush1.msk.msra.mxu1 %vm519_vm2, %v7639_v27 }
 0x12a   :  { %8335 = vmatprep.subr.mxu0 %v11970_v1  ;;  %1198 = vmatprep.subr.mxu1 %v7636_v30  ;;  %v9109_v30 = vld [vmem:[%s8604_s17 + $0x168] sm:$0xff] }
 0x12b   :  { %7598 = vmatmul.mubr.msk.f32.gmra.mxu0 %vm497_vm3, %v8907_v54  ;;  %7607 = vmatmul.mubr.msk.f32.gmra.mxu1 %vm497_vm3, %v8907_v54  ;;  %12027 = vst [vmem:[#allocation26_spill] sm:$0xff] %v9109_v30 }
 0x12c   :  { %855 = vmatprep.mubr.f32.mxu0 %v11970_v1  ;;  %962 = vmatprep.mubr.f32.mxu1 %v11970_v1 }
 0x12d   :  { %8336 = vmatpush3.msra.mxu0 %v8761_v2  ;;  %v7614_v2 = vld [vmem:[%s8594_s9 + $0x78] sm:$0xff]  ;;  %1199 = vmatpush1.msra.mxu1 %v7635_v31  ;;  %v9114_v31 = vld [vmem:[%s8604_s17 + $0x160] sm:$0xff] }
 0x12e   :  { %8337 = vmatprep.subr.mxu0 %v11970_v1  ;;  %1200 = vmatprep.subr.mxu1 %v7632_v34  ;;  %12028 = vst [vmem:[#allocation27_spill] sm:$0xff] %v9114_v31  ;;  %v9126_v34 = vld [vmem:[%s8604_s17 + $0x158] sm:$0xff] }
 0x12f   :  { %7599 = vmatmul.mubr.msk.f32.gmra.mxu0 %vm497_vm3, %v311_v62  ;;  %7608 = vmatmul.mubr.msk.f32.gmra.mxu1 %vm497_vm3, %v311_v62  ;;  %12031 = vst [vmem:[#allocation30_spill] sm:$0xff] %v9126_v34 }
 0x130   :  { %861 = vmatprep.mubr.f32.mxu0 %v11970_v1  ;;  %968 = vmatprep.mubr.f32.mxu1 %v11970_v1 }
 0x131   :  { %8338 = vmatpush3.msra.mxu0 %v8769_v3  ;;  %v7615_v3 = vld [vmem:[%s8594_s9 + $0x80] sm:$0xff]  ;;  %1201 = vmatpush1.msra.mxu1 %v7631_v36  ;;  %v9136_v36 = vld [vmem:[%s8604_s17 + $0x70] sm:$0xff] }
 0x132   :  { %8339 = vmatprep.subr.mxu0 %v11970_v1  ;;  %1202 = vmatprep.subr.mxu1 %v7628_v38  ;;  %12033 = vst [vmem:[#allocation32_spill] sm:$0xff] %v9136_v36  ;;  %v9144_v38 = vld [vmem:[%s8604_s17 + $0xe8] sm:$0xff] }
 0x133   :  { %7600 = vmatmul.mubr.msk.f32.gmra.mxu0 %vm497_vm3, %v316_v12  ;;  %7609 = vmatmul.mubr.msk.f32.gmra.mxu1 %vm497_vm3, %v316_v12  ;;  %12035 = vst [vmem:[#allocation34_spill] sm:$0xff] %v9144_v38 }
 0x134   :  { %867 = vmatprep.mubr.f32.mxu0 %v11970_v1  ;;  %974 = vmatprep.mubr.f32.mxu1 %v11970_v1 }
 0x135   :  { %8340 = vmatpush3.msra.mxu0 %v8776_v4  ;;  %v7616_v4 = vld [vmem:[%s8594_s9 + $0x88] sm:$0xff]  ;;  %1203 = vmatpush1.msra.mxu1 %v7627_v40 }
 0x136   :  { %8341 = vmatprep.subr.mxu0 %v11970_v1  ;;  %v9152_v40 = vld [vmem:[%s8604_s17 + $0x148] sm:$0xff] }
 0x137   :  { %7601 = vmatmul.mubr.msk.f32.gmra.mxu0 %vm497_vm3, %v321_v16  ;;  %7610 = vmatmul.mubr.msk.f32.gmra.mxu1 %vm497_vm3, %v321_v16  ;;  %12037 = vst [vmem:[#allocation36_spill] sm:$0xff] %v9152_v40 }
 0x138   :  { %873 = vmatprep.mubr.f32.mxu0 %v11970_v1  ;;  %980 = vmatprep.mubr.f32.mxu1 %v11970_v1 }
 0x139   :  { %8342 = vmatpush3.msra.mxu0 %v8783_v5  ;;  %v7617_v5 = vld [vmem:[%s8594_s9 + $0x90] sm:$0xff] }
 0x13a   :  { %8343 = vmatprep.subr.mxu0 %v11970_v1 }
 0x13b   :  { %7602 = vmatmul.mubr.msk.f32.gmra.mxu0 %vm497_vm3, %v326_v20  ;;  %7611 = vmatmul.mubr.msk.f32.gmra.mxu1 %vm497_vm3, %v326_v20 }
 0x13c   :  { %879 = vmatprep.mubr.f32.mxu0 %v11970_v1  ;;  %986 = vmatprep.mubr.f32.mxu1 %v11970_v1 }
 0x13d   :  { %8344 = vmatpush3.msra.mxu0 %v8790_v6  ;;  %v7618_v6 = vld [vmem:[%s8594_s9 + $0x98] sm:$0xff] }
 0x13e   :  { %8345 = vmatprep.subr.mxu0 %v11970_v1 }
 0x13f   :  { %7603 = vmatmul.mubr.msk.f32.gmra.mxu0 %vm497_vm3, %v331_v24  ;;  %7612 = vmatmul.mubr.msk.f32.gmra.mxu1 %vm497_vm3, %v331_v24 }
 0x140   :  { %8346 = vmatpush3.msra.mxu0 %v8797_v7  ;;  %8347 = vmatprep.mubr.msk.f32.mxu0 %vm8579_vm0, %v11970_v1  ;;  %v7619_v7 = vld [vmem:[%s8594_s9 + $0xa0] sm:$0xf]  ;;  %s12165_s9 = sld [smem:[#allocation6_spill]] }
 0x141   :  { %1236 = vmatprep.mubr.f32.mxu1 %v11970_v1  ;;  %7652 = vmatprep.subr.msk.mxu0 %vm519_vm2, %v7642_v28  ;;  %v9099_v28 = vld [vmem:[%s8604_s17 + $0x178] sm:$0xff] }
 0x142   :  { %12025 = vst [vmem:[#allocation24_spill] sm:$0xff] %v9099_v28 }
 0x143   :  { %8348 = vmatmul.mubr.msk.f32.vlgmr.msra.gmra.mxu0 %vm213_vm1, %v7613_v0 }
 0x144   :  { %8350 = vmatprep.mubr.msk.f32.mxu0 %vm8579_vm0, %v11970_v1  ;;  %7653 = vmatpush1.msk.msra.mxu0 %vm519_vm2, %v7641_v29  ;;  %v9104_v29 = vld [vmem:[%s8604_s17 + $0x170] sm:$0xff] }
 0x145   :  { %1305 = vmatprep.subr.mxu0 %v7638_v32  ;;  %12026 = vst [vmem:[#allocation25_spill] sm:$0xff] %v9104_v29  ;;  %v9118_v32 = vld [vmem:[%s8604_s17 + $0xf8] sm:$0xff] }
 0x146   :  { %1306 = vmatpush1.msra.mxu0 %v7637_v33  ;;  %12029 = vst [vmem:[#allocation28_spill] sm:$0xff] %v9118_v32  ;;  %8068 = vmatprep.subr.mxu1 %v9118_v32  ;;  %v9123_v33 = vld [vmem:[%s8604_s17 + $0x78] sm:$0xff] }
 0x147   :  { %8351 = vmatmul.mubr.msk.f32.gmra.mxu0 %vm213_vm1, %v7614_v2  ;;  %1307 = vmatprep.subr.mxu0 %v7634_v35  ;;  %12030 = vst [vmem:[#allocation29_spill] sm:$0xff] %v9123_v33  ;;  %v9131_v35 = vld [vmem:[%s8604_s17 + $0xf0] sm:$0xff] }
 0x148   :  { %8353 = vmatprep.mubr.msk.f32.mxu0 %vm8579_vm0, %v11970_v1  ;;  %1308 = vmatpush1.msra.mxu0 %v7633_v37  ;;  %12032 = vst [vmem:[#allocation31_spill] sm:$0xff] %v9131_v35  ;;  %v9139_v37 = vld [vmem:[%s8604_s17 + $0x150] sm:$0xff] }
 0x149   :  { %1309 = vmatprep.subr.mxu0 %v7630_v39  ;;  %12034 = vst [vmem:[#allocation33_spill] sm:$0xff] %v9139_v37  ;;  %v9149_v39 = vld [vmem:[%s8604_s17 + $0x68] sm:$0xff] }
 0x14a   :  { %1310 = vmatpush1.msra.mxu0 %v7629_v41  ;;  %12036 = vst [vmem:[#allocation35_spill] sm:$0xff] %v9149_v39 }
 0x14b   :  { %8354 = vmatmul.mubr.msk.f32.gmra.mxu0 %vm213_vm1, %v7615_v3  ;;  %1547 = vmatprep.subr.mxu0 %v11970_v1 }
 0x14c   :  { %8356 = vmatprep.mubr.msk.f32.mxu0 %vm8579_vm0, %v11970_v1 }
 0x14f   :  { %8357 = vmatmul.mubr.msk.f32.gmra.mxu0 %vm213_vm1, %v7616_v4 }
 0x150   :  { %8359 = vmatprep.mubr.msk.f32.mxu0 %vm8579_vm0, %v11970_v1 }
 0x153   :  { %8360 = vmatmul.mubr.msk.f32.gmra.mxu0 %vm213_vm1, %v7617_v5 }
 0x154   :  { %8362 = vmatprep.mubr.msk.f32.mxu0 %vm8579_vm0, %v11970_v1 }
 0x157   :  { %8363 = vmatmul.mubr.msk.f32.gmra.mxu0 %vm213_vm1, %v7618_v6 }
 0x158   :  { %8365 = vmatprep.mubr.msk.f32.mxu0 %vm8579_vm0, %v11970_v1 }
 0x15b   :  { %8366 = vmatmul.mubr.msk.f32.gmra.mxu0 %vm213_vm1, %v7619_v7  ;;  %vm6679_vm1 = vcmask 521216  }
 0x15c   :  { %1343 = vmatprep.mubr.f32.mxu0 %v11970_v1 }
 0x1cb   :  { %v598_v42 = vpop.f32.mrf.mxu0  ;;  %v9154_v41 = vpop.f32.mrf.mxu1 }
 0x1cd   :  { %v9030_v43 = vpop.f32.mrf.mxu0 }
 0x1cf   :  { %v604_v44 = vpop.f32.mrf.mxu0 }
 0x1d1   :  { %v9032_v45 = vpop.f32.mrf.mxu0 }
 0x1d3   :  { %v610_v46 = vpop.f32.mrf.mxu0 }
 0x1d5   :  { %v9034_v47 = vpop.f32.mrf.mxu0 }
 0x1d7   :  { %v616_v48 = vpop.f32.mrf.mxu0 }
 0x1d9   :  { %v9036_v49 = vpop.f32.mrf.mxu0 }
 0x1db   :  { %v622_v50 = vpop.f32.mrf.mxu0 }
 0x1dd   :  { %v9038_v51 = vpop.f32.mrf.mxu0 }
 0x1df   :  { %v628_v52 = vpop.f32.mrf.mxu0 }
 0x1e1   :  { %v9040_v53 = vpop.f32.mrf.mxu0 }
 0x1e3   :  { %v634_v54 = vpop.f32.mrf.mxu0 }
 0x1e5   :  { %v9042_v55 = vpop.f32.mrf.mxu0 }
 0x1e7   :  { %v845_v56 = vpop.f32.mrf.mxu0 }
 0x1e8   :  { %v9044_v57 = vadd.f32 %v845_v56, %v598_v42  ;;  %v9159_v42 = vld [vmem:[%s8604_s17 + $0xe0] sm:$0xff]  ;;  %v9187_v56 = vld [vmem:[%s8604_s17 + $0xd0] sm:$0xff] }
 0x1e9   :  { %v9046_v58 = vpop.f32.mrf.mxu0  ;;  %12038 = vst [vmem:[#allocation37_spill] sm:$0xff] %v9159_v42  ;;  %12044 = vst [vmem:[#allocation43_spill] sm:$0xff] %v9187_v56 }
 0x1eb   :  { %v851_v59 = vpop.f32.mrf.mxu0 }
 0x1ec   :  { %v9048_v60 = vadd.f32 %v851_v59, %v604_v44  ;;  %v9164_v44 = vld [vmem:[%s8604_s17 + $0x60] sm:$0xff]  ;;  %v9192_v59 = vld [vmem:[%s8604_s17 + $0x50] sm:$0xff] }
 0x1ed   :  { %v9050_v61 = vpop.f32.mrf.mxu0  ;;  %12039 = vst [vmem:[#allocation38_spill] sm:$0xff] %v9164_v44  ;;  %12045 = vst [vmem:[#allocation44_spill] sm:$0xff] %v9192_v59 }
 0x1ef   :  { %v857_v62 = vpop.f32.mrf.mxu0 }
 0x1f0   :  { %v9052_v63 = vadd.f32 %v857_v62, %v610_v46  ;;  %v9167_v46 = vld [vmem:[%s8604_s17 + $0x140] sm:$0xff]  ;;  %v9195_v62 = vld [vmem:[%s8604_s17 + $0x130] sm:$0xff] }
 0x1f1   :  { %v9054_v8 = vpop.f32.mrf.mxu0  ;;  %12040 = vst [vmem:[#allocation39_spill] sm:$0xff] %v9167_v46  ;;  %12046 = vst [vmem:[#allocation45_spill] sm:$0xff] %v9195_v62 }
 0x1f3   :  { %v863_v9 = vpop.f32.mrf.mxu0 }
 0x1f4   :  { %v9056_v10 = vadd.f32 %v863_v9, %v616_v48  ;;  %v9172_v48 = vld [vmem:[%s8604_s17 + $0xd8] sm:$0xff]  ;;  %v9200_v9 = vld [vmem:[%s8604_s17 + $0xc8] sm:$0xff] }
 0x1f5   :  { %v9058_v11 = vpop.f32.mrf.mxu0  ;;  %12041 = vst [vmem:[#allocation40_spill] sm:$0xff] %v9172_v48  ;;  %12047 = vst [vmem:[#allocation46_spill] sm:$0xff] %v9200_v9 }
 0x1f7   :  { %v869_v12 = vpop.f32.mrf.mxu0 }
 0x1f8   :  { %v9060_v13 = vadd.f32 %v869_v12, %v622_v50  ;;  %v9177_v50 = vld [vmem:[%s8604_s17 + $0x58] sm:$0xff]  ;;  %v9205_v12 = vld [vmem:[%s8604_s17 + $0x48] sm:$0xff] }
 0x1f9   :  { %v9062_v14 = vpop.f32.mrf.mxu0  ;;  %12042 = vst [vmem:[#allocation41_spill] sm:$0xff] %v9177_v50  ;;  %12048 = vst [vmem:[#allocation47_spill] sm:$0xff] %v9205_v12 }
 0x1fa   :  { %12022 = vst [vmem:[#allocation21_spill] sm:$0xff] %v9060_v13 }
 0x1fb   :  { %v875_v15 = vpop.f32.mrf.mxu0 }
 0x1fc   :  { %v9064_v16 = vadd.f32 %v875_v15, %v628_v52  ;;  %v9180_v52 = vld [vmem:[%s8604_s17 + $0x138] sm:$0xff]  ;;  %v9208_v15 = vld [vmem:[%s8604_s17 + $0x128] sm:$0xff] }
 0x1fd   :  { %v9066_v17 = vpop.f32.mrf.mxu0  ;;  %12043 = vst [vmem:[#allocation42_spill] sm:$0xff] %v9180_v52  ;;  %12049 = vst [vmem:[#allocation48_spill] sm:$0xff] %v9208_v15 }
 0x1fe   :  { %12023 = vst [vmem:[#allocation22_spill] sm:$0xff] %v9064_v16 }
 0x1ff   :  { %v881_v18 = vpop.f32.mrf.mxu0 }
 0x200   :  { %v9068_v19 = vadd.f32 %v881_v18, %v634_v54  ;;  %v9182_v54 = vpop.f32.mrf.mxu1 }
 0x201   :  { %v9070_v20 = vpop.f32.mrf.mxu0 }
 0x202   :  { %12024 = vst [vmem:[#allocation23_spill] sm:$0xff] %v9068_v19  ;;  %v9210_v18 = vpop.f32.mrf.mxu1 }
 0x203   :  { %v1088_v21 = vpop.f32.mrf.mxu0 }
 0x204   :  { %7645 = vmatmul.mubr.msk.f32.vlgmr.msra.gmra.mxu1 %vm497_vm3, %v1088_v21  ;;  %7654 = vmatmul.mubr.msk.f32.vlgmr.msra.gmra.mxu0 %vm497_vm3, %v1088_v21  ;;  %v9215_v21 = vld [vmem:[%s8604_s17 + $0xc0] sm:$0xff] }
 0x205   :  { %v8349_v22 = vpop.f32.mrf.mxu0  ;;  %1242 = vmatprep.mubr.f32.mxu1 %v11970_v1  ;;  %1349 = vmatprep.mubr.f32.mxu0 %v11970_v1  ;;  %12050 = vst [vmem:[#allocation49_spill] sm:$0xff] %v9215_v21 }
 0x206   :  { %1548 = vmatpush1.msra.mxu0 %v9099_v28  ;;  %8069 = vmatpush3.msra.mxu1 %v9123_v33  ;;  %v9220_v22 = vld [vmem:[%s8604_s17 + $0x40] sm:$0xff]  ;;  %v854_v28 = vadd.f32 %v9050_v61, %v9032_v45  ;;  %v872_v45 = vadd.f32 %v9062_v14, %v9038_v51 }
 0x207   :  { %v1093_v23 = vpop.f32.mrf.mxu0  ;;  %1549 = vmatprep.subr.mxu0 %v11970_v1  ;;  %8070 = vmatprep.subr.mxu1 %v9131_v35  ;;  %12051 = vst [vmem:[#allocation50_spill] sm:$0xff] %v9220_v22 }
 0x208   :  { %7646 = vmatmul.mubr.msk.f32.gmra.mxu1 %vm497_vm3, %v1093_v23  ;;  %7655 = vmatmul.mubr.msk.f32.gmra.mxu0 %vm497_vm3, %v1093_v23  ;;  %v9223_v23 = vld [vmem:[%s8604_s17 + $0x120] sm:$0xff] }
 0x209   :  { %v8352_v24 = vpop.f32.mrf.mxu0  ;;  %1248 = vmatprep.mubr.f32.mxu1 %v11970_v1  ;;  %1355 = vmatprep.mubr.f32.mxu0 %v11970_v1  ;;  %12052 = vst [vmem:[#allocation51_spill] sm:$0xff] %v9223_v23 }
 0x20a   :  { %1550 = vmatpush1.msra.mxu0 %v9104_v29  ;;  %8071 = vmatpush3.msra.mxu1 %v9136_v36  ;;  %v9228_v24 = vld [vmem:[%s8604_s17 + $0xb8] sm:$0xff] }
 0x20b   :  { %v1098_v25 = vpop.f32.mrf.mxu0  ;;  %1551 = vmatprep.subr.mxu0 %v11970_v1  ;;  %8072 = vmatprep.subr.mxu1 %v9144_v38  ;;  %12053 = vst [vmem:[#allocation52_spill] sm:$0xff] %v9228_v24 }
 0x20c   :  { %7647 = vmatmul.mubr.msk.f32.gmra.mxu1 %vm497_vm3, %v1098_v25  ;;  %7656 = vmatmul.mubr.msk.f32.gmra.mxu0 %vm497_vm3, %v1098_v25  ;;  %v9233_v25 = vld [vmem:[%s8604_s17 + $0x38] sm:$0xff] }
 0x20d   :  { %v8355_v0 = vpop.f32.mrf.mxu0  ;;  %1254 = vmatprep.mubr.f32.mxu1 %v11970_v1  ;;  %1361 = vmatprep.mubr.f32.mxu0 %v11970_v1  ;;  %12054 = vst [vmem:[#allocation53_spill] sm:$0xff] %v9233_v25 }
 0x20e   :  { %1552 = vmatpush1.msra.mxu0 %v9109_v30  ;;  %8073 = vmatpush3.msra.mxu1 %v9149_v39  ;;  %v9236_v0 = vld [vmem:[%s8604_s17 + $0x118] sm:$0xff] }
 0x20f   :  { %v1103_v2 = vpop.f32.mrf.mxu0  ;;  %1553 = vmatprep.subr.mxu0 %v11970_v1  ;;  %8074 = vmatprep.subr.mxu1 %v9159_v42  ;;  %12055 = vst [vmem:[#allocation54_spill] sm:$0xff] %v9236_v0 }
 0x210   :  { %7648 = vmatmul.mubr.msk.f32.gmra.mxu1 %vm497_vm3, %v1103_v2  ;;  %7657 = vmatmul.mubr.msk.f32.gmra.mxu0 %vm497_vm3, %v1103_v2  ;;  %v9238_v2 = vpop.f32.mrf.mxu1 }
 0x211   :  { %v8358_v3 = vpop.f32.mrf.mxu0  ;;  %1260 = vmatprep.mubr.f32.mxu1 %v11970_v1  ;;  %1367 = vmatprep.mubr.f32.mxu0 %v11970_v1 }
 0x212   :  { %1554 = vmatpush1.msra.mxu0 %v9114_v31  ;;  %8075 = vmatpush3.msra.mxu1 %v9164_v44  ;;  %v9243_v3 = vld [vmem:[%s8604_s17 + $0xb0] sm:$0xff]  ;;  %v848_v31 = vadd.f32 %v9046_v58, %v9030_v43  ;;  %v866_v43 = vadd.f32 %v9058_v11, %v9036_v49 }
 0x213   :  { %v1108_v4 = vpop.f32.mrf.mxu0  ;;  %1555 = vmatprep.subr.mxu0 %v11970_v1  ;;  %8076 = vmatprep.subr.mxu1 %v9172_v48  ;;  %12056 = vst [vmem:[#allocation55_spill] sm:$0xff] %v9243_v3 }
 0x214   :  { %7649 = vmatmul.mubr.msk.f32.gmra.mxu1 %vm497_vm3, %v1108_v4  ;;  %7658 = vmatmul.mubr.msk.f32.gmra.mxu0 %vm497_vm3, %v1108_v4  ;;  %v9248_v4 = vld [vmem:[%s8604_s17 + $0x30] sm:$0xff] }
 0x215   :  { %v8361_v5 = vpop.f32.mrf.mxu0  ;;  %1266 = vmatprep.mubr.f32.mxu1 %v11970_v1  ;;  %1373 = vmatprep.mubr.f32.mxu0 %v11970_v1  ;;  %12057 = vst [vmem:[#allocation56_spill] sm:$0xff] %v9248_v4 }
 0x216   :  { %1556 = vmatpush1.msra.mxu0 %v9126_v34  ;;  %8077 = vmatpush3.msra.mxu1 %v9177_v50  ;;  %v9251_v5 = vld [vmem:[%s8604_s17 + $0x110] sm:$0xff] }
 0x217   :  { %v1113_v6 = vpop.f32.mrf.mxu0  ;;  %1557 = vmatprep.subr.mxu0 %v11970_v1  ;;  %8078 = vmatprep.subr.mxu1 %v9187_v56  ;;  %12058 = vst [vmem:[#allocation57_spill] sm:$0xff] %v9251_v5 }
 0x218   :  { %7650 = vmatmul.mubr.msk.f32.gmra.mxu1 %vm497_vm3, %v1113_v6  ;;  %7659 = vmatmul.mubr.msk.f32.gmra.mxu0 %vm497_vm3, %v1113_v6  ;;  %v9256_v6 = vld [vmem:[%s8604_s17 + $0xa8] sm:$0xff] }
 0x219   :  { %v8364_v7 = vpop.f32.mrf.mxu0  ;;  %1272 = vmatprep.mubr.f32.mxu1 %v11970_v1  ;;  %1379 = vmatprep.mubr.f32.mxu0 %v11970_v1  ;;  %12059 = vst [vmem:[#allocation58_spill] sm:$0xff] %v9256_v6 }
 0x21a   :  { %1558 = vmatpush1.msra.mxu0 %v9139_v37  ;;  %8079 = vmatpush3.msra.mxu1 %v9192_v59  ;;  %v9261_v7 = vld [vmem:[%s8604_s17 + $0x28] sm:$0xff] }
 0x21b   :  { %v1118_v26 = vpop.f32.mrf.mxu0  ;;  %1559 = vmatprep.subr.mxu0 %v11970_v1  ;;  %8080 = vmatprep.subr.mxu1 %v9200_v9  ;;  %12060 = vst [vmem:[#allocation59_spill] sm:$0xff] %v9261_v7  ;;  %v9326_v9 = vld [vmem:[%s8604_s17] sm:$0xff] }
 0x21c   :  { %7651 = vmatmul.mubr.msk.f32.gmra.mxu1 %vm497_vm3, %v1118_v26  ;;  %7660 = vmatmul.mubr.msk.f32.gmra.mxu0 %vm497_vm3, %v1118_v26  ;;  %v9264_v26 = vld [vmem:[%s8604_s17 + $0x108] sm:$0xff]  ;;  %12075 = vst [vmem:[#allocation74_spill] sm:$0xff] %v9326_v9  ;;  %vm7053_vm3 = vcmask 48128  }
 0x21d   :  { %v8367_v27 = vpop.f32.mrf.mxu0  ;;  %1560 = vmatpush1.msra.mxu0 %v9152_v40  ;;  %8081 = vmatpush3.msra.mxu1 %v9205_v12  ;;  %12061 = vst [vmem:[#allocation60_spill] sm:$0xff] %v9264_v26  ;;  %v9318_v12 = vld [vmem:[%s8604_s17 + $0x188] sm:$0xff] }
 0x21e   :  { %1561 = vmatprep.subr.mxu0 %v11970_v1  ;;  %8082 = vmatprep.subr.mxu1 %v9215_v21  ;;  %v9266_v27 = vpop.f32.mrf.mxu1  ;;  %v9312_v21 = vld [vmem:[%s8604_s17 + $0x88] sm:$0xff]  ;;  %12073 = vst [vmem:[#allocation72_spill] sm:$0xff] %v9318_v12 }
 0x21f   :  { %1562 = vmatpush1.msra.mxu0 %v9167_v46  ;;  %8083 = vmatpush3.msra.mxu1 %v9220_v22  ;;  %v9307_v22 = vld [vmem:[%s8604_s17 + $0x190] sm:$0xff]  ;;  %12071 = vst [vmem:[#allocation70_spill] sm:$0xff] %v9312_v21 }
 0x220   :  { %1563 = vmatprep.subr.mxu0 %v11970_v1  ;;  %8084 = vmatprep.subr.mxu1 %v9228_v24  ;;  %v9294_v24 = vpop.f32.mrf.mxu1  ;;  %12070 = vst [vmem:[#allocation69_spill] sm:$0xff] %v9307_v22 }
 0x221   :  { %1564 = vmatpush1.msra.mxu0 %v9180_v52  ;;  %8085 = vmatpush3.msra.mxu1 %v9233_v25  ;;  %v9292_v25 = vld [vmem:[%s8604_s17 + $0x198] sm:$0xff] }
 0x222   :  { %1565 = vmatprep.subr.mxu0 %v11970_v1  ;;  %8086 = vmatprep.subr.mxu1 %v9243_v3  ;;  %v9279_v3 = vld [vmem:[%s8604_s17 + $0x100] sm:$0xff]  ;;  %12067 = vst [vmem:[#allocation66_spill] sm:$0xff] %v9292_v25  ;;  %v723_v59 = vpop.f32.mrf.mxu1 }
 0x223   :  { %1566 = vmatpush1.msra.mxu0 %v9195_v62  ;;  %8087 = vmatpush3.msra.mxu1 %v9248_v4  ;;  %v9271_v4 = vld [vmem:[%s8604_s17 + $0xa0] sm:$0xff]  ;;  %12064 = vst [vmem:[#allocation63_spill] sm:$0xff] %v9279_v3 }
 0x224   :  { %1567 = vmatprep.subr.mxu0 %v11970_v1  ;;  %8088 = vmatprep.subr.mxu1 %v9256_v6  ;;  %12062 = vst [vmem:[#allocation61_spill] sm:$0xff] %v9271_v4  ;;  %v9276_v6 = vld [vmem:[%s8604_s17 + $0x20] sm:$0xff] }
 0x225   :  { %1568 = vmatpush1.msra.mxu0 %v9208_v15  ;;  %8089 = vmatpush3.msra.mxu1 %v9261_v7  ;;  %12063 = vst [vmem:[#allocation62_spill] sm:$0xff] %v9276_v6  ;;  %v9284_v7 = vld [vmem:[%s8604_s17 + $0x98] sm:$0xff] }
 0x226   :  { %1569 = vmatprep.subr.mxu0 %v11970_v1  ;;  %8090 = vmatprep.subr.mxu1 %v9271_v4  ;;  %12065 = vst [vmem:[#allocation64_spill] sm:$0xff] %v9284_v7  ;;  %v9289_v4 = vld [vmem:[%s8604_s17 + $0x18] sm:$0xff] }
 0x227   :  { %1570 = vmatpush1.msra.mxu0 %v9223_v23  ;;  %8091 = vmatpush3.msra.mxu1 %v9276_v6  ;;  %12066 = vst [vmem:[#allocation65_spill] sm:$0xff] %v9289_v4  ;;  %v9299_v6 = vld [vmem:[%s8604_s17 + $0x90] sm:$0xff] }
 0x228   :  { %1571 = vmatprep.subr.mxu0 %v11970_v1  ;;  %8092 = vmatprep.subr.mxu1 %v9284_v7  ;;  %12068 = vst [vmem:[#allocation67_spill] sm:$0xff] %v9299_v6  ;;  %v9304_v7 = vld [vmem:[%s8604_s17 + $0x10] sm:$0xff] }
 0x229   :  { %1572 = vmatpush1.msra.mxu0 %v9236_v0  ;;  %8093 = vmatpush3.msra.mxu1 %v9289_v4  ;;  %12069 = vst [vmem:[#allocation68_spill] sm:$0xff] %v9304_v7  ;;  %v9315_v4 = vld [vmem:[%s8604_s17 + $0x8] sm:$0xff] }
 0x22a   :  { %1573 = vmatprep.subr.mxu0 %v11970_v1  ;;  %8094 = vmatprep.subr.mxu1 %v9299_v6  ;;  %12072 = vst [vmem:[#allocation71_spill] sm:$0xff] %v9315_v4  ;;  %v9323_v6 = vld [vmem:[%s8604_s17 + $0x80] sm:$0xff] }
 0x22b   :  { %1574 = vmatpush1.msra.mxu0 %v9251_v5  ;;  %8095 = vmatpush3.msra.mxu1 %v9304_v7  ;;  %12074 = vst [vmem:[#allocation73_spill] sm:$0xff] %v9323_v6  ;;  %v9333_v7 = vld [vmem:[%s8604_s17 + $0x180] sm:$0xff]  ;;  %s12169_s17 = sld [smem:[#allocation9_spill]] }
 0x22c   :  { %1575 = vmatprep.subr.mxu0 %v11970_v1  ;;  %8096 = vmatprep.subr.mxu1 %v9312_v21  ;;  %12076 = vst [vmem:[#allocation75_spill] sm:$0xff] %v9333_v7  ;;  %v725_v21 = vpop.f32.mrf.mxu1 }
 0x22d   :  { %1576 = vmatpush1.msra.mxu0 %v9264_v26  ;;  %8097 = vmatpush3.msra.mxu1 %v9315_v4 }
 0x22e   :  { %1577 = vmatprep.subr.mxu0 %v11970_v1  ;;  %8098 = vmatprep.subr.mxu1 %v9323_v6  ;;  %v729_v56 = vpop.f32.mrf.mxu1 }
 0x22f   :  { %1578 = vmatpush1.msra.mxu0 %v9279_v3  ;;  %8099 = vmatpush3.msra.mxu1 %v9326_v9 }
 0x230   :  { %1603 = vmatprep.subr.mxu0 %v11970_v1  ;;  %v731_v50 = vpop.f32.mrf.mxu1 }
 0x231   :  { %1604 = vmatpush2.msra.mxu0 %v9292_v25 }
 0x232   :  { %1605 = vmatprep.subr.mxu0 %v11970_v1  ;;  %v735_v48 = vpop.f32.mrf.mxu1 }
 0x233   :  { %1606 = vmatpush2.msra.mxu0 %v9307_v22 }
 0x234   :  { %1607 = vmatprep.subr.mxu0 %v11970_v1  ;;  %v737_v44 = vpop.f32.mrf.mxu1 }
 0x235   :  { %1608 = vmatpush2.msra.mxu0 %v9318_v12 }
 0x236   :  { %1609 = vmatprep.subr.mxu0 %v11970_v1  ;;  %v741_v4 = vpop.f32.mrf.mxu1 }
 0x237   :  { %1610 = vmatpush2.msra.mxu0 %v9333_v7 }
 0x238   :  { %1967 = vmatprep.subr.mxu0 %v11970_v1  ;;  %v9338_v42 = vpop.f32.mrf.mxu1 }
 0x239   :  { %12077 = vst [vmem:[#allocation76_spill] sm:$0xff] %v9338_v42  ;;  %v860_v42 = vadd.f32 %v9054_v8, %v9034_v47 }
 0x23a   :  { %v952_v39 = vpop.f32.mrf.mxu1 }
 0x23b   :  { %v953_v40 = vadd.f32 %v952_v39, %v9154_v41 }
 0x23c   :  { %v954_v6 = vpop.f32.mrf.mxu1 }
 0x23d   :  { %v955_v30 = vadd.f32 %v954_v6, %v9182_v54 }
 0x23e   :  { %v958_v38 = vpop.f32.mrf.mxu1 }
 0x23f   :  { %v959_v29 = vadd.f32 %v958_v38, %v9210_v18  ;;  %v12079_v18 = vld [vmem:[#allocation21_spill] sm:$0xff] }
 0x240   :  { %v960_v36 = vpop.f32.mrf.mxu1 }
 0x241   :  { %v961_v19 = vadd.f32 %v960_v36, %v9238_v2 }
 0x242   :  { %v964_v35 = vpop.f32.mrf.mxu1 }
 0x244   :  { %v966_v33 = vpop.f32.mrf.mxu1 }
 0x245   :  { %v967_v39 = vadd.f32 %v966_v33, %v9294_v24  ;;  %v878_v33 = vadd.f32 %v9066_v17, %v9040_v53 }
 0x246   :  { %v970_v32 = vpop.f32.mrf.mxu1 }
 0x247   :  { %v971_v13 = vadd.f32 %v970_v32, %v723_v59 }
 0x248   :  { %v972_v9 = vpop.f32.mrf.mxu1 }
 0x249   :  { %v973_v58 = vadd.f32 %v972_v9, %v725_v21 }
 0x24a   :  { %v976_v12 = vpop.f32.mrf.mxu1 }
 0x24b   :  { %v977_v38 = vadd.f32 %v976_v12, %v729_v56  ;;  %v884_v12 = vadd.f32 %v9070_v20, %v9042_v55  ;;  %v12080_v20 = vld [vmem:[#allocation22_spill] sm:$0xff] }
 0x24c   :  { %v978_v7 = vpop.f32.mrf.mxu1 }
 0x24d   :  { %v979_v61 = vadd.f32 %v978_v7, %v731_v50 }
 0x24e   :  { %v982_v22 = vpop.f32.mrf.mxu1 }
 0x24f   :  { %v983_v8 = vadd.f32 %v982_v22, %v735_v48 }
 0x250   :  { %v984_v1 = vpop.f32.mrf.mxu1 }
 0x251   :  { %v985_v49 = vadd.f32 %v984_v1, %v737_v44 }
 0x252   :  { %v988_v25 = vpop.f32.mrf.mxu1 }
 0x254   :  { %v9340_v3 = vpop.f32.mrf.mxu1 }
 0x255   :  { %12078 = vst [vmem:[#allocation77_spill] sm:$0xff] %v9340_v3  ;;  %v965_v3 = vadd.f32 %v964_v35, %v9266_v27 }
 0x25c   :  { %v12082_v27 = vld [vmem:[#allocation77_spill] sm:$0xff] }
 0x2c4   :  { %v1238_v26 = vpop.f32.mrf.mxu1  ;;  %v1345_v5 = vpop.f32.mrf.mxu0 }
 0x2c5   :  { %v9376_v48 = vadd.f32 %v1345_v5, %v953_v40 }
 0x2c6   :  { %v1240_v0 = vpop.f32.mrf.mxu1  ;;  %v1347_v23 = vpop.f32.mrf.mxu0 }
 0x2c7   :  { %v9358_v36 = vadd.f32 %v1347_v23, %v955_v30  ;;  %v989_v30 = vadd.f32 %v988_v25, %v741_v4 }
 0x2c8   :  { %v1244_v15 = vpop.f32.mrf.mxu1  ;;  %v1351_v62 = vpop.f32.mrf.mxu0 }
 0x2c9   :  { %v9365_v32 = vadd.f32 %v1244_v15, %v9048_v60  ;;  %v9367_v11 = vadd.f32 %v1351_v62, %v959_v29  ;;  %v9381_v60 = vadd.f32 %v1240_v0, %v848_v31  ;;  %v1454_v1 = vsel %vm1453_vm4, %v9358_v36, 0.0 }
 0x2ca   :  { %v1246_v52 = vpop.f32.mrf.mxu1  ;;  %v1353_v46 = vpop.f32.mrf.mxu0 }
 0x2cb   :  { %v9360_v35 = vadd.f32 %v1353_v46, %v961_v19  ;;  %v9369_v56 = vadd.f32 %v1246_v52, %v854_v28  ;;  %v9374_v46 = vadd.f32 %v1238_v26, %v9044_v57  ;;  %v12081_v26 = vld [vmem:[#allocation76_spill] sm:$0xff] }
 0x2cc   :  { %v1250_v37 = vpop.f32.mrf.mxu1  ;;  %v1357_v34 = vpop.f32.mrf.mxu0 }
 0x2cd   :  { %v9379_v53 = vadd.f32 %v1250_v37, %v9052_v63  ;;  %v9387_v17 = vadd.f32 %v1357_v34, %v965_v3  ;;  %v1414_v57 = vadd.f32 %v9365_v32, %v9374_v46  ;;  %v1440_v37 = vadd.f32 %v9367_v11, %v9376_v48 }
 0x2ce   :  { %v1252_v41 = vpop.f32.mrf.mxu1  ;;  %v1359_v16 = vpop.f32.mrf.mxu0  ;;  %v1427_v44 = vadd.f32 %v9369_v56, %v9381_v60 }
 0x2cf   :  { %v9371_v51 = vadd.f32 %v1359_v16, %v967_v39  ;;  %v1455_v16 = vsel %vm1453_vm4, %v9360_v35, 0.0  ;;  %v9391_v40 = vadd.f32 %v1252_v41, %v860_v42  ;;  %v1415_v62 = vadd.f32 %v1414_v57, %v9379_v53 }
 0x2d0   :  { %v1256_v54 = vpop.f32.mrf.mxu1  ;;  %v1363_v47 = vpop.f32.mrf.mxu0  ;;  %v1456_v42 = vadd.f32 %v1455_v16, %v1454_v1  ;;  %v1441_v15 = vadd.f32 %v1440_v37, %v9387_v17  ;;  %v991_v39 = vadd.f32 %v12082_v27, %v12081_v26 }
 0x2d1   :  { %v9394_v63 = vadd.f32 %v1256_v54, %v9056_v10  ;;  %v1457_v34 = vsel %vm1453_vm4, %v9371_v51, 0.0  ;;  %v9404_v50 = vadd.f32 %v1363_v47, %v971_v13  ;;  %v1428_v24 = vadd.f32 %v1427_v44, %v9391_v40 }
 0x2d2   :  { %v1258_v14 = vpop.f32.mrf.mxu1  ;;  %v1365_v19 = vpop.f32.mrf.mxu0  ;;  %v1458_v25 = vadd.f32 %v1457_v34, %v1456_v42 }
 0x2d3   :  { %v9396_v31 = vadd.f32 %v1365_v19, %v973_v58  ;;  %v9407_v10 = vadd.f32 %v1258_v14, %v866_v43  ;;  %v1416_v0 = vadd.f32 %v1415_v62, %v9394_v63  ;;  %v1442_v3 = vadd.f32 %v1441_v15, %v9404_v50  ;;  %v12083_v19 = vld [vmem:[#allocation23_spill] sm:$0xff] }
 0x2d4   :  { %v1262_v28 = vpop.f32.mrf.mxu1  ;;  %v1369_v29 = vpop.f32.mrf.mxu0 }
 0x2d5   :  { %v9415_v21 = vadd.f32 %v1262_v28, %v12079_v18  ;;  %v9417_v22 = vadd.f32 %v1369_v29, %v977_v38  ;;  %v1459_v2 = vsel %vm1453_vm4, %v9396_v31, 0.0  ;;  %v1429_v41 = vadd.f32 %v1428_v24, %v9407_v10 }
 0x2d6   :  { %v1264_v52 = vpop.f32.mrf.mxu1  ;;  %v1371_v59 = vpop.f32.mrf.mxu0  ;;  %v1460_v38 = vadd.f32 %v1459_v2, %v1458_v25 }
 0x2d7   :  { %v9409_v9 = vadd.f32 %v1371_v59, %v979_v61  ;;  %v9424_v55 = vadd.f32 %v1264_v52, %v872_v45  ;;  %v1417_v45 = vadd.f32 %v1416_v0, %v9415_v21  ;;  %v1443_v61 = vadd.f32 %v1442_v3, %v9417_v22 }
 0x2d8   :  { %v1268_v13 = vpop.f32.mrf.mxu1  ;;  %v1375_v23 = vpop.f32.mrf.mxu0 }
 0x2d9   :  { %v9427_v4 = vadd.f32 %v1268_v13, %v12080_v20  ;;  %v9429_v5 = vadd.f32 %v1375_v23, %v983_v8  ;;  %v1461_v43 = vsel %vm1453_vm4, %v9409_v9, 0.0 }
 0x2da   :  { %v1270_v6 = vpop.f32.mrf.mxu1  ;;  %v1377_v7 = vpop.f32.mrf.mxu0  ;;  %v1462_v28 = vadd.f32 %v1461_v43, %v1460_v38 }
 0x2db   :  { %v9436_v58 = vadd.f32 %v1377_v7, %v985_v49  ;;  %v9440_v54 = vadd.f32 %v1270_v6, %v878_v33  ;;  %v1430_v49 = vadd.f32 %v1429_v41, %v9424_v55  ;;  %v1418_v29 = vadd.f32 %v1417_v45, %v9427_v4 }
 0x2dc   :  { %v1274_v47 = vpop.f32.mrf.mxu1  ;;  %v1381_v8 = vpop.f32.mrf.mxu0  ;;  %v1444_v57 = vadd.f32 %v1443_v61, %v9429_v5 }
 0x2dd   :  { %v1463_v14 = vsel %vm1453_vm4, %v9436_v58, 0.0  ;;  %v9445_v1 = vadd.f32 %v1274_v47, %v12083_v19  ;;  %v9447_v16 = vadd.f32 %v1381_v8, %v989_v30  ;;  %v1431_v59 = vadd.f32 %v1430_v49, %v9440_v54 }
 0x2de   :  { %v1276_v33 = vpop.f32.mrf.mxu1  ;;  %v1383_v37 = vpop.f32.mrf.mxu0  ;;  %v1464_v42 = vadd.f32 %v1463_v14, %v1462_v28 }
 0x2df   :  { %v1419_v44 = vsel %vm519_vm2, %v9445_v1, 0.0  ;;  %v1445_v34 = vsel %vm519_vm2, %v9447_v16, 0.0  ;;  %v9456_v52 = vadd.f32 %v1276_v33, %v884_v12  ;;  %v9458_v30 = vadd.f32 %v1383_v37, %v991_v39  ;;  %v12085_v37 = vld [vmem:[#allocation24_spill] sm:$0xff] }
 0x2e0   :  { %v1420_v62 = vadd.f32 %v1419_v44, %v1418_v29  ;;  %v1446_v15 = vadd.f32 %v1445_v34, %v1444_v57  ;;  %v12084_v33 = vmov 0.0   ;;  %v12086_v44 = vld [vmem:[#allocation25_spill] sm:$0xff]  ;;  %v12087_v34 = vld [vmem:[#allocation26_spill] sm:$0xff] }
 0x2e1   :  { %v1432_v18 = vsel %vm519_vm2, %v9456_v52, 0.0  ;;  %v1466_v13 = vsel %vm1465_vm5, %v9458_v30, 0.0 }
 0x2e2   :  { %v1421_v23 = vrot.slane %v1420_v62, 4  ;;  %v1447_v24 = vrot.slane %v1446_v15, 4  ;;  %v1433_v25 = vadd.f32 %v1432_v18, %v1431_v59  ;;  %v1467_v0 = vadd.f32 %v1466_v13, %v1464_v42  ;;  %v12088_v59 = vld [vmem:[#allocation27_spill] sm:$0xff]  ;;  %v12089_v42 = vld [vmem:[#allocation30_spill] sm:$0xff] }
 0x2e3   :  { %v12092_v18 = vld [vmem:[#allocation39_spill] sm:$0xff]  ;;  %v12093_v13 = vld [vmem:[#allocation42_spill] sm:$0xff] }
 0x2e4   :  { %v1422_v2 = vadd.f32 %v1421_v23, %v1420_v62  ;;  %v1448_v12 = vadd.f32 %v1447_v24, %v1446_v15  ;;  %v1434_v3 = vrot.slane %v1433_v25, 4  ;;  %v1468_v20 = vrot.slane %v1467_v0, 4  ;;  %v12090_v62 = vld [vmem:[#allocation33_spill] sm:$0xff]  ;;  %v12091_v15 = vld [vmem:[#allocation36_spill] sm:$0xff] }
 0x2e5   :  { %v12094_v23 = vld [vmem:[#allocation45_spill] sm:$0xff]  ;;  %v12095_v24 = vld [vmem:[#allocation48_spill] sm:$0xff] }
 0x2e6   :  { %v1423_v6 = vrot.slane %v1422_v2, 2  ;;  %v1449_v7 = vrot.slane %v1448_v12, 2  ;;  %v1435_v26 = vadd.f32 %v1434_v3, %v1433_v25  ;;  %v1469_v27 = vadd.f32 %v1468_v20, %v1467_v0  ;;  %v12096_v25 = vld [vmem:[#allocation51_spill] sm:$0xff]  ;;  %v12097_v0 = vld [vmem:[#allocation54_spill] sm:$0xff] }
 0x2e7   :  { %v12100_v3 = vld [vmem:[#allocation63_spill] sm:$0xff]  ;;  %v12101_v20 = vld [vmem:[#allocation66_spill] sm:$0xff] }
 0x2e8   :  { %v1424_v39 = vadd.f32 %v1423_v6, %v1422_v2  ;;  %v1450_v41 = vadd.f32 %v1449_v7, %v1448_v12  ;;  %v1470_v43 = vrot.slane %v1469_v27, 2  ;;  %v1436_v38 = vrot.slane %v1435_v26, 2  ;;  %v12098_v2 = vld [vmem:[#allocation57_spill] sm:$0xff]  ;;  %v12099_v12 = vld [vmem:[#allocation60_spill] sm:$0xff] }
 0x2e9   :  { %v12102_v6 = vld [vmem:[#allocation69_spill] sm:$0xff]  ;;  %v12103_v7 = vld [vmem:[#allocation72_spill] sm:$0xff] }
 0x2ea   :  { %v1471_v45 = vadd.f32 %v1470_v43, %v1469_v27  ;;  %v1437_v61 = vadd.f32 %v1436_v38, %v1435_v26  ;;  %v1425_v47 = vrot.slane %v1424_v39, 1  ;;  %v1451_v8 = vrot.slane %v1450_v41, 1  ;;  %v12104_v26 = vld [vmem:[#allocation75_spill] sm:$0xff]  ;;  %v203_v27 = vld [vmem:[%s8609_s21 + $0x28] sm:$0xff]  ;;  %v9516_v43 = vld [vmem:[%s8609_s21] sm:$0xff] }
 0x2eb   :  { %1650 = vmatprep.subr.mxu1 %v203_v27  ;;  %v9520_v38 = vld [vmem:[%s8609_s21 + $0x38] sm:$0xff] }
 0x2ec   :  { %v1438_v14 = vrot.slane %v1437_v61, 1  ;;  %v1472_v19 = vrot.slane %v1471_v45, 1  ;;  %v1426_v29 = vadd.f32 %v1425_v47, %v1424_v39  ;;  %v1452_v57 = vadd.f32 %v1451_v8, %v1450_v41  ;;  %v9508_v39 = vld [vmem:[%s8609_s21 + $0x20] sm:$0xff]  ;;  %v9512_v41 = vld [vmem:[%s8609_s21 + $0x8] sm:$0xff] }
 0x2ee   :  { %v1439_v49 = vadd.f32 %v1438_v14, %v1437_v61  ;;  %v1473_v28 = vadd.f32 %v1472_v19, %v1471_v45 }
 0x2f0   :  { %1541 = vmatprep.mubr.f32.mxu1 %v1439_v49  ;;  %7661 = vmatprep.mubr.msk.f32.mxu0 %vm1453_vm4, %v1473_v28  ;;  %v9524_v28 = vld [vmem:[%s8609_s21 + $0x30] sm:$0xff] }
 0x2f1   :  { %1542 = vmatmul.mubr.f32.vlgmr.msra.gmra.mxu1 %v1426_v29  ;;  %1612 = vmatmul.mubr.f32.vlgmr.msra.gmra.mxu0 %v1452_v57  ;;  %v9527_v29 = vld [vmem:[%s8609_s21 + $0x18] sm:$0xff]  ;;  %v9531_v57 = vld [vmem:[%s8609_s21 + $0x10] sm:$0xff]  ;;  %s12170_s21 = sld [smem:[#allocation10_spill]] }
 0x2f2   :  { %1686 = vmatprep.mubr.f32.mxu1 %v12084_v33  ;;  %1968 = vmatpush1.msra.mxu0 %v12085_v37  ;;  %v12105_v37 = vld [vmem:[#allocation28_spill] sm:$0xff] }
 0x2f3   :  { %1969 = vmatprep.subr.mxu0 %v12084_v33  ;;  %1651 = vmatpush1.msra.mxu1 %v9508_v39 }
 0x2f4   :  { %1970 = vmatpush1.msra.mxu0 %v12086_v44  ;;  %1652 = vmatprep.subr.mxu1 %v9512_v41  ;;  %v12106_v44 = vld [vmem:[#allocation29_spill] sm:$0xff] }
 0x2f5   :  { %1971 = vmatprep.subr.mxu0 %v12084_v33  ;;  %1653 = vmatpush1.msra.mxu1 %v9516_v43 }
 0x2f6   :  { %1972 = vmatpush1.msra.mxu0 %v12087_v34  ;;  %1721 = vmatprep.subr.mxu1 %v9520_v38  ;;  %v12107_v34 = vld [vmem:[#allocation31_spill] sm:$0xff] }
 0x2f7   :  { %1973 = vmatprep.subr.mxu0 %v12084_v33 }
 0x2f8   :  { %1974 = vmatpush1.msra.mxu0 %v12088_v59  ;;  %v12108_v59 = vld [vmem:[#allocation32_spill] sm:$0xff] }
 0x2f9   :  { %1975 = vmatprep.subr.mxu0 %v12084_v33 }
 0x2fa   :  { %1976 = vmatpush1.msra.mxu0 %v12089_v42  ;;  %v12109_v42 = vld [vmem:[#allocation34_spill] sm:$0xff] }
 0x2fb   :  { %1977 = vmatprep.subr.mxu0 %v12084_v33 }
 0x2fc   :  { %1978 = vmatpush1.msra.mxu0 %v12090_v62  ;;  %v12110_v62 = vld [vmem:[#allocation35_spill] sm:$0xff] }
 0x2fd   :  { %1979 = vmatprep.subr.mxu0 %v12084_v33 }
 0x2fe   :  { %1980 = vmatpush1.msra.mxu0 %v12091_v15  ;;  %v12111_v15 = vld [vmem:[#allocation37_spill] sm:$0xff] }
 0x2ff   :  { %1981 = vmatprep.subr.mxu0 %v12084_v33 }
 0x300   :  { %1982 = vmatpush1.msra.mxu0 %v12092_v18  ;;  %v12112_v18 = vld [vmem:[#allocation38_spill] sm:$0xff] }
 0x301   :  { %1983 = vmatprep.subr.mxu0 %v12084_v33 }
 0x302   :  { %1984 = vmatpush1.msra.mxu0 %v12093_v13  ;;  %v12113_v13 = vld [vmem:[#allocation40_spill] sm:$0xff] }
 0x303   :  { %1985 = vmatprep.subr.mxu0 %v12084_v33 }
 0x304   :  { %1986 = vmatpush1.msra.mxu0 %v12094_v23  ;;  %v12114_v23 = vld [vmem:[#allocation41_spill] sm:$0xff] }
 0x305   :  { %1987 = vmatprep.subr.mxu0 %v12084_v33 }
 0x306   :  { %1988 = vmatpush1.msra.mxu0 %v12095_v24  ;;  %v12115_v24 = vld [vmem:[#allocation43_spill] sm:$0xff] }
 0x307   :  { %1989 = vmatprep.subr.mxu0 %v12084_v33 }
 0x308   :  { %1990 = vmatpush1.msra.mxu0 %v12096_v25  ;;  %v12116_v25 = vld [vmem:[#allocation44_spill] sm:$0xff] }
 0x309   :  { %1991 = vmatprep.subr.mxu0 %v12084_v33 }
 0x30a   :  { %1992 = vmatpush1.msra.mxu0 %v12097_v0  ;;  %v12117_v0 = vld [vmem:[#allocation46_spill] sm:$0xff] }
 0x30b   :  { %1993 = vmatprep.subr.mxu0 %v12084_v33 }
 0x30c   :  { %1994 = vmatpush1.msra.mxu0 %v12098_v2  ;;  %v12118_v2 = vld [vmem:[#allocation47_spill] sm:$0xff] }
 0x30d   :  { %1995 = vmatprep.subr.mxu0 %v12084_v33 }
 0x30e   :  { %1996 = vmatpush1.msra.mxu0 %v12099_v12  ;;  %v12119_v12 = vld [vmem:[#allocation49_spill] sm:$0xff] }
 0x30f   :  { %1997 = vmatprep.subr.mxu0 %v12084_v33 }
 0x310   :  { %1998 = vmatpush1.msra.mxu0 %v12100_v3  ;;  %v12120_v3 = vld [vmem:[#allocation50_spill] sm:$0xff] }
 0x311   :  { %2023 = vmatprep.subr.mxu0 %v12084_v33 }
 0x312   :  { %2024 = vmatpush2.msra.mxu0 %v12101_v20  ;;  %v12121_v20 = vld [vmem:[#allocation52_spill] sm:$0xff] }
 0x313   :  { %2025 = vmatprep.subr.mxu0 %v12084_v33 }
 0x314   :  { %2026 = vmatpush2.msra.mxu0 %v12102_v6  ;;  %v12122_v6 = vld [vmem:[#allocation53_spill] sm:$0xff] }
 0x315   :  { %2027 = vmatprep.subr.mxu0 %v12084_v33 }
 0x316   :  { %2028 = vmatpush2.msra.mxu0 %v12103_v7  ;;  %v12123_v7 = vld [vmem:[#allocation55_spill] sm:$0xff] }
 0x317   :  { %2029 = vmatprep.subr.mxu0 %v12084_v33 }
 0x318   :  { %2030 = vmatpush2.msra.mxu0 %v12104_v26  ;;  %v12124_v26 = vld [vmem:[#allocation56_spill] sm:$0xff] }
 0x3b1   :  { %v8100_v45 = vpop.f32.mrf.mxu1  ;;  %v1613_v61 = vpop.f32.mrf.mxu0 }
 0x3b3   :  { %v8101_v47 = vpop.f32.mrf.mxu1  ;;  %v1615_v8 = vpop.f32.mrf.mxu0 }
 0x3b4   :  { %v8102_v14 = vadd.f32 %v8101_v47, %v8100_v45  ;;  %v12125_v45 = vld [vmem:[#allocation58_spill] sm:$0xff]  ;;  %v12127_v47 = vld [vmem:[#allocation61_spill] sm:$0xff] }
 0x3b5   :  { %v12128_v8 = vld [vmem:[#allocation62_spill] sm:$0xff] }
 0x3b6   :  { %v1614_v19 = vadd.f32 %v8102_v14, %v1613_v61  ;;  %v12126_v61 = vld [vmem:[#allocation59_spill] sm:$0xff]  ;;  %v12129_v14 = vld [vmem:[#allocation64_spill] sm:$0xff] }
 0x3b8   :  { %v1617_v49 = vmul.f32 0.000739645, %v1614_v19  ;;  %v12130_v19 = vld [vmem:[#allocation65_spill] sm:$0xff] }
 0x3ba   :  { %7662 = vmatmul.mubr.msk.f32.vlgmr.msra.gmra.mxu1 %vm1618_vm6, %v1617_v49 }
 0x3bb   :  { %1722 = vmatpush1.msra.mxu1 %v9524_v28  ;;  %1757 = vmatprep.mubr.f32.mxu1 %v12084_v33 }
 0x3bc   :  { %1723 = vmatprep.subr.mxu1 %v9527_v29 }
 0x3bd   :  { %1724 = vmatpush1.msra.mxu1 %v9531_v57 }
 0x3be   :  { %7663 = vmatmul.mubr.msk.f32.vlgmr.msra.gmra.mxu1 %vm1618_vm6, %v1617_v49  ;;  %8103 = vmatprep.subr.mxu1 %v12105_v37  ;;  %v12131_v49 = vld [vmem:[#allocation67_spill] sm:$0xff]  ;;  %v12132_v37 = vld [vmem:[#allocation68_spill] sm:$0xff] }
 0x3bf   :  { %8104 = vmatpush3.msra.mxu1 %v12106_v44  ;;  %v12133_v44 = vld [vmem:[#allocation70_spill] sm:$0xff] }
 0x3c0   :  { %8105 = vmatprep.subr.mxu1 %v12107_v34  ;;  %v12134_v34 = vld [vmem:[#allocation71_spill] sm:$0xff] }
 0x3c1   :  { %8106 = vmatpush3.msra.mxu1 %v12108_v59  ;;  %v12135_v59 = vld [vmem:[#allocation73_spill] sm:$0xff] }
 0x3c2   :  { %8107 = vmatprep.subr.mxu1 %v12109_v42  ;;  %v12136_v42 = vld [vmem:[#allocation74_spill] sm:$0xff] }
 0x3c3   :  { %8108 = vmatpush3.msra.mxu1 %v12110_v62  ;;  %v1764_v62 = vlaneseq }
 0x3c4   :  { %8109 = vmatprep.subr.mxu1 %v12111_v15 }
 0x3c5   :  { %8110 = vmatpush3.msra.mxu1 %v12112_v18  ;;  %v9570_v15 = vshrl.u32 %v1764_v62, 7 }
 0x3c6   :  { %8111 = vmatprep.subr.mxu1 %v12113_v13 }
 0x3c7   :  { %8112 = vmatpush3.msra.mxu1 %v12114_v23  ;;  %v9573_v18 = vsub.s32 0, %v9570_v15 }
 0x3c8   :  { %8113 = vmatprep.subr.mxu1 %v12115_v24 }
 0x3c9   :  { %8114 = vmatpush3.msra.mxu1 %v12116_v25  ;;  %12137 = vst [vmem:[#allocation21_spill] sm:$0xff] %v9573_v18 }
 0x3ca   :  { %8115 = vmatprep.subr.mxu1 %v12117_v0 }
 0x3cb   :  { %8116 = vmatpush3.msra.mxu1 %v12118_v2 }
 0x3cc   :  { %8117 = vmatprep.subr.mxu1 %v12119_v12 }
 0x3cd   :  { %8118 = vmatpush3.msra.mxu1 %v12120_v3 }
 0x3ce   :  { %8119 = vmatprep.subr.mxu1 %v12121_v20 }
 0x3cf   :  { %8120 = vmatpush3.msra.mxu1 %v12122_v6 }
 0x3d0   :  { %8121 = vmatprep.subr.mxu1 %v12123_v7 }
 0x3d1   :  { %8122 = vmatpush3.msra.mxu1 %v12124_v26 }
 0x3d2   :  { %8123 = vmatprep.subr.mxu1 %v12125_v45 }
 0x3d3   :  { %8124 = vmatpush3.msra.mxu1 %v12126_v61 }
 0x3d4   :  { %8125 = vmatprep.subr.mxu1 %v12127_v47 }
 0x3d5   :  { %8126 = vmatpush3.msra.mxu1 %v12128_v8 }
 0x3d6   :  { %8127 = vmatprep.subr.mxu1 %v12129_v14 }
 0x3d7   :  { %8128 = vmatpush3.msra.mxu1 %v12130_v19 }
 0x3d8   :  { %8129 = vmatprep.subr.mxu1 %v12131_v49 }
 0x3d9   :  { %8130 = vmatpush3.msra.mxu1 %v12132_v37 }
 0x3da   :  { %8131 = vmatprep.subr.mxu1 %v12133_v44 }
 0x3db   :  { %8132 = vmatpush3.msra.mxu1 %v12134_v34 }
 0x3dc   :  { %8133 = vmatprep.subr.mxu1 %v12135_v59 }
 0x3dd   :  { %8134 = vmatpush3.msra.mxu1 %v12136_v42 }
 0x3de   :  { %2071 = vmatprep.subr.mxu1 %v203_v27 }
 0x47a   :  { %v1688_v13 = vpop.f32.mrf.mxu1 }
 0x47b   :  { %v1767_v23 = vrot.slane %v1688_v13, %v9573_v18 }
 0x47c   :  { %v1690_v24 = vpop.f32.mrf.mxu1 }
 0x47d   :  { %v1771_v25 = vrot.slane %v1690_v24, %v9573_v18  ;;  %v9584_v27 = vsub.f32 %v9374_v46, %v1767_v23  ;;  %v9587_v3 = vsub.f32 %v9365_v32, %v1767_v23  ;;  %v9590_v20 = vsub.f32 %v9379_v53, %v1767_v23 }
 0x47e   :  { %v1759_v0 = vpop.f32.mrf.mxu1  ;;  %v9603_v46 = vsub.f32 %v9415_v21, %v1767_v23  ;;  %v9622_v21 = vsub.f32 %v9427_v4, %v1767_v23 }
 0x47f   :  { %v9578_v2 = vsub.f32 %v9381_v60, %v1771_v25  ;;  %v9581_v12 = vsub.f32 %v9369_v56, %v1771_v25  ;;  %v9593_v7 = vsub.f32 %v9391_v40, %v1771_v25  ;;  %v9596_v26 = vrot.slane %v1759_v0, %v9573_v18 }
 0x480   :  { %v1761_v6 = vpop.f32.mrf.mxu1  ;;  %v9600_v56 = vsub.f32 %v9394_v63, %v1767_v23  ;;  %v9606_v32 = vsub.f32 %v9407_v10, %v1771_v25  ;;  %v9609_v53 = vsub.f32 %v9456_v52, %v1771_v25  ;;  %v9616_v61 = vsub.f32 %v9424_v55, %v1771_v25 }
 0x481   :  { %v1779_v60 = vrot.slane %v1761_v6, %v9573_v18  ;;  %v1809_v40 = vmul.f32 %v9578_v2, %v9578_v2  ;;  %v1813_v45 = vmul.f32 %v9581_v12, %v9581_v12  ;;  %v9619_v63 = vsub.f32 %v9440_v54, %v1771_v25 }
 0x482   :  { %v9625_v10 = vsub.f32 %v9445_v1, %v1767_v23  ;;  %v1817_v47 = vmul.f32 %v9593_v7, %v9593_v7  ;;  %v1808_v55 = vmul.f32 %v9584_v27, %v9584_v27  ;;  %v9636_v54 = vsub.f32 %v9376_v48, %v9596_v26 }
 0x483   :  { %v9628_v52 = vsub.f32 %v9358_v36, %v1779_v60  ;;  %v1849_v8 = vadd.f32 %v1813_v45, %v1809_v40  ;;  %v9639_v4 = vsub.f32 %v9360_v35, %v1779_v60  ;;  %v9642_v1 = vsub.f32 %v9371_v51, %v1779_v60 }
 0x484   :  { %v1812_v36 = vmul.f32 %v9587_v3, %v9587_v3  ;;  %v9648_v14 = vsub.f32 %v9367_v11, %v9596_v26  ;;  %v1821_v19 = vmul.f32 %v9606_v32, %v9606_v32  ;;  %v1833_v48 = vmul.f32 %v9609_v53, %v9609_v53 }
 0x485   :  { %v1850_v49 = vadd.f32 %v1849_v8, %v1817_v47  ;;  %v1825_v35 = vmul.f32 %v9616_v61, %v9616_v61  ;;  %v1816_v51 = vmul.f32 %v9590_v20, %v9590_v20  ;;  %v9659_v44 = vsub.f32 %v9396_v31, %v1779_v60 }
 0x486   :  { %v1836_v37 = vadd.f32 %v1812_v36, %v1808_v55  ;;  %v1829_v11 = vmul.f32 %v9619_v63, %v9619_v63  ;;  %v1820_v59 = vmul.f32 %v9600_v56, %v9600_v56  ;;  %v1811_v42 = vmul.f32 %v9628_v52, %v9628_v52 }
 0x487   :  { %v1851_v34 = vadd.f32 %v1850_v49, %v1821_v19  ;;  %v9668_v13 = vsub.f32 %v9409_v9, %v1779_v60  ;;  %v1815_v23 = vmul.f32 %v9639_v4, %v9639_v4  ;;  %v1819_v31 = vmul.f32 %v9642_v1, %v9642_v1 }
 0x488   :  { %v1837_v62 = vadd.f32 %v1836_v37, %v1816_v51  ;;  %v1854_v25 = vsel %vm519_vm2, %v1833_v48, 0.0  ;;  %v1824_v0 = vmul.f32 %v9603_v46, %v9603_v46  ;;  %v9678_v6 = vsub.f32 %v9436_v58, %v1779_v60 }
 0x489   :  { %v1852_v24 = vadd.f32 %v1851_v34, %v1825_v35  ;;  %v1823_v9 = vmul.f32 %v9659_v44, %v9659_v44  ;;  %v1875_v45 = vsel %vm1453_vm4, %v1811_v42, 0.0  ;;  %v1876_v47 = vsel %vm1453_vm4, %v1815_v23, 0.0 }
 0x48a   :  { %v1838_v40 = vadd.f32 %v1837_v62, %v1820_v59  ;;  %v1828_v55 = vmul.f32 %v9622_v21, %v9622_v21  ;;  %v1832_v36 = vmul.f32 %v9625_v10, %v9625_v10  ;;  %v1877_v19 = vadd.f32 %v1876_v47, %v1875_v45 }
 0x48b   :  { %v1853_v8 = vadd.f32 %v1852_v24, %v1829_v11  ;;  %v9689_v58 = vsub.f32 %v9458_v30, %v1779_v60  ;;  %v1827_v49 = vmul.f32 %v9668_v13, %v9668_v13  ;;  %v1878_v35 = vsel %vm1453_vm4, %v1819_v31, 0.0 }
 0x48c   :  { %v1839_v48 = vadd.f32 %v1838_v40, %v1824_v0  ;;  %v9696_v51 = vsub.f32 %v9387_v17, %v9596_v26  ;;  %v1831_v11 = vmul.f32 %v9678_v6, %v9678_v6  ;;  %v1879_v34 = vadd.f32 %v1878_v35, %v1877_v19 }
 0x48d   :  { %v1855_v37 = vadd.f32 %v1854_v25, %v1853_v8  ;;  %v1880_v42 = vsel %vm1453_vm4, %v1823_v9, 0.0  ;;  %v1810_v30 = vmul.f32 %v9636_v54, %v9636_v54  ;;  %v1814_v60 = vmul.f32 %v9648_v14, %v9648_v14 }
 0x48e   :  { %v1840_v59 = vadd.f32 %v1839_v48, %v1828_v55  ;;  %v1841_v23 = vsel %vm519_vm2, %v1832_v36, 0.0  ;;  %v1881_v31 = vadd.f32 %v1880_v42, %v1879_v34  ;;  %v9708_v17 = vsub.f32 %v9404_v50, %v9596_v26 }
 0x48f   :  { %v1856_v62 = vrot.slane %v1855_v37, 4  ;;  %v1835_v25 = vmul.f32 %v9689_v58, %v9689_v58  ;;  %v1882_v0 = vsel %vm1453_vm4, %v1827_v49, 0.0  ;;  %v9715_v40 = vsub.f32 %v9417_v22, %v9596_v26 }
 0x490   :  { %v1842_v24 = vadd.f32 %v1841_v23, %v1840_v59  ;;  %v1883_v45 = vadd.f32 %v1882_v0, %v1881_v31  ;;  %v1818_v47 = vmul.f32 %v9696_v51, %v9696_v51  ;;  %v1862_v8 = vadd.f32 %v1814_v60, %v1810_v30 }
 0x491   :  { %v1857_v9 = vadd.f32 %v1856_v62, %v1855_v37  ;;  %v1884_v50 = vsel %vm1453_vm4, %v1831_v11, 0.0  ;;  %v9722_v36 = vsub.f32 %v9429_v5, %v9596_v26  ;;  %v9726_v19 = vsub.f32 %v9447_v16, %v9596_v26 }
 0x492   :  { %v1843_v55 = vrot.slane %v1842_v24, 4  ;;  %v1885_v22 = vadd.f32 %v1884_v50, %v1883_v45  ;;  %v1822_v49 = vmul.f32 %v9708_v17, %v9708_v17  ;;  %v1863_v35 = vadd.f32 %v1862_v8, %v1818_v47 }
 0x493   :  { %v1858_v48 = vrot.slane %v1857_v9, 2  ;;  %v1886_v34 = vsel %vm1465_vm5, %v1835_v25, 0.0  ;;  %v1826_v11 = vmul.f32 %v9715_v40, %v9715_v40  ;;  %v1834_v16 = vmul.f32 %v9726_v19, %v9726_v19 }
 0x494   :  { %v1844_v37 = vadd.f32 %v1843_v55, %v1842_v24  ;;  %v1887_v42 = vadd.f32 %v1886_v34, %v1885_v22  ;;  %v1864_v5 = vadd.f32 %v1863_v35, %v1822_v49  ;;  %v1830_v62 = vmul.f32 %v9722_v36, %v9722_v36 }
 0x495   :  { %v1859_v59 = vadd.f32 %v1858_v48, %v1857_v9  ;;  %v1867_v45 = vsel %vm519_vm2, %v1834_v16, 0.0 }
 0x496   :  { %v1845_v30 = vrot.slane %v1844_v37, 2  ;;  %v1888_v60 = vrot.slane %v1887_v42, 4  ;;  %v1865_v23 = vadd.f32 %v1864_v5, %v1826_v11 }
 0x497   :  { %v1860_v26 = vrot.slane %v1859_v59, 1 }
 0x498   :  { %v1846_v31 = vadd.f32 %v1845_v30, %v1844_v37  ;;  %v1889_v0 = vadd.f32 %v1888_v60, %v1887_v42  ;;  %v1866_v25 = vadd.f32 %v1865_v23, %v1830_v62  ;;  %v2229_v60 = vld [vmem:[%s8614_s25] sm:$0xf]  ;;  %v9754_v62 = vsub.s32 1, %v9570_v15  ;;  %s12171_s25 = sld [smem:[#allocation11_spill]] }
 0x499   :  { %v1861_v24 = vadd.f32 %v1860_v26, %v1859_v59 }
 0x49a   :  { %v1847_v9 = vrot.slane %v1846_v31, 1  ;;  %v1890_v47 = vrot.slane %v1889_v0, 2  ;;  %v1868_v8 = vadd.f32 %v1867_v45, %v1866_v25  ;;  %12138 = vst [vmem:[#allocation22_spill] sm:$0xff] %v9754_v62  ;;  %v2245_v25 = vsub.s32 3, %v9570_v15 }
 0x49b   :  { %1961 = vmatprep.mubr.f32.mxu1 %v1861_v24  ;;  %v9758_v24 = vld [vmem:[%s8619_s29] sm:$0xf]  ;;  %s12172_s29 = sld [smem:[#allocation13_spill]] }
 0x49c   :  { %v1848_v55 = vadd.f32 %v1847_v9, %v1846_v31  ;;  %v1891_v50 = vadd.f32 %v1890_v47, %v1889_v0  ;;  %v1869_v48 = vrot.slane %v1868_v8, 4  ;;  %v2238_v0 = vrot.slane %v2229_v60, %v9754_v62 }
 0x49e   :  { %1962 = vmatmul.mubr.f32.vlgmr.msra.gmra.mxu1 %v1848_v55  ;;  %v1892_v22 = vrot.slane %v1891_v50, 1  ;;  %v1870_v49 = vadd.f32 %v1869_v48, %v1868_v8  ;;  %v9778_v48 = vrot.slane %v9758_v24, %v9573_v18 }
 0x49f   :  { %2072 = vmatpush1.msra.mxu1 %v9508_v39  ;;  %2107 = vmatprep.mubr.f32.mxu1 %v12084_v33 }
 0x4a0   :  { %2073 = vmatprep.subr.mxu1 %v9512_v41  ;;  %v1893_v35 = vadd.f32 %v1892_v22, %v1891_v50  ;;  %v1871_v37 = vrot.slane %v1870_v49, 2  ;;  %v9774_v50 = vrot.slane %v9758_v24, %v9754_v62 }
 0x4a1   :  { %2074 = vmatpush1.msra.mxu1 %v9516_v43 }
 0x4a2   :  { %2142 = vmatprep.subr.mxu1 %v9520_v38  ;;  %7664 = vmatprep.mubr.msk.f32.mxu0 %vm1453_vm4, %v1893_v35  ;;  %v1872_v34 = vadd.f32 %v1871_v37, %v1870_v49 }
 0x4a4   :  { %v1873_v59 = vrot.slane %v1872_v34, 1 }
 0x4a6   :  { %v1874_v42 = vadd.f32 %v1873_v59, %v1872_v34 }
 0x4a8   :  { %2032 = vmatmul.mubr.f32.vlgmr.msra.gmra.mxu0 %v1874_v42 }
 0x4a9   :  { %2644 = vmatprep.mubr.f32.mxu0 %v12084_v33 }
 0x55e   :  { %v8135_v11 = vpop.f32.mrf.mxu1 }
 0x560   :  { %v8136_v39 = vpop.f32.mrf.mxu1 }
 0x561   :  { %v8137_v5 = vadd.f32 %v8136_v39, %v8135_v11  ;;  %v9791_v11 = vrot.slane %v2229_v60, %v2245_v25 }
 0x568   :  { %v2033_v30 = vpop.f32.mrf.mxu0 }
 0x569   :  { %v2034_v41 = vadd.f32 %v8137_v5, %v2033_v30 }
 0x56a   :  { %v2035_v16 = vpop.f32.mrf.mxu0 }
 0x56b   :  { %v2037_v26 = vmul.f32 0.000739645, %v2034_v41 }
 0x56d   :  { %v2038_v43 = vadd.f32 1e-05, %v2037_v26 }
 0x56f   :  { %8517 = vrsqrt.f32 %v2038_v43 }
 0x57c   :  { %v8518_v38 = vpop.eup %8517 }
 0x57d   :  { %7665 = vmatmul.mubr.msk.f32.vlgmr.msra.gmra.mxu1 %vm1618_vm6, %v8518_v38 }
 0x57e   :  { %2143 = vmatpush1.msra.mxu1 %v9524_v28  ;;  %2178 = vmatprep.mubr.f32.mxu1 %v12084_v33  ;;  %v9761_v28 = vrot.slane %v2229_v60, %v9573_v18 }
 0x57f   :  { %2144 = vmatprep.subr.mxu1 %v9527_v29  ;;  %v9764_v29 = vsub.s32 2, %v9570_v15 }
 0x580   :  { %2145 = vmatpush1.msra.mxu1 %v9531_v57 }
 0x581   :  { %7666 = vmatmul.mubr.msk.f32.vlgmr.msra.gmra.mxu1 %vm1618_vm6, %v8518_v38  ;;  %12139 = vst [vmem:[#allocation76_spill] sm:$0xff] %v9764_v29 }
 0x582   :  { %2450 = vmatprep.mubr.f32.mxu1 %v12084_v33 }
 0x63d   :  { %v2109_v23 = vpop.f32.mrf.mxu1 }
 0x63e   :  { %v2188_v31 = vrot.slane %v2109_v23, %v9573_v18 }
 0x63f   :  { %v2111_v57 = vpop.f32.mrf.mxu1 }
 0x640   :  { %v2192_v9 = vrot.slane %v2111_v57, %v9573_v18  ;;  %v2225_v45 = vmul.f32 %v2188_v31, %v9625_v10  ;;  %v2221_v47 = vmul.f32 %v2188_v31, %v9622_v21  ;;  %v2217_v8 = vmul.f32 %v2188_v31, %v9603_v46 }
 0x641   :  { %v2180_v55 = vpop.f32.mrf.mxu1  ;;  %v9784_v10 = vrot.slane %v2229_v60, %v9764_v29  ;;  %v2213_v37 = vmul.f32 %v2188_v31, %v9600_v56  ;;  %v2209_v30 = vmul.f32 %v2188_v31, %v9590_v20  ;;  %v2201_v56 = vmul.f32 %v2188_v31, %v9584_v27 }
 0x642   :  { %v2226_v22 = vmul.f32 %v2192_v9, %v9609_v53  ;;  %v2275_v15 = vmul.f32 %v9761_v28, %v2225_v45  ;;  %v2222_v49 = vmul.f32 %v2192_v9, %v9619_v63  ;;  %v2271_v46 = vmul.f32 %v9761_v28, %v2221_v47 }
 0x643   :  { %v2218_v21 = vmul.f32 %v2192_v9, %v9616_v61  ;;  %v2214_v35 = vmul.f32 %v2192_v9, %v9606_v32  ;;  %v2182_v34 = vpop.f32.mrf.mxu1  ;;  %v2267_v53 = vmul.f32 %v9761_v28, %v2217_v8  ;;  %v2205_v32 = vmul.f32 %v2188_v31, %v9587_v3 }
 0x644   :  { %v2276_v59 = vmul.f32 %v2238_v0, %v2226_v22  ;;  %v2272_v42 = vmul.f32 %v2238_v0, %v2222_v49  ;;  %v2325_v63 = vadd.f32 %v9778_v48, %v2275_v15  ;;  %v9800_v16 = vrot.slane %v2180_v55, %v9573_v18 }
 0x645   :  { %v2268_v39 = vmul.f32 %v2238_v0, %v2218_v21  ;;  %v2264_v5 = vmul.f32 %v2238_v0, %v2214_v35  ;;  %v9803_v26 = vrot.slane %v2182_v34, %v9573_v18  ;;  %v2321_v43 = vadd.f32 %v9778_v48, %v2271_v46 }
 0x646   :  { %v2326_v41 = vadd.f32 %v9774_v50, %v2276_v59  ;;  %v2322_v61 = vadd.f32 %v9774_v50, %v2272_v42  ;;  %v2263_v38 = vmul.f32 %v9761_v28, %v2213_v37  ;;  %v2317_v23 = vadd.f32 %v9778_v48, %v2267_v53 }
 0x647   :  { %v2318_v20 = vadd.f32 %v9774_v50, %v2268_v39  ;;  %v2210_v57 = vmul.f32 %v2192_v9, %v9593_v7  ;;  %v2353_v3 = vmax.f32 %v2325_v63, 0.0  ;;  %v2314_v27 = vadd.f32 %v9774_v50, %v2264_v5 }
 0x648   :  { %v2354_v60 = vmax.f32 %v2326_v41, 0.0  ;;  %v2259_v31 = vmul.f32 %v9761_v28, %v2209_v30  ;;  %v2206_v45 = vmul.f32 %v2192_v9, %v9581_v12  ;;  %v2350_v47 = vmax.f32 %v2322_v61, 0.0 }
 0x649   :  { %v2260_v8 = vmul.f32 %v2238_v0, %v2210_v57  ;;  %v2255_v55 = vmul.f32 %v9761_v28, %v2205_v32  ;;  %v2202_v22 = vmul.f32 %v2192_v9, %v9578_v2  ;;  %v2349_v7 = vmax.f32 %v2321_v43, 0.0 }
 0x64a   :  { %7667 = vmatprep.subr.msk.mxu1 %vm519_vm2, %v2354_v60  ;;  %7679 = vmatprep.subr.msk.mxu0 %vm519_vm2, %v2354_v60  ;;  %v2313_v15 = vadd.f32 %v9778_v48, %v2263_v38  ;;  %v2256_v49 = vmul.f32 %v2238_v0, %v2206_v45  ;;  %v9822_v12 = vrot.slane %v9758_v24, %v9764_v29  ;;  %v2346_v46 = vmax.f32 %v2318_v20, 0.0 }
 0x64b   :  { %7668 = vmatpush1.msk.msra.mxu1 %vm519_vm2, %v2353_v3  ;;  %7680 = vmatpush1.msk.msra.mxu0 %vm519_vm2, %v2353_v3  ;;  %v2310_v21 = vadd.f32 %v9774_v50, %v2260_v8  ;;  %v2252_v35 = vmul.f32 %v2238_v0, %v2202_v22  ;;  %v9826_v2 = vrot.slane %v9758_v24, %v2245_v25  ;;  %v2345_v9 = vmax.f32 %v2317_v23, 0.0  ;;  %v9866_v3 = vld [vmem:[%s8624_s3] sm:$0xff] }
 0x64c   :  { %2406 = vmatprep.subr.mxu1 %v2350_v47  ;;  %2600 = vmatprep.subr.mxu0 %v2350_v47  ;;  %v2309_v37 = vadd.f32 %v9778_v48, %v2259_v31  ;;  %v2251_v34 = vmul.f32 %v9761_v28, %v2201_v56  ;;  %v2228_v59 = vmul.f32 %v9803_v26, %v9689_v58  ;;  %v2342_v42 = vmax.f32 %v2314_v27, 0.0  ;;  %v9876_v47 = vld [vmem:[%s8629_s8] sm:$0xff] }
 0x64d   :  { %2407 = vmatpush1.msra.mxu1 %v2349_v7  ;;  %2601 = vmatpush1.msra.mxu0 %v2349_v7  ;;  %v2306_v53 = vadd.f32 %v9774_v50, %v2256_v49  ;;  %v2305_v0 = vadd.f32 %v9778_v48, %v2255_v55  ;;  %v2227_v24 = vmul.f32 %v9800_v16, %v9726_v19  ;;  %v2341_v25 = vmax.f32 %v2313_v15, 0.0 }
 0x64e   :  { %2408 = vmatprep.subr.mxu1 %v2346_v46  ;;  %2602 = vmatprep.subr.mxu0 %v2346_v46  ;;  %v2302_v63 = vadd.f32 %v9774_v50, %v2252_v35  ;;  %v2278_v28 = vmul.f32 %v9791_v11, %v2228_v59  ;;  %v2224_v58 = vmul.f32 %v9803_v26, %v9678_v6  ;;  %v2338_v39 = vmax.f32 %v2310_v21, 0.0  ;;  %v9910_v35 = vld [vmem:[%s8624_s3 + $0x8] sm:$0xff] }
 0x64f   :  { %2409 = vmatpush1.msra.mxu1 %v2345_v9  ;;  %2603 = vmatpush1.msra.mxu0 %v2345_v9  ;;  %v2277_v5 = vmul.f32 %v9784_v10, %v2227_v24  ;;  %v2223_v30 = vmul.f32 %v9800_v16, %v9722_v36  ;;  %v2220_v19 = vmul.f32 %v9803_v26, %v9668_v13  ;;  %v2337_v41 = vmax.f32 %v2309_v37, 0.0  ;;  %v9923_v59 = vld [vmem:[%s8629_s8 + $0x8] sm:$0xff] }
 0x650   :  { %2410 = vmatprep.subr.mxu1 %v2342_v42  ;;  %2604 = vmatprep.subr.mxu0 %v2342_v42  ;;  %v2301_v50 = vadd.f32 %v9778_v48, %v2251_v34  ;;  %v2274_v61 = vmul.f32 %v9791_v11, %v2224_v58  ;;  %v2219_v6 = vmul.f32 %v9800_v16, %v9715_v40  ;;  %v2334_v32 = vmax.f32 %v2306_v53, 0.0 }
 0x651   :  { %2411 = vmatpush1.msra.mxu1 %v2341_v25  ;;  %2605 = vmatpush1.msra.mxu0 %v2341_v25  ;;  %v9850_v56 = vadd.f32 %v9826_v2, %v2278_v28  ;;  %v2273_v36 = vmul.f32 %v9784_v10, %v2223_v30  ;;  %v2270_v13 = vmul.f32 %v9791_v11, %v2220_v19  ;;  %v2333_v43 = vmax.f32 %v2305_v0, 0.0  ;;  %v2359_v28 = vld [vmem:[%s8624_s3 + $0x10] sm:$0xff] }
 0x652   :  { %2412 = vmatprep.subr.mxu1 %v2338_v39  ;;  %2606 = vmatprep.subr.mxu0 %v2338_v39  ;;  %v9855_v48 = vadd.f32 %v9822_v12, %v2277_v5  ;;  %v2269_v38 = vmul.f32 %v9784_v10, %v2219_v6  ;;  %v2216_v40 = vmul.f32 %v9803_v26, %v9659_v44  ;;  %v2330_v60 = vmax.f32 %v2302_v63, 0.0  ;;  %v9954_v39 = vld [vmem:[%s8629_s8 + $0x10] sm:$0xff]  ;;  %v2805_v6 = vld [vmem:[%s8634_s14 + $0xf8] sm:$0xff] }
 0x653   :  { %2413 = vmatpush1.msra.mxu1 %v2337_v41  ;;  %2607 = vmatpush1.msra.mxu0 %v2337_v41  ;;  %v9861_v20 = vadd.f32 %v9826_v2, %v2274_v61  ;;  %v2215_v23 = vmul.f32 %v9800_v16, %v9708_v17  ;;  %v2329_v57 = vmax.f32 %v2301_v50, 0.0  ;;  %v9869_v27 = vadd.f32 %v9822_v12, %v2273_v36  ;;  %v9967_v61 = vld [vmem:[%s8629_s8 + $0x18] sm:$0x3]  ;;  %v2803_v36 = vld [vmem:[%s8634_s14 + $0xe8] sm:$0xff]  ;;  %s12174_s8 = sld [smem:[#allocation14_spill]] }
 0x654   :  { %2414 = vmatprep.subr.mxu1 %v2334_v32  ;;  %2608 = vmatprep.subr.mxu0 %v2334_v32  ;;  %v2266_v44 = vmul.f32 %v9791_v11, %v2216_v40  ;;  %v2212_v31 = vmul.f32 %v9803_v26, %v9642_v1  ;;  %v2356_v45 = vmax.f32 %v9850_v56, 0.0  ;;  %v9879_v17 = vadd.f32 %v9826_v2, %v2270_v13  ;;  %v2804_v32 = vld [vmem:[%s8634_s14 + $0xf0] sm:$0xff]  ;;  %v2802_v13 = vld [vmem:[%s8634_s14 + $0xe0] sm:$0xff]  ;;  %v2801_v56 = vld [vmem:[%s8634_s14 + $0xd8] sm:$0xff] }
 0x655   :  { %2415 = vmatpush1.msra.mxu1 %v2333_v43  ;;  %2609 = vmatpush1.msra.mxu0 %v2333_v43  ;;  %v2265_v8 = vmul.f32 %v9784_v10, %v2215_v23  ;;  %v2211_v55 = vmul.f32 %v9800_v16, %v9696_v51  ;;  %v2355_v22 = vmax.f32 %v9855_v48, 0.0  ;;  %v9886_v1 = vadd.f32 %v9822_v12, %v2269_v38  ;;  %v2800_v43 = vld [vmem:[%s8634_s14 + $0xd0] sm:$0xff]  ;;  %v2799_v48 = vld [vmem:[%s8634_s14 + $0xc8] sm:$0xff]  ;;  %v2798_v38 = vld [vmem:[%s8634_s14 + $0xc0] sm:$0xff] }
 0x656   :  { %2416 = vmatprep.subr.mxu1 %v2330_v60  ;;  %2610 = vmatprep.subr.mxu0 %v2330_v60  ;;  %v2262_v7 = vmul.f32 %v9791_v11, %v2212_v31  ;;  %v2208_v15 = vmul.f32 %v9803_v26, %v9639_v4  ;;  %v2352_v51 = vmax.f32 %v9861_v20, 0.0  ;;  %v9898_v49 = vadd.f32 %v9826_v2, %v2266_v44  ;;  %v2797_v40 = vld [vmem:[%s8634_s14 + $0xb8] sm:$0xff]  ;;  %v2796_v20 = vld [vmem:[%s8634_s14 + $0xb0] sm:$0xff]  ;;  %v2795_v23 = vld [vmem:[%s8634_s14 + $0xa8] sm:$0xff] }
 0x657   :  { %2417 = vmatpush1.msra.mxu1 %v2329_v57  ;;  %2611 = vmatpush1.msra.mxu0 %v2329_v57  ;;  %v2261_v46 = vmul.f32 %v9784_v10, %v2211_v55  ;;  %v2207_v21 = vmul.f32 %v9800_v16, %v9648_v14  ;;  %v2351_v4 = vmax.f32 %v9869_v27, 0.0  ;;  %v9913_v9 = vadd.f32 %v9822_v12, %v2265_v8  ;;  %v2869_v60 = vld [vmem:[%s8634_s14 + $0x2f8] sm:$0xff]  ;;  %v2794_v57 = vld [vmem:[%s8634_s14 + $0xa0] sm:$0xff]  ;;  %v2868_v27 = vld [vmem:[%s8634_s14 + $0x2f0] sm:$0xff] }
 0x658   :  { %7669 = vmatmul.mubr.msk.f32.vlgmr.msra.gmra.mxu1 %vm2361_vm7, %v9866_v3  ;;  %7673 = vmatprep.subr.msk.mxu1 %vm519_vm2, %v2356_v45  ;;  %v2258_v37 = vmul.f32 %v9791_v11, %v2208_v15  ;;  %v2204_v34 = vmul.f32 %v9803_v26, %v9628_v52  ;;  %v2348_v14 = vmax.f32 %v9879_v17, 0.0  ;;  %v9926_v42 = vadd.f32 %v9826_v2, %v2262_v7  ;;  %v2792_v44 = vld [vmem:[%s8634_s14 + $0x90] sm:$0xff]  ;;  %v2867_v31 = vld [vmem:[%s8634_s14 + $0x2e8] sm:$0xff]  ;;  %v2790_v17 = vld [vmem:[%s8634_s14 + $0x80] sm:$0xff] }
 0x659   :  { %7681 = vmatmul.mubr.msk.f32.vlgmr.msra.gmra.mxu0 %vm2361_vm7, %v9876_v47  ;;  %7674 = vmatpush1.msk.msra.mxu1 %vm519_vm2, %v2355_v22  ;;  %v2257_v53 = vmul.f32 %v9784_v10, %v2207_v21  ;;  %v2203_v0 = vmul.f32 %v9800_v16, %v9636_v54  ;;  %v2347_v52 = vmax.f32 %v9886_v1, 0.0  ;;  %v9936_v26 = vadd.f32 %v9822_v12, %v2261_v46  ;;  %v2789_v8 = vld [vmem:[%s8634_s14 + $0x78] sm:$0xff]  ;;  %v2787_v55 = vld [vmem:[%s8634_s14 + $0x68] sm:$0xff]  ;;  %v2784_v7 = vld [vmem:[%s8634_s14 + $0x50] sm:$0xff] }
 0x65a   :  { %2495 = vmatprep.subr.mxu1 %v2352_v51  ;;  %2456 = vmatprep.mubr.f32.mxu1 %v12084_v33  ;;  %v2254_v24 = vmul.f32 %v9791_v11, %v2204_v34  ;;  %v2344_v25 = vmax.f32 %v9898_v49, 0.0  ;;  %v9943_v54 = vadd.f32 %v9826_v2, %v2258_v37  ;;  %v2343_v63 = vmax.f32 %v9913_v9, 0.0  ;;  %v2785_v1 = vld [vmem:[%s8634_s14 + $0x58] sm:$0xff]  ;;  %v2783_v15 = vld [vmem:[%s8634_s14 + $0x48] sm:$0xff]  ;;  %v2780_v46 = vld [vmem:[%s8634_s14 + $0x30] sm:$0xff] }
 0x65b   :  { %2496 = vmatpush1.msra.mxu1 %v2351_v4  ;;  %2650 = vmatprep.mubr.f32.mxu0 %v12084_v33  ;;  %v2253_v16 = vmul.f32 %v9784_v10, %v2203_v0  ;;  %v2307_v11 = vadd.f32 %v9822_v12, %v2257_v53  ;;  %v2340_v58 = vmax.f32 %v9926_v42, 0.0  ;;  %v2339_v5 = vmax.f32 %v9936_v26, 0.0  ;;  %v2781_v49 = vld [vmem:[%s8634_s14 + $0x38] sm:$0xff]  ;;  %v2779_v21 = vld [vmem:[%s8634_s14 + $0x28] sm:$0xff]  ;;  %v2776_v9 = vld [vmem:[%s8634_s14 + $0x10] sm:$0xff] }
 0x65c   :  { %7670 = vmatmul.mubr.msk.f32.gmra.mxu1 %vm2361_vm7, %v9910_v35  ;;  %2497 = vmatprep.subr.mxu1 %v2348_v14  ;;  %v2304_v10 = vadd.f32 %v9826_v2, %v2254_v24  ;;  %v2336_v19 = vmax.f32 %v9943_v54, 0.0  ;;  %v2360_v2 = vld [vmem:[%s8624_s3 + $0x18] sm:$0x3]  ;;  %v2775_v37 = vld [vmem:[%s8634_s14 + $0x8] sm:$0xff]  ;;  %v2774_v34 = vld [vmem:[%s8634_s14] sm:$0xff]  ;;  %s12173_s3 = sld [smem:[#allocation12_spill]] }
 0x65d   :  { %7682 = vmatmul.mubr.msk.f32.gmra.mxu0 %vm2361_vm7, %v9923_v59  ;;  %2498 = vmatpush1.msra.mxu1 %v2347_v52  ;;  %v2303_v30 = vadd.f32 %v9822_v12, %v2253_v16  ;;  %v2335_v41 = vmax.f32 %v2307_v11, 0.0  ;;  %v2835_v42 = vld [vmem:[%s8634_s14 + $0x1e8] sm:$0xff]  ;;  %v2834_v53 = vld [vmem:[%s8634_s14 + $0x1e0] sm:$0xff]  ;;  %v2833_v0 = vld [vmem:[%s8634_s14 + $0x1d8] sm:$0xff] }
 0x65e   :  { %2499 = vmatprep.subr.mxu1 %v2344_v25  ;;  %2462 = vmatprep.mubr.f32.mxu1 %v12084_v33  ;;  %v2332_v50 = vmax.f32 %v2304_v10, 0.0  ;;  %v2831_v26 = vld [vmem:[%s8634_s14 + $0x1c8] sm:$0xff]  ;;  %v2830_v24 = vld [vmem:[%s8634_s14 + $0x1c0] sm:$0xff]  ;;  %v2828_v54 = vld [vmem:[%s8634_s14 + $0x1b0] sm:$0xff] }
 0x65f   :  { %2500 = vmatpush1.msra.mxu1 %v2343_v63  ;;  %2656 = vmatprep.mubr.f32.mxu0 %v12084_v33  ;;  %v2331_v12 = vmax.f32 %v2303_v30, 0.0  ;;  %v2827_v16 = vld [vmem:[%s8634_s14 + $0x1a8] sm:$0xff]  ;;  %v2824_v11 = vld [vmem:[%s8634_s14 + $0x190] sm:$0xff]  ;;  %v2866_v10 = vld [vmem:[%s8634_s14 + $0x2e0] sm:$0xff] }
 0x660   :  { %7671 = vmatmul.mubr.msk.f32.gmra.mxu1 %vm2361_vm7, %v2359_v28  ;;  %2501 = vmatprep.subr.mxu1 %v2340_v58  ;;  %v2865_v30 = vld [vmem:[%s8634_s14 + $0x2d8] sm:$0xff] }
 0x661   :  { %7683 = vmatmul.mubr.msk.f32.gmra.mxu0 %vm2361_vm7, %v9954_v39  ;;  %2502 = vmatpush1.msra.mxu1 %v2339_v5 }
 0x662   :  { %2503 = vmatprep.subr.mxu1 %v2336_v19  ;;  %2468 = vmatprep.mubr.f32.mxu1 %v12084_v33 }
 0x663   :  { %2504 = vmatpush1.msra.mxu1 %v2335_v41  ;;  %2662 = vmatprep.mubr.f32.mxu0 %v12084_v33 }
 0x664   :  { %7672 = vmatmul.mubr.msk.f32.gmra.mxu1 %vm2361_vm7, %v2360_v2  ;;  %2505 = vmatprep.subr.mxu1 %v2332_v50 }
 0x665   :  { %7684 = vmatmul.mubr.msk.f32.gmra.mxu0 %vm2361_vm7, %v9967_v61  ;;  %2506 = vmatpush1.msra.mxu1 %v2331_v12 }
 0x666   :  { %7685 = vmatprep.subr.msk.mxu1 %vm519_vm2, %v2356_v45  ;;  %2539 = vmatprep.mubr.f32.mxu1 %v12084_v33  ;;  %v2791_v45 = vld [vmem:[%s8634_s14 + $0x88] sm:$0xff] }
 0x667   :  { %2890 = vmatprep.subr.mxu0 %v2805_v6  ;;  %v2861_v6 = vld [vmem:[%s8634_s14 + $0x2b8] sm:$0xff] }
 0x668   :  { %7675 = vmatmul.mubr.msk.f32.vlgmr.msra.gmra.mxu1 %vm2361_vm7, %v9866_v3  ;;  %2891 = vmatpush1.msra.mxu0 %v2804_v32  ;;  %v2793_v3 = vld [vmem:[%s8634_s14 + $0x98] sm:$0xff] }
 0x669   :  { %7686 = vmatpush1.msk.msra.mxu1 %vm519_vm2, %v2355_v22  ;;  %2545 = vmatprep.mubr.f32.mxu1 %v12084_v33  ;;  %v2786_v22 = vld [vmem:[%s8634_s14 + $0x60] sm:$0xff]  ;;  %v2817_v32 = vld [vmem:[%s8634_s14 + $0x158] sm:$0xff]  ;;  %vm6687_vm2 = vcmask 523264  }
 0x66a   :  { %2689 = vmatprep.subr.mxu1 %v2352_v51  ;;  %2892 = vmatprep.subr.mxu0 %v2803_v36  ;;  %v2782_v51 = vld [vmem:[%s8634_s14 + $0x40] sm:$0xff]  ;;  %v2816_v36 = vld [vmem:[%s8634_s14 + $0x150] sm:$0xff] }
 0x66b   :  { %2690 = vmatpush1.msra.mxu1 %v2351_v4  ;;  %2893 = vmatpush1.msra.mxu0 %v2802_v13  ;;  %v2778_v4 = vld [vmem:[%s8634_s14 + $0x20] sm:$0xff]  ;;  %v2860_v13 = vld [vmem:[%s8634_s14 + $0x2b0] sm:$0xff] }
 0x66c   :  { %2691 = vmatprep.subr.mxu1 %v2348_v14  ;;  %7676 = vmatmul.mubr.msk.f32.gmra.mxu1 %vm2361_vm7, %v9910_v35  ;;  %v2777_v35 = vld [vmem:[%s8634_s14 + $0x18] sm:$0xff] }
 0x66d   :  { %2692 = vmatpush1.msra.mxu1 %v2347_v52  ;;  %2551 = vmatprep.mubr.f32.mxu1 %v12084_v33  ;;  %v2837_v14 = vld [vmem:[%s8634_s14 + $0x1f8] sm:$0xff]  ;;  %v2832_v52 = vld [vmem:[%s8634_s14 + $0x1d0] sm:$0xff] }
 0x66e   :  { %2693 = vmatprep.subr.mxu1 %v2344_v25  ;;  %2894 = vmatprep.subr.mxu0 %v2801_v56  ;;  %v2829_v25 = vld [vmem:[%s8634_s14 + $0x1b8] sm:$0xff]  ;;  %v2859_v56 = vld [vmem:[%s8634_s14 + $0x2a8] sm:$0xff] }
 0x66f   :  { %2694 = vmatpush1.msra.mxu1 %v2343_v63  ;;  %2895 = vmatpush1.msra.mxu0 %v2800_v43  ;;  %v2826_v63 = vld [vmem:[%s8634_s14 + $0x1a0] sm:$0xff]  ;;  %v2815_v43 = vld [vmem:[%s8634_s14 + $0x148] sm:$0xff] }
 0x670   :  { %2695 = vmatprep.subr.mxu1 %v2340_v58  ;;  %7677 = vmatmul.mubr.msk.f32.gmra.mxu1 %vm2361_vm7, %v2359_v28  ;;  %v2825_v28 = vld [vmem:[%s8634_s14 + $0x198] sm:$0xff]  ;;  %v2823_v58 = vld [vmem:[%s8634_s14 + $0x188] sm:$0xff] }
 0x671   :  { %2696 = vmatpush1.msra.mxu1 %v2339_v5  ;;  %2557 = vmatprep.mubr.f32.mxu1 %v12084_v33  ;;  %v2821_v5 = vld [vmem:[%s8634_s14 + $0x178] sm:$0xff] }
 0x672   :  { %2697 = vmatprep.subr.mxu1 %v2336_v19  ;;  %2896 = vmatprep.subr.mxu0 %v2799_v48  ;;  %v2820_v19 = vld [vmem:[%s8634_s14 + $0x170] sm:$0xff]  ;;  %v2814_v48 = vld [vmem:[%s8634_s14 + $0x140] sm:$0xff] }
 0x673   :  { %2698 = vmatpush1.msra.mxu1 %v2335_v41  ;;  %2897 = vmatpush1.msra.mxu0 %v2798_v38  ;;  %v2864_v41 = vld [vmem:[%s8634_s14 + $0x2d0] sm:$0xff]  ;;  %v2858_v38 = vld [vmem:[%s8634_s14 + $0x2a0] sm:$0xff] }
 0x674   :  { %2699 = vmatprep.subr.mxu1 %v2332_v50  ;;  %7678 = vmatmul.mubr.msk.f32.gmra.mxu1 %vm2361_vm7, %v2360_v2  ;;  %v2819_v2 = vld [vmem:[%s8634_s14 + $0x168] sm:$0xff] }
 0x675   :  { %2700 = vmatpush1.msra.mxu1 %v2331_v12  ;;  %2733 = vmatprep.mubr.f32.mxu1 %v12084_v33  ;;  %v2863_v50 = vld [vmem:[%s8634_s14 + $0x2c8] sm:$0xff]  ;;  %v2862_v12 = vld [vmem:[%s8634_s14 + $0x2c0] sm:$0xff] }
 0x676   :  { %2898 = vmatprep.subr.mxu0 %v2797_v40  ;;  %2979 = vmatprep.subr.mxu1 %v2869_v60  ;;  %v2857_v40 = vld [vmem:[%s8634_s14 + $0x298] sm:$0xff] }
 0x677   :  { %2899 = vmatpush1.msra.mxu0 %v2796_v20  ;;  %v2813_v60 = vld [vmem:[%s8634_s14 + $0x138] sm:$0xff]  ;;  %v2812_v20 = vld [vmem:[%s8634_s14 + $0x130] sm:$0xff] }
 0x678   :  { %7687 = vmatmul.mubr.msk.f32.vlgmr.msra.gmra.mxu1 %vm2361_vm7, %v9876_v47  ;;  %2900 = vmatprep.subr.mxu0 %v2795_v23  ;;  %v2788_v47 = vld [vmem:[%s8634_s14 + $0x70] sm:$0xff] }
 0x679   :  { %2739 = vmatprep.mubr.f32.mxu1 %v12084_v33  ;;  %2901 = vmatpush1.msra.mxu0 %v2794_v57  ;;  %v2856_v23 = vld [vmem:[%s8634_s14 + $0x290] sm:$0xff]  ;;  %v2855_v57 = vld [vmem:[%s8634_s14 + $0x288] sm:$0xff] }
 0x67a   :  { %2902 = vmatprep.subr.mxu0 %v2793_v3  ;;  %2980 = vmatpush1.msra.mxu1 %v2868_v27  ;;  %v2811_v3 = vld [vmem:[%s8634_s14 + $0x128] sm:$0xff]  ;;  %v2810_v27 = vld [vmem:[%s8634_s14 + $0x120] sm:$0xff] }
 0x67b   :  { %2903 = vmatpush1.msra.mxu0 %v2792_v44  ;;  %2981 = vmatprep.subr.mxu1 %v2867_v31  ;;  %v2854_v44 = vld [vmem:[%s8634_s14 + $0x280] sm:$0xff]  ;;  %v2853_v31 = vld [vmem:[%s8634_s14 + $0x278] sm:$0xff] }
 0x67c   :  { %7688 = vmatmul.mubr.msk.f32.gmra.mxu1 %vm2361_vm7, %v9923_v59  ;;  %2904 = vmatprep.subr.mxu0 %v2791_v45  ;;  %v2836_v59 = vld [vmem:[%s8634_s14 + $0x1f0] sm:$0xff]  ;;  %v2809_v45 = vld [vmem:[%s8634_s14 + $0x118] sm:$0xff] }
 0x67d   :  { %2745 = vmatprep.mubr.f32.mxu1 %v12084_v33  ;;  %2905 = vmatpush1.msra.mxu0 %v2790_v17  ;;  %v2808_v17 = vld [vmem:[%s8634_s14 + $0x110] sm:$0xff] }
 0x67e   :  { %2906 = vmatprep.subr.mxu0 %v2789_v8  ;;  %2982 = vmatpush1.msra.mxu1 %v2866_v10  ;;  %v2852_v8 = vld [vmem:[%s8634_s14 + $0x270] sm:$0xff] }
 0x67f   :  { %2907 = vmatpush1.msra.mxu0 %v2788_v47  ;;  %2983 = vmatprep.subr.mxu1 %v2865_v30  ;;  %v2851_v47 = vld [vmem:[%s8634_s14 + $0x268] sm:$0xff] }
 0x680   :  { %7689 = vmatmul.mubr.msk.f32.gmra.mxu1 %vm2361_vm7, %v9954_v39  ;;  %2908 = vmatprep.subr.mxu0 %v2787_v55  ;;  %v2822_v39 = vld [vmem:[%s8634_s14 + $0x180] sm:$0xff]  ;;  %v2807_v55 = vld [vmem:[%s8634_s14 + $0x108] sm:$0xff] }
 0x681   :  { %2751 = vmatprep.mubr.f32.mxu1 %v12084_v33  ;;  %2909 = vmatpush1.msra.mxu0 %v2786_v22  ;;  %v2850_v22 = vld [vmem:[%s8634_s14 + $0x260] sm:$0xff] }
 0x682   :  { %2910 = vmatprep.subr.mxu0 %v2785_v1  ;;  %2984 = vmatpush1.msra.mxu1 %v2864_v41  ;;  %v2806_v1 = vld [vmem:[%s8634_s14 + $0x100] sm:$0xff] }
 0x683   :  { %2911 = vmatpush1.msra.mxu0 %v2784_v7  ;;  %2985 = vmatprep.subr.mxu1 %v2863_v50  ;;  %v2849_v7 = vld [vmem:[%s8634_s14 + $0x258] sm:$0xff] }
 0x684   :  { %7690 = vmatmul.mubr.msk.f32.gmra.mxu1 %vm2361_vm7, %v9967_v61  ;;  %2912 = vmatprep.subr.mxu0 %v2783_v15  ;;  %v2818_v61 = vld [vmem:[%s8634_s14 + $0x160] sm:$0xff]  ;;  %v3163_v15 = vld [vmem:[%s8639_s19 + $0x2f8] sm:$0xff] }
 0x685   :  { %2913 = vmatpush1.msra.mxu0 %v2782_v51  ;;  %2986 = vmatpush1.msra.mxu1 %v2862_v12  ;;  %v2848_v51 = vld [vmem:[%s8634_s14 + $0x250] sm:$0xff] }
 0x686   :  { %2914 = vmatprep.subr.mxu0 %v2781_v49  ;;  %2987 = vmatprep.subr.mxu1 %v2861_v6  ;;  %v2847_v49 = vld [vmem:[%s8634_s14 + $0x248] sm:$0xff] }
 0x687   :  { %2915 = vmatpush1.msra.mxu0 %v2780_v46  ;;  %2988 = vmatpush1.msra.mxu1 %v2860_v13  ;;  %v2846_v46 = vld [vmem:[%s8634_s14 + $0x240] sm:$0xff] }
 0x688   :  { %2916 = vmatprep.subr.mxu0 %v2779_v21  ;;  %2989 = vmatprep.subr.mxu1 %v2859_v56  ;;  %v2845_v21 = vld [vmem:[%s8634_s14 + $0x238] sm:$0xff]  ;;  %v3158_v56 = vld [vmem:[%s8639_s19 + $0x2d0] sm:$0xff] }
 0x689   :  { %2917 = vmatpush1.msra.mxu0 %v2778_v4  ;;  %2990 = vmatpush1.msra.mxu1 %v2858_v38  ;;  %v2844_v4 = vld [vmem:[%s8634_s14 + $0x230] sm:$0xff] }
 0x68a   :  { %2918 = vmatprep.subr.mxu0 %v2777_v35  ;;  %2991 = vmatprep.subr.mxu1 %v2857_v40  ;;  %v2843_v35 = vld [vmem:[%s8634_s14 + $0x228] sm:$0xff]  ;;  %v3156_v40 = vld [vmem:[%s8639_s19 + $0x2c0] sm:$0xff] }
 0x68b   :  { %2919 = vmatpush1.msra.mxu0 %v2776_v9  ;;  %2992 = vmatpush1.msra.mxu1 %v2856_v23  ;;  %v2842_v9 = vld [vmem:[%s8634_s14 + $0x220] sm:$0xff]  ;;  %v3155_v23 = vld [vmem:[%s8639_s19 + $0x2b8] sm:$0xff] }
 0x68c   :  { %2920 = vmatprep.subr.mxu0 %v2775_v37  ;;  %2993 = vmatprep.subr.mxu1 %v2855_v57  ;;  %v2841_v37 = vld [vmem:[%s8634_s14 + $0x218] sm:$0xff] }
 0x68d   :  { %2921 = vmatpush1.msra.mxu0 %v2774_v34  ;;  %2994 = vmatpush1.msra.mxu1 %v2854_v44  ;;  %v2840_v34 = vld [vmem:[%s8634_s14 + $0x210] sm:$0xff] }
 0x68e   :  { %2922 = vmatprep.subr.mxu0 %v2837_v14  ;;  %2995 = vmatprep.subr.mxu1 %v2853_v31  ;;  %v2839_v14 = vld [vmem:[%s8634_s14 + $0x208] sm:$0xff] }
 0x68f   :  { %2923 = vmatpush2.msra.mxu0 %v2836_v59  ;;  %2996 = vmatpush1.msra.mxu1 %v2852_v8  ;;  %v2838_v59 = vld [vmem:[%s8634_s14 + $0x200] sm:$0xff]  ;;  %v3153_v31 = vld [vmem:[%s8639_s19 + $0x2a8] sm:$0xff] }
 0x690   :  { %2924 = vmatprep.subr.mxu0 %v2835_v42  ;;  %2997 = vmatprep.subr.mxu1 %v2851_v47  ;;  %v2877_v42 = vld [vmem:[%s8634_s14 + $0x338] sm:$0xff] }
 0x691   :  { %2925 = vmatpush2.msra.mxu0 %v2834_v53  ;;  %2998 = vmatpush1.msra.mxu1 %v2850_v22  ;;  %v2876_v53 = vld [vmem:[%s8634_s14 + $0x330] sm:$0xff] }
 0x692   :  { %2926 = vmatprep.subr.mxu0 %v2833_v0  ;;  %2999 = vmatprep.subr.mxu1 %v2849_v7  ;;  %v2875_v0 = vld [vmem:[%s8634_s14 + $0x328] sm:$0xff] }
 0x693   :  { %2927 = vmatpush2.msra.mxu0 %v2832_v52  ;;  %3000 = vmatpush1.msra.mxu1 %v2848_v51  ;;  %v2874_v52 = vld [vmem:[%s8634_s14 + $0x320] sm:$0xff] }
 0x694   :  { %2928 = vmatprep.subr.mxu0 %v2831_v26  ;;  %3001 = vmatprep.subr.mxu1 %v2847_v49  ;;  %v2873_v26 = vld [vmem:[%s8634_s14 + $0x318] sm:$0xff]  ;;  %v3148_v51 = vld [vmem:[%s8639_s19 + $0x280] sm:$0xff] }
 0x695   :  { %2929 = vmatpush2.msra.mxu0 %v2830_v24  ;;  %3002 = vmatpush1.msra.mxu1 %v2846_v46  ;;  %v2872_v24 = vld [vmem:[%s8634_s14 + $0x310] sm:$0xff]  ;;  %v3147_v46 = vld [vmem:[%s8639_s19 + $0x278] sm:$0xff] }
 0x696   :  { %2930 = vmatprep.subr.mxu0 %v2829_v25  ;;  %3003 = vmatprep.subr.mxu1 %v2845_v21  ;;  %v2871_v25 = vld [vmem:[%s8634_s14 + $0x308] sm:$0xff]  ;;  %v3146_v21 = vld [vmem:[%s8639_s19 + $0x270] sm:$0xff] }
 0x697   :  { %2931 = vmatpush2.msra.mxu0 %v2828_v54  ;;  %3004 = vmatpush1.msra.mxu1 %v2844_v4  ;;  %v2870_v54 = vld [vmem:[%s8634_s14 + $0x300] sm:$0xff]  ;;  %s12175_s14 = sld [smem:[#allocation15_spill]] }
 0x698   :  { %2932 = vmatprep.subr.mxu0 %v2827_v16  ;;  %3005 = vmatprep.subr.mxu1 %v2843_v35  ;;  %v3099_v16 = vld [vmem:[%s8639_s19 + $0xf8] sm:$0xff]  ;;  %v3145_v35 = vld [vmem:[%s8639_s19 + $0x268] sm:$0xff] }
 0x699   :  { %2933 = vmatpush2.msra.mxu0 %v2826_v63  ;;  %3006 = vmatpush1.msra.mxu1 %v2842_v9  ;;  %v3144_v9 = vld [vmem:[%s8639_s19 + $0x260] sm:$0xff] }
 0x69a   :  { %2934 = vmatprep.subr.mxu0 %v2825_v28  ;;  %3007 = vmatprep.subr.mxu1 %v2841_v37 }
 0x69b   :  { %2935 = vmatpush2.msra.mxu0 %v2824_v11  ;;  %3008 = vmatpush1.msra.mxu1 %v2840_v34  ;;  %v3143_v34 = vld [vmem:[%s8639_s19 + $0x258] sm:$0xff] }
 0x69c   :  { %2936 = vmatprep.subr.mxu0 %v2823_v58  ;;  %3009 = vmatprep.subr.mxu1 %v2839_v14  ;;  %v3142_v14 = vld [vmem:[%s8639_s19 + $0x250] sm:$0xff] }
 0x69d   :  { %2937 = vmatpush2.msra.mxu0 %v2822_v39  ;;  %3010 = vmatpush1.msra.mxu1 %v2838_v59 }
 0x69e   :  { %2938 = vmatprep.subr.mxu0 %v2821_v5  ;;  %3035 = vmatprep.subr.mxu1 %v2877_v42  ;;  %v3141_v42 = vld [vmem:[%s8639_s19 + $0x248] sm:$0xff] }
 0x69f   :  { %2939 = vmatpush2.msra.mxu0 %v2820_v19  ;;  %3036 = vmatpush2.msra.mxu1 %v2876_v53  ;;  %v3162_v19 = vld [vmem:[%s8639_s19 + $0x2f0] sm:$0xff]  ;;  %v3140_v53 = vld [vmem:[%s8639_s19 + $0x240] sm:$0xff] }
 0x6a0   :  { %2940 = vmatprep.subr.mxu0 %v2819_v2  ;;  %3037 = vmatprep.subr.mxu1 %v2875_v0  ;;  %v3161_v2 = vld [vmem:[%s8639_s19 + $0x2e8] sm:$0xff] }
 0x6a1   :  { %2941 = vmatpush2.msra.mxu0 %v2818_v61  ;;  %3038 = vmatpush2.msra.mxu1 %v2874_v52  ;;  %v3160_v61 = vld [vmem:[%s8639_s19 + $0x2e0] sm:$0xff]  ;;  %v3139_v52 = vld [vmem:[%s8639_s19 + $0x238] sm:$0xff] }
 0x6a2   :  { %2942 = vmatprep.subr.mxu0 %v2817_v32  ;;  %3039 = vmatprep.subr.mxu1 %v2873_v26  ;;  %v3159_v32 = vld [vmem:[%s8639_s19 + $0x2d8] sm:$0xff]  ;;  %v3138_v26 = vld [vmem:[%s8639_s19 + $0x230] sm:$0xff] }
 0x6a3   :  { %2943 = vmatpush2.msra.mxu0 %v2816_v36  ;;  %3040 = vmatpush2.msra.mxu1 %v2872_v24 }
 0x6a4   :  { %2944 = vmatprep.subr.mxu0 %v2815_v43  ;;  %3041 = vmatprep.subr.mxu1 %v2871_v25  ;;  %v3137_v25 = vld [vmem:[%s8639_s19 + $0x228] sm:$0xff] }
 0x6a5   :  { %2945 = vmatpush2.msra.mxu0 %v2814_v48  ;;  %3042 = vmatpush2.msra.mxu1 %v2870_v54  ;;  %v3157_v48 = vld [vmem:[%s8639_s19 + $0x2c8] sm:$0xff]  ;;  %v3136_v54 = vld [vmem:[%s8639_s19 + $0x220] sm:$0xff] }
 0x6a6   :  { %2946 = vmatprep.subr.mxu0 %v2813_v60  ;;  %3172 = vmatprep.subr.mxu1 %v3099_v16 }
 0x6a7   :  { %2947 = vmatpush2.msra.mxu0 %v2812_v20 }
 0x6a8   :  { %2948 = vmatprep.subr.mxu0 %v2811_v3 }
 0x6a9   :  { %2949 = vmatpush2.msra.mxu0 %v2810_v27  ;;  %v3154_v27 = vld [vmem:[%s8639_s19 + $0x2b0] sm:$0xff] }
 0x6aa   :  { %2950 = vmatprep.subr.mxu0 %v2809_v45 }
 0x6ab   :  { %2951 = vmatpush2.msra.mxu0 %v2808_v17  ;;  %v3152_v17 = vld [vmem:[%s8639_s19 + $0x2a0] sm:$0xff] }
 0x6ac   :  { %2952 = vmatprep.subr.mxu0 %v2807_v55  ;;  %v3151_v55 = vld [vmem:[%s8639_s19 + $0x298] sm:$0xff] }
 0x6ad   :  { %2953 = vmatpush2.msra.mxu0 %v2806_v1  ;;  %v3150_v1 = vld [vmem:[%s8639_s19 + $0x290] sm:$0xff] }
 0x6ae   :  { %3261 = vmatprep.subr.mxu0 %v3163_v15  ;;  %v3149_v15 = vld [vmem:[%s8639_s19 + $0x288] sm:$0xff] }
 0x718   :  { %v2452_v63 = vpop.f32.mrf.mxu1 }
 0x719   :  { %v2646_v28 = vpop.f32.mrf.mxu0 }
 0x71a   :  { %v2454_v11 = vpop.f32.mrf.mxu1  ;;  %v10113_v5 = vmax.f32 %v2452_v63, %v2646_v28  ;;  %v3135_v63 = vld [vmem:[%s8639_s19 + $0x218] sm:$0xff]  ;;  %v3134_v28 = vld [vmem:[%s8639_s19 + $0x210] sm:$0xff] }
 0x71b   :  { %v2648_v58 = vpop.f32.mrf.mxu0 }
 0x71c   :  { %v10111_v39 = vmax.f32 %v2454_v11, %v2648_v58  ;;  %v2458_v10 = vpop.f32.mrf.mxu1  ;;  %v3133_v58 = vld [vmem:[%s8639_s19 + $0x208] sm:$0xff] }
 0x71d   :  { %v2652_v30 = vpop.f32.mrf.mxu0 }
 0x71e   :  { %2954 = vmatprep.mubr.f32.mxu0 %v10111_v39  ;;  %v2460_v41 = vpop.f32.mrf.mxu1  ;;  %v10123_v36 = vmax.f32 %v2458_v10, %v2652_v30  ;;  %v3132_v30 = vld [vmem:[%s8639_s19 + $0x200] sm:$0xff] }
 0x71f   :  { %v2654_v50 = vpop.f32.mrf.mxu0  ;;  %2955 = vmatmul.mubr.f32.vlgmr.msra.gmra.mxu0 %v10113_v5 }
 0x720   :  { %v10120_v12 = vmax.f32 %v2460_v41, %v2654_v50  ;;  %3262 = vmatpush1.msra.mxu0 %v3162_v19  ;;  %v2464_v6 = vpop.f32.mrf.mxu1  ;;  %v3171_v41 = vld [vmem:[%s8639_s19 + $0x338] sm:$0xff]  ;;  %v3098_v50 = vld [vmem:[%s8639_s19 + $0xf0] sm:$0xff] }
 0x721   :  { %3263 = vmatprep.subr.mxu0 %v3161_v2  ;;  %v2658_v13 = vpop.f32.mrf.mxu0 }
 0x722   :  { %3264 = vmatpush1.msra.mxu0 %v3160_v61  ;;  %2960 = vmatprep.mubr.f32.mxu0 %v10120_v12  ;;  %v2466_v43 = vpop.f32.mrf.mxu1  ;;  %v10133_v57 = vmax.f32 %v2464_v6, %v2658_v13  ;;  %v3170_v61 = vld [vmem:[%s8639_s19 + $0x330] sm:$0xff]  ;;  %v3169_v13 = vld [vmem:[%s8639_s19 + $0x328] sm:$0xff] }
 0x723   :  { %3265 = vmatprep.subr.mxu0 %v3159_v32  ;;  %v2660_v38 = vpop.f32.mrf.mxu0  ;;  %2961 = vmatmul.mubr.f32.gmra.mxu0 %v10123_v36  ;;  %v3097_v32 = vld [vmem:[%s8639_s19 + $0xe8] sm:$0xff] }
 0x724   :  { %v10130_v60 = vmax.f32 %v2466_v43, %v2660_v38  ;;  %3266 = vmatpush1.msra.mxu0 %v3158_v56  ;;  %v2470_v20 = vpop.f32.mrf.mxu1  ;;  %v3096_v43 = vld [vmem:[%s8639_s19 + $0xe0] sm:$0xff] }
 0x725   :  { %3267 = vmatprep.subr.mxu0 %v3157_v48  ;;  %v2664_v3 = vpop.f32.mrf.mxu0  ;;  %v3168_v48 = vld [vmem:[%s8639_s19 + $0x320] sm:$0xff] }
 0x726   :  { %3268 = vmatpush1.msra.mxu0 %v3156_v40  ;;  %2966 = vmatprep.mubr.f32.mxu0 %v10130_v60  ;;  %v2472_v44 = vpop.f32.mrf.mxu1  ;;  %v10143_v22 = vmax.f32 %v2470_v20, %v2664_v3  ;;  %v3095_v40 = vld [vmem:[%s8639_s19 + $0xd8] sm:$0xff] }
 0x727   :  { %3269 = vmatprep.subr.mxu0 %v3155_v23  ;;  %v2666_v45 = vpop.f32.mrf.mxu0  ;;  %2967 = vmatmul.mubr.f32.gmra.mxu0 %v10133_v57  ;;  %v3167_v20 = vld [vmem:[%s8639_s19 + $0x318] sm:$0xff] }
 0x728   :  { %v10140_v8 = vmax.f32 %v2472_v44, %v2666_v45  ;;  %3270 = vmatpush1.msra.mxu0 %v3154_v27  ;;  %v2541_v47 = vpop.f32.mrf.mxu1  ;;  %v3094_v27 = vld [vmem:[%s8639_s19 + $0xd0] sm:$0xff]  ;;  %v3165_v45 = vld [vmem:[%s8639_s19 + $0x308] sm:$0xff] }
 0x729   :  { %3271 = vmatprep.subr.mxu0 %v3153_v31  ;;  %v3166_v44 = vld [vmem:[%s8639_s19 + $0x310] sm:$0xff]  ;;  %v3093_v31 = vld [vmem:[%s8639_s19 + $0xc8] sm:$0xff] }
 0x72a   :  { %3272 = vmatpush1.msra.mxu0 %v3152_v17  ;;  %2972 = vmatprep.mubr.f32.mxu0 %v10140_v8  ;;  %v2543_v7 = vpop.f32.mrf.mxu1 }
 0x72b   :  { %3273 = vmatprep.subr.mxu0 %v3151_v55  ;;  %2973 = vmatmul.mubr.f32.gmra.mxu0 %v10143_v22  ;;  %v3092_v55 = vld [vmem:[%s8639_s19 + $0xc0] sm:$0xff] }
 0x72c   :  { %3274 = vmatpush1.msra.mxu0 %v3150_v1  ;;  %v10150_v49 = vpop.f32.mrf.mxu1  ;;  %v3164_v1 = vld [vmem:[%s8639_s19 + $0x300] sm:$0xff] }
 0x72d   :  { %3275 = vmatprep.subr.mxu0 %v3149_v15 }
 0x72e   :  { %3276 = vmatpush1.msra.mxu0 %v3148_v51  ;;  %v2549_v4 = vpop.f32.mrf.mxu1 }
 0x72f   :  { %3277 = vmatprep.subr.mxu0 %v3147_v46  ;;  %v3090_v46 = vld [vmem:[%s8639_s19 + $0xb0] sm:$0xff] }
 0x730   :  { %3278 = vmatpush1.msra.mxu0 %v3146_v21  ;;  %v10156_v37 = vpop.f32.mrf.mxu1  ;;  %v3089_v21 = vld [vmem:[%s8639_s19 + $0xa8] sm:$0xff] }
 0x731   :  { %3279 = vmatprep.subr.mxu0 %v3145_v35  ;;  %v3087_v35 = vld [vmem:[%s8639_s19 + $0x98] sm:$0xff] }
 0x732   :  { %3280 = vmatpush1.msra.mxu0 %v3144_v9  ;;  %v2555_v59 = vpop.f32.mrf.mxu1 }
 0x733   :  { %3281 = vmatprep.subr.mxu0 %v3143_v34  ;;  %v3085_v34 = vld [vmem:[%s8639_s19 + $0x88] sm:$0xff] }
 0x734   :  { %3282 = vmatpush1.msra.mxu0 %v3142_v14  ;;  %v10162_v0 = vpop.f32.mrf.mxu1  ;;  %v3084_v14 = vld [vmem:[%s8639_s19 + $0x80] sm:$0xff] }
 0x735   :  { %3283 = vmatprep.subr.mxu0 %v3141_v42  ;;  %v3082_v42 = vld [vmem:[%s8639_s19 + $0x70] sm:$0xff] }
 0x736   :  { %3284 = vmatpush1.msra.mxu0 %v3140_v53  ;;  %v10166_v24 = vpop.f32.mrf.mxu1  ;;  %v3081_v53 = vld [vmem:[%s8639_s19 + $0x68] sm:$0xff] }
 0x737   :  { %3285 = vmatprep.subr.mxu0 %v3139_v52  ;;  %v3079_v52 = vld [vmem:[%s8639_s19 + $0x58] sm:$0xff] }
 0x738   :  { %3286 = vmatpush1.msra.mxu0 %v3138_v26  ;;  %v2735_v16 = vpop.f32.mrf.mxu1  ;;  %v3077_v26 = vld [vmem:[%s8639_s19 + $0x48] sm:$0xff] }
 0x739   :  { %3287 = vmatprep.subr.mxu0 %v3137_v25  ;;  %v2760_v2 = vmax.f32 %v2541_v47, %v2735_v16  ;;  %v3075_v25 = vld [vmem:[%s8639_s19 + $0x38] sm:$0xff]  ;;  %v3073_v16 = vld [vmem:[%s8639_s19 + $0x28] sm:$0xff] }
 0x73a   :  { %3288 = vmatpush1.msra.mxu0 %v3136_v54  ;;  %v2737_v11 = vpop.f32.mrf.mxu1  ;;  %v3074_v54 = vld [vmem:[%s8639_s19 + $0x30] sm:$0xff] }
 0x73b   :  { %3289 = vmatprep.subr.mxu0 %v3135_v63  ;;  %v2761_v10 = vmax.f32 %v2543_v7, %v2737_v11  ;;  %v3091_v7 = vld [vmem:[%s8639_s19 + $0xb8] sm:$0xff]  ;;  %v3072_v63 = vld [vmem:[%s8639_s19 + $0x20] sm:$0xff]  ;;  %v3070_v11 = vld [vmem:[%s8639_s19 + $0x10] sm:$0xff] }
 0x73c   :  { %3290 = vmatpush1.msra.mxu0 %v3134_v28  ;;  %v2741_v19 = vpop.f32.mrf.mxu1  ;;  %v3071_v28 = vld [vmem:[%s8639_s19 + $0x18] sm:$0xff] }
 0x73d   :  { %3291 = vmatprep.subr.mxu0 %v3133_v58  ;;  %7691 = vmatprep.mubr.msk.f32.mxu1 %vm1453_vm4, %v2761_v10  ;;  %v2764_v23 = vmax.f32 %v10150_v49, %v2741_v19  ;;  %v3069_v58 = vld [vmem:[%s8639_s19 + $0x8] sm:$0xff]  ;;  %v3130_v19 = vld [vmem:[%s8639_s19 + $0x1f0] sm:$0xff] }
 0x73e   :  { %3292 = vmatpush1.msra.mxu0 %v3132_v30  ;;  %7695 = vmatprep.mubr.msk.f32.mxu0 %vm1453_vm4, %v2761_v10  ;;  %v2743_v6 = vpop.f32.mrf.mxu1  ;;  %v3068_v10 = vld [vmem:[%s8639_s19] sm:$0xff]  ;;  %v3131_v30 = vld [vmem:[%s8639_s19 + $0x1f8] sm:$0xff] }
 0x73f   :  { %3317 = vmatprep.subr.mxu0 %v3171_v41  ;;  %v2765_v56 = vmax.f32 %v2549_v4, %v2743_v6  ;;  %3044 = vmatmul.mubr.f32.vlgmr.msra.gmra.mxu1 %v2760_v2  ;;  %v3088_v4 = vld [vmem:[%s8639_s19 + $0xa0] sm:$0xff]  ;;  %v3129_v41 = vld [vmem:[%s8639_s19 + $0x1e8] sm:$0xff] }
 0x740   :  { %3173 = vmatpush1.msra.mxu1 %v3098_v50  ;;  %3318 = vmatpush2.msra.mxu0 %v3170_v61  ;;  %v2747_v38 = vpop.f32.mrf.mxu1  ;;  %v3127_v50 = vld [vmem:[%s8639_s19 + $0x1d8] sm:$0xff]  ;;  %v3126_v61 = vld [vmem:[%s8639_s19 + $0x1d0] sm:$0xff]  ;;  %v3125_v6 = vld [vmem:[%s8639_s19 + $0x1c8] sm:$0xff] }
 0x741   :  { %3174 = vmatprep.subr.mxu1 %v3097_v32  ;;  %3319 = vmatprep.subr.mxu0 %v3169_v13  ;;  %v2768_v51 = vmax.f32 %v10156_v37, %v2747_v38  ;;  %v3086_v37 = vld [vmem:[%s8639_s19 + $0x90] sm:$0xff]  ;;  %v3124_v32 = vld [vmem:[%s8639_s19 + $0x1c0] sm:$0xff]  ;;  %v3123_v13 = vld [vmem:[%s8639_s19 + $0x1b8] sm:$0xff] }
 0x742   :  { %3175 = vmatpush1.msra.mxu1 %v3096_v43  ;;  %3320 = vmatpush2.msra.mxu0 %v3168_v48  ;;  %v2749_v3 = vpop.f32.mrf.mxu1  ;;  %v3121_v43 = vld [vmem:[%s8639_s19 + $0x1a8] sm:$0xff]  ;;  %v3120_v48 = vld [vmem:[%s8639_s19 + $0x1a0] sm:$0xff]  ;;  %v3119_v38 = vld [vmem:[%s8639_s19 + $0x198] sm:$0xff] }
 0x743   :  { %7692 = vmatprep.mubr.msk.f32.mxu1 %vm1453_vm4, %v2765_v56  ;;  %3176 = vmatprep.subr.mxu1 %v3095_v40  ;;  %v2769_v17 = vmax.f32 %v2555_v59, %v2749_v3  ;;  %v3083_v59 = vld [vmem:[%s8639_s19 + $0x78] sm:$0xff]  ;;  %v3118_v40 = vld [vmem:[%s8639_s19 + $0x190] sm:$0xff] }
 0x744   :  { %3321 = vmatprep.subr.mxu0 %v3167_v20  ;;  %3050 = vmatmul.mubr.f32.gmra.mxu1 %v2764_v23  ;;  %v2753_v47 = vpop.f32.mrf.mxu1  ;;  %v3117_v20 = vld [vmem:[%s8639_s19 + $0x188] sm:$0xff]  ;;  %v3115_v3 = vld [vmem:[%s8639_s19 + $0x178] sm:$0xff] }
 0x745   :  { %3177 = vmatpush1.msra.mxu1 %v3094_v27  ;;  %3322 = vmatpush2.msra.mxu0 %v3166_v44  ;;  %v2772_v9 = vmax.f32 %v10162_v0, %v2753_v47  ;;  %v3080_v0 = vld [vmem:[%s8639_s19 + $0x60] sm:$0xff]  ;;  %v3114_v27 = vld [vmem:[%s8639_s19 + $0x170] sm:$0xff]  ;;  %v3113_v44 = vld [vmem:[%s8639_s19 + $0x168] sm:$0xff] }
 0x746   :  { %3178 = vmatprep.subr.mxu1 %v3093_v31  ;;  %3323 = vmatprep.subr.mxu0 %v3165_v45  ;;  %v2755_v15 = vpop.f32.mrf.mxu1  ;;  %v3112_v31 = vld [vmem:[%s8639_s19 + $0x160] sm:$0xff]  ;;  %v3111_v45 = vld [vmem:[%s8639_s19 + $0x158] sm:$0xff]  ;;  %v3109_v47 = vld [vmem:[%s8639_s19 + $0x148] sm:$0xff] }
 0x747   :  { %3179 = vmatpush1.msra.mxu1 %v3092_v55  ;;  %3324 = vmatpush2.msra.mxu0 %v3164_v1  ;;  %v2773_v49 = vmax.f32 %v10166_v24, %v2755_v15  ;;  %v3076_v24 = vld [vmem:[%s8639_s19 + $0x40] sm:$0xff]  ;;  %v3107_v1 = vld [vmem:[%s8639_s19 + $0x138] sm:$0xff]  ;;  %v3105_v15 = vld [vmem:[%s8639_s19 + $0x128] sm:$0xff] }
 0x748   :  { %7693 = vmatprep.mubr.msk.f32.mxu1 %vm1453_vm4, %v2769_v17  ;;  %3180 = vmatprep.subr.mxu1 %v3091_v7  ;;  %v3108_v55 = vld [vmem:[%s8639_s19 + $0x140] sm:$0xff]  ;;  %v3106_v7 = vld [vmem:[%s8639_s19 + $0x130] sm:$0xff] }
 0x749   :  { %3326 = vmatmul.mubr.f32.vlgmr.msra.gmra.mxu0 %v2760_v2  ;;  %3056 = vmatmul.mubr.f32.gmra.mxu1 %v2768_v51  ;;  %v3128_v2 = vld [vmem:[%s8639_s19 + $0x1e0] sm:$0xff] }
 0x74a   :  { %3181 = vmatpush1.msra.mxu1 %v3090_v46  ;;  %7696 = vmatprep.mubr.msk.f32.mxu0 %vm1453_vm4, %v2765_v56  ;;  %v3122_v56 = vld [vmem:[%s8639_s19 + $0x1b0] sm:$0xff] }
 0x74b   :  { %3182 = vmatprep.subr.mxu1 %v3089_v21  ;;  %7694 = vmatprep.mubr.msk.f32.mxu1 %vm1453_vm4, %v2773_v49  ;;  %v3102_v46 = vld [vmem:[%s8639_s19 + $0x110] sm:$0xff]  ;;  %v3101_v21 = vld [vmem:[%s8639_s19 + $0x108] sm:$0xff] }
 0x74c   :  { %3183 = vmatpush1.msra.mxu1 %v3088_v4  ;;  %v3100_v4 = vld [vmem:[%s8639_s19 + $0x100] sm:$0xff] }
 0x74d   :  { %3184 = vmatprep.subr.mxu1 %v3087_v35  ;;  %3332 = vmatmul.mubr.f32.gmra.mxu0 %v2764_v23  ;;  %v3116_v23 = vld [vmem:[%s8639_s19 + $0x180] sm:$0xff] }
 0x74e   :  { %3062 = vmatmul.mubr.f32.gmra.mxu1 %v2772_v9  ;;  %7697 = vmatprep.mubr.msk.f32.mxu0 %vm1453_vm4, %v2769_v17  ;;  %v3110_v17 = vld [vmem:[%s8639_s19 + $0x150] sm:$0xff] }
 0x74f   :  { %3185 = vmatpush1.msra.mxu1 %v3086_v37  ;;  %3236 = vmatprep.mubr.f32.mxu1 %v10111_v39  ;;  %v3078_v39 = vld [vmem:[%s8639_s19 + $0x50] sm:$0xff] }
 0x750   :  { %3186 = vmatprep.subr.mxu1 %v3085_v34 }
 0x751   :  { %3187 = vmatpush1.msra.mxu1 %v3084_v14  ;;  %3338 = vmatmul.mubr.f32.gmra.mxu0 %v2768_v51  ;;  %v3104_v51 = vld [vmem:[%s8639_s19 + $0x120] sm:$0xff] }
 0x752   :  { %3188 = vmatprep.subr.mxu1 %v3083_v59  ;;  %7698 = vmatprep.mubr.msk.f32.mxu0 %vm1453_vm4, %v2773_v49  ;;  %v3103_v49 = vld [vmem:[%s8639_s19 + $0x118] sm:$0xff]  ;;  %s12176_s19 = sld [smem:[#allocation16_spill]] }
 0x753   :  { %3189 = vmatpush1.msra.mxu1 %v3082_v42 }
 0x754   :  { %3190 = vmatprep.subr.mxu1 %v3081_v53 }
 0x755   :  { %3191 = vmatpush1.msra.mxu1 %v3080_v0  ;;  %3344 = vmatmul.mubr.f32.gmra.mxu0 %v2772_v9 }
 0x756   :  { %3192 = vmatprep.subr.mxu1 %v3079_v52  ;;  %3498 = vmatprep.mubr.f32.mxu0 %v12084_v33 }
 0x757   :  { %3193 = vmatpush1.msra.mxu1 %v3078_v39 }
 0x758   :  { %3194 = vmatprep.subr.mxu1 %v3077_v26 }
 0x759   :  { %3195 = vmatpush1.msra.mxu1 %v3076_v24 }
 0x75a   :  { %3196 = vmatprep.subr.mxu1 %v3075_v25 }
 0x75b   :  { %3197 = vmatpush1.msra.mxu1 %v3074_v54 }
 0x75c   :  { %3198 = vmatprep.subr.mxu1 %v3073_v16 }
 0x75d   :  { %3199 = vmatpush1.msra.mxu1 %v3072_v63 }
 0x75e   :  { %3200 = vmatprep.subr.mxu1 %v3071_v28 }
 0x75f   :  { %3201 = vmatpush1.msra.mxu1 %v3070_v11 }
 0x760   :  { %3202 = vmatprep.subr.mxu1 %v3069_v58 }
 0x761   :  { %3203 = vmatpush1.msra.mxu1 %v3068_v10 }
 0x762   :  { %3204 = vmatprep.subr.mxu1 %v3131_v30 }
 0x763   :  { %3205 = vmatpush2.msra.mxu1 %v3130_v19 }
 0x764   :  { %3206 = vmatprep.subr.mxu1 %v3129_v41 }
 0x765   :  { %3207 = vmatpush2.msra.mxu1 %v3128_v2 }
 0x766   :  { %3208 = vmatprep.subr.mxu1 %v3127_v50 }
 0x767   :  { %3209 = vmatpush2.msra.mxu1 %v3126_v61 }
 0x768   :  { %3210 = vmatprep.subr.mxu1 %v3125_v6 }
 0x769   :  { %3211 = vmatpush2.msra.mxu1 %v3124_v32 }
 0x76a   :  { %3212 = vmatprep.subr.mxu1 %v3123_v13 }
 0x76b   :  { %3213 = vmatpush2.msra.mxu1 %v3122_v56 }
 0x76c   :  { %3214 = vmatprep.subr.mxu1 %v3121_v43 }
 0x76d   :  { %3215 = vmatpush2.msra.mxu1 %v3120_v48 }
 0x76e   :  { %3216 = vmatprep.subr.mxu1 %v3119_v38 }
 0x76f   :  { %3217 = vmatpush2.msra.mxu1 %v3118_v40 }
 0x770   :  { %3218 = vmatprep.subr.mxu1 %v3117_v20 }
 0x771   :  { %3219 = vmatpush2.msra.mxu1 %v3116_v23 }
 0x772   :  { %3220 = vmatprep.subr.mxu1 %v3115_v3 }
 0x773   :  { %3221 = vmatpush2.msra.mxu1 %v3114_v27 }
 0x774   :  { %3222 = vmatprep.subr.mxu1 %v3113_v44 }
 0x775   :  { %3223 = vmatpush2.msra.mxu1 %v3112_v31 }
 0x776   :  { %3224 = vmatprep.subr.mxu1 %v3111_v45 }
 0x777   :  { %3225 = vmatpush2.msra.mxu1 %v3110_v17 }
 0x778   :  { %3226 = vmatprep.subr.mxu1 %v3109_v47 }
 0x779   :  { %3227 = vmatpush2.msra.mxu1 %v3108_v55 }
 0x77a   :  { %3228 = vmatprep.subr.mxu1 %v3107_v1 }
 0x77b   :  { %3229 = vmatpush2.msra.mxu1 %v3106_v7 }
 0x77c   :  { %3230 = vmatprep.subr.mxu1 %v3105_v15 }
 0x77d   :  { %3231 = vmatpush2.msra.mxu1 %v3104_v51 }
 0x77e   :  { %3232 = vmatprep.subr.mxu1 %v3103_v49  ;;  %v7704_v49 = vld [vmem:[%s8644_s24 + $0x18] sm:$0xff] }
 0x77f   :  { %3233 = vmatpush2.msra.mxu1 %v3102_v46  ;;  %v3414_v46 = vld [vmem:[%s8644_s24] sm:$0xff] }
 0x780   :  { %3234 = vmatprep.subr.mxu1 %v3101_v21  ;;  %v7758_v21 = vld [vmem:[%s8649_s30 + $0x3e0] sm:$0xff] }
 0x781   :  { %3235 = vmatpush2.msra.mxu1 %v3100_v4  ;;  %v7757_v4 = vld [vmem:[%s8649_s30 + $0x3d8] sm:$0xff] }
 0x782   :  { %3237 = vmatmul.mubr.f32.vlgmr.msra.gmra.mxu1 %v10113_v5 }
 0x783   :  { %3242 = vmatprep.mubr.f32.mxu1 %v10120_v12 }
 0x786   :  { %3243 = vmatmul.mubr.f32.gmra.mxu1 %v10123_v36 }
 0x787   :  { %3248 = vmatprep.mubr.f32.mxu1 %v10130_v60 }
 0x78a   :  { %3249 = vmatmul.mubr.f32.gmra.mxu1 %v10133_v57 }
 0x78b   :  { %3254 = vmatprep.mubr.f32.mxu1 %v10140_v8 }
 0x78e   :  { %3255 = vmatmul.mubr.f32.gmra.mxu1 %v10143_v22 }
 0x78f   :  { %3672 = vmatprep.mubr.f32.mxu1 %v12084_v33 }
 0x7df   :  { %v2956_v35 = vpop.f32.mrf.mxu0 }
 0x7e1   :  { %v2958_v9 = vpop.f32.mrf.mxu0 }
 0x7e3   :  { %v2962_v37 = vpop.f32.mrf.mxu0 }
 0x7e5   :  { %v2964_v34 = vpop.f32.mrf.mxu0 }
 0x7e7   :  { %v2968_v5 = vpop.f32.mrf.mxu0 }
 0x7e9   :  { %v2970_v12 = vpop.f32.mrf.mxu0 }
 0x7eb   :  { %v2974_v36 = vpop.f32.mrf.mxu0 }
 0x7ed   :  { %v2976_v60 = vpop.f32.mrf.mxu0 }
 0x7ff   :  { %v3045_v14 = vpop.f32.mrf.mxu1 }
 0x800   :  { %v3046_v1 = vadd.f32 %v3045_v14, %v2956_v35  ;;  %v7759_v35 = vld [vmem:[%s8649_s30 + $0x3e8] sm:$0xff]  ;;  %v7754_v14 = vld [vmem:[%s8649_s30 + $0x3c0] sm:$0xff] }
 0x801   :  { %v3047_v59 = vpop.f32.mrf.mxu1 }
 0x802   :  { %v3048_v47 = vadd.f32 %v3047_v59, %v2958_v9  ;;  %v7705_v9 = vld [vmem:[%s8644_s24 + $0x20] sm:$0xff]  ;;  %v7706_v59 = vld [vmem:[%s8644_s24 + $0x28] sm:$0x3f] }
 0x804   :  { %v3051_v42 = vpop.f32.mrf.mxu1 }
 0x805   :  { %v3052_v31 = vadd.f32 %v3051_v42, %v2962_v37  ;;  %v3415_v37 = vld [vmem:[%s8644_s24 + $0x8] sm:$0xff]  ;;  %v7752_v42 = vld [vmem:[%s8649_s30 + $0x3b0] sm:$0xff] }
 0x806   :  { %v3053_v53 = vpop.f32.mrf.mxu1 }
 0x807   :  { %v3054_v3 = vadd.f32 %v3053_v53, %v2964_v34  ;;  %v7755_v34 = vld [vmem:[%s8649_s30 + $0x3c8] sm:$0xff]  ;;  %v7753_v53 = vld [vmem:[%s8649_s30 + $0x3b8] sm:$0xff] }
 0x809   :  { %v3327_v0 = vpop.f32.mrf.mxu0  ;;  %v3057_v57 = vpop.f32.mrf.mxu1 }
 0x80a   :  { %v3058_v40 = vadd.f32 %v3057_v57, %v2968_v5  ;;  %v7756_v5 = vld [vmem:[%s8649_s30 + $0x3d0] sm:$0xff]  ;;  %v7750_v57 = vld [vmem:[%s8649_s30 + $0x3a0] sm:$0xff] }
 0x80b   :  { %v3329_v52 = vpop.f32.mrf.mxu0  ;;  %v3059_v8 = vpop.f32.mrf.mxu1 }
 0x80c   :  { %v3060_v43 = vadd.f32 %v3059_v8, %v2970_v12  ;;  %v3416_v12 = vld [vmem:[%s8644_s24 + $0x10] sm:$0x3f]  ;;  %v7745_v8 = vld [vmem:[%s8649_s30 + $0x378] sm:$0xff] }
 0x80d   :  { %v3333_v39 = vpop.f32.mrf.mxu0 }
 0x80e   :  { %v3063_v22 = vpop.f32.mrf.mxu1 }
 0x80f   :  { %v3335_v26 = vpop.f32.mrf.mxu0  ;;  %v3064_v13 = vadd.f32 %v3063_v22, %v2974_v36  ;;  %v7751_v36 = vld [vmem:[%s8649_s30 + $0x3a8] sm:$0xff] }
 0x810   :  { %v3065_v24 = vpop.f32.mrf.mxu1  ;;  %v7743_v22 = vld [vmem:[%s8649_s30 + $0x368] sm:$0xff] }
 0x811   :  { %v3339_v54 = vpop.f32.mrf.mxu0  ;;  %v3066_v61 = vadd.f32 %v3065_v24, %v2976_v60  ;;  %v7749_v60 = vld [vmem:[%s8649_s30 + $0x398] sm:$0xff]  ;;  %v7744_v24 = vld [vmem:[%s8649_s30 + $0x370] sm:$0xff] }
 0x813   :  { %v3341_v28 = vpop.f32.mrf.mxu0 }
 0x815   :  { %v3345_v10 = vpop.f32.mrf.mxu0 }
 0x817   :  { %v3347_v41 = vpop.f32.mrf.mxu0 }
 0x842   :  { %v3238_v25 = vpop.f32.mrf.mxu1 }
 0x843   :  { %v3328_v45 = vadd.f32 %v3327_v0, %v3238_v25  ;;  %v7748_v0 = vld [vmem:[%s8649_s30 + $0x390] sm:$0xff] }
 0x844   :  { %v3240_v16 = vpop.f32.mrf.mxu1  ;;  %v7740_v25 = vld [vmem:[%s8649_s30 + $0x350] sm:$0xff] }
 0x845   :  { %v3330_v27 = vadd.f32 %v3329_v52, %v3240_v16  ;;  %v10295_v51 = vmax.f32 %v3046_v1, %v3328_v45  ;;  %v7746_v52 = vld [vmem:[%s8649_s30 + $0x380] sm:$0xff]  ;;  %v7741_v16 = vld [vmem:[%s8649_s30 + $0x358] sm:$0xff]  ;;  %v7715_v45 = vld [vmem:[%s8649_s30 + $0x288] sm:$0xff] }
 0x846   :  { %v3244_v63 = vpop.f32.mrf.mxu1  ;;  %v7713_v1 = vld [vmem:[%s8649_s30 + $0x278] sm:$0xff] }
 0x847   :  { %v3334_v20 = vadd.f32 %v3333_v39, %v3244_v63  ;;  %v10291_v15 = vmax.f32 %v3048_v47, %v3330_v27  ;;  %v7747_v39 = vld [vmem:[%s8649_s30 + $0x388] sm:$0xff]  ;;  %v7737_v63 = vld [vmem:[%s8649_s30 + $0x338] sm:$0xff]  ;;  %v7720_v27 = vld [vmem:[%s8649_s30 + $0x2b0] sm:$0xff] }
 0x848   :  { %v3246_v11 = vpop.f32.mrf.mxu1  ;;  %v7717_v47 = vld [vmem:[%s8649_s30 + $0x298] sm:$0xff] }
 0x849   :  { %v3336_v48 = vadd.f32 %v3335_v26, %v3246_v11  ;;  %v10287_v7 = vmax.f32 %v3052_v31, %v3334_v20  ;;  %v7742_v26 = vld [vmem:[%s8649_s30 + $0x360] sm:$0xff]  ;;  %v7719_v20 = vld [vmem:[%s8649_s30 + $0x2a8] sm:$0xff]  ;;  %v7716_v31 = vld [vmem:[%s8649_s30 + $0x290] sm:$0xff] }
 0x84a   :  { %v3250_v58 = vpop.f32.mrf.mxu1  ;;  %v7738_v11 = vld [vmem:[%s8649_s30 + $0x340] sm:$0xff] }
 0x84b   :  { %v3340_v56 = vadd.f32 %v3339_v54, %v3250_v58  ;;  %v10283_v55 = vmax.f32 %v3054_v3, %v3336_v48  ;;  %v7739_v54 = vld [vmem:[%s8649_s30 + $0x348] sm:$0xff]  ;;  %v7734_v58 = vld [vmem:[%s8649_s30 + $0x320] sm:$0xff]  ;;  %v7721_v48 = vld [vmem:[%s8649_s30 + $0x2b8] sm:$0xff] }
 0x84c   :  { %v3252_v30 = vpop.f32.mrf.mxu1  ;;  %v7718_v3 = vld [vmem:[%s8649_s30 + $0x2a0] sm:$0xff] }
 0x84d   :  { %v3342_v6 = vadd.f32 %v3341_v28, %v3252_v30  ;;  %v10277_v17 = vmax.f32 %v3058_v40, %v3340_v56  ;;  %v7736_v28 = vld [vmem:[%s8649_s30 + $0x330] sm:$0xff]  ;;  %v7735_v30 = vld [vmem:[%s8649_s30 + $0x328] sm:$0xff]  ;;  %v7726_v56 = vld [vmem:[%s8649_s30 + $0x2e0] sm:$0xff] }
 0x84e   :  { %v3256_v19 = vpop.f32.mrf.mxu1  ;;  %v7723_v40 = vld [vmem:[%s8649_s30 + $0x2c8] sm:$0xff] }
 0x84f   :  { %v3346_v2 = vadd.f32 %v3345_v10, %v3256_v19  ;;  %v10271_v44 = vmax.f32 %v3060_v43, %v3342_v6  ;;  %v7733_v10 = vld [vmem:[%s8649_s30 + $0x318] sm:$0xff]  ;;  %v7731_v19 = vld [vmem:[%s8649_s30 + $0x308] sm:$0xff]  ;;  %v7722_v43 = vld [vmem:[%s8649_s30 + $0x2c0] sm:$0xff] }
 0x850   :  { %v3258_v50 = vpop.f32.mrf.mxu1  ;;  %v7729_v6 = vld [vmem:[%s8649_s30 + $0x2f8] sm:$0xff] }
 0x851   :  { %v3348_v32 = vadd.f32 %v3347_v41, %v3258_v50  ;;  %v10269_v23 = vmax.f32 %v3064_v13, %v3346_v2  ;;  %v7730_v41 = vld [vmem:[%s8649_s30 + $0x300] sm:$0xff]  ;;  %v7732_v2 = vld [vmem:[%s8649_s30 + $0x310] sm:$0xff] }
 0x852   :  { %v7728_v50 = vld [vmem:[%s8649_s30 + $0x2f0] sm:$0xff] }
 0x853   :  { %v10267_v38 = vmax.f32 %v3066_v61, %v3348_v32  ;;  %v7727_v61 = vld [vmem:[%s8649_s30 + $0x2e8] sm:$0xff]  ;;  %v7725_v32 = vld [vmem:[%s8649_s30 + $0x2d8] sm:$0xff]  ;;  %v7724_v13 = vld [vmem:[%s8649_s30 + $0x2d0] sm:$0xff] }
 0x855   :  { %7699 = vmatprep.subr.msk.mxu0 %vm3427_vm8, %v10267_v38  ;;  %7707 = vmatprep.subr.msk.mxu1 %vm3427_vm8, %v10267_v38 }
 0x856   :  { %7700 = vmatpush1.msk.msra.mxu0 %vm3427_vm8, %v10269_v23  ;;  %7708 = vmatpush1.msk.msra.mxu1 %vm3427_vm8, %v10269_v23 }
 0x857   :  { %3460 = vmatprep.subr.mxu0 %v10271_v44  ;;  %3634 = vmatprep.subr.mxu1 %v10271_v44 }
 0x858   :  { %3461 = vmatpush1.msra.mxu0 %v10277_v17  ;;  %3635 = vmatpush1.msra.mxu1 %v10277_v17 }
 0x859   :  { %3462 = vmatprep.subr.mxu0 %v10283_v55  ;;  %3636 = vmatprep.subr.mxu1 %v10283_v55 }
 0x85a   :  { %3463 = vmatpush1.msra.mxu0 %v10287_v7  ;;  %3637 = vmatpush1.msra.mxu1 %v10287_v7 }
 0x85b   :  { %3464 = vmatprep.subr.mxu0 %v10291_v15  ;;  %3638 = vmatprep.subr.mxu1 %v10291_v15 }
 0x85c   :  { %3465 = vmatpush1.msra.mxu0 %v10295_v51  ;;  %3639 = vmatpush1.msra.mxu1 %v10295_v51 }
 0x85d   :  { %7709 = vmatmul.mubr.msk.f32.vlgmr.msra.gmra.mxu1 %vm3417_vm9, %v7704_v49  ;;  %7701 = vmatmul.mubr.msk.f32.vlgmr.msra.gmra.mxu0 %vm3417_vm9, %v3414_v46  ;;  %v7712_v49 = vld [vmem:[%s8649_s30 + $0x270] sm:$0xff]  ;;  %v7714_v46 = vld [vmem:[%s8649_s30 + $0x280] sm:$0xff] }
 0x85e   :  { %3678 = vmatprep.mubr.f32.mxu1 %v12084_v33  ;;  %3504 = vmatprep.mubr.f32.mxu0 %v12084_v33 }
 0x85f   :  { %3780 = vmatprep.subr.mxu0 %v7758_v21  ;;  %3863 = vmatprep.subr.mxu1 %v12084_v33  ;;  %v7788_v21 = vld [vmem:[%s8649_s30 + $0x4d0] sm:$0xff] }
 0x860   :  { %3781 = vmatpush1.msra.mxu0 %v7757_v4  ;;  %3864 = vmatpush1.msra.mxu1 %v7759_v35  ;;  %v7787_v4 = vld [vmem:[%s8649_s30 + $0x4c8] sm:$0xff]  ;;  %v7789_v35 = vld [vmem:[%s8649_s30 + $0x4d8] sm:$0xff] }
 0x861   :  { %7710 = vmatmul.mubr.msk.f32.gmra.mxu1 %vm3417_vm9, %v7705_v9  ;;  %7702 = vmatmul.mubr.msk.f32.gmra.mxu0 %vm3417_vm9, %v3415_v37  ;;  %v7785_v9 = vld [vmem:[%s8649_s30 + $0x4b8] sm:$0xff]  ;;  %v7784_v37 = vld [vmem:[%s8649_s30 + $0x4b0] sm:$0xff] }
 0x862   :  { %3684 = vmatprep.mubr.f32.mxu1 %v12084_v33  ;;  %3510 = vmatprep.mubr.f32.mxu0 %v12084_v33 }
 0x863   :  { %3782 = vmatprep.subr.mxu0 %v7755_v34  ;;  %3865 = vmatprep.subr.mxu1 %v12084_v33  ;;  %v7786_v34 = vld [vmem:[%s8649_s30 + $0x4c0] sm:$0xff] }
 0x864   :  { %3783 = vmatpush1.msra.mxu0 %v7754_v14  ;;  %3866 = vmatpush1.msra.mxu1 %v7756_v5  ;;  %v7782_v14 = vld [vmem:[%s8649_s30 + $0x4a0] sm:$0xff]  ;;  %v7781_v5 = vld [vmem:[%s8649_s30 + $0x498] sm:$0xff] }
 0x865   :  { %7711 = vmatmul.mubr.msk.f32.gmra.mxu1 %vm3417_vm9, %v7706_v59  ;;  %7703 = vmatmul.mubr.msk.f32.gmra.mxu0 %vm3417_vm9, %v3416_v12  ;;  %v7783_v59 = vld [vmem:[%s8649_s30 + $0x4a8] sm:$0xff] }
 0x866   :  { %3784 = vmatprep.subr.mxu0 %v7752_v42  ;;  %3867 = vmatprep.subr.mxu1 %v12084_v33  ;;  %v7779_v12 = vld [vmem:[%s8649_s30 + $0x488] sm:$0xff]  ;;  %v7778_v42 = vld [vmem:[%s8649_s30 + $0x480] sm:$0xff] }
 0x867   :  { %3785 = vmatpush1.msra.mxu0 %v7751_v36  ;;  %3868 = vmatpush1.msra.mxu1 %v7753_v53  ;;  %v7780_v36 = vld [vmem:[%s8649_s30 + $0x490] sm:$0xff] }
 0x868   :  { %3786 = vmatprep.subr.mxu0 %v7749_v60  ;;  %3869 = vmatprep.subr.mxu1 %v12084_v33  ;;  %v7776_v53 = vld [vmem:[%s8649_s30 + $0x470] sm:$0xff]  ;;  %v7775_v60 = vld [vmem:[%s8649_s30 + $0x468] sm:$0xff] }
 0x869   :  { %3787 = vmatpush1.msra.mxu0 %v7748_v0  ;;  %3870 = vmatpush1.msra.mxu1 %v7750_v57  ;;  %v7777_v0 = vld [vmem:[%s8649_s30 + $0x478] sm:$0xff] }
 0x86a   :  { %3788 = vmatprep.subr.mxu0 %v7746_v52  ;;  %3871 = vmatprep.subr.mxu1 %v12084_v33  ;;  %v7773_v57 = vld [vmem:[%s8649_s30 + $0x458] sm:$0xff]  ;;  %v7772_v52 = vld [vmem:[%s8649_s30 + $0x450] sm:$0xff] }
 0x86b   :  { %3789 = vmatpush1.msra.mxu0 %v7745_v8  ;;  %3872 = vmatpush1.msra.mxu1 %v7747_v39  ;;  %v7774_v8 = vld [vmem:[%s8649_s30 + $0x460] sm:$0xff] }
 0x86c   :  { %3790 = vmatprep.subr.mxu0 %v7743_v22  ;;  %3873 = vmatprep.subr.mxu1 %v12084_v33  ;;  %v7770_v39 = vld [vmem:[%s8649_s30 + $0x440] sm:$0xff]  ;;  %v7769_v22 = vld [vmem:[%s8649_s30 + $0x438] sm:$0xff] }
 0x86d   :  { %3791 = vmatpush1.msra.mxu0 %v7742_v26  ;;  %3874 = vmatpush1.msra.mxu1 %v7744_v24  ;;  %v7771_v26 = vld [vmem:[%s8649_s30 + $0x448] sm:$0xff] }
 0x86e   :  { %3792 = vmatprep.subr.mxu0 %v7740_v25  ;;  %3875 = vmatprep.subr.mxu1 %v12084_v33  ;;  %v7767_v24 = vld [vmem:[%s8649_s30 + $0x428] sm:$0xff]  ;;  %v7766_v25 = vld [vmem:[%s8649_s30 + $0x420] sm:$0xff] }
 0x86f   :  { %3793 = vmatpush1.msra.mxu0 %v7739_v54  ;;  %3876 = vmatpush1.msra.mxu1 %v7741_v16  ;;  %v7768_v54 = vld [vmem:[%s8649_s30 + $0x430] sm:$0xff] }
 0x870   :  { %3794 = vmatprep.subr.mxu0 %v7737_v63  ;;  %3877 = vmatprep.subr.mxu1 %v12084_v33  ;;  %v7764_v16 = vld [vmem:[%s8649_s30 + $0x410] sm:$0xff]  ;;  %v7763_v63 = vld [vmem:[%s8649_s30 + $0x408] sm:$0xff] }
 0x871   :  { %3795 = vmatpush1.msra.mxu0 %v7736_v28  ;;  %3878 = vmatpush1.msra.mxu1 %v7738_v11  ;;  %v7765_v28 = vld [vmem:[%s8649_s30 + $0x418] sm:$0xff] }
 0x872   :  { %3796 = vmatprep.subr.mxu0 %v7734_v58  ;;  %3879 = vmatprep.subr.mxu1 %v12084_v33  ;;  %v7761_v11 = vld [vmem:[%s8649_s30 + $0x3f8] sm:$0xff]  ;;  %v7760_v58 = vld [vmem:[%s8649_s30 + $0x3f0] sm:$0xff] }
 0x873   :  { %3797 = vmatpush1.msra.mxu0 %v7733_v10  ;;  %3880 = vmatpush1.msra.mxu1 %v7735_v30  ;;  %v7762_v10 = vld [vmem:[%s8649_s30 + $0x400] sm:$0xff]  ;;  %v3563_v30 = vld [vmem:[%s8649_s30 + $0x170] sm:$0xff] }
 0x874   :  { %3798 = vmatprep.subr.mxu0 %v7731_v19  ;;  %3881 = vmatprep.subr.mxu1 %v12084_v33 }
 0x875   :  { %3799 = vmatpush1.msra.mxu0 %v7730_v41  ;;  %3882 = vmatpush1.msra.mxu1 %v7732_v2  ;;  %v3562_v2 = vld [vmem:[%s8649_s30 + $0x168] sm:$0xff] }
 0x876   :  { %3800 = vmatprep.subr.mxu0 %v7728_v50  ;;  %3883 = vmatprep.subr.mxu1 %v12084_v33  ;;  %v3564_v50 = vld [vmem:[%s8649_s30 + $0x178] sm:$0xff] }
 0x877   :  { %3801 = vmatpush1.msra.mxu0 %v7727_v61  ;;  %3884 = vmatpush1.msra.mxu1 %v7729_v6  ;;  %v3560_v61 = vld [vmem:[%s8649_s30 + $0x158] sm:$0xff]  ;;  %v3559_v6 = vld [vmem:[%s8649_s30 + $0x150] sm:$0xff] }
 0x878   :  { %3802 = vmatprep.subr.mxu0 %v7725_v32  ;;  %3885 = vmatprep.subr.mxu1 %v12084_v33  ;;  %v3561_v32 = vld [vmem:[%s8649_s30 + $0x160] sm:$0xff] }
 0x879   :  { %3803 = vmatpush1.msra.mxu0 %v7724_v13  ;;  %3886 = vmatpush1.msra.mxu1 %v7726_v56  ;;  %v3557_v13 = vld [vmem:[%s8649_s30 + $0x140] sm:$0xff]  ;;  %v3556_v56 = vld [vmem:[%s8649_s30 + $0x138] sm:$0xff] }
 0x87a   :  { %3804 = vmatprep.subr.mxu0 %v7722_v43  ;;  %3887 = vmatprep.subr.mxu1 %v12084_v33  ;;  %v3558_v43 = vld [vmem:[%s8649_s30 + $0x148] sm:$0xff] }
 0x87b   :  { %3805 = vmatpush1.msra.mxu0 %v7721_v48  ;;  %3888 = vmatpush1.msra.mxu1 %v7723_v40  ;;  %v3554_v48 = vld [vmem:[%s8649_s30 + $0x128] sm:$0xff]  ;;  %v3553_v40 = vld [vmem:[%s8649_s30 + $0x120] sm:$0xff] }
 0x87c   :  { %3806 = vmatprep.subr.mxu0 %v7719_v20  ;;  %3889 = vmatprep.subr.mxu1 %v12084_v33  ;;  %v3555_v20 = vld [vmem:[%s8649_s30 + $0x130] sm:$0xff] }
 0x87d   :  { %3807 = vmatpush1.msra.mxu0 %v7718_v3  ;;  %3890 = vmatpush1.msra.mxu1 %v7720_v27  ;;  %v3551_v3 = vld [vmem:[%s8649_s30 + $0x110] sm:$0xff]  ;;  %v3550_v27 = vld [vmem:[%s8649_s30 + $0x108] sm:$0xff] }
 0x87e   :  { %3808 = vmatprep.subr.mxu0 %v7716_v31  ;;  %3891 = vmatprep.subr.mxu1 %v12084_v33  ;;  %v3552_v31 = vld [vmem:[%s8649_s30 + $0x118] sm:$0xff] }
 0x87f   :  { %3809 = vmatpush1.msra.mxu0 %v7715_v45  ;;  %3892 = vmatpush1.msra.mxu1 %v7717_v47  ;;  %v3548_v45 = vld [vmem:[%s8649_s30 + $0xf8] sm:$0xff]  ;;  %v3547_v47 = vld [vmem:[%s8649_s30 + $0xf0] sm:$0xff] }
 0x880   :  { %3810 = vmatprep.subr.mxu0 %v7713_v1  ;;  %3893 = vmatprep.subr.mxu1 %v12084_v33  ;;  %v3549_v1 = vld [vmem:[%s8649_s30 + $0x100] sm:$0xff] }
 0x881   :  { %3811 = vmatpush1.msra.mxu0 %v7712_v49  ;;  %3894 = vmatpush1.msra.mxu1 %v7714_v46  ;;  %v3545_v49 = vld [vmem:[%s8649_s30 + $0xe0] sm:$0xff]  ;;  %v3544_v46 = vld [vmem:[%s8649_s30 + $0xd8] sm:$0xff] }
 0x882   :  { %3824 = vmatprep.subr.mxu0 %v7788_v21  ;;  %3907 = vmatprep.subr.mxu1 %v12084_v33  ;;  %v3546_v21 = vld [vmem:[%s8649_s30 + $0xe8] sm:$0xff] }
 0x883   :  { %3825 = vmatpush2.msra.mxu0 %v7787_v4  ;;  %3908 = vmatpush2.msra.mxu1 %v7789_v35  ;;  %v3542_v4 = vld [vmem:[%s8649_s30 + $0xc8] sm:$0xff]  ;;  %v3541_v35 = vld [vmem:[%s8649_s30 + $0xc0] sm:$0xff] }
 0x884   :  { %3826 = vmatprep.subr.mxu0 %v7785_v9  ;;  %3909 = vmatprep.subr.mxu1 %v12084_v33  ;;  %v3543_v9 = vld [vmem:[%s8649_s30 + $0xd0] sm:$0xff] }
 0x885   :  { %3827 = vmatpush2.msra.mxu0 %v7784_v37  ;;  %3910 = vmatpush2.msra.mxu1 %v7786_v34  ;;  %v3539_v37 = vld [vmem:[%s8649_s30 + $0xb0] sm:$0xff]  ;;  %v3538_v34 = vld [vmem:[%s8649_s30 + $0xa8] sm:$0xff] }
 0x886   :  { %3828 = vmatprep.subr.mxu0 %v7782_v14  ;;  %3911 = vmatprep.subr.mxu1 %v12084_v33  ;;  %v3540_v14 = vld [vmem:[%s8649_s30 + $0xb8] sm:$0xff] }
 0x887   :  { %3829 = vmatpush2.msra.mxu0 %v7781_v5  ;;  %3912 = vmatpush2.msra.mxu1 %v7783_v59  ;;  %v3536_v5 = vld [vmem:[%s8649_s30 + $0x98] sm:$0xff]  ;;  %v3535_v59 = vld [vmem:[%s8649_s30 + $0x90] sm:$0xff] }
 0x888   :  { %3830 = vmatprep.subr.mxu0 %v7779_v12  ;;  %3913 = vmatprep.subr.mxu1 %v12084_v33  ;;  %v3537_v12 = vld [vmem:[%s8649_s30 + $0xa0] sm:$0xff] }
 0x889   :  { %3831 = vmatpush2.msra.mxu0 %v7778_v42  ;;  %3914 = vmatpush2.msra.mxu1 %v7780_v36  ;;  %v3533_v42 = vld [vmem:[%s8649_s30 + $0x80] sm:$0xff]  ;;  %v3532_v36 = vld [vmem:[%s8649_s30 + $0x78] sm:$0xff] }
 0x88a   :  { %3832 = vmatprep.subr.mxu0 %v7776_v53  ;;  %3915 = vmatprep.subr.mxu1 %v12084_v33  ;;  %v3534_v53 = vld [vmem:[%s8649_s30 + $0x88] sm:$0xff] }
 0x88b   :  { %3833 = vmatpush2.msra.mxu0 %v7775_v60  ;;  %3916 = vmatpush2.msra.mxu1 %v7777_v0  ;;  %v3530_v60 = vld [vmem:[%s8649_s30 + $0x68] sm:$0xff]  ;;  %v3529_v0 = vld [vmem:[%s8649_s30 + $0x60] sm:$0xff] }
 0x88c   :  { %3834 = vmatprep.subr.mxu0 %v7773_v57  ;;  %3917 = vmatprep.subr.mxu1 %v12084_v33  ;;  %v3531_v57 = vld [vmem:[%s8649_s30 + $0x70] sm:$0xff] }
 0x88d   :  { %3835 = vmatpush2.msra.mxu0 %v7772_v52  ;;  %3918 = vmatpush2.msra.mxu1 %v7774_v8  ;;  %v3527_v52 = vld [vmem:[%s8649_s30 + $0x50] sm:$0xff]  ;;  %v3526_v8 = vld [vmem:[%s8649_s30 + $0x48] sm:$0xff] }
 0x88e   :  { %3836 = vmatprep.subr.mxu0 %v7770_v39  ;;  %3919 = vmatprep.subr.mxu1 %v12084_v33  ;;  %v3528_v39 = vld [vmem:[%s8649_s30 + $0x58] sm:$0xff] }
 0x88f   :  { %3837 = vmatpush2.msra.mxu0 %v7769_v22  ;;  %3920 = vmatpush2.msra.mxu1 %v7771_v26  ;;  %v3524_v22 = vld [vmem:[%s8649_s30 + $0x38] sm:$0xff]  ;;  %v3523_v26 = vld [vmem:[%s8649_s30 + $0x30] sm:$0xff] }
 0x890   :  { %3838 = vmatprep.subr.mxu0 %v7767_v24  ;;  %3921 = vmatprep.subr.mxu1 %v12084_v33  ;;  %v3525_v24 = vld [vmem:[%s8649_s30 + $0x40] sm:$0xff] }
 0x891   :  { %3839 = vmatpush2.msra.mxu0 %v7766_v25  ;;  %3922 = vmatpush2.msra.mxu1 %v7768_v54  ;;  %v3521_v25 = vld [vmem:[%s8649_s30 + $0x20] sm:$0xff]  ;;  %v3520_v54 = vld [vmem:[%s8649_s30 + $0x18] sm:$0xff] }
 0x892   :  { %3840 = vmatprep.subr.mxu0 %v7764_v16  ;;  %3923 = vmatprep.subr.mxu1 %v12084_v33  ;;  %v3522_v16 = vld [vmem:[%s8649_s30 + $0x28] sm:$0xff] }
 0x893   :  { %3841 = vmatpush2.msra.mxu0 %v7763_v63  ;;  %3924 = vmatpush2.msra.mxu1 %v7765_v28  ;;  %v3518_v63 = vld [vmem:[%s8649_s30 + $0x8] sm:$0xff]  ;;  %v3517_v28 = vld [vmem:[%s8649_s30] sm:$0xff] }
 0x894   :  { %3842 = vmatprep.subr.mxu0 %v7761_v11  ;;  %3925 = vmatprep.subr.mxu1 %v12084_v33  ;;  %v3519_v11 = vld [vmem:[%s8649_s30 + $0x10] sm:$0xff] }
 0x895   :  { %3843 = vmatpush2.msra.mxu0 %v7760_v58  ;;  %3926 = vmatpush2.msra.mxu1 %v7762_v10  ;;  %v3593_v58 = vld [vmem:[%s8649_s30 + $0x260] sm:$0xff]  ;;  %v3592_v10 = vld [vmem:[%s8649_s30 + $0x258] sm:$0xff] }
 0x896   :  { %3952 = vmatprep.subr.mxu0 %v3563_v30  ;;  %4035 = vmatprep.subr.mxu1 %v12084_v33  ;;  %v3594_v30 = vld [vmem:[%s8649_s30 + $0x268] sm:$0xff] }
 0x91d   :  { %v3674_v19 = vpop.f32.mrf.mxu1 }
 0x91f   :  { %v3676_v41 = vpop.f32.mrf.mxu1 }
 0x920   :  { %7790 = vmatprep.mubr.msk.f32.mxu0 %vm3770_vm10, %v3676_v41  ;;  %7793 = vmatprep.mubr.msk.f32.mxu1 %vm3770_vm10, %v3676_v41  ;;  %v3589_v41 = vld [vmem:[%s8649_s30 + $0x240] sm:$0xff] }
 0x921   :  { %3845 = vmatmul.mubr.f32.vlgmr.msra.gmra.mxu0 %v3674_v19  ;;  %3928 = vmatmul.mubr.f32.vlgmr.msra.gmra.mxu1 %v3674_v19  ;;  %v3590_v19 = vld [vmem:[%s8649_s30 + $0x248] sm:$0xff] }
 0x922   :  { %3953 = vmatpush1.msra.mxu0 %v3562_v2  ;;  %4036 = vmatpush1.msra.mxu1 %v3564_v50  ;;  %v3591_v2 = vld [vmem:[%s8649_s30 + $0x250] sm:$0xff] }
 0x923   :  { %3954 = vmatprep.subr.mxu0 %v3560_v61  ;;  %4037 = vmatprep.subr.mxu1 %v12084_v33  ;;  %v3587_v50 = vld [vmem:[%s8649_s30 + $0x230] sm:$0xff]  ;;  %v3680_v61 = vpop.f32.mrf.mxu1 }
 0x924   :  { %3955 = vmatpush1.msra.mxu0 %v3559_v6  ;;  %4038 = vmatpush1.msra.mxu1 %v3561_v32  ;;  %v3586_v6 = vld [vmem:[%s8649_s30 + $0x228] sm:$0xff]  ;;  %v3588_v32 = vld [vmem:[%s8649_s30 + $0x238] sm:$0xff] }
 0x925   :  { %3956 = vmatprep.subr.mxu0 %v3557_v13  ;;  %4039 = vmatprep.subr.mxu1 %v12084_v33  ;;  %v3584_v13 = vld [vmem:[%s8649_s30 + $0x218] sm:$0xff] }
 0x926   :  { %3957 = vmatpush1.msra.mxu0 %v3556_v56  ;;  %4040 = vmatpush1.msra.mxu1 %v3558_v43  ;;  %v3583_v56 = vld [vmem:[%s8649_s30 + $0x210] sm:$0xff]  ;;  %v3585_v43 = vld [vmem:[%s8649_s30 + $0x220] sm:$0xff] }
 0x927   :  { %3958 = vmatprep.subr.mxu0 %v3554_v48  ;;  %4041 = vmatprep.subr.mxu1 %v12084_v33  ;;  %v3581_v48 = vld [vmem:[%s8649_s30 + $0x200] sm:$0xff] }
 0x928   :  { %3959 = vmatpush1.msra.mxu0 %v3553_v40  ;;  %4042 = vmatpush1.msra.mxu1 %v3555_v20  ;;  %v3682_v40 = vpop.f32.mrf.mxu1  ;;  %v3580_v20 = vld [vmem:[%s8649_s30 + $0x1f8] sm:$0xff] }
 0x929   :  { %3960 = vmatprep.subr.mxu0 %v3551_v3  ;;  %4043 = vmatprep.subr.mxu1 %v12084_v33  ;;  %v3582_v3 = vld [vmem:[%s8649_s30 + $0x208] sm:$0xff] }
 0x92a   :  { %3961 = vmatpush1.msra.mxu0 %v3550_v27  ;;  %4044 = vmatpush1.msra.mxu1 %v3552_v31  ;;  %v3578_v27 = vld [vmem:[%s8649_s30 + $0x1e8] sm:$0xff]  ;;  %v3500_v31 = vpop.f32.mrf.mxu0 }
 0x92b   :  { %3962 = vmatprep.subr.mxu0 %v3548_v45  ;;  %4045 = vmatprep.subr.mxu1 %v12084_v33  ;;  %v3686_v45 = vpop.f32.mrf.mxu1 }
 0x92c   :  { %3963 = vmatpush1.msra.mxu0 %v3547_v47  ;;  %4046 = vmatpush1.msra.mxu1 %v3549_v1  ;;  %v3577_v47 = vld [vmem:[%s8649_s30 + $0x1e0] sm:$0xff]  ;;  %v3579_v1 = vld [vmem:[%s8649_s30 + $0x1f0] sm:$0xff] }
 0x92d   :  { %3964 = vmatprep.subr.mxu0 %v3545_v49  ;;  %4047 = vmatprep.subr.mxu1 %v12084_v33  ;;  %v3575_v49 = vld [vmem:[%s8649_s30 + $0x1d0] sm:$0xff] }
 0x92e   :  { %3965 = vmatpush1.msra.mxu0 %v3544_v46  ;;  %4048 = vmatpush1.msra.mxu1 %v3546_v21  ;;  %v3574_v46 = vld [vmem:[%s8649_s30 + $0x1c8] sm:$0xff]  ;;  %v3576_v21 = vld [vmem:[%s8649_s30 + $0x1d8] sm:$0xff] }
 0x92f   :  { %3966 = vmatprep.subr.mxu0 %v3542_v4  ;;  %4049 = vmatprep.subr.mxu1 %v12084_v33  ;;  %v3502_v4 = vpop.f32.mrf.mxu0 }
 0x930   :  { %3967 = vmatpush1.msra.mxu0 %v3541_v35  ;;  %4050 = vmatpush1.msra.mxu1 %v3543_v9  ;;  %v3688_v35 = vpop.f32.mrf.mxu1  ;;  %v3572_v9 = vld [vmem:[%s8649_s30 + $0x1b8] sm:$0xff] }
 0x931   :  { %3968 = vmatprep.subr.mxu0 %v3539_v37  ;;  %4051 = vmatprep.subr.mxu1 %v12084_v33  ;;  %v3571_v37 = vld [vmem:[%s8649_s30 + $0x1b0] sm:$0xff] }
 0x932   :  { %3969 = vmatpush1.msra.mxu0 %v3538_v34  ;;  %4052 = vmatpush1.msra.mxu1 %v3540_v14  ;;  %v3573_v34 = vld [vmem:[%s8649_s30 + $0x1c0] sm:$0xff]  ;;  %v3506_v14 = vpop.f32.mrf.mxu0 }
 0x933   :  { %3970 = vmatprep.subr.mxu0 %v3536_v5  ;;  %4053 = vmatprep.subr.mxu1 %v12084_v33  ;;  %v3569_v5 = vld [vmem:[%s8649_s30 + $0x1a0] sm:$0xff] }
 0x934   :  { %3971 = vmatpush1.msra.mxu0 %v3535_v59  ;;  %4054 = vmatpush1.msra.mxu1 %v3537_v12  ;;  %v3568_v59 = vld [vmem:[%s8649_s30 + $0x198] sm:$0xff]  ;;  %v3570_v12 = vld [vmem:[%s8649_s30 + $0x1a8] sm:$0xff] }
 0x935   :  { %3972 = vmatprep.subr.mxu0 %v3533_v42  ;;  %4055 = vmatprep.subr.mxu1 %v12084_v33  ;;  %v3566_v42 = vld [vmem:[%s8649_s30 + $0x188] sm:$0xff] }
 0x936   :  { %3973 = vmatpush1.msra.mxu0 %v3532_v36  ;;  %4056 = vmatpush1.msra.mxu1 %v3534_v53  ;;  %v3565_v36 = vld [vmem:[%s8649_s30 + $0x180] sm:$0xff]  ;;  %v3508_v53 = vpop.f32.mrf.mxu0 }
 0x937   :  { %3974 = vmatprep.subr.mxu0 %v3530_v60  ;;  %4057 = vmatprep.subr.mxu1 %v12084_v33  ;;  %v3567_v60 = vld [vmem:[%s8649_s30 + $0x190] sm:$0xff] }
 0x938   :  { %3975 = vmatpush1.msra.mxu0 %v3529_v0  ;;  %4058 = vmatpush1.msra.mxu1 %v3531_v57  ;;  %v3512_v0 = vpop.f32.mrf.mxu0 }
 0x939   :  { %3976 = vmatprep.subr.mxu0 %v3527_v52  ;;  %4059 = vmatprep.subr.mxu1 %v12084_v33  ;;  %v7849_v52 = vld [vmem:[%s8649_s30 + $0x618] sm:$0xff] }
 0x93a   :  { %3977 = vmatpush1.msra.mxu0 %v3526_v8  ;;  %4060 = vmatpush1.msra.mxu1 %v3528_v39  ;;  %v3514_v57 = vpop.f32.mrf.mxu0  ;;  %v7803_v8 = vld [vmem:[%s8644_s24 + $0x38] sm:$0xff]  ;;  %v7851_v39 = vld [vmem:[%s8649_s30 + $0x628] sm:$0xff] }
 0x93b   :  { %3978 = vmatprep.subr.mxu0 %v3524_v22  ;;  %4061 = vmatprep.subr.mxu1 %v12084_v33  ;;  %v7847_v22 = vld [vmem:[%s8649_s30 + $0x608] sm:$0xff] }
 0x93c   :  { %3979 = vmatpush1.msra.mxu0 %v3523_v26  ;;  %4062 = vmatpush1.msra.mxu1 %v3525_v24  ;;  %v7846_v26 = vld [vmem:[%s8649_s30 + $0x600] sm:$0xff]  ;;  %v7848_v24 = vld [vmem:[%s8649_s30 + $0x610] sm:$0xff] }
 0x93d   :  { %3980 = vmatprep.subr.mxu0 %v3521_v25  ;;  %4063 = vmatprep.subr.mxu1 %v12084_v33  ;;  %v7804_v25 = vld [vmem:[%s8644_s24 + $0x40] sm:$0x3f] }
 0x93e   :  { %3981 = vmatpush1.msra.mxu0 %v3520_v54  ;;  %4064 = vmatpush1.msra.mxu1 %v3522_v16  ;;  %v7844_v54 = vld [vmem:[%s8649_s30 + $0x5f0] sm:$0xff]  ;;  %v7843_v16 = vld [vmem:[%s8649_s30 + $0x5e8] sm:$0xff] }
 0x93f   :  { %3982 = vmatprep.subr.mxu0 %v3518_v63  ;;  %4065 = vmatprep.subr.mxu1 %v12084_v33  ;;  %v7845_v63 = vld [vmem:[%s8649_s30 + $0x5f8] sm:$0xff] }
 0x940   :  { %3983 = vmatpush1.msra.mxu0 %v3517_v28  ;;  %4066 = vmatpush1.msra.mxu1 %v3519_v11  ;;  %v7841_v28 = vld [vmem:[%s8649_s30 + $0x5d8] sm:$0xff]  ;;  %v7840_v11 = vld [vmem:[%s8649_s30 + $0x5d0] sm:$0xff] }
 0x941   :  { %3996 = vmatprep.subr.mxu0 %v3593_v58  ;;  %4079 = vmatprep.subr.mxu1 %v12084_v33  ;;  %v7842_v58 = vld [vmem:[%s8649_s30 + $0x5e0] sm:$0xff] }
 0x942   :  { %3997 = vmatpush2.msra.mxu0 %v3592_v10  ;;  %4080 = vmatpush2.msra.mxu1 %v3594_v30  ;;  %v7838_v10 = vld [vmem:[%s8649_s30 + $0x5c0] sm:$0xff]  ;;  %v7837_v30 = vld [vmem:[%s8649_s30 + $0x5b8] sm:$0xff] }
 0x943   :  { %3998 = vmatprep.subr.mxu0 %v3590_v19  ;;  %4081 = vmatprep.subr.mxu1 %v12084_v33  ;;  %v7839_v19 = vld [vmem:[%s8649_s30 + $0x5c8] sm:$0xff] }
 0x944   :  { %3999 = vmatpush2.msra.mxu0 %v3589_v41  ;;  %4082 = vmatpush2.msra.mxu1 %v3591_v2  ;;  %v7835_v41 = vld [vmem:[%s8649_s30 + $0x5a8] sm:$0xff]  ;;  %v7834_v2 = vld [vmem:[%s8649_s30 + $0x5a0] sm:$0xff] }
 0x945   :  { %4000 = vmatprep.subr.mxu0 %v3587_v50  ;;  %4083 = vmatprep.subr.mxu1 %v12084_v33  ;;  %v7836_v50 = vld [vmem:[%s8649_s30 + $0x5b0] sm:$0xff] }
 0x946   :  { %4001 = vmatpush2.msra.mxu0 %v3586_v6  ;;  %4084 = vmatpush2.msra.mxu1 %v3588_v32  ;;  %v7831_v6 = vld [vmem:[%s8649_s30 + $0x588] sm:$0xff]  ;;  %v7833_v32 = vld [vmem:[%s8649_s30 + $0x598] sm:$0xff] }
 0x947   :  { %4002 = vmatprep.subr.mxu0 %v3584_v13  ;;  %4085 = vmatprep.subr.mxu1 %v12084_v33  ;;  %v7829_v13 = vld [vmem:[%s8649_s30 + $0x578] sm:$0xff] }
 0x948   :  { %4003 = vmatpush2.msra.mxu0 %v3583_v56  ;;  %4086 = vmatpush2.msra.mxu1 %v3585_v43  ;;  %v7828_v56 = vld [vmem:[%s8649_s30 + $0x570] sm:$0xff]  ;;  %v7830_v43 = vld [vmem:[%s8649_s30 + $0x580] sm:$0xff] }
 0x949   :  { %4004 = vmatprep.subr.mxu0 %v3581_v48  ;;  %4087 = vmatprep.subr.mxu1 %v12084_v33  ;;  %v7826_v48 = vld [vmem:[%s8649_s30 + $0x560] sm:$0xff] }
 0x94a   :  { %4005 = vmatpush2.msra.mxu0 %v3580_v20  ;;  %4088 = vmatpush2.msra.mxu1 %v3582_v3  ;;  %v7827_v20 = vld [vmem:[%s8649_s30 + $0x568] sm:$0xff] }
 0x94b   :  { %7791 = vmatprep.mubr.msk.f32.mxu0 %vm3770_vm10, %v3682_v40  ;;  %7794 = vmatprep.mubr.msk.f32.mxu1 %vm3770_vm10, %v3682_v40  ;;  %v7825_v40 = vld [vmem:[%s8649_s30 + $0x558] sm:$0xff]  ;;  %v7823_v3 = vld [vmem:[%s8649_s30 + $0x548] sm:$0xff] }
 0x94c   :  { %4006 = vmatprep.subr.mxu0 %v3578_v27  ;;  %4089 = vmatprep.subr.mxu1 %v12084_v33  ;;  %v7822_v27 = vld [vmem:[%s8649_s30 + $0x540] sm:$0xff] }
 0x94d   :  { %3851 = vmatmul.mubr.f32.gmra.mxu0 %v3680_v61  ;;  %3933 = vmatmul.mubr.f32.gmra.mxu1 %v3680_v61  ;;  %v7832_v61 = vld [vmem:[%s8649_s30 + $0x590] sm:$0xff] }
 0x94e   :  { %4007 = vmatpush2.msra.mxu0 %v3577_v47  ;;  %4090 = vmatpush2.msra.mxu1 %v3579_v1  ;;  %v7819_v47 = vld [vmem:[%s8649_s30 + $0x528] sm:$0xff]  ;;  %v7821_v1 = vld [vmem:[%s8649_s30 + $0x538] sm:$0xff] }
 0x94f   :  { %4008 = vmatprep.subr.mxu0 %v3575_v49  ;;  %4091 = vmatprep.subr.mxu1 %v12084_v33  ;;  %v7817_v49 = vld [vmem:[%s8649_s30 + $0x518] sm:$0xff] }
 0x950   :  { %4009 = vmatpush2.msra.mxu0 %v3574_v46  ;;  %4092 = vmatpush2.msra.mxu1 %v3576_v21  ;;  %v7816_v46 = vld [vmem:[%s8649_s30 + $0x510] sm:$0xff]  ;;  %v7818_v21 = vld [vmem:[%s8649_s30 + $0x520] sm:$0xff] }
 0x951   :  { %7792 = vmatprep.mubr.msk.f32.mxu0 %vm3770_vm10, %v3688_v35  ;;  %7795 = vmatprep.mubr.msk.f32.mxu1 %vm3770_vm10, %v3688_v35  ;;  %v7813_v35 = vld [vmem:[%s8649_s30 + $0x4f8] sm:$0xff] }
 0x952   :  { %4010 = vmatprep.subr.mxu0 %v3572_v9  ;;  %4093 = vmatprep.subr.mxu1 %v12084_v33  ;;  %v7815_v9 = vld [vmem:[%s8649_s30 + $0x508] sm:$0xff] }
 0x953   :  { %3857 = vmatmul.mubr.f32.gmra.mxu0 %v3686_v45  ;;  %3938 = vmatmul.mubr.f32.gmra.mxu1 %v3686_v45  ;;  %v7820_v45 = vld [vmem:[%s8649_s30 + $0x530] sm:$0xff] }
 0x954   :  { %4011 = vmatpush2.msra.mxu0 %v3571_v37  ;;  %4094 = vmatpush2.msra.mxu1 %v3573_v34  ;;  %v7811_v37 = vld [vmem:[%s8649_s30 + $0x4e8] sm:$0xff]  ;;  %v7810_v34 = vld [vmem:[%s8649_s30 + $0x4e0] sm:$0xff] }
 0x955   :  { %4012 = vmatprep.subr.mxu0 %v3569_v5  ;;  %4095 = vmatprep.subr.mxu1 %v12084_v33  ;;  %v7886_v5 = vld [vmem:[%s8649_s30 + $0x740] sm:$0xff] }
 0x956   :  { %4013 = vmatpush2.msra.mxu0 %v3568_v59  ;;  %4096 = vmatpush2.msra.mxu1 %v3570_v12  ;;  %v7885_v59 = vld [vmem:[%s8649_s30 + $0x738] sm:$0xff]  ;;  %v7887_v12 = vld [vmem:[%s8649_s30 + $0x748] sm:$0xff] }
 0x957   :  { %4014 = vmatprep.subr.mxu0 %v3566_v42  ;;  %4097 = vmatprep.subr.mxu1 %v12084_v33  ;;  %v7883_v42 = vld [vmem:[%s8649_s30 + $0x728] sm:$0xff] }
 0x958   :  { %4015 = vmatpush2.msra.mxu0 %v3565_v36  ;;  %7796 = vmatprep.mubr.msk.f32.mxu0 %vm3770_vm10, %v3502_v4  ;;  %v7882_v36 = vld [vmem:[%s8649_s30 + $0x720] sm:$0xff] }
 0x959   :  { %4098 = vmatpush2.msra.mxu1 %v3567_v60  ;;  %7799 = vmatprep.mubr.msk.f32.mxu1 %vm3770_vm10, %v3502_v4  ;;  %v7814_v4 = vld [vmem:[%s8649_s30 + $0x500] sm:$0xff]  ;;  %v7880_v60 = vld [vmem:[%s8649_s30 + $0x710] sm:$0xff] }
 0x95a   :  { %4017 = vmatmul.mubr.f32.vlgmr.msra.gmra.mxu0 %v3500_v31  ;;  %4100 = vmatmul.mubr.f32.vlgmr.msra.gmra.mxu1 %v3500_v31  ;;  %v7824_v31 = vld [vmem:[%s8649_s30 + $0x550] sm:$0xff] }
 0x95b   :  { %7805 = vmatprep.subr.msk.mxu0 %vm3427_vm8, %v10267_v38  ;;  %7797 = vmatprep.mubr.msk.f32.mxu0 %vm3770_vm10, %v3508_v53  ;;  %v7856_v38 = vld [vmem:[%s8649_s30 + $0x650] sm:$0xff] }
 0x95c   :  { %7806 = vmatpush1.msk.msra.mxu0 %vm3427_vm8, %v10269_v23  ;;  %7800 = vmatprep.mubr.msk.f32.mxu1 %vm3770_vm10, %v3508_v53  ;;  %v7855_v23 = vld [vmem:[%s8649_s30 + $0x648] sm:$0xff]  ;;  %v7884_v53 = vld [vmem:[%s8649_s30 + $0x730] sm:$0xff] }
 0x95d   :  { %4154 = vmatprep.subr.mxu0 %v10271_v44  ;;  %v7802_v44 = vld [vmem:[%s8644_s24 + $0x30] sm:$0xff]  ;;  %4299 = vmatprep.subr.mxu1 %v7856_v38  ;;  %v7877_v38 = vld [vmem:[%s8649_s30 + $0x6f8] sm:$0xff]  ;;  %s12177_s24 = sld [smem:[#allocation17_spill]] }
 0x95e   :  { %4155 = vmatpush1.msra.mxu0 %v10277_v17  ;;  %4105 = vmatmul.mubr.f32.gmra.mxu1 %v3506_v14  ;;  %v7853_v17 = vld [vmem:[%s8649_s30 + $0x638] sm:$0xff] }
 0x95f   :  { %4023 = vmatmul.mubr.f32.gmra.mxu0 %v3506_v14  ;;  %4156 = vmatprep.subr.mxu0 %v10283_v55  ;;  %v7852_v55 = vld [vmem:[%s8649_s30 + $0x630] sm:$0xff] }
 0x960   :  { %4157 = vmatpush1.msra.mxu0 %v10287_v7  ;;  %7798 = vmatprep.mubr.msk.f32.mxu0 %vm3770_vm10, %v3514_v57  ;;  %v7857_v7 = vld [vmem:[%s8649_s30 + $0x658] sm:$0xff]  ;;  %v7812_v14 = vld [vmem:[%s8649_s30 + $0x4f0] sm:$0xff] }
 0x961   :  { %4158 = vmatprep.subr.mxu0 %v10291_v15  ;;  %7801 = vmatprep.mubr.msk.f32.mxu1 %vm3770_vm10, %v3514_v57  ;;  %v7850_v15 = vld [vmem:[%s8649_s30 + $0x620] sm:$0xff]  ;;  %v7881_v57 = vld [vmem:[%s8649_s30 + $0x718] sm:$0xff] }
 0x962   :  { %4159 = vmatpush1.msra.mxu0 %v10295_v51  ;;  %4110 = vmatmul.mubr.f32.gmra.mxu1 %v3512_v0  ;;  %v7854_v51 = vld [vmem:[%s8649_s30 + $0x640] sm:$0xff] }
 0x963   :  { %4029 = vmatmul.mubr.f32.gmra.mxu0 %v3512_v0  ;;  %4382 = vmatprep.subr.mxu0 %v12084_v33  ;;  %v7879_v0 = vld [vmem:[%s8649_s30 + $0x708] sm:$0xff] }
 0x964   :  { %4192 = vmatprep.mubr.f32.mxu0 %v12084_v33  ;;  %4300 = vmatpush1.msra.mxu1 %v7855_v23  ;;  %v7876_v23 = vld [vmem:[%s8649_s30 + $0x6f0] sm:$0xff] }
 0x965   :  { %4301 = vmatprep.subr.mxu1 %v7853_v17  ;;  %v7874_v17 = vld [vmem:[%s8649_s30 + $0x6e0] sm:$0xff] }
 0x966   :  { %4302 = vmatpush1.msra.mxu1 %v7852_v55  ;;  %v7873_v55 = vld [vmem:[%s8649_s30 + $0x6d8] sm:$0xff] }
 0x967   :  { %7807 = vmatmul.mubr.msk.f32.vlgmr.msra.gmra.mxu0 %vm3417_vm9, %v7802_v44  ;;  %4303 = vmatprep.subr.mxu1 %v7850_v15  ;;  %v7878_v44 = vld [vmem:[%s8649_s30 + $0x700] sm:$0xff]  ;;  %v7871_v15 = vld [vmem:[%s8649_s30 + $0x6c8] sm:$0xff] }
 0x968   :  { %4198 = vmatprep.mubr.f32.mxu0 %v12084_v33  ;;  %4383 = vmatpush1.msra.mxu0 %v7857_v7  ;;  %v7875_v7 = vld [vmem:[%s8649_s30 + $0x6e8] sm:$0xff] }
 0x969   :  { %4384 = vmatprep.subr.mxu0 %v12084_v33  ;;  %4304 = vmatpush1.msra.mxu1 %v7849_v52  ;;  %v7872_v52 = vld [vmem:[%s8649_s30 + $0x6d0] sm:$0xff] }
 0x96a   :  { %4385 = vmatpush1.msra.mxu0 %v7854_v51  ;;  %4305 = vmatprep.subr.mxu1 %v7847_v22  ;;  %v7870_v51 = vld [vmem:[%s8649_s30 + $0x6c0] sm:$0xff]  ;;  %v7869_v22 = vld [vmem:[%s8649_s30 + $0x6b8] sm:$0xff] }
 0x96b   :  { %7808 = vmatmul.mubr.msk.f32.gmra.mxu0 %vm3417_vm9, %v7803_v8  ;;  %4386 = vmatprep.subr.mxu0 %v12084_v33  ;;  %v7868_v8 = vld [vmem:[%s8649_s30 + $0x6b0] sm:$0xff] }
 0x96c   :  { %4204 = vmatprep.mubr.f32.mxu0 %v12084_v33  ;;  %4387 = vmatpush1.msra.mxu0 %v7851_v39  ;;  %v7867_v39 = vld [vmem:[%s8649_s30 + $0x6a8] sm:$0xff] }
 0x96d   :  { %4388 = vmatprep.subr.mxu0 %v12084_v33  ;;  %4306 = vmatpush1.msra.mxu1 %v7846_v26  ;;  %v7865_v26 = vld [vmem:[%s8649_s30 + $0x698] sm:$0xff] }
 0x96e   :  { %4389 = vmatpush1.msra.mxu0 %v7848_v24  ;;  %4307 = vmatprep.subr.mxu1 %v7844_v54  ;;  %v7864_v24 = vld [vmem:[%s8649_s30 + $0x690] sm:$0xff]  ;;  %v7862_v54 = vld [vmem:[%s8649_s30 + $0x680] sm:$0xff] }
 0x96f   :  { %7809 = vmatmul.mubr.msk.f32.gmra.mxu0 %vm3417_vm9, %v7804_v25  ;;  %4390 = vmatprep.subr.mxu0 %v12084_v33  ;;  %v7866_v25 = vld [vmem:[%s8649_s30 + $0x6a0] sm:$0xff] }
 0x970   :  { %4308 = vmatpush1.msra.mxu1 %v7843_v16  ;;  %4391 = vmatpush1.msra.mxu0 %v7845_v63  ;;  %v7861_v16 = vld [vmem:[%s8649_s30 + $0x678] sm:$0xff]  ;;  %v7863_v63 = vld [vmem:[%s8649_s30 + $0x688] sm:$0xff] }
 0x971   :  { %4309 = vmatprep.subr.mxu1 %v7841_v28  ;;  %4392 = vmatprep.subr.mxu0 %v12084_v33  ;;  %v7859_v28 = vld [vmem:[%s8649_s30 + $0x668] sm:$0xff] }
 0x972   :  { %4310 = vmatpush1.msra.mxu1 %v7840_v11  ;;  %4393 = vmatpush1.msra.mxu0 %v7842_v58  ;;  %v7858_v11 = vld [vmem:[%s8649_s30 + $0x660] sm:$0xff]  ;;  %v7860_v58 = vld [vmem:[%s8649_s30 + $0x670] sm:$0xff]  ;;  %s12178_s30 = sld [smem:[#allocation18_spill]] }
 0x973   :  { %4311 = vmatprep.subr.mxu1 %v7838_v10  ;;  %4394 = vmatprep.subr.mxu0 %v12084_v33  ;;  %v10664_v10 = vld [vmem:[%s8654_s6 + $0xf8] sm:$0xff] }
 0x974   :  { %4312 = vmatpush1.msra.mxu1 %v7837_v30  ;;  %4395 = vmatpush1.msra.mxu0 %v7839_v19 }
 0x975   :  { %4313 = vmatprep.subr.mxu1 %v7835_v41  ;;  %4396 = vmatprep.subr.mxu0 %v12084_v33 }
 0x976   :  { %4314 = vmatpush1.msra.mxu1 %v7834_v2  ;;  %4397 = vmatpush1.msra.mxu0 %v7836_v50 }
 0x977   :  { %4315 = vmatprep.subr.mxu1 %v7832_v61  ;;  %4398 = vmatprep.subr.mxu0 %v12084_v33 }
 0x978   :  { %4316 = vmatpush1.msra.mxu1 %v7831_v6  ;;  %4399 = vmatpush1.msra.mxu0 %v7833_v32 }
 0x979   :  { %4317 = vmatprep.subr.mxu1 %v7829_v13  ;;  %4400 = vmatprep.subr.mxu0 %v12084_v33 }
 0x97a   :  { %4318 = vmatpush1.msra.mxu1 %v7828_v56  ;;  %4401 = vmatpush1.msra.mxu0 %v7830_v43 }
 0x97b   :  { %4319 = vmatprep.subr.mxu1 %v7826_v48  ;;  %4402 = vmatprep.subr.mxu0 %v12084_v33 }
 0x97c   :  { %4320 = vmatpush1.msra.mxu1 %v7825_v40  ;;  %4403 = vmatpush1.msra.mxu0 %v7827_v20 }
 0x97d   :  { %4321 = vmatprep.subr.mxu1 %v7823_v3  ;;  %4404 = vmatprep.subr.mxu0 %v12084_v33 }
 0x97e   :  { %4322 = vmatpush1.msra.mxu1 %v7822_v27  ;;  %4405 = vmatpush1.msra.mxu0 %v7824_v31 }
 0x97f   :  { %4323 = vmatprep.subr.mxu1 %v7820_v45  ;;  %4406 = vmatprep.subr.mxu0 %v12084_v33 }
 0x980   :  { %4324 = vmatpush1.msra.mxu1 %v7819_v47  ;;  %4407 = vmatpush1.msra.mxu0 %v7821_v1 }
 0x981   :  { %4325 = vmatprep.subr.mxu1 %v7817_v49  ;;  %4408 = vmatprep.subr.mxu0 %v12084_v33 }
 0x982   :  { %4326 = vmatpush1.msra.mxu1 %v7816_v46  ;;  %4409 = vmatpush1.msra.mxu0 %v7818_v21 }
 0x983   :  { %4327 = vmatprep.subr.mxu1 %v7814_v4  ;;  %4410 = vmatprep.subr.mxu0 %v12084_v33 }
 0x984   :  { %4328 = vmatpush1.msra.mxu1 %v7813_v35  ;;  %4411 = vmatpush1.msra.mxu0 %v7815_v9 }
 0x985   :  { %4329 = vmatprep.subr.mxu1 %v7811_v37  ;;  %4412 = vmatprep.subr.mxu0 %v12084_v33 }
 0x986   :  { %4330 = vmatpush1.msra.mxu1 %v7810_v34  ;;  %4413 = vmatpush1.msra.mxu0 %v7812_v14 }
 0x987   :  { %4343 = vmatprep.subr.mxu1 %v7886_v5  ;;  %4426 = vmatprep.subr.mxu0 %v12084_v33 }
 0x988   :  { %4344 = vmatpush2.msra.mxu1 %v7885_v59  ;;  %4427 = vmatpush2.msra.mxu0 %v7887_v12 }
 0x989   :  { %4345 = vmatprep.subr.mxu1 %v7883_v42  ;;  %4428 = vmatprep.subr.mxu0 %v12084_v33 }
 0x98a   :  { %4346 = vmatpush2.msra.mxu1 %v7882_v36  ;;  %4429 = vmatpush2.msra.mxu0 %v7884_v53 }
 0x98b   :  { %4430 = vmatprep.subr.mxu0 %v12084_v33  ;;  %4347 = vmatprep.subr.mxu1 %v7880_v60  ;;  %v10686_v60 = vld [vmem:[%s8654_s6 + $0x78] sm:$0xff] }
 0x98c   :  { %4431 = vmatpush2.msra.mxu0 %v7881_v57  ;;  %4348 = vmatpush2.msra.mxu1 %v7879_v0  ;;  %v10691_v0 = vld [vmem:[%s8654_s6 + $0xf0] sm:$0xff] }
 0x98d   :  { %4432 = vmatprep.subr.mxu0 %v12084_v33  ;;  %4349 = vmatprep.subr.mxu1 %v7877_v38 }
 0x98e   :  { %4433 = vmatpush2.msra.mxu0 %v7878_v44  ;;  %4350 = vmatpush2.msra.mxu1 %v7876_v23 }
 0x98f   :  { %4434 = vmatprep.subr.mxu0 %v12084_v33  ;;  %4351 = vmatprep.subr.mxu1 %v7874_v17  ;;  %v10702_v17 = vld [vmem:[%s8654_s6 + $0x70] sm:$0xff] }
 0x990   :  { %4435 = vmatpush2.msra.mxu0 %v7875_v7  ;;  %4352 = vmatpush2.msra.mxu1 %v7873_v55  ;;  %v10705_v55 = vld [vmem:[%s8654_s6 + $0xe8] sm:$0xff] }
 0x991   :  { %4436 = vmatprep.subr.mxu0 %v12084_v33  ;;  %4353 = vmatprep.subr.mxu1 %v7871_v15  ;;  %v10708_v7 = vld [vmem:[%s8654_s6 + $0x68] sm:$0xff]  ;;  %v10712_v15 = vld [vmem:[%s8654_s6 + $0xe0] sm:$0xff] }
 0x992   :  { %4437 = vmatpush2.msra.mxu0 %v7872_v52  ;;  %4354 = vmatpush2.msra.mxu1 %v7870_v51  ;;  %v10715_v51 = vld [vmem:[%s8654_s6 + $0x158] sm:$0xff]  ;;  %v10723_v52 = vld [vmem:[%s8654_s6 + $0x60] sm:$0xff] }
 0x993   :  { %4438 = vmatprep.subr.mxu0 %v12084_v33  ;;  %4355 = vmatprep.subr.mxu1 %v7868_v8  ;;  %v10726_v8 = vld [vmem:[%s8654_s6 + $0xd8] sm:$0xff] }
 0x994   :  { %4439 = vmatpush2.msra.mxu0 %v7869_v22  ;;  %4356 = vmatpush2.msra.mxu1 %v7867_v39  ;;  %v10729_v39 = vld [vmem:[%s8654_s6 + $0x150] sm:$0xff]  ;;  %v10734_v22 = vld [vmem:[%s8654_s6 + $0x58] sm:$0xff] }
 0x995   :  { %4440 = vmatprep.subr.mxu0 %v12084_v33  ;;  %4357 = vmatprep.subr.mxu1 %v7865_v26  ;;  %v10737_v26 = vld [vmem:[%s8654_s6 + $0xd0] sm:$0xff] }
 0x996   :  { %4441 = vmatpush2.msra.mxu0 %v7866_v25  ;;  %4358 = vmatpush2.msra.mxu1 %v7864_v24  ;;  %v10740_v24 = vld [vmem:[%s8654_s6 + $0x148] sm:$0xff]  ;;  %v10749_v25 = vld [vmem:[%s8654_s6 + $0x50] sm:$0xff] }
 0x997   :  { %4442 = vmatprep.subr.mxu0 %v12084_v33  ;;  %4359 = vmatprep.subr.mxu1 %v7862_v54  ;;  %v10753_v54 = vld [vmem:[%s8654_s6 + $0xc8] sm:$0xff] }
 0x998   :  { %4443 = vmatpush2.msra.mxu0 %v7863_v63  ;;  %4360 = vmatpush2.msra.mxu1 %v7861_v16  ;;  %v10756_v16 = vld [vmem:[%s8654_s6 + $0x140] sm:$0xff]  ;;  %v10761_v63 = vld [vmem:[%s8654_s6 + $0x48] sm:$0xff] }
 0x999   :  { %4444 = vmatprep.subr.mxu0 %v12084_v33  ;;  %4361 = vmatprep.subr.mxu1 %v7859_v28  ;;  %v10766_v28 = vld [vmem:[%s8654_s6 + $0xc0] sm:$0xff] }
 0x99a   :  { %4445 = vmatpush2.msra.mxu0 %v7860_v58  ;;  %4362 = vmatpush2.msra.mxu1 %v7858_v11  ;;  %v10769_v11 = vld [vmem:[%s8654_s6 + $0x138] sm:$0xff]  ;;  %v10774_v58 = vld [vmem:[%s8654_s6 + $0x40] sm:$0xff] }
 0x99b   :  { %8368 = vmatprep.subr.mxu0 %v12084_v33  ;;  %8138 = vmatprep.subr.mxu1 %v10664_v10 }
 0x9e1   :  { %v3929_v30 = vpop.f32.mrf.mxu1  ;;  %v3846_v41 = vpop.f32.mrf.mxu0 }
 0x9e3   :  { %v3931_v19 = vpop.f32.mrf.mxu1  ;;  %v3848_v2 = vpop.f32.mrf.mxu0 }
 0x9e4   :  { %v10782_v19 = vld [vmem:[%s8654_s6 + $0x130] sm:$0xff] }
 0xa0d   :  { %v3852_v50 = vpop.f32.mrf.mxu0  ;;  %v3934_v61 = vpop.f32.mrf.mxu1 }
 0xa0f   :  { %v3936_v6 = vpop.f32.mrf.mxu1  ;;  %v3854_v32 = vpop.f32.mrf.mxu0 }
 0xa10   :  { %v10803_v6 = vld [vmem:[%s8654_s6 + $0xa8] sm:$0xff] }
 0xa13   :  { %v3939_v13 = vpop.f32.mrf.mxu1  ;;  %v3858_v56 = vpop.f32.mrf.mxu0 }
 0xa15   :  { %v3941_v43 = vpop.f32.mrf.mxu1  ;;  %v3860_v48 = vpop.f32.mrf.mxu0 }
 0xa16   :  { %v10817_v43 = vld [vmem:[%s8654_s6 + $0x118] sm:$0xff] }
 0xa1a   :  { %v4018_v40 = vpop.f32.mrf.mxu0  ;;  %v4101_v20 = vpop.f32.mrf.mxu1 }
 0xa1b   :  { %v10667_v3 = vadd.f32 %v4018_v40, %v3846_v41  ;;  %v10669_v27 = vadd.f32 %v4101_v20, %v3929_v30  ;;  %v10779_v30 = vld [vmem:[%s8654_s6 + $0xb8] sm:$0xff]  ;;  %v10830_v20 = vld [vmem:[%s8654_s6 + $0x110] sm:$0xff] }
 0xa1c   :  { %v4020_v31 = vpop.f32.mrf.mxu0  ;;  %v4103_v45 = vpop.f32.mrf.mxu1  ;;  %v10787_v41 = vld [vmem:[%s8654_s6 + $0x38] sm:$0xff] }
 0xa1d   :  { %v10671_v47 = vadd.f32 %v4020_v31, %v3848_v2  ;;  %v10792_v2 = vld [vmem:[%s8654_s6 + $0xb0] sm:$0xff]  ;;  %v10827_v40 = vld [vmem:[%s8654_s6 + $0x98] sm:$0xff] }
 0xa1e   :  { %v4106_v1 = vpop.f32.mrf.mxu1  ;;  %v10835_v31 = vld [vmem:[%s8654_s6 + $0x18] sm:$0xff]  ;;  %v10840_v45 = vld [vmem:[%s8654_s6 + $0x90] sm:$0xff] }
 0xa1f   :  { %v4024_v49 = vpop.f32.mrf.mxu0  ;;  %v10673_v46 = vadd.f32 %v4106_v1, %v3934_v61  ;;  %v10798_v61 = vld [vmem:[%s8654_s6 + $0x30] sm:$0xff]  ;;  %v10843_v1 = vld [vmem:[%s8654_s6 + $0x108] sm:$0xff] }
 0xa20   :  { %v10675_v21 = vadd.f32 %v4024_v49, %v3852_v50  ;;  %v4108_v4 = vpop.f32.mrf.mxu1  ;;  %v10795_v50 = vld [vmem:[%s8654_s6 + $0x128] sm:$0xff]  ;;  %v10848_v49 = vld [vmem:[%s8654_s6 + $0x10] sm:$0xff] }
 0xa21   :  { %v4026_v35 = vpop.f32.mrf.mxu0  ;;  %v10853_v4 = vld [vmem:[%s8654_s6 + $0x88] sm:$0xff] }
 0xa22   :  { %v10677_v9 = vadd.f32 %v4026_v35, %v3854_v32  ;;  %v4111_v37 = vpop.f32.mrf.mxu1  ;;  %v10806_v32 = vld [vmem:[%s8654_s6 + $0x120] sm:$0xff]  ;;  %12140 = vst [vmem:[#allocation77_spill] sm:$0xff] %v10853_v4 }
 0xa23   :  { %v4030_v34 = vpop.f32.mrf.mxu0  ;;  %v10679_v14 = vadd.f32 %v4111_v37, %v3939_v13  ;;  %v10809_v13 = vld [vmem:[%s8654_s6 + $0x28] sm:$0xff]  ;;  %v10856_v35 = vld [vmem:[%s8654_s6 + $0x100] sm:$0xff] }
 0xa24   :  { %v10681_v5 = vadd.f32 %v4030_v34, %v3858_v56  ;;  %v4113_v59 = vpop.f32.mrf.mxu1  ;;  %v10814_v56 = vld [vmem:[%s8654_s6 + $0xa0] sm:$0xff]  ;;  %v10861_v37 = vld [vmem:[%s8654_s6 + $0x8] sm:$0xff] }
 0xa25   :  { %v4032_v12 = vpop.f32.mrf.mxu0  ;;  %12141 = vst [vmem:[#allocation23_spill] sm:$0xff] %v10861_v37  ;;  %v10866_v34 = vld [vmem:[%s8654_s6 + $0x80] sm:$0xff] }
 0xa26   :  { %v10683_v42 = vadd.f32 %v4032_v12, %v3860_v48  ;;  %v10822_v48 = vld [vmem:[%s8654_s6 + $0x20] sm:$0xff]  ;;  %12142 = vst [vmem:[#allocation24_spill] sm:$0xff] %v10866_v34 }
 0xa27   :  { %v4194_v36 = vpop.f32.mrf.mxu0  ;;  %v10871_v59 = vld [vmem:[%s8654_s6] sm:$0xff]  ;;  %s12179_s6 = sld [smem:[#allocation19_spill]] }
 0xa28   :  { %12143 = vst [vmem:[#allocation25_spill] sm:$0xff] %v10871_v59 }
 0xa29   :  { %v4196_v53 = vpop.f32.mrf.mxu0 }
 0xa2a   :  { %7888 = vmatprep.mubr.msk.f32.mxu1 %vm3770_vm10, %v4196_v53  ;;  %7891 = vmatprep.mubr.msk.f32.mxu0 %vm3770_vm10, %v4196_v53 }
 0xa2b   :  { %v4200_v57 = vpop.f32.mrf.mxu0  ;;  %4364 = vmatmul.mubr.f32.vlgmr.msra.gmra.mxu1 %v4194_v36  ;;  %4447 = vmatmul.mubr.f32.vlgmr.msra.gmra.mxu0 %v4194_v36 }
 0xa2c   :  { %8139 = vmatpush3.msra.mxu1 %v10686_v60  ;;  %8369 = vmatpush3.msra.mxu0 %v10715_v51 }
 0xa2d   :  { %v4202_v38 = vpop.f32.mrf.mxu0  ;;  %8140 = vmatprep.subr.mxu1 %v10691_v0  ;;  %8370 = vmatprep.subr.mxu0 %v12084_v33 }
 0xa2e   :  { %7889 = vmatprep.mubr.msk.f32.mxu1 %vm3770_vm10, %v4202_v38  ;;  %7892 = vmatprep.mubr.msk.f32.mxu0 %vm3770_vm10, %v4202_v38 }
 0xa2f   :  { %v4206_v23 = vpop.f32.mrf.mxu0  ;;  %4370 = vmatmul.mubr.f32.gmra.mxu1 %v4200_v57  ;;  %4452 = vmatmul.mubr.f32.gmra.mxu0 %v4200_v57 }
 0xa30   :  { %8141 = vmatpush3.msra.mxu1 %v10702_v17  ;;  %8371 = vmatpush3.msra.mxu0 %v10729_v39 }
 0xa31   :  { %v4208_v44 = vpop.f32.mrf.mxu0  ;;  %8142 = vmatprep.subr.mxu1 %v10705_v55  ;;  %8372 = vmatprep.subr.mxu0 %v12084_v33 }
 0xa32   :  { %7890 = vmatprep.mubr.msk.f32.mxu1 %vm3770_vm10, %v4208_v44  ;;  %7893 = vmatprep.mubr.msk.f32.mxu0 %vm3770_vm10, %v4208_v44 }
 0xa33   :  { %4376 = vmatmul.mubr.f32.gmra.mxu1 %v4206_v23  ;;  %4457 = vmatmul.mubr.f32.gmra.mxu0 %v4206_v23 }
 0xa34   :  { %8392 = vmatprep.mubr.msk.f32.mxu0 %vm8579_vm0, %v12084_v33  ;;  %8143 = vmatpush3.msra.mxu1 %v10708_v7 }
 0xa35   :  { %8144 = vmatprep.subr.mxu1 %v10712_v15  ;;  %8373 = vmatpush3.msra.mxu0 %v10740_v24 }
 0xa36   :  { %8145 = vmatpush3.msra.mxu1 %v10723_v52  ;;  %8374 = vmatprep.subr.mxu0 %v12084_v33 }
 0xa37   :  { %8146 = vmatprep.subr.mxu1 %v10726_v8  ;;  %8375 = vmatpush3.msra.mxu0 %v10756_v16 }
 0xa38   :  { %8147 = vmatpush3.msra.mxu1 %v10734_v22  ;;  %8376 = vmatprep.subr.mxu0 %v12084_v33 }
 0xa39   :  { %8148 = vmatprep.subr.mxu1 %v10737_v26  ;;  %8377 = vmatpush3.msra.mxu0 %v10769_v11 }
 0xa3a   :  { %8149 = vmatpush3.msra.mxu1 %v10749_v25  ;;  %8378 = vmatprep.subr.mxu0 %v12084_v33 }
 0xa3b   :  { %8150 = vmatprep.subr.mxu1 %v10753_v54  ;;  %8379 = vmatpush3.msra.mxu0 %v10782_v19 }
 0xa3c   :  { %8151 = vmatpush3.msra.mxu1 %v10761_v63  ;;  %8380 = vmatprep.subr.mxu0 %v12084_v33 }
 0xa3d   :  { %8152 = vmatprep.subr.mxu1 %v10766_v28  ;;  %8381 = vmatpush3.msra.mxu0 %v10795_v50 }
 0xa3e   :  { %8153 = vmatpush3.msra.mxu1 %v10774_v58  ;;  %8382 = vmatprep.subr.mxu0 %v12084_v33 }
 0xa3f   :  { %8154 = vmatprep.subr.mxu1 %v10779_v30  ;;  %8383 = vmatpush3.msra.mxu0 %v10806_v32 }
 0xa40   :  { %8155 = vmatpush3.msra.mxu1 %v10787_v41  ;;  %8384 = vmatprep.subr.mxu0 %v12084_v33 }
 0xa41   :  { %8156 = vmatprep.subr.mxu1 %v10792_v2  ;;  %8385 = vmatpush3.msra.mxu0 %v10817_v43 }
 0xa42   :  { %8157 = vmatpush3.msra.mxu1 %v10798_v61  ;;  %8386 = vmatprep.subr.mxu0 %v12084_v33 }
 0xa43   :  { %8158 = vmatprep.subr.mxu1 %v10803_v6  ;;  %8387 = vmatpush3.msra.mxu0 %v10830_v20 }
 0xa44   :  { %8159 = vmatpush3.msra.mxu1 %v10809_v13  ;;  %8388 = vmatprep.subr.mxu0 %v12084_v33 }
 0xa45   :  { %8160 = vmatprep.subr.mxu1 %v10814_v56  ;;  %8389 = vmatpush3.msra.mxu0 %v10843_v1 }
 0xa46   :  { %8161 = vmatpush3.msra.mxu1 %v10822_v48  ;;  %8390 = vmatprep.subr.mxu0 %v12084_v33 }
 0xa47   :  { %8162 = vmatprep.subr.mxu1 %v10827_v40  ;;  %8391 = vmatpush3.msra.mxu0 %v10856_v35 }
 0xa48   :  { %8163 = vmatpush3.msra.mxu1 %v10835_v31 }
 0xa49   :  { %8164 = vmatprep.subr.mxu1 %v10840_v45 }
 0xa4a   :  { %8165 = vmatpush3.msra.mxu1 %v10848_v49 }
 0xa4b   :  { %8166 = vmatprep.subr.mxu1 %v10853_v4 }
 0xa4c   :  { %8167 = vmatpush3.msra.mxu1 %v10861_v37 }
 0xa4d   :  { %8168 = vmatprep.subr.mxu1 %v10866_v34 }
 0xa4e   :  { %8169 = vmatpush3.msra.mxu1 %v10871_v59 }
 0xa4f   :  { %8395 = vmatprep.subr.mxu1 %v12084_v33 }
 0xaeb   :  { %v4365_v12 = vpop.f32.mrf.mxu1  ;;  %v4448_v36 = vpop.f32.mrf.mxu0 }
 0xaec   :  { %v10878_v44 = vadd.f32 %v4448_v36, %v10669_v27  ;;  %v10889_v37 = vadd.f32 %v4365_v12, %v10667_v3 }
 0xaed   :  { %v4367_v53 = vpop.f32.mrf.mxu1  ;;  %v4450_v57 = vpop.f32.mrf.mxu0 }
 0xaee   :  { %12144 = vst [vmem:[#allocation26_spill] sm:$0xff] %v10878_v44  ;;  %12147 = vst [vmem:[#allocation33_spill] sm:$0xff] %v10889_v37 }
 0xaef   :  { %v4371_v38 = vpop.f32.mrf.mxu1  ;;  %v4453_v23 = vpop.f32.mrf.mxu0 }
 0xaf0   :  { %v10881_v62 = vadd.f32 %v4453_v23, %v10673_v46  ;;  %v10884_v29 = vadd.f32 %v4371_v38, %v10675_v21  ;;  %v4491_v46 = vsel %vm4490_vm11, %v10878_v44, 0.0  ;;  %v10903_v38 = vadd.f32 %v4367_v53, %v10671_v47 }
 0xaf1   :  { %v4373_v18 = vpop.f32.mrf.mxu1  ;;  %v4455_v59 = vpop.f32.mrf.mxu0 }
 0xaf2   :  { %12145 = vst [vmem:[#allocation27_spill] sm:$0xff] %v10881_v62  ;;  %12146 = vst [vmem:[#allocation30_spill] sm:$0xff] %v10884_v29  ;;  %v4492_v34 = vsel %vm4490_vm11, %v10881_v62, 0.0  ;;  %v10892_v57 = vadd.f32 %v4373_v18, %v10677_v9  ;;  %v4471_v18 = vadd.f32 %v10884_v29, %v10889_v37 }
 0xaf3   :  { %v4377_v27 = vpop.f32.mrf.mxu1  ;;  %v4458_v36 = vpop.f32.mrf.mxu0  ;;  %v4493_v3 = vadd.f32 %v4492_v34, %v4491_v46 }
 0xaf4   :  { %v10897_v21 = vadd.f32 %v4377_v27, %v10681_v5  ;;  %v10900_v59 = vadd.f32 %v4458_v36, %v10679_v14  ;;  %v4481_v14 = vadd.f32 %v10892_v57, %v10903_v38 }
 0xaf5   :  { %v4379_v9 = vpop.f32.mrf.mxu1  ;;  %v4460_v12 = vpop.f32.mrf.mxu0 }
 0xaf6   :  { %12148 = vst [vmem:[#allocation36_spill] sm:$0xff] %v10897_v21  ;;  %12149 = vst [vmem:[#allocation39_spill] sm:$0xff] %v10900_v59  ;;  %v4473_v23 = vsel %vm4472_vm12, %v10897_v21, 0.0  ;;  %v4495_v62 = vsel %vm4494_vm13, %v10900_v59, 0.0  ;;  %v10912_v5 = vadd.f32 %v4379_v9, %v10683_v42 }
 0xaf7   :  { %v4474_v47 = vadd.f32 %v4473_v23, %v4471_v18  ;;  %v4496_v53 = vadd.f32 %v4495_v62, %v4493_v3 }
 0xaf8   :  { %12150 = vst [vmem:[#allocation42_spill] sm:$0xff] %v10912_v5  ;;  %v4482_v27 = vsel %vm4472_vm12, %v10912_v5, 0.0 }
 0xaf9   :  { %v4475_v34 = vrot.slane %v4474_v47, 4  ;;  %v4497_v36 = vrot.slane %v4496_v53, 4  ;;  %v4483_v46 = vadd.f32 %v4482_v27, %v4481_v14  ;;  %v10952_v27 = vld [vmem:[%s12151_s0 + $0x28] sm:$0xff] }
 0xafb   :  { %v4476_v12 = vadd.f32 %v4475_v34, %v4474_v47  ;;  %v4498_v44 = vadd.f32 %v4497_v36, %v4496_v53  ;;  %v4484_v21 = vrot.slane %v4483_v46, 4  ;;  %v10949_v53 = vld [vmem:[%s12151_s0 + $0x18] sm:$0xff]  ;;  %v10957_v34 = vld [vmem:[%s12151_s0 + $0x8] sm:$0xff]  ;;  %v10962_v36 = vld [vmem:[%s12151_s0] sm:$0xff] }
 0xafd   :  { %v4477_v29 = vrot.slane %v4476_v12, 2  ;;  %v4499_v37 = vrot.slane %v4498_v44, 2  ;;  %v4485_v59 = vadd.f32 %v4484_v21, %v4483_v46  ;;  %v10938_v21 = vld [vmem:[%s12151_s0 + $0x30] sm:$0xff] }
 0xafe   :  { %v10965_v46 = vld [vmem:[%s12151_s0 + $0x10] sm:$0xff] }
 0xaff   :  { %v4478_v42 = vadd.f32 %v4477_v29, %v4476_v12  ;;  %v4500_v9 = vadd.f32 %v4499_v37, %v4498_v44  ;;  %v4486_v4 = vrot.slane %v4485_v59, 2  ;;  %v10923_v29 = vld [vmem:[%s12151_s0 + $0x50] sm:$0xff]  ;;  %v10930_v37 = vld [vmem:[%s12151_s0 + $0x58] sm:$0xff] }
 0xb00   :  { %4674 = vmatprep.subr.mxu0 %v10923_v29  ;;  %v10933_v44 = vld [vmem:[%s12151_s0 + $0x38] sm:$0xff] }
 0xb01   :  { %v4501_v18 = vrot.slane %v4500_v9, 1  ;;  %v4487_v62 = vadd.f32 %v4486_v4, %v4485_v59  ;;  %v4479_v3 = vrot.slane %v4478_v42, 1  ;;  %v10927_v4 = vld [vmem:[%s12151_s0 + $0x48] sm:$0xff]  ;;  %v10941_v59 = vld [vmem:[%s12151_s0 + $0x40] sm:$0xff] }
 0xb03   :  { %v4502_v23 = vadd.f32 %v4501_v18, %v4500_v9  ;;  %v4488_v5 = vrot.slane %v4487_v62, 1  ;;  %v4480_v47 = vadd.f32 %v4479_v3, %v4478_v42 }
 0xb05   :  { %8393 = vmatmul.mubr.msk.f32.vlgmr.msra.gmra.mxu0 %vm4490_vm11, %v4502_v23  ;;  %v4489_v14 = vadd.f32 %v4488_v5, %v4487_v62  ;;  %v10944_v5 = vld [vmem:[%s12151_s0 + $0x20] sm:$0xff] }
 0xb06   :  { %4714 = vmatprep.mubr.f32.mxu0 %v12084_v33  ;;  %4675 = vmatpush1.msra.mxu0 %v10927_v4 }
 0xb07   :  { %4570 = vmatprep.mubr.f32.mxu1 %v4489_v14  ;;  %4676 = vmatprep.subr.mxu0 %v10933_v44 }
 0xb08   :  { %4571 = vmatmul.mubr.f32.vlgmr.msra.gmra.mxu1 %v4480_v47  ;;  %4677 = vmatpush1.msra.mxu0 %v10938_v21 }
 0xb09   :  { %8403 = vmatprep.mubr.msk.f32.mxu1 %vm8579_vm0, %v12084_v33  ;;  %8396 = vmatpush3.msra.mxu1 %v10930_v37 }
 0xb0a   :  { %8397 = vmatprep.subr.mxu1 %v12084_v33  ;;  %4678 = vmatprep.subr.mxu0 %v10944_v5 }
 0xb0b   :  { %8398 = vmatpush3.msra.mxu1 %v10941_v59  ;;  %4679 = vmatpush1.msra.mxu0 %v10949_v53 }
 0xb0c   :  { %8399 = vmatprep.subr.mxu1 %v12084_v33  ;;  %4680 = vmatprep.subr.mxu0 %v10957_v34 }
 0xb0d   :  { %8400 = vmatpush3.msra.mxu1 %v10952_v27  ;;  %4681 = vmatpush1.msra.mxu0 %v10962_v36 }
 0xb0e   :  { %8401 = vmatprep.subr.mxu1 %v12084_v33  ;;  %8191 = vmatprep.subr.mxu0 %v10664_v10  ;;  %v12152_v10 = vld [vmem:[#allocation77_spill] sm:$0xff] }
 0xb0f   :  { %8402 = vmatpush3.msra.mxu1 %v10965_v46 }
 0xb10   :  { %8406 = vmatprep.subr.mxu1 %v12084_v33 }
 0xbc5   :  { %v4642_v12 = vpop.f32.mrf.mxu0 }
 0xbc7   :  { %v8394_v42 = vpop.f32.mrf.mxu0 }
 0xbc8   :  { %v8170_v9 = vpop.f32.mrf.mxu1 }
 0xbca   :  { %v8171_v18 = vpop.f32.mrf.mxu1 }
 0xbcb   :  { %v8172_v62 = vadd.f32 %v8171_v18, %v8170_v9 }
 0xbcd   :  { %v4643_v3 = vadd.f32 %v8172_v62, %v4642_v12 }
 0xbcf   :  { %v4646_v23 = vmul.f32 0.004132231, %v4643_v3 }
 0xbd1   :  { %7895 = vmatmul.mubr.msk.f32.vlgmr.msra.gmra.mxu0 %vm1453_vm4, %v4646_v23  ;;  %8404 = vmatmul.mubr.msk.f32.vlgmr.msra.gmra.mxu1 %vm1453_vm4, %v4646_v23 }
 0xbd2   :  { %8192 = vmatpush3.msra.mxu0 %v10686_v60  ;;  %8407 = vmatpush3.msra.mxu1 %v10715_v51  ;;  %v12153_v60 = vld [vmem:[#allocation23_spill] sm:$0xff] }
 0xbd3   :  { %8193 = vmatprep.subr.mxu0 %v10691_v0  ;;  %8408 = vmatprep.subr.mxu1 %v12084_v33  ;;  %v12154_v0 = vld [vmem:[#allocation24_spill] sm:$0xff] }
 0xbd4   :  { %8194 = vmatpush3.msra.mxu0 %v10702_v17  ;;  %8409 = vmatpush3.msra.mxu1 %v10729_v39  ;;  %v12155_v17 = vld [vmem:[#allocation25_spill] sm:$0xff] }
 0xbd5   :  { %8195 = vmatprep.subr.mxu0 %v10705_v55  ;;  %8410 = vmatprep.subr.mxu1 %v12084_v33 }
 0xbd6   :  { %8196 = vmatpush3.msra.mxu0 %v10708_v7  ;;  %8411 = vmatpush3.msra.mxu1 %v10740_v24  ;;  %v12158_v24 = vld [vmem:[#allocation30_spill] sm:$0xff] }
 0xbd7   :  { %8197 = vmatprep.subr.mxu0 %v10712_v15  ;;  %8412 = vmatprep.subr.mxu1 %v12084_v33  ;;  %v12156_v15 = vld [vmem:[#allocation21_spill] sm:$0xff] }
 0xbd8   :  { %8198 = vmatpush3.msra.mxu0 %v10723_v52  ;;  %8413 = vmatpush3.msra.mxu1 %v10756_v16 }
 0xbd9   :  { %8199 = vmatprep.subr.mxu0 %v10726_v8  ;;  %8414 = vmatprep.subr.mxu1 %v12084_v33 }
 0xbda   :  { %8200 = vmatpush3.msra.mxu0 %v10734_v22  ;;  %8415 = vmatpush3.msra.mxu1 %v10769_v11  ;;  %v12157_v22 = vld [vmem:[#allocation33_spill] sm:$0xff]  ;;  %v12161_v11 = vld [vmem:[#allocation27_spill] sm:$0xff] }
 0xbdb   :  { %8201 = vmatprep.subr.mxu0 %v10737_v26  ;;  %8416 = vmatprep.subr.mxu1 %v12084_v33 }
 0xbdc   :  { %8202 = vmatpush3.msra.mxu0 %v10749_v25  ;;  %8417 = vmatpush3.msra.mxu1 %v10782_v19 }
 0xbdd   :  { %8203 = vmatprep.subr.mxu0 %v10753_v54  ;;  %8418 = vmatprep.subr.mxu1 %v12084_v33  ;;  %v12159_v54 = vld [vmem:[#allocation36_spill] sm:$0xff] }
 0xbde   :  { %8204 = vmatpush3.msra.mxu0 %v10761_v63  ;;  %8419 = vmatpush3.msra.mxu1 %v10795_v50  ;;  %v12160_v63 = vld [vmem:[#allocation26_spill] sm:$0xff] }
 0xbdf   :  { %8205 = vmatprep.subr.mxu0 %v10766_v28  ;;  %8420 = vmatprep.subr.mxu1 %v12084_v33 }
 0xbe0   :  { %8206 = vmatpush3.msra.mxu0 %v10774_v58  ;;  %8421 = vmatpush3.msra.mxu1 %v10806_v32 }
 0xbe1   :  { %8207 = vmatprep.subr.mxu0 %v10779_v30  ;;  %8422 = vmatprep.subr.mxu1 %v12084_v33  ;;  %v12162_v30 = vld [vmem:[#allocation39_spill] sm:$0xff] }
 0xbe2   :  { %8208 = vmatpush3.msra.mxu0 %v10787_v41  ;;  %8423 = vmatpush3.msra.mxu1 %v10817_v43 }
 0xbe3   :  { %8209 = vmatprep.subr.mxu0 %v10792_v2  ;;  %8424 = vmatprep.subr.mxu1 %v12084_v33 }
 0xbe4   :  { %8210 = vmatpush3.msra.mxu0 %v10798_v61  ;;  %8425 = vmatpush3.msra.mxu1 %v10830_v20 }
 0xbe5   :  { %8211 = vmatprep.subr.mxu0 %v10803_v6  ;;  %8426 = vmatprep.subr.mxu1 %v12084_v33 }
 0xbe6   :  { %8212 = vmatpush3.msra.mxu0 %v10809_v13  ;;  %8427 = vmatpush3.msra.mxu1 %v10843_v1 }
 0xbe7   :  { %8213 = vmatprep.subr.mxu0 %v10814_v56  ;;  %8428 = vmatprep.subr.mxu1 %v12084_v33 }
 0xbe8   :  { %8214 = vmatpush3.msra.mxu0 %v10822_v48  ;;  %8429 = vmatpush3.msra.mxu1 %v10856_v35 }
 0xbe9   :  { %8215 = vmatprep.subr.mxu0 %v10827_v40  ;;  %8430 = vmatprep.mubr.msk.f32.mxu1 %vm8579_vm0, %v12084_v33 }
 0xbea   :  { %8216 = vmatpush3.msra.mxu0 %v10835_v31  ;;  %5023 = vmatprep.subr.mxu1 %v10923_v29  ;;  %v12163_v31 = vld [vmem:[#allocation42_spill] sm:$0xff] }
 0xbeb   :  { %8217 = vmatprep.subr.mxu0 %v10840_v45 }
 0xbec   :  { %8218 = vmatpush3.msra.mxu0 %v10848_v49 }
 0xbed   :  { %8219 = vmatprep.subr.mxu0 %v12152_v10 }
 0xbee   :  { %8220 = vmatpush3.msra.mxu0 %v12153_v60 }
 0xbef   :  { %8221 = vmatprep.subr.mxu0 %v12154_v0 }
 0xbf0   :  { %8222 = vmatpush3.msra.mxu0 %v12155_v17 }
 0xbf1   :  { %8433 = vmatprep.subr.mxu0 %v12084_v33 }
 0xc91   :  { %v4716_v55 = vpop.f32.mrf.mxu0  ;;  %v4787_v7 = vpop.f32.mrf.mxu1 }
 0xc92   :  { %v4794_v51 = vrot.slane %v4716_v55, %v12156_v15  ;;  %v4802_v52 = vrot.slane %v4787_v7, %v12156_v15 }
 0xc93   :  { %v4718_v8 = vpop.f32.mrf.mxu0  ;;  %v8405_v39 = vpop.f32.mrf.mxu1 }
 0xc94   :  { %v11038_v26 = vsub.f32 %v12157_v22, %v4794_v51  ;;  %v11041_v25 = vsub.f32 %v12158_v24, %v4794_v51  ;;  %v11044_v16 = vsub.f32 %v12159_v54, %v4794_v51  ;;  %v11047_v28 = vsub.f32 %v12160_v63, %v4802_v52 }
 0xc95   :  { %v11050_v58 = vsub.f32 %v12161_v11, %v4802_v52  ;;  %v11053_v19 = vsub.f32 %v12162_v30, %v4802_v52  ;;  %v4798_v41 = vrot.slane %v4718_v8, %v12156_v15  ;;  %v5187_v30 = vld [vmem:[%s12166_s13] sm:$0x7] }
 0xc96   :  { %v4812_v2 = vmul.f32 %v11038_v26, %v11038_v26  ;;  %v4815_v50 = vmul.f32 %v11041_v25, %v11041_v25  ;;  %v4818_v61 = vmul.f32 %v11044_v16, %v11044_v16  ;;  %v4814_v6 = vmul.f32 %v11047_v28, %v11047_v28 }
 0xc97   :  { %v4817_v32 = vmul.f32 %v11050_v58, %v11050_v58  ;;  %v4820_v13 = vmul.f32 %v11053_v19, %v11053_v19  ;;  %v11069_v56 = vsub.f32 %v10903_v38, %v4798_v41  ;;  %v11072_v43 = vsub.f32 %v10892_v57, %v4798_v41 }
 0xc98   :  { %v4821_v48 = vadd.f32 %v4815_v50, %v4812_v2  ;;  %v4822_v40 = vsel %vm4472_vm12, %v4818_v61, 0.0  ;;  %v4839_v20 = vsel %vm4490_vm11, %v4814_v6, 0.0  ;;  %v11077_v45 = vsub.f32 %v12163_v31, %v4798_v41  ;;  %v12167_v6 = vld [vmem:[#allocation76_spill] sm:$0xff]  ;;  %v12168_v31 = vld [vmem:[#allocation22_spill] sm:$0xff] }
 0xc99   :  { %v4840_v1 = vsel %vm4490_vm11, %v4817_v32, 0.0  ;;  %v4813_v49 = vmul.f32 %v11069_v56, %v11069_v56  ;;  %v4816_v35 = vmul.f32 %v11072_v43, %v11072_v43  ;;  %v4842_v47 = vsel %vm4494_vm13, %v4820_v13, 0.0 }
 0xc9a   :  { %v4823_v38 = vadd.f32 %v4822_v40, %v4821_v48  ;;  %v4841_v14 = vadd.f32 %v4840_v1, %v4839_v20  ;;  %v4819_v57 = vmul.f32 %v11077_v45, %v11077_v45 }
 0xc9b   :  { %v4830_v29 = vadd.f32 %v4816_v35, %v4813_v49  ;;  %v5200_v49 = vrot.slane %v5187_v30, %v12167_v6 }
 0xc9c   :  { %v4824_v12 = vrot.slane %v4823_v38, 4  ;;  %v4843_v42 = vadd.f32 %v4842_v47, %v4841_v14  ;;  %v4831_v9 = vsel %vm4472_vm12, %v4819_v57, 0.0 }
 0xc9d   :  { %v4832_v18 = vadd.f32 %v4831_v9, %v4830_v29 }
 0xc9e   :  { %v4825_v62 = vadd.f32 %v4824_v12, %v4823_v38  ;;  %v4844_v3 = vrot.slane %v4843_v42, 4  ;;  %v5192_v12 = vrot.slane %v5187_v30, %v12156_v15 }
 0xc9f   :  { %v4833_v23 = vrot.slane %v4832_v18, 4 }
 0xca0   :  { %v4826_v10 = vrot.slane %v4825_v62, 2  ;;  %v4845_v60 = vadd.f32 %v4844_v3, %v4843_v42 }
 0xca1   :  { %v4834_v0 = vadd.f32 %v4833_v23, %v4832_v18 }
 0xca2   :  { %v4846_v17 = vrot.slane %v4845_v60, 2  ;;  %v4827_v55 = vadd.f32 %v4826_v10, %v4825_v62 }
 0xca3   :  { %v4835_v7 = vrot.slane %v4834_v0, 2 }
 0xca4   :  { %v4847_v51 = vadd.f32 %v4846_v17, %v4845_v60  ;;  %v4828_v39 = vrot.slane %v4827_v55, 1 }
 0xca5   :  { %v4836_v52 = vadd.f32 %v4835_v7, %v4834_v0 }
 0xca6   :  { %v4848_v8 = vrot.slane %v4847_v51, 1  ;;  %v4829_v63 = vadd.f32 %v4828_v39, %v4827_v55 }
 0xca7   :  { %v4837_v22 = vrot.slane %v4836_v52, 1 }
 0xca8   :  { %v4849_v24 = vadd.f32 %v4848_v8, %v4847_v51 }
 0xca9   :  { %v4838_v54 = vadd.f32 %v4837_v22, %v4836_v52 }
 0xcaa   :  { %8431 = vmatmul.mubr.msk.f32.vlgmr.msra.gmra.mxu1 %vm4490_vm11, %v4849_v24 }
 0xcab   :  { %4917 = vmatprep.mubr.f32.mxu0 %v4838_v54  ;;  %5024 = vmatpush1.msra.mxu1 %v10927_v4 }
 0xcac   :  { %4918 = vmatmul.mubr.f32.vlgmr.msra.gmra.mxu0 %v4829_v63  ;;  %5025 = vmatprep.subr.mxu1 %v10933_v44  ;;  %v5223_v63 = vld [vmem:[%s12164_s5 + $0x8] sm:$0x3] }
 0xcad   :  { %8434 = vmatpush3.msra.mxu0 %v10930_v37  ;;  %5026 = vmatpush1.msra.mxu1 %v10938_v21 }
 0xcae   :  { %8435 = vmatprep.subr.mxu0 %v12084_v33  ;;  %5027 = vmatprep.subr.mxu1 %v10944_v5 }
 0xcaf   :  { %8436 = vmatpush3.msra.mxu0 %v10941_v59  ;;  %5028 = vmatpush1.msra.mxu1 %v10949_v53 }
 0xcb0   :  { %8437 = vmatprep.subr.mxu0 %v12084_v33  ;;  %5029 = vmatprep.subr.mxu1 %v10957_v34 }
 0xcb1   :  { %8438 = vmatpush3.msra.mxu0 %v10952_v27  ;;  %5030 = vmatpush1.msra.mxu1 %v10962_v36  ;;  %v11110_v36 = vld [vmem:[%s12164_s5] sm:$0xff] }
 0xcb2   :  { %8439 = vmatprep.subr.mxu0 %v12084_v33  ;;  %5063 = vmatprep.mubr.f32.mxu1 %v12084_v33 }
 0xcb3   :  { %8440 = vmatpush3.msra.mxu0 %v10965_v46  ;;  %8441 = vmatprep.mubr.msk.f32.mxu0 %vm8579_vm0, %v12084_v33  ;;  %v5161_v46 = vld [vmem:[%s12165_s9] sm:$0x7] }
 0xcb4   :  { %v5166_v50 = vrot.slane %v5161_v46, %v12156_v15  ;;  %v5174_v32 = vrot.slane %v5161_v46, %v12167_v6  ;;  %v5170_v1 = vrot.slane %v5161_v46, %v12168_v31  ;;  %v5586_v46 = vld [vmem:[%s12170_s21 + $0xe0] sm:$0xff] }
 0xcb5   :  { %v5582_v6 = vld [vmem:[%s12170_s21 + $0xc0] sm:$0xff] }
 0xd6a   :  { %v4989_v4 = vpop.f32.mrf.mxu1 }
 0xd6c   :  { %v8223_v37 = vpop.f32.mrf.mxu0  ;;  %v8432_v44 = vpop.f32.mrf.mxu1 }
 0xd6d   :  { %v5392_v44 = vld [vmem:[%s12169_s17] sm:$0xff] }
 0xd6e   :  { %v8224_v21 = vpop.f32.mrf.mxu0 }
 0xd6f   :  { %v8225_v59 = vadd.f32 %v8224_v21, %v8223_v37  ;;  %v5393_v21 = vld [vmem:[%s12169_s17 + $0x8] sm:$0x3] }
 0xd71   :  { %v4990_v5 = vadd.f32 %v8225_v59, %v4989_v4  ;;  %v5589_v59 = vld [vmem:[%s12170_s21 + $0xf8] sm:$0xff] }
 0xd73   :  { %v4993_v53 = vmul.f32 0.004132231, %v4990_v5  ;;  %v5645_v5 = vld [vmem:[%s12170_s21 + $0x2b8] sm:$0xff] }
 0xd75   :  { %v4994_v27 = vadd.f32 1e-05, %v4993_v53  ;;  %v5644_v53 = vld [vmem:[%s12170_s21 + $0x2b0] sm:$0xff] }
 0xd77   :  { %8519 = vrsqrt.f32 %v4994_v27  ;;  %v5588_v27 = vld [vmem:[%s12170_s21 + $0xf0] sm:$0xff] }
 0xd84   :  { %v8520_v34 = vpop.eup %8519 }
 0xd85   :  { %7898 = vmatmul.mubr.msk.f32.vlgmr.msra.gmra.mxu1 %vm1453_vm4, %v8520_v34  ;;  %8442 = vmatmul.mubr.msk.f32.vlgmr.msra.gmra.mxu0 %vm1453_vm4, %v8520_v34  ;;  %v5587_v34 = vld [vmem:[%s12170_s21 + $0xe8] sm:$0xff] }
 0xd86   :  { %5304 = vmatprep.mubr.f32.mxu1 %v12084_v33  ;;  %8450 = vmatprep.mubr.msk.f32.mxu0 %vm5224_vm14, %v11110_v36 }
 0xe45   :  { %v5065_v11 = vpop.f32.mrf.mxu1  ;;  %v5136_v41 = vpop.f32.mrf.mxu0 }
 0xe46   :  { %v5143_v2 = vrot.slane %v5065_v11, %v12156_v15  ;;  %v5151_v61 = vrot.slane %v5136_v41, %v12156_v15  ;;  %v5642_v11 = vld [vmem:[%s12170_s21 + $0x2a0] sm:$0xff]  ;;  %v5584_v41 = vld [vmem:[%s12170_s21 + $0xd0] sm:$0xff] }
 0xe47   :  { %v5067_v13 = vpop.f32.mrf.mxu1  ;;  %v8443_v48 = vpop.f32.mrf.mxu0 }
 0xe48   :  { %v5158_v40 = vmul.f32 %v5143_v2, %v11044_v16  ;;  %v5154_v20 = vmul.f32 %v5151_v61, %v11047_v28  ;;  %v5155_v35 = vmul.f32 %v5143_v2, %v11041_v25  ;;  %v5157_v38 = vmul.f32 %v5151_v61, %v11050_v58  ;;  %v5638_v48 = vld [vmem:[%s12170_s21 + $0x280] sm:$0xff] }
 0xe49   :  { %v5160_v14 = vmul.f32 %v5151_v61, %v11053_v19  ;;  %v5147_v57 = vrot.slane %v5067_v13, %v12156_v15  ;;  %v5152_v47 = vmul.f32 %v5143_v2, %v11038_v26  ;;  %v5196_v58 = vrot.slane %v5187_v30, %v12168_v31  ;;  %v5585_v30 = vld [vmem:[%s12170_s21 + $0xd8] sm:$0xff]  ;;  %v5640_v61 = vld [vmem:[%s12170_s21 + $0x290] sm:$0xff] }
 0xe4a   :  { %v5184_v29 = vmul.f32 %v5166_v50, %v5158_v40  ;;  %v5180_v16 = vmul.f32 %v5174_v32, %v5154_v20  ;;  %v5183_v42 = vmul.f32 %v5174_v32, %v5157_v38  ;;  %v5181_v62 = vmul.f32 %v5166_v50, %v5155_v35  ;;  %v5641_v2 = vld [vmem:[%s12170_s21 + $0x298] sm:$0xff]  ;;  %v5580_v40 = vld [vmem:[%s12170_s21 + $0xb0] sm:$0xff]  ;;  %v5578_v35 = vld [vmem:[%s12170_s21 + $0xa0] sm:$0xff] }
 0xe4b   :  { %v5186_v28 = vmul.f32 %v5174_v32, %v5160_v14  ;;  %v5153_v9 = vmul.f32 %v5147_v57, %v11069_v56  ;;  %v5156_v18 = vmul.f32 %v5147_v57, %v11072_v43  ;;  %v5159_v25 = vmul.f32 %v5147_v57, %v11077_v45  ;;  %v5639_v32 = vld [vmem:[%s12170_s21 + $0x288] sm:$0xff]  ;;  %v5581_v13 = vld [vmem:[%s12170_s21 + $0xb8] sm:$0xff]  ;;  %v5634_v57 = vld [vmem:[%s12170_s21 + $0x260] sm:$0xff] }
 0xe4c   :  { %v5209_v3 = vadd.f32 %v5200_v49, %v5183_v42  ;;  %v5178_v60 = vmul.f32 %v5166_v50, %v5152_v47  ;;  %v5210_v0 = vadd.f32 %v5192_v12, %v5184_v29  ;;  %v5206_v55 = vadd.f32 %v5200_v49, %v5180_v16  ;;  %v5583_v50 = vld [vmem:[%s12170_s21 + $0xc8] sm:$0xff]  ;;  %v5637_v20 = vld [vmem:[%s12170_s21 + $0x278] sm:$0xff]  ;;  %v5576_v47 = vld [vmem:[%s12170_s21 + $0x90] sm:$0xff] }
 0xe4d   :  { %v5212_v19 = vadd.f32 %v5200_v49, %v5186_v28  ;;  %v5182_v23 = vmul.f32 %v5170_v1, %v5156_v18  ;;  %v5185_v10 = vmul.f32 %v5170_v1, %v5159_v25  ;;  %v5179_v26 = vmul.f32 %v5170_v1, %v5153_v9  ;;  %v5579_v1 = vld [vmem:[%s12170_s21 + $0xa8] sm:$0xff]  ;;  %v5636_v49 = vld [vmem:[%s12170_s21 + $0x270] sm:$0xff]  ;;  %v5577_v14 = vld [vmem:[%s12170_s21 + $0x98] sm:$0xff] }
 0xe4e   :  { %v5218_v56 = vmax.f32 %v5209_v3, 0.0  ;;  %v5207_v43 = vadd.f32 %v5192_v12, %v5181_v62  ;;  %v5219_v8 = vmax.f32 %v5210_v0, 0.0  ;;  %v5215_v39 = vmax.f32 %v5206_v55, 0.0  ;;  %v5635_v38 = vld [vmem:[%s12170_s21 + $0x268] sm:$0xff]  ;;  %v5633_v29 = vld [vmem:[%s12170_s21 + $0x258] sm:$0xff]  ;;  %v5632_v16 = vld [vmem:[%s12170_s21 + $0x250] sm:$0xff] }
 0xe4f   :  { %v5221_v17 = vmax.f32 %v5212_v19, 0.0  ;;  %v5211_v7 = vadd.f32 %v5196_v58, %v5185_v10  ;;  %v5208_v51 = vadd.f32 %v5196_v58, %v5182_v23  ;;  %v5205_v52 = vadd.f32 %v5196_v58, %v5179_v26  ;;  %v5574_v42 = vld [vmem:[%s12170_s21 + $0x80] sm:$0xff]  ;;  %v5631_v28 = vld [vmem:[%s12170_s21 + $0x248] sm:$0xff]  ;;  %v5573_v9 = vld [vmem:[%s12170_s21 + $0x78] sm:$0xff] }
 0xe50   :  { %v5204_v22 = vadd.f32 %v5192_v12, %v5178_v60  ;;  %v5216_v54 = vmax.f32 %v5207_v43, 0.0  ;;  %v5575_v12 = vld [vmem:[%s12170_s21 + $0x88] sm:$0xff]  ;;  %v5630_v18 = vld [vmem:[%s12170_s21 + $0x240] sm:$0xff]  ;;  %v5572_v25 = vld [vmem:[%s12170_s21 + $0x70] sm:$0xff] }
 0xe51   :  { %8444 = vmatprep.subr.msk.mxu0 %vm4472_vm12, %v5221_v17  ;;  %v5220_v45 = vmax.f32 %v5211_v7, 0.0  ;;  %v5217_v24 = vmax.f32 %v5208_v51, 0.0  ;;  %v5214_v4 = vmax.f32 %v5205_v52, 0.0  ;;  %v5571_v58 = vld [vmem:[%s12170_s21 + $0x68] sm:$0xff]  ;;  %v5570_v62 = vld [vmem:[%s12170_s21 + $0x60] sm:$0xff]  ;;  %v5569_v19 = vld [vmem:[%s12170_s21 + $0x58] sm:$0xff] }
 0xe52   :  { %8445 = vmatpush3.msk.msra.mxu0 %vm4472_vm12, %v5221_v17  ;;  %v5213_v37 = vmax.f32 %v5204_v22, 0.0  ;;  %v5568_v3 = vld [vmem:[%s12170_s21 + $0x50] sm:$0xff]  ;;  %v5567_v23 = vld [vmem:[%s12170_s21 + $0x48] sm:$0xff]  ;;  %v5566_v10 = vld [vmem:[%s12170_s21 + $0x40] sm:$0xff] }
 0xe53   :  { %8446 = vmatprep.subr.mxu0 %v5218_v56  ;;  %7900 = vmatprep.subr.msk.mxu1 %vm4472_vm12, %v5220_v45  ;;  %v5565_v26 = vld [vmem:[%s12170_s21 + $0x38] sm:$0xff]  ;;  %v5564_v60 = vld [vmem:[%s12170_s21 + $0x30] sm:$0xff]  ;;  %v5563_v0 = vld [vmem:[%s12170_s21 + $0x28] sm:$0xff] }
 0xe54   :  { %8447 = vmatpush3.msra.mxu0 %v5218_v56  ;;  %7901 = vmatpush1.msk.msra.mxu1 %vm4472_vm12, %v5219_v8  ;;  %v5561_v55 = vld [vmem:[%s12170_s21 + $0x18] sm:$0xff]  ;;  %v5560_v7 = vld [vmem:[%s12170_s21 + $0x10] sm:$0xff]  ;;  %v5559_v51 = vld [vmem:[%s12170_s21 + $0x8] sm:$0xff] }
 0xe55   :  { %8448 = vmatprep.subr.mxu0 %v5215_v39  ;;  %5268 = vmatprep.subr.mxu1 %v5217_v24  ;;  %v5621_v43 = vld [vmem:[%s12170_s21 + $0x1f8] sm:$0xff]  ;;  %v5619_v52 = vld [vmem:[%s12170_s21 + $0x1e8] sm:$0xff]  ;;  %v5616_v22 = vld [vmem:[%s12170_s21 + $0x1d0] sm:$0xff] }
 0xe56   :  { %8449 = vmatpush3.msra.mxu0 %v5215_v39  ;;  %5269 = vmatpush1.msra.mxu1 %v5216_v54 }
 0xe57   :  { %8453 = vmatprep.subr.msk.mxu0 %vm4472_vm12, %v5221_v17  ;;  %5270 = vmatprep.subr.mxu1 %v5214_v4 }
 0xe58   :  { %8451 = vmatmul.mubr.msk.f32.vlgmr.msra.gmra.mxu0 %vm5224_vm14, %v5223_v63  ;;  %5271 = vmatpush1.msra.mxu1 %v5213_v37 }
 0xe59   :  { %8454 = vmatpush3.msk.msra.mxu0 %vm4472_vm12, %v5221_v17  ;;  %7902 = vmatmul.mubr.msk.f32.vlgmr.msra.gmra.mxu1 %vm5224_vm14, %v11110_v36  ;;  %v5643_v36 = vld [vmem:[%s12170_s21 + $0x2a8] sm:$0xff]  ;;  %v5562_v17 = vld [vmem:[%s12170_s21 + $0x20] sm:$0xff] }
 0xe5a   :  { %7907 = vmatprep.subr.msk.mxu1 %vm4472_vm12, %v5220_v45  ;;  %8455 = vmatprep.subr.mxu0 %v5218_v56  ;;  %v5620_v45 = vld [vmem:[%s12170_s21 + $0x1f0] sm:$0xff] }
 0xe5b   :  { %7908 = vmatpush1.msk.msra.mxu1 %vm4472_vm12, %v5219_v8  ;;  %8456 = vmatpush3.msra.mxu0 %v5218_v56  ;;  %v5558_v56 = vld [vmem:[%s12170_s21] sm:$0xff] }
 0xe5c   :  { %5428 = vmatprep.subr.mxu1 %v5217_v24  ;;  %8457 = vmatprep.subr.mxu0 %v5215_v39  ;;  %v5618_v8 = vld [vmem:[%s12170_s21 + $0x1e0] sm:$0xff]  ;;  %v5615_v24 = vld [vmem:[%s12170_s21 + $0x1c8] sm:$0xff] }
 0xe5d   :  { %5310 = vmatprep.mubr.f32.mxu1 %v12084_v33  ;;  %5429 = vmatpush1.msra.mxu1 %v5216_v54  ;;  %v5614_v54 = vld [vmem:[%s12170_s21 + $0x1c0] sm:$0xff] }
 0xe5e   :  { %8458 = vmatpush3.msra.mxu0 %v5215_v39  ;;  %8459 = vmatprep.mubr.msk.f32.mxu0 %vm5224_vm14, %v5392_v44  ;;  %v5617_v39 = vld [vmem:[%s12170_s21 + $0x1d8] sm:$0xff] }
 0xe5f   :  { %7903 = vmatmul.mubr.msk.f32.gmra.mxu1 %vm5224_vm14, %v5223_v63  ;;  %5430 = vmatprep.subr.mxu1 %v5214_v4  ;;  %v5613_v63 = vld [vmem:[%s12170_s21 + $0x1b8] sm:$0xff]  ;;  %v5612_v4 = vld [vmem:[%s12170_s21 + $0x1b0] sm:$0xff] }
 0xe60   :  { %8460 = vmatmul.mubr.msk.f32.vlgmr.msra.gmra.mxu0 %vm5224_vm14, %v5393_v21  ;;  %5431 = vmatpush1.msra.mxu1 %v5213_v37  ;;  %v5611_v37 = vld [vmem:[%s12170_s21 + $0x1a8] sm:$0xff] }
 0xe61   :  { %5464 = vmatprep.mubr.f32.mxu1 %v12084_v33  ;;  %5652 = vmatprep.subr.mxu1 %v5589_v59  ;;  %v5608_v59 = vld [vmem:[%s12170_s21 + $0x190] sm:$0xff] }
 0xe62   :  { %5737 = vmatprep.subr.mxu0 %v5645_v5  ;;  %5793 = vmatprep.mubr.f32.mxu0 %v12084_v33  ;;  %v5607_v5 = vld [vmem:[%s12170_s21 + $0x188] sm:$0xff] }
 0xe63   :  { %7909 = vmatmul.mubr.msk.f32.vlgmr.msra.gmra.mxu1 %vm5224_vm14, %v5392_v44  ;;  %5738 = vmatpush1.msra.mxu0 %v5644_v53  ;;  %v5610_v44 = vld [vmem:[%s12170_s21 + $0x1a0] sm:$0xff] }
 0xe64   :  { %5470 = vmatprep.mubr.f32.mxu1 %v12084_v33  ;;  %5653 = vmatpush1.msra.mxu1 %v5588_v27  ;;  %v5606_v53 = vld [vmem:[%s12170_s21 + $0x180] sm:$0xff]  ;;  %v5605_v27 = vld [vmem:[%s12170_s21 + $0x178] sm:$0xff] }
 0xe65   :  { %5654 = vmatprep.subr.mxu1 %v5587_v34  ;;  %5739 = vmatprep.subr.mxu0 %v5643_v36  ;;  %v5604_v34 = vld [vmem:[%s12170_s21 + $0x170] sm:$0xff]  ;;  %v5603_v36 = vld [vmem:[%s12170_s21 + $0x168] sm:$0xff] }
 0xe66   :  { %5655 = vmatpush1.msra.mxu1 %v5586_v46  ;;  %5740 = vmatpush1.msra.mxu0 %v5642_v11  ;;  %v5602_v46 = vld [vmem:[%s12170_s21 + $0x160] sm:$0xff]  ;;  %v5629_v11 = vld [vmem:[%s12170_s21 + $0x238] sm:$0xff] }
 0xe67   :  { %7910 = vmatmul.mubr.msk.f32.gmra.mxu1 %vm5224_vm14, %v5393_v21  ;;  %5656 = vmatprep.subr.mxu1 %v5585_v30  ;;  %v5609_v21 = vld [vmem:[%s12170_s21 + $0x198] sm:$0xff] }
 0xe68   :  { %5657 = vmatpush1.msra.mxu1 %v5584_v41  ;;  %5741 = vmatprep.subr.mxu0 %v5641_v2  ;;  %v5601_v30 = vld [vmem:[%s12170_s21 + $0x158] sm:$0xff]  ;;  %v5628_v41 = vld [vmem:[%s12170_s21 + $0x230] sm:$0xff] }
 0xe69   :  { %5658 = vmatprep.subr.mxu1 %v5583_v50  ;;  %5742 = vmatpush1.msra.mxu0 %v5640_v61  ;;  %v5600_v2 = vld [vmem:[%s12170_s21 + $0x150] sm:$0xff]  ;;  %v5627_v50 = vld [vmem:[%s12170_s21 + $0x228] sm:$0xff] }
 0xe6a   :  { %5659 = vmatpush1.msra.mxu1 %v5582_v6  ;;  %5743 = vmatprep.subr.mxu0 %v5639_v32  ;;  %v5599_v61 = vld [vmem:[%s12170_s21 + $0x148] sm:$0xff]  ;;  %v5626_v6 = vld [vmem:[%s12170_s21 + $0x220] sm:$0xff] }
 0xe6b   :  { %5660 = vmatprep.subr.mxu1 %v5581_v13  ;;  %5744 = vmatpush1.msra.mxu0 %v5638_v48  ;;  %v5598_v32 = vld [vmem:[%s12170_s21 + $0x140] sm:$0xff]  ;;  %v5625_v13 = vld [vmem:[%s12170_s21 + $0x218] sm:$0xff] }
 0xe6c   :  { %5661 = vmatpush1.msra.mxu1 %v5580_v40  ;;  %5745 = vmatprep.subr.mxu0 %v5637_v20  ;;  %v5597_v48 = vld [vmem:[%s12170_s21 + $0x138] sm:$0xff]  ;;  %v5624_v40 = vld [vmem:[%s12170_s21 + $0x210] sm:$0xff] }
 0xe6d   :  { %5662 = vmatprep.subr.mxu1 %v5579_v1  ;;  %5746 = vmatpush1.msra.mxu0 %v5636_v49  ;;  %v5596_v20 = vld [vmem:[%s12170_s21 + $0x130] sm:$0xff]  ;;  %v5623_v1 = vld [vmem:[%s12170_s21 + $0x208] sm:$0xff] }
 0xe6e   :  { %5663 = vmatpush1.msra.mxu1 %v5578_v35  ;;  %5747 = vmatprep.subr.mxu0 %v5635_v38  ;;  %v5595_v49 = vld [vmem:[%s12170_s21 + $0x128] sm:$0xff]  ;;  %v5622_v35 = vld [vmem:[%s12170_s21 + $0x200] sm:$0xff] }
 0xe6f   :  { %5664 = vmatprep.subr.mxu1 %v5577_v14  ;;  %5748 = vmatpush1.msra.mxu0 %v5634_v57  ;;  %v5594_v38 = vld [vmem:[%s12170_s21 + $0x120] sm:$0xff]  ;;  %v5837_v14 = vld [vmem:[%s12171_s25 + $0xf8] sm:$0xff] }
 0xe70   :  { %5665 = vmatpush1.msra.mxu1 %v5576_v47  ;;  %5749 = vmatprep.subr.mxu0 %v5633_v29  ;;  %v5593_v57 = vld [vmem:[%s12170_s21 + $0x118] sm:$0xff]  ;;  %v5592_v47 = vld [vmem:[%s12170_s21 + $0x110] sm:$0xff]  ;;  %v5591_v29 = vld [vmem:[%s12170_s21 + $0x108] sm:$0xff] }
 0xe71   :  { %5666 = vmatprep.subr.mxu1 %v5575_v12  ;;  %5750 = vmatpush1.msra.mxu0 %v5632_v16  ;;  %v5590_v12 = vld [vmem:[%s12170_s21 + $0x100] sm:$0xff]  ;;  %v5893_v16 = vld [vmem:[%s12171_s25 + $0x2b8] sm:$0xff] }
 0xe72   :  { %5667 = vmatpush1.msra.mxu1 %v5574_v42  ;;  %5751 = vmatprep.subr.mxu0 %v5631_v28 }
 0xe73   :  { %5668 = vmatprep.subr.mxu1 %v5573_v9  ;;  %5752 = vmatpush1.msra.mxu0 %v5630_v18 }
 0xe74   :  { %5669 = vmatpush1.msra.mxu1 %v5572_v25  ;;  %5753 = vmatprep.subr.mxu0 %v5629_v11  ;;  %v5823_v11 = vld [vmem:[%s12171_s25 + $0x88] sm:$0xff] }
 0xe75   :  { %5670 = vmatprep.subr.mxu1 %v5571_v58  ;;  %5754 = vmatpush1.msra.mxu0 %v5628_v41  ;;  %v5822_v41 = vld [vmem:[%s12171_s25 + $0x80] sm:$0xff] }
 0xe76   :  { %5671 = vmatpush1.msra.mxu1 %v5570_v62  ;;  %5755 = vmatprep.subr.mxu0 %v5627_v50  ;;  %v5821_v50 = vld [vmem:[%s12171_s25 + $0x78] sm:$0xff] }
 0xe77   :  { %5672 = vmatprep.subr.mxu1 %v5569_v19  ;;  %5756 = vmatpush1.msra.mxu0 %v5626_v6  ;;  %v5820_v6 = vld [vmem:[%s12171_s25 + $0x70] sm:$0xff] }
 0xe78   :  { %5673 = vmatpush1.msra.mxu1 %v5568_v3  ;;  %5757 = vmatprep.subr.mxu0 %v5625_v13  ;;  %v5819_v13 = vld [vmem:[%s12171_s25 + $0x68] sm:$0xff] }
 0xe79   :  { %5674 = vmatprep.subr.mxu1 %v5567_v23  ;;  %5758 = vmatpush1.msra.mxu0 %v5624_v40  ;;  %v5818_v40 = vld [vmem:[%s12171_s25 + $0x60] sm:$0xff] }
 0xe7a   :  { %5675 = vmatpush1.msra.mxu1 %v5566_v10  ;;  %5759 = vmatprep.subr.mxu0 %v5623_v1  ;;  %v5836_v10 = vld [vmem:[%s12171_s25 + $0xf0] sm:$0xff]  ;;  %v5817_v1 = vld [vmem:[%s12171_s25 + $0x58] sm:$0xff] }
 0xe7b   :  { %5676 = vmatprep.subr.mxu1 %v5565_v26  ;;  %5760 = vmatpush1.msra.mxu0 %v5622_v35  ;;  %v5835_v26 = vld [vmem:[%s12171_s25 + $0xe8] sm:$0xff]  ;;  %v5816_v35 = vld [vmem:[%s12171_s25 + $0x50] sm:$0xff] }
 0xe7c   :  { %5677 = vmatpush1.msra.mxu1 %v5564_v60  ;;  %5894 = vmatprep.subr.mxu0 %v5837_v14  ;;  %v5815_v14 = vld [vmem:[%s12171_s25 + $0x48] sm:$0xff] }
 0xe7d   :  { %5678 = vmatprep.subr.mxu1 %v5563_v0  ;;  %v5834_v0 = vld [vmem:[%s12171_s25 + $0xe0] sm:$0xff] }
 0xe7e   :  { %5679 = vmatpush1.msra.mxu1 %v5562_v17 }
 0xe7f   :  { %5680 = vmatprep.subr.mxu1 %v5561_v55 }
 0xe80   :  { %5681 = vmatpush1.msra.mxu1 %v5560_v7  ;;  %v5833_v7 = vld [vmem:[%s12171_s25 + $0xd8] sm:$0xff] }
 0xe81   :  { %5682 = vmatprep.subr.mxu1 %v5559_v51 }
 0xe82   :  { %5683 = vmatpush1.msra.mxu1 %v5558_v56 }
 0xe83   :  { %5684 = vmatprep.subr.mxu1 %v5621_v43  ;;  %v5832_v43 = vld [vmem:[%s12171_s25 + $0xd0] sm:$0xff] }
 0xe84   :  { %5685 = vmatpush2.msra.mxu1 %v5620_v45  ;;  %v5831_v45 = vld [vmem:[%s12171_s25 + $0xc8] sm:$0xff] }
 0xe85   :  { %5686 = vmatprep.subr.mxu1 %v5619_v52  ;;  %v5892_v52 = vld [vmem:[%s12171_s25 + $0x2b0] sm:$0xff] }
 0xe86   :  { %5687 = vmatpush2.msra.mxu1 %v5618_v8 }
 0xe87   :  { %5688 = vmatprep.subr.mxu1 %v5617_v39  ;;  %v5830_v39 = vld [vmem:[%s12171_s25 + $0xc0] sm:$0xff] }
 0xe88   :  { %5689 = vmatpush2.msra.mxu1 %v5616_v22  ;;  %v5891_v22 = vld [vmem:[%s12171_s25 + $0x2a8] sm:$0xff] }
 0xe89   :  { %5690 = vmatprep.subr.mxu1 %v5615_v24 }
 0xe8a   :  { %5691 = vmatpush2.msra.mxu1 %v5614_v54  ;;  %v5829_v54 = vld [vmem:[%s12171_s25 + $0xb8] sm:$0xff] }
 0xe8b   :  { %5692 = vmatprep.subr.mxu1 %v5613_v63  ;;  %v5890_v63 = vld [vmem:[%s12171_s25 + $0x2a0] sm:$0xff] }
 0xe8c   :  { %5693 = vmatpush2.msra.mxu1 %v5612_v4 }
 0xe8d   :  { %5694 = vmatprep.subr.mxu1 %v5611_v37  ;;  %v5828_v37 = vld [vmem:[%s12171_s25 + $0xb0] sm:$0xff] }
 0xe8e   :  { %5695 = vmatpush2.msra.mxu1 %v5610_v44  ;;  %v5889_v44 = vld [vmem:[%s12171_s25 + $0x298] sm:$0xff] }
 0xe8f   :  { %5696 = vmatprep.subr.mxu1 %v5609_v21  ;;  %v5827_v21 = vld [vmem:[%s12171_s25 + $0xa8] sm:$0xff] }
 0xe90   :  { %5697 = vmatpush2.msra.mxu1 %v5608_v59  ;;  %v5888_v59 = vld [vmem:[%s12171_s25 + $0x290] sm:$0xff] }
 0xe91   :  { %5698 = vmatprep.subr.mxu1 %v5607_v5  ;;  %v5826_v5 = vld [vmem:[%s12171_s25 + $0xa0] sm:$0xff] }
 0xe92   :  { %5699 = vmatpush2.msra.mxu1 %v5606_v53  ;;  %v5887_v53 = vld [vmem:[%s12171_s25 + $0x288] sm:$0xff] }
 0xe93   :  { %5700 = vmatprep.subr.mxu1 %v5605_v27  ;;  %v5825_v27 = vld [vmem:[%s12171_s25 + $0x98] sm:$0xff] }
 0xe94   :  { %5701 = vmatpush2.msra.mxu1 %v5604_v34  ;;  %v5886_v34 = vld [vmem:[%s12171_s25 + $0x280] sm:$0xff] }
 0xe95   :  { %5702 = vmatprep.subr.mxu1 %v5603_v36  ;;  %v5824_v36 = vld [vmem:[%s12171_s25 + $0x90] sm:$0xff] }
 0xe96   :  { %5703 = vmatpush2.msra.mxu1 %v5602_v46  ;;  %v5885_v46 = vld [vmem:[%s12171_s25 + $0x278] sm:$0xff] }
 0xe97   :  { %5704 = vmatprep.subr.mxu1 %v5601_v30  ;;  %v5884_v30 = vld [vmem:[%s12171_s25 + $0x270] sm:$0xff] }
 0xe98   :  { %5705 = vmatpush2.msra.mxu1 %v5600_v2  ;;  %v5883_v2 = vld [vmem:[%s12171_s25 + $0x268] sm:$0xff] }
 0xe99   :  { %5706 = vmatprep.subr.mxu1 %v5599_v61  ;;  %v5882_v61 = vld [vmem:[%s12171_s25 + $0x260] sm:$0xff] }
 0xe9a   :  { %5707 = vmatpush2.msra.mxu1 %v5598_v32  ;;  %v5881_v32 = vld [vmem:[%s12171_s25 + $0x258] sm:$0xff] }
 0xe9b   :  { %5708 = vmatprep.subr.mxu1 %v5597_v48  ;;  %v5880_v48 = vld [vmem:[%s12171_s25 + $0x250] sm:$0xff] }
 0xe9c   :  { %5709 = vmatpush2.msra.mxu1 %v5596_v20  ;;  %v5879_v20 = vld [vmem:[%s12171_s25 + $0x248] sm:$0xff] }
 0xe9d   :  { %5710 = vmatprep.subr.mxu1 %v5595_v49  ;;  %v5878_v49 = vld [vmem:[%s12171_s25 + $0x240] sm:$0xff] }
 0xe9e   :  { %5711 = vmatpush2.msra.mxu1 %v5594_v38  ;;  %v5877_v38 = vld [vmem:[%s12171_s25 + $0x238] sm:$0xff] }
 0xe9f   :  { %5712 = vmatprep.subr.mxu1 %v5593_v57  ;;  %v5876_v57 = vld [vmem:[%s12171_s25 + $0x230] sm:$0xff] }
 0xea0   :  { %5713 = vmatpush2.msra.mxu1 %v5592_v47  ;;  %v5814_v47 = vld [vmem:[%s12171_s25 + $0x40] sm:$0xff] }
 0xea1   :  { %5714 = vmatprep.subr.mxu1 %v5591_v29  ;;  %v5875_v29 = vld [vmem:[%s12171_s25 + $0x228] sm:$0xff] }
 0xea2   :  { %5715 = vmatpush2.msra.mxu1 %v5590_v12  ;;  %v5813_v12 = vld [vmem:[%s12171_s25 + $0x38] sm:$0xff] }
 0xea3   :  { %5979 = vmatprep.subr.mxu1 %v5893_v16  ;;  %v5874_v16 = vld [vmem:[%s12171_s25 + $0x220] sm:$0xff] }
 0xf18   :  { %v8452_v28 = vpop.f32.mrf.mxu0 }
 0xf19   :  { %v5306_v42 = vpop.f32.mrf.mxu1 }
 0xf1a   :  { %v5383_v18 = vpop.f32.mrf.mxu0 }
 0xf1b   :  { %v5308_v9 = vpop.f32.mrf.mxu1 }
 0xf1f   :  { %v5312_v25 = vpop.f32.mrf.mxu1 }
 0xf20   :  { %v8461_v58 = vpop.f32.mrf.mxu0 }
 0xf21   :  { %v5314_v62 = vpop.f32.mrf.mxu1  ;;  %v11260_v51 = vmax.f32 %v8452_v28, %v8461_v58  ;;  %v5873_v28 = vld [vmem:[%s12171_s25 + $0x218] sm:$0xff]  ;;  %v5871_v58 = vld [vmem:[%s12171_s25 + $0x208] sm:$0xff] }
 0xf22   :  { %v5543_v19 = vpop.f32.mrf.mxu0 }
 0xf23   :  { %v11247_v3 = vmax.f32 %v5383_v18, %v5543_v19  ;;  %v5466_v23 = vpop.f32.mrf.mxu1  ;;  %v5872_v18 = vld [vmem:[%s12171_s25 + $0x210] sm:$0xff]  ;;  %v5870_v19 = vld [vmem:[%s12171_s25 + $0x200] sm:$0xff] }
 0xf24   :  { %v11254_v17 = vmax.f32 %v5306_v42, %v5466_v23  ;;  %v5812_v42 = vld [vmem:[%s12171_s25 + $0x30] sm:$0xff] }
 0xf25   :  { %7914 = vmatmul.mubr.msk.f32.vlgmr.msra.gmra.mxu0 %vm4490_vm11, %v11247_v3  ;;  %v5468_v60 = vpop.f32.mrf.mxu1  ;;  %v5808_v23 = vld [vmem:[%s12171_s25 + $0x10] sm:$0xff] }
 0xf26   :  { %5895 = vmatpush1.msra.mxu0 %v5836_v10  ;;  %v11256_v55 = vmax.f32 %v5308_v9, %v5468_v60  ;;  %5799 = vmatprep.mubr.f32.mxu0 %v12084_v33  ;;  %v5811_v9 = vld [vmem:[%s12171_s25 + $0x28] sm:$0xff]  ;;  %v5869_v60 = vld [vmem:[%s12171_s25 + $0x1f8] sm:$0xff] }
 0xf27   :  { %5896 = vmatprep.subr.mxu0 %v5835_v26  ;;  %v5472_v56 = vpop.f32.mrf.mxu1  ;;  %v5807_v10 = vld [vmem:[%s12171_s25 + $0x8] sm:$0xff]  ;;  %v5806_v26 = vld [vmem:[%s12171_s25] sm:$0xff] }
 0xf28   :  { %5897 = vmatpush1.msra.mxu0 %v5834_v0  ;;  %5716 = vmatprep.mubr.f32.mxu1 %v11256_v55  ;;  %v11275_v4 = vmax.f32 %v5312_v25, %v5472_v56  ;;  %v5810_v25 = vld [vmem:[%s12171_s25 + $0x20] sm:$0xff]  ;;  %v5868_v0 = vld [vmem:[%s12171_s25 + $0x1f0] sm:$0xff] }
 0xf29   :  { %5898 = vmatprep.subr.mxu0 %v5833_v7  ;;  %7915 = vmatmul.mubr.msk.f32.gmra.mxu0 %vm4490_vm11, %v11260_v51  ;;  %v5474_v8 = vpop.f32.mrf.mxu1  ;;  %v5867_v7 = vld [vmem:[%s12171_s25 + $0x1e8] sm:$0xff]  ;;  %v5866_v56 = vld [vmem:[%s12171_s25 + $0x1e0] sm:$0xff] }
 0xf2a   :  { %5899 = vmatpush1.msra.mxu0 %v5832_v43  ;;  %v11270_v24 = vmax.f32 %v5314_v62, %v5474_v8  ;;  %5717 = vmatmul.mubr.f32.vlgmr.msra.gmra.mxu1 %v11254_v17  ;;  %v5809_v62 = vld [vmem:[%s12171_s25 + $0x18] sm:$0xff]  ;;  %v5860_v8 = vld [vmem:[%s12171_s25 + $0x1b0] sm:$0xff] }
 0xf2b   :  { %5900 = vmatprep.subr.mxu0 %v5831_v45  ;;  %5980 = vmatpush1.msra.mxu1 %v5892_v52  ;;  %v5865_v43 = vld [vmem:[%s12171_s25 + $0x1d8] sm:$0xff]  ;;  %v5863_v45 = vld [vmem:[%s12171_s25 + $0x1c8] sm:$0xff]  ;;  %v5862_v52 = vld [vmem:[%s12171_s25 + $0x1c0] sm:$0xff] }
 0xf2c   :  { %5901 = vmatpush1.msra.mxu0 %v5830_v39  ;;  %5981 = vmatprep.subr.mxu1 %v5891_v22  ;;  %v5858_v39 = vld [vmem:[%s12171_s25 + $0x1a0] sm:$0xff]  ;;  %v5857_v22 = vld [vmem:[%s12171_s25 + $0x198] sm:$0xff] }
 0xf2d   :  { %5902 = vmatprep.subr.mxu0 %v5829_v54  ;;  %5982 = vmatpush1.msra.mxu1 %v5890_v63  ;;  %v5856_v54 = vld [vmem:[%s12171_s25 + $0x190] sm:$0xff]  ;;  %v5855_v63 = vld [vmem:[%s12171_s25 + $0x188] sm:$0xff] }
 0xf2e   :  { %5722 = vmatprep.mubr.f32.mxu1 %v11270_v24  ;;  %5903 = vmatpush1.msra.mxu0 %v5828_v37  ;;  %v5854_v37 = vld [vmem:[%s12171_s25 + $0x180] sm:$0xff] }
 0xf2f   :  { %5983 = vmatprep.subr.mxu1 %v5889_v44  ;;  %5723 = vmatmul.mubr.f32.gmra.mxu1 %v11275_v4  ;;  %v5853_v44 = vld [vmem:[%s12171_s25 + $0x178] sm:$0xff] }
 0xf30   :  { %5904 = vmatprep.subr.mxu0 %v5827_v21  ;;  %5984 = vmatpush1.msra.mxu1 %v5888_v59  ;;  %v5852_v21 = vld [vmem:[%s12171_s25 + $0x170] sm:$0xff]  ;;  %v5851_v59 = vld [vmem:[%s12171_s25 + $0x168] sm:$0xff] }
 0xf31   :  { %5905 = vmatpush1.msra.mxu0 %v5826_v5  ;;  %5985 = vmatprep.subr.mxu1 %v5887_v53  ;;  %v5850_v5 = vld [vmem:[%s12171_s25 + $0x160] sm:$0xff]  ;;  %v5849_v53 = vld [vmem:[%s12171_s25 + $0x158] sm:$0xff] }
 0xf32   :  { %5906 = vmatprep.subr.mxu0 %v5825_v27  ;;  %5986 = vmatpush1.msra.mxu1 %v5886_v34  ;;  %v5848_v27 = vld [vmem:[%s12171_s25 + $0x150] sm:$0xff]  ;;  %v5847_v34 = vld [vmem:[%s12171_s25 + $0x148] sm:$0xff] }
 0xf33   :  { %5907 = vmatpush1.msra.mxu0 %v5824_v36  ;;  %5987 = vmatprep.subr.mxu1 %v5885_v46  ;;  %v5846_v36 = vld [vmem:[%s12171_s25 + $0x140] sm:$0xff]  ;;  %v5845_v46 = vld [vmem:[%s12171_s25 + $0x138] sm:$0xff] }
 0xf34   :  { %5908 = vmatprep.subr.mxu0 %v5823_v11  ;;  %5988 = vmatpush1.msra.mxu1 %v5884_v30  ;;  %v5844_v11 = vld [vmem:[%s12171_s25 + $0x130] sm:$0xff]  ;;  %v5843_v30 = vld [vmem:[%s12171_s25 + $0x128] sm:$0xff] }
 0xf35   :  { %5909 = vmatpush1.msra.mxu0 %v5822_v41  ;;  %5989 = vmatprep.subr.mxu1 %v5883_v2  ;;  %v5842_v41 = vld [vmem:[%s12171_s25 + $0x120] sm:$0xff]  ;;  %v5841_v2 = vld [vmem:[%s12171_s25 + $0x118] sm:$0xff] }
 0xf36   :  { %5910 = vmatprep.subr.mxu0 %v5821_v50  ;;  %5990 = vmatpush1.msra.mxu1 %v5882_v61  ;;  %v5840_v50 = vld [vmem:[%s12171_s25 + $0x110] sm:$0xff]  ;;  %v5839_v61 = vld [vmem:[%s12171_s25 + $0x108] sm:$0xff] }
 0xf37   :  { %5911 = vmatpush1.msra.mxu0 %v5820_v6  ;;  %5991 = vmatprep.subr.mxu1 %v5881_v32  ;;  %v5838_v6 = vld [vmem:[%s12171_s25 + $0x100] sm:$0xff]  ;;  %v7956_v32 = vld [vmem:[%s12172_s29 + $0x238] sm:$0xff] }
 0xf38   :  { %5912 = vmatprep.subr.mxu0 %v5819_v13  ;;  %5992 = vmatpush1.msra.mxu1 %v5880_v48  ;;  %v7955_v13 = vld [vmem:[%s12172_s29 + $0x230] sm:$0xff]  ;;  %v7954_v48 = vld [vmem:[%s12172_s29 + $0x228] sm:$0xff] }
 0xf39   :  { %5913 = vmatpush1.msra.mxu0 %v5818_v40  ;;  %5993 = vmatprep.subr.mxu1 %v5879_v20  ;;  %v7953_v40 = vld [vmem:[%s12172_s29 + $0x220] sm:$0xff]  ;;  %v7952_v20 = vld [vmem:[%s12172_s29 + $0x218] sm:$0xff] }
 0xf3a   :  { %5914 = vmatprep.subr.mxu0 %v5817_v1  ;;  %5994 = vmatpush1.msra.mxu1 %v5878_v49  ;;  %v7951_v1 = vld [vmem:[%s12172_s29 + $0x210] sm:$0xff] }
 0xf3b   :  { %5915 = vmatpush1.msra.mxu0 %v5816_v35  ;;  %5995 = vmatprep.subr.mxu1 %v5877_v38  ;;  %v7947_v49 = vld [vmem:[%s12172_s29 + $0x1f0] sm:$0xff]  ;;  %v7946_v35 = vld [vmem:[%s12172_s29 + $0x1e8] sm:$0xff]  ;;  %v7945_v38 = vld [vmem:[%s12172_s29 + $0x1e0] sm:$0xff] }
 0xf3c   :  { %5916 = vmatprep.subr.mxu0 %v5815_v14  ;;  %5996 = vmatpush1.msra.mxu1 %v5876_v57  ;;  %v7944_v14 = vld [vmem:[%s12172_s29 + $0x1d8] sm:$0xff]  ;;  %v7943_v57 = vld [vmem:[%s12172_s29 + $0x1d0] sm:$0xff] }
 0xf3d   :  { %5917 = vmatpush1.msra.mxu0 %v5814_v47  ;;  %5997 = vmatprep.subr.mxu1 %v5875_v29  ;;  %v7942_v47 = vld [vmem:[%s12172_s29 + $0x1c8] sm:$0xff]  ;;  %v7941_v29 = vld [vmem:[%s12172_s29 + $0x1c0] sm:$0xff] }
 0xf3e   :  { %5918 = vmatprep.subr.mxu0 %v5813_v12  ;;  %5998 = vmatpush1.msra.mxu1 %v5874_v16  ;;  %v7940_v12 = vld [vmem:[%s12172_s29 + $0x1b8] sm:$0xff]  ;;  %v7939_v16 = vld [vmem:[%s12172_s29 + $0x1b0] sm:$0xff] }
 0xf3f   :  { %5919 = vmatpush1.msra.mxu0 %v5812_v42  ;;  %5999 = vmatprep.subr.mxu1 %v5873_v28  ;;  %v7938_v42 = vld [vmem:[%s12172_s29 + $0x1a8] sm:$0xff]  ;;  %v7937_v28 = vld [vmem:[%s12172_s29 + $0x1a0] sm:$0xff] }
 0xf40   :  { %5920 = vmatprep.subr.mxu0 %v5811_v9  ;;  %6000 = vmatpush1.msra.mxu1 %v5872_v18  ;;  %v7936_v9 = vld [vmem:[%s12172_s29 + $0x198] sm:$0xff]  ;;  %v7935_v18 = vld [vmem:[%s12172_s29 + $0x190] sm:$0xff] }
 0xf41   :  { %5921 = vmatpush1.msra.mxu0 %v5810_v25  ;;  %6001 = vmatprep.subr.mxu1 %v5871_v58  ;;  %v7934_v25 = vld [vmem:[%s12172_s29 + $0x188] sm:$0xff]  ;;  %v7933_v58 = vld [vmem:[%s12172_s29 + $0x180] sm:$0xff] }
 0xf42   :  { %5922 = vmatprep.subr.mxu0 %v5809_v62  ;;  %6002 = vmatpush1.msra.mxu1 %v5870_v19  ;;  %v7932_v62 = vld [vmem:[%s12172_s29 + $0x178] sm:$0xff]  ;;  %v7931_v19 = vld [vmem:[%s12172_s29 + $0x170] sm:$0xff] }
 0xf43   :  { %6035 = vmatprep.mubr.f32.mxu1 %v12084_v33  ;;  %5923 = vmatpush1.msra.mxu0 %v5808_v23  ;;  %v7930_v23 = vld [vmem:[%s12172_s29 + $0x168] sm:$0xff] }
 0xf44   :  { %7916 = vmatmul.mubr.msk.f32.vlgmr.msra.gmra.mxu1 %vm4490_vm11, %v11247_v3  ;;  %5924 = vmatprep.subr.mxu0 %v5807_v10  ;;  %v5864_v3 = vld [vmem:[%s12171_s25 + $0x1d0] sm:$0xff]  ;;  %v7929_v10 = vld [vmem:[%s12172_s29 + $0x160] sm:$0xff] }
 0xf45   :  { %5925 = vmatpush1.msra.mxu0 %v5806_v26  ;;  %6041 = vmatprep.mubr.f32.mxu1 %v12084_v33  ;;  %v7928_v26 = vld [vmem:[%s12172_s29 + $0x158] sm:$0xff] }
 0xf46   :  { %5926 = vmatprep.subr.mxu0 %v5869_v60  ;;  %5958 = vmatprep.mubr.f32.mxu0 %v11256_v55  ;;  %v5861_v55 = vld [vmem:[%s12171_s25 + $0x1b8] sm:$0xff]  ;;  %v7927_v60 = vld [vmem:[%s12172_s29 + $0x150] sm:$0xff] }
 0xf47   :  { %5927 = vmatpush2.msra.mxu0 %v5868_v0  ;;  %v7926_v0 = vld [vmem:[%s12172_s29 + $0x148] sm:$0xff] }
 0xf48   :  { %7917 = vmatmul.mubr.msk.f32.gmra.mxu1 %vm4490_vm11, %v11260_v51  ;;  %5928 = vmatprep.subr.mxu0 %v5867_v7  ;;  %v5859_v51 = vld [vmem:[%s12171_s25 + $0x1a8] sm:$0xff]  ;;  %v7925_v7 = vld [vmem:[%s12172_s29 + $0x140] sm:$0xff] }
 0xf49   :  { %5929 = vmatpush2.msra.mxu0 %v5866_v56  ;;  %6167 = vmatprep.mubr.f32.mxu1 %v12084_v33  ;;  %v7964_v56 = vld [vmem:[%s12172_s29 + $0x278] sm:$0xff] }
 0xf4a   :  { %5930 = vmatprep.subr.mxu0 %v5865_v43  ;;  %v7963_v43 = vld [vmem:[%s12172_s29 + $0x270] sm:$0xff] }
 0xf4b   :  { %5931 = vmatpush2.msra.mxu0 %v5864_v3  ;;  %v7962_v3 = vld [vmem:[%s12172_s29 + $0x268] sm:$0xff] }
 0xf4c   :  { %5932 = vmatprep.subr.mxu0 %v5863_v45  ;;  %v7961_v45 = vld [vmem:[%s12172_s29 + $0x260] sm:$0xff] }
 0xf4d   :  { %5933 = vmatpush2.msra.mxu0 %v5862_v52  ;;  %v7960_v52 = vld [vmem:[%s12172_s29 + $0x258] sm:$0xff] }
 0xf4e   :  { %5934 = vmatprep.subr.mxu0 %v5861_v55  ;;  %v7959_v55 = vld [vmem:[%s12172_s29 + $0x250] sm:$0xff] }
 0xf4f   :  { %5935 = vmatpush2.msra.mxu0 %v5860_v8  ;;  %v7958_v8 = vld [vmem:[%s12172_s29 + $0x248] sm:$0xff] }
 0xf50   :  { %5936 = vmatprep.subr.mxu0 %v5859_v51  ;;  %v7957_v51 = vld [vmem:[%s12172_s29 + $0x240] sm:$0xff] }
 0xf51   :  { %5937 = vmatpush2.msra.mxu0 %v5858_v39 }
 0xf52   :  { %5938 = vmatprep.subr.mxu0 %v5857_v22 }
 0xf53   :  { %5939 = vmatpush2.msra.mxu0 %v5856_v54 }
 0xf54   :  { %5940 = vmatprep.subr.mxu0 %v5855_v63 }
 0xf55   :  { %5941 = vmatpush2.msra.mxu0 %v5854_v37 }
 0xf56   :  { %5942 = vmatprep.subr.mxu0 %v5853_v44 }
 0xf57   :  { %5943 = vmatpush2.msra.mxu0 %v5852_v21 }
 0xf58   :  { %5944 = vmatprep.subr.mxu0 %v5851_v59 }
 0xf59   :  { %5945 = vmatpush2.msra.mxu0 %v5850_v5 }
 0xf5a   :  { %5946 = vmatprep.subr.mxu0 %v5849_v53 }
 0xf5b   :  { %5947 = vmatpush2.msra.mxu0 %v5848_v27 }
 0xf5c   :  { %5948 = vmatprep.subr.mxu0 %v5847_v34 }
 0xf5d   :  { %5949 = vmatpush2.msra.mxu0 %v5846_v36 }
 0xf5e   :  { %5950 = vmatprep.subr.mxu0 %v5845_v46 }
 0xf5f   :  { %5951 = vmatpush2.msra.mxu0 %v5844_v11 }
 0xf60   :  { %5952 = vmatprep.subr.mxu0 %v5843_v30 }
 0xf61   :  { %5953 = vmatpush2.msra.mxu0 %v5842_v41 }
 0xf62   :  { %5954 = vmatprep.subr.mxu0 %v5841_v2 }
 0xf63   :  { %5955 = vmatpush2.msra.mxu0 %v5840_v50 }
 0xf64   :  { %5956 = vmatprep.subr.mxu0 %v5839_v61 }
 0xf65   :  { %5957 = vmatpush2.msra.mxu0 %v5838_v6 }
 0xf66   :  { %5959 = vmatmul.mubr.f32.vlgmr.msra.gmra.mxu0 %v11254_v17  ;;  %6334 = vmatprep.subr.mxu0 %v7956_v32  ;;  %v7950_v17 = vld [vmem:[%s12172_s29 + $0x208] sm:$0xff] }
 0xf67   :  { %5964 = vmatprep.mubr.f32.mxu0 %v11270_v24  ;;  %6335 = vmatpush1.msra.mxu0 %v7955_v13  ;;  %v7949_v24 = vld [vmem:[%s12172_s29 + $0x200] sm:$0xff] }
 0xf68   :  { %6336 = vmatprep.subr.mxu0 %v7954_v48 }
 0xf69   :  { %6337 = vmatpush1.msra.mxu0 %v7953_v40 }
 0xf6a   :  { %5965 = vmatmul.mubr.f32.gmra.mxu0 %v11275_v4  ;;  %6338 = vmatprep.subr.mxu0 %v7952_v20  ;;  %v7948_v4 = vld [vmem:[%s12172_s29 + $0x1f8] sm:$0xff] }
 0xf6b   :  { %6339 = vmatpush1.msra.mxu0 %v7951_v1 }
 0xf6c   :  { %6340 = vmatprep.subr.mxu0 %v7950_v17 }
 0xf6d   :  { %6341 = vmatpush1.msra.mxu0 %v7949_v24  ;;  %v6092_v24 = vld [vmem:[%s12173_s3] sm:$0x3f] }
 0xf6e   :  { %6342 = vmatprep.subr.mxu0 %v7948_v4  ;;  %v7921_v4 = vld [vmem:[%s12173_s3 + $0x8] sm:$0x3f] }
 0xf6f   :  { %6343 = vmatpush1.msra.mxu0 %v7947_v49  ;;  %v6205_v49 = vld [vmem:[%s12172_s29 + $0xf8] sm:$0xff] }
 0xf70   :  { %6344 = vmatprep.subr.mxu0 %v7946_v35  ;;  %v6204_v35 = vld [vmem:[%s12172_s29 + $0xf0] sm:$0xff] }
 0xf71   :  { %6345 = vmatpush1.msra.mxu0 %v7945_v38  ;;  %v6203_v38 = vld [vmem:[%s12172_s29 + $0xe8] sm:$0xff] }
 0xf72   :  { %6346 = vmatprep.subr.mxu0 %v7944_v14  ;;  %v6202_v14 = vld [vmem:[%s12172_s29 + $0xe0] sm:$0xff] }
 0xf73   :  { %6347 = vmatpush1.msra.mxu0 %v7943_v57  ;;  %v6201_v57 = vld [vmem:[%s12172_s29 + $0xd8] sm:$0xff] }
 0xf74   :  { %6348 = vmatprep.subr.mxu0 %v7942_v47  ;;  %v6200_v47 = vld [vmem:[%s12172_s29 + $0xd0] sm:$0xff] }
 0xf75   :  { %6349 = vmatpush1.msra.mxu0 %v7941_v29  ;;  %v6199_v29 = vld [vmem:[%s12172_s29 + $0xc8] sm:$0xff] }
 0xf76   :  { %6350 = vmatprep.subr.mxu0 %v7940_v12  ;;  %v6198_v12 = vld [vmem:[%s12172_s29 + $0xc0] sm:$0xff] }
 0xf77   :  { %6351 = vmatpush1.msra.mxu0 %v7939_v16  ;;  %v6197_v16 = vld [vmem:[%s12172_s29 + $0xb8] sm:$0xff] }
 0xf78   :  { %6352 = vmatprep.subr.mxu0 %v7938_v42  ;;  %v6196_v42 = vld [vmem:[%s12172_s29 + $0xb0] sm:$0xff] }
 0xf79   :  { %6353 = vmatpush1.msra.mxu0 %v7937_v28  ;;  %v6195_v28 = vld [vmem:[%s12172_s29 + $0xa8] sm:$0xff] }
 0xf7a   :  { %6354 = vmatprep.subr.mxu0 %v7936_v9  ;;  %v6194_v9 = vld [vmem:[%s12172_s29 + $0xa0] sm:$0xff] }
 0xf7b   :  { %6355 = vmatpush1.msra.mxu0 %v7935_v18  ;;  %v6193_v18 = vld [vmem:[%s12172_s29 + $0x98] sm:$0xff] }
 0xf7c   :  { %6356 = vmatprep.subr.mxu0 %v7934_v25  ;;  %v6192_v25 = vld [vmem:[%s12172_s29 + $0x90] sm:$0xff] }
 0xf7d   :  { %6357 = vmatpush1.msra.mxu0 %v7933_v58  ;;  %v6191_v58 = vld [vmem:[%s12172_s29 + $0x88] sm:$0xff] }
 0xf7e   :  { %6358 = vmatprep.subr.mxu0 %v7932_v62  ;;  %v6190_v62 = vld [vmem:[%s12172_s29 + $0x80] sm:$0xff] }
 0xf7f   :  { %6359 = vmatpush1.msra.mxu0 %v7931_v19  ;;  %v6189_v19 = vld [vmem:[%s12172_s29 + $0x78] sm:$0xff] }
 0xf80   :  { %6360 = vmatprep.subr.mxu0 %v7930_v23  ;;  %v6188_v23 = vld [vmem:[%s12172_s29 + $0x70] sm:$0xff] }
 0xf81   :  { %6361 = vmatpush1.msra.mxu0 %v7929_v10  ;;  %v6187_v10 = vld [vmem:[%s12172_s29 + $0x68] sm:$0xff] }
 0xf82   :  { %6362 = vmatprep.subr.mxu0 %v7928_v26  ;;  %v6186_v26 = vld [vmem:[%s12172_s29 + $0x60] sm:$0xff] }
 0xf83   :  { %6363 = vmatpush1.msra.mxu0 %v7927_v60  ;;  %v6185_v60 = vld [vmem:[%s12172_s29 + $0x58] sm:$0xff] }
 0xf84   :  { %6364 = vmatprep.subr.mxu0 %v7926_v0  ;;  %v6184_v0 = vld [vmem:[%s12172_s29 + $0x50] sm:$0xff] }
 0xf85   :  { %6365 = vmatpush1.msra.mxu0 %v7925_v7  ;;  %v6183_v7 = vld [vmem:[%s12172_s29 + $0x48] sm:$0xff] }
 0xf86   :  { %6390 = vmatprep.subr.mxu0 %v7964_v56  ;;  %v6182_v56 = vld [vmem:[%s12172_s29 + $0x40] sm:$0xff] }
 0xf87   :  { %6391 = vmatpush2.msra.mxu0 %v7963_v43  ;;  %v6181_v43 = vld [vmem:[%s12172_s29 + $0x38] sm:$0xff] }
 0xf88   :  { %6392 = vmatprep.subr.mxu0 %v7962_v3  ;;  %v6180_v3 = vld [vmem:[%s12172_s29 + $0x30] sm:$0xff] }
 0xf89   :  { %6393 = vmatpush2.msra.mxu0 %v7961_v45  ;;  %v6179_v45 = vld [vmem:[%s12172_s29 + $0x28] sm:$0xff] }
 0xf8a   :  { %6394 = vmatprep.subr.mxu0 %v7960_v52  ;;  %v6178_v52 = vld [vmem:[%s12172_s29 + $0x20] sm:$0xff] }
 0xf8b   :  { %6395 = vmatpush2.msra.mxu0 %v7959_v55  ;;  %v6177_v55 = vld [vmem:[%s12172_s29 + $0x18] sm:$0xff] }
 0xf8c   :  { %6396 = vmatprep.subr.mxu0 %v7958_v8  ;;  %v6176_v8 = vld [vmem:[%s12172_s29 + $0x10] sm:$0xff] }
 0xf8d   :  { %6397 = vmatpush2.msra.mxu0 %v7957_v51  ;;  %v6175_v51 = vld [vmem:[%s12172_s29 + $0x8] sm:$0xff] }
 0xfe5   :  { %v5795_v54 = vpop.f32.mrf.mxu0 }
 0xfe7   :  { %v5797_v37 = vpop.f32.mrf.mxu0 }
 0xfe9   :  { %v5801_v21 = vpop.f32.mrf.mxu0 }
 0xfea   :  { %v5718_v39 = vpop.f32.mrf.mxu1 }
 0xfeb   :  { %v5803_v5 = vpop.f32.mrf.mxu0  ;;  %v5796_v40 = vadd.f32 %v5795_v54, %v5718_v39  ;;  %v6174_v39 = vld [vmem:[%s12172_s29] sm:$0xff]  ;;  %v6212_v54 = vld [vmem:[%s12172_s29 + $0x130] sm:$0xff] }
 0xfec   :  { %v5720_v22 = vpop.f32.mrf.mxu1 }
 0xfed   :  { %v5798_v13 = vadd.f32 %v5797_v37, %v5720_v22  ;;  %v6213_v22 = vld [vmem:[%s12172_s29 + $0x138] sm:$0xff]  ;;  %v6210_v37 = vld [vmem:[%s12172_s29 + $0x120] sm:$0xff] }
 0xfef   :  { %v5724_v63 = vpop.f32.mrf.mxu1 }
 0xff0   :  { %v5802_v6 = vadd.f32 %v5801_v21, %v5724_v63  ;;  %v6211_v63 = vld [vmem:[%s12172_s29 + $0x128] sm:$0xff]  ;;  %v6208_v21 = vld [vmem:[%s12172_s29 + $0x110] sm:$0xff] }
 0xff1   :  { %v5726_v44 = vpop.f32.mrf.mxu1 }
 0xff2   :  { %v5804_v2 = vadd.f32 %v5803_v5, %v5726_v44  ;;  %v6209_v44 = vld [vmem:[%s12172_s29 + $0x118] sm:$0xff]  ;;  %v6206_v5 = vld [vmem:[%s12172_s29 + $0x100] sm:$0xff] }
0x1004   :  { %v6037_v59 = vpop.f32.mrf.mxu1 }
0x1006   :  { %v6039_v53 = vpop.f32.mrf.mxu1 }
0x1008   :  { %v6043_v34 = vpop.f32.mrf.mxu1 }
0x100a   :  { %v6045_v11 = vpop.f32.mrf.mxu1 }
0x1026   :  { %v5960_v27 = vpop.f32.mrf.mxu0 }
0x1027   :  { %v6038_v32 = vadd.f32 %v6037_v59, %v5960_v27  ;;  %v6207_v59 = vld [vmem:[%s12172_s29 + $0x108] sm:$0xff] }
0x1028   :  { %v5962_v36 = vpop.f32.mrf.mxu0 }
0x1029   :  { %v6040_v50 = vadd.f32 %v6039_v53, %v5962_v36  ;;  %v11411_v17 = vmax.f32 %v5796_v40, %v6038_v32  ;;  %v7995_v32 = vld [vmem:[%s12172_s29 + $0x340] sm:$0xff]  ;;  %v7992_v40 = vld [vmem:[%s12172_s29 + $0x328] sm:$0xff] }
0x102a   :  { %v5966_v46 = vpop.f32.mrf.mxu0 }
0x102b   :  { %v6044_v30 = vadd.f32 %v6043_v34, %v5966_v46  ;;  %v11407_v1 = vmax.f32 %v5798_v13, %v6040_v50  ;;  %v7967_v46 = vld [vmem:[%s12173_s3 + $0x10] sm:$0x3f]  ;;  %v7998_v50 = vld [vmem:[%s12172_s29 + $0x358] sm:$0xff] }
0x102c   :  { %v5968_v41 = vpop.f32.mrf.mxu0  ;;  %v7994_v13 = vld [vmem:[%s12172_s29 + $0x338] sm:$0xff] }
0x102d   :  { %v6046_v61 = vadd.f32 %v6045_v11, %v5968_v41  ;;  %v11405_v20 = vmax.f32 %v5802_v6, %v6044_v30  ;;  %v8002_v11 = vld [vmem:[%s12172_s29 + $0x378] sm:$0xff]  ;;  %v8001_v30 = vld [vmem:[%s12172_s29 + $0x370] sm:$0xff]  ;;  %v8000_v41 = vld [vmem:[%s12172_s29 + $0x368] sm:$0xff] }
0x102e   :  { %v7996_v6 = vld [vmem:[%s12172_s29 + $0x348] sm:$0xff] }
0x102f   :  { %v6051_v48 = vmax.f32 %v5804_v2, %v6046_v61  ;;  %v7999_v2 = vld [vmem:[%s12172_s29 + $0x360] sm:$0xff]  ;;  %v7997_v61 = vld [vmem:[%s12172_s29 + $0x350] sm:$0xff] }
0x1031   :  { %7918 = vmatprep.subr.msk.mxu1 %vm3427_vm8, %v6051_v48  ;;  %7968 = vmatprep.subr.msk.mxu0 %vm3427_vm8, %v6051_v48 }
0x1032   :  { %7919 = vmatpush1.msk.msra.mxu1 %vm3427_vm8, %v11405_v20 }
0x1033   :  { %6133 = vmatprep.subr.mxu1 %v11407_v1 }
0x1034   :  { %6134 = vmatpush1.msra.mxu1 %v11411_v17 }
0x1035   :  { %7920 = vmatmul.mubr.msk.f32.vlgmr.msra.gmra.mxu1 %vm6093_vm15, %v6092_v24  ;;  %7922 = vmatprep.subr.msk.mxu1 %vm3427_vm8, %v6051_v48  ;;  %v7993_v48 = vld [vmem:[%s12172_s29 + $0x330] sm:$0xff]  ;;  %v7988_v24 = vld [vmem:[%s12172_s29 + $0x308] sm:$0xff] }
0x1036   :  { %7923 = vmatpush1.msk.msra.mxu1 %vm3427_vm8, %v11405_v20  ;;  %6283 = vmatprep.mubr.f32.mxu1 %v12084_v33 }
0x1037   :  { %6249 = vmatprep.subr.mxu1 %v11407_v1 }
0x1038   :  { %6250 = vmatpush1.msra.mxu1 %v11411_v17 }
0x1039   :  { %7924 = vmatmul.mubr.msk.f32.vlgmr.msra.gmra.mxu1 %vm6093_vm15, %v7921_v4  ;;  %6408 = vmatprep.subr.mxu1 %v6205_v49  ;;  %v7987_v4 = vld [vmem:[%s12172_s29 + $0x300] sm:$0xff]  ;;  %v7986_v49 = vld [vmem:[%s12172_s29 + $0x2f8] sm:$0xff] }
0x103a   :  { %6409 = vmatpush1.msra.mxu1 %v6204_v35  ;;  %v7985_v35 = vld [vmem:[%s12172_s29 + $0x2f0] sm:$0xff] }
0x103b   :  { %6410 = vmatprep.subr.mxu1 %v6203_v38  ;;  %v7984_v38 = vld [vmem:[%s12172_s29 + $0x2e8] sm:$0xff] }
0x103c   :  { %6411 = vmatpush1.msra.mxu1 %v6202_v14  ;;  %v7983_v14 = vld [vmem:[%s12172_s29 + $0x2e0] sm:$0xff] }
0x103d   :  { %6412 = vmatprep.subr.mxu1 %v6201_v57  ;;  %v7982_v57 = vld [vmem:[%s12172_s29 + $0x2d8] sm:$0xff] }
0x103e   :  { %6413 = vmatpush1.msra.mxu1 %v6200_v47  ;;  %v7981_v47 = vld [vmem:[%s12172_s29 + $0x2d0] sm:$0xff] }
0x103f   :  { %6414 = vmatprep.subr.mxu1 %v6199_v29  ;;  %v7980_v29 = vld [vmem:[%s12172_s29 + $0x2c8] sm:$0xff] }
0x1040   :  { %6415 = vmatpush1.msra.mxu1 %v6198_v12  ;;  %v7979_v12 = vld [vmem:[%s12172_s29 + $0x2c0] sm:$0xff] }
0x1041   :  { %6416 = vmatprep.subr.mxu1 %v6197_v16  ;;  %v7978_v16 = vld [vmem:[%s12172_s29 + $0x2b8] sm:$0xff] }
0x1042   :  { %6417 = vmatpush1.msra.mxu1 %v6196_v42  ;;  %v7977_v42 = vld [vmem:[%s12172_s29 + $0x2b0] sm:$0xff] }
0x1043   :  { %6418 = vmatprep.subr.mxu1 %v6195_v28  ;;  %v7976_v28 = vld [vmem:[%s12172_s29 + $0x2a8] sm:$0xff] }
0x1044   :  { %6419 = vmatpush1.msra.mxu1 %v6194_v9  ;;  %v7975_v9 = vld [vmem:[%s12172_s29 + $0x2a0] sm:$0xff] }
0x1045   :  { %6420 = vmatprep.subr.mxu1 %v6193_v18  ;;  %v7974_v18 = vld [vmem:[%s12172_s29 + $0x298] sm:$0xff] }
0x1046   :  { %6421 = vmatpush1.msra.mxu1 %v6192_v25  ;;  %v7973_v25 = vld [vmem:[%s12172_s29 + $0x290] sm:$0xff] }
0x1047   :  { %6422 = vmatprep.subr.mxu1 %v6191_v58  ;;  %v7972_v58 = vld [vmem:[%s12172_s29 + $0x288] sm:$0xff] }
0x1048   :  { %6423 = vmatpush1.msra.mxu1 %v6190_v62  ;;  %v7971_v62 = vld [vmem:[%s12172_s29 + $0x280] sm:$0xff] }
0x1049   :  { %6424 = vmatprep.subr.mxu1 %v6189_v19  ;;  %v8010_v19 = vld [vmem:[%s12172_s29 + $0x3b8] sm:$0xff] }
0x104a   :  { %6425 = vmatpush1.msra.mxu1 %v6188_v23  ;;  %v8009_v23 = vld [vmem:[%s12172_s29 + $0x3b0] sm:$0xff] }
0x104b   :  { %6426 = vmatprep.subr.mxu1 %v6187_v10  ;;  %v8008_v10 = vld [vmem:[%s12172_s29 + $0x3a8] sm:$0xff] }
0x104c   :  { %6427 = vmatpush1.msra.mxu1 %v6186_v26  ;;  %v8007_v26 = vld [vmem:[%s12172_s29 + $0x3a0] sm:$0xff] }
0x104d   :  { %6428 = vmatprep.subr.mxu1 %v6185_v60  ;;  %v8006_v60 = vld [vmem:[%s12172_s29 + $0x398] sm:$0xff] }
0x104e   :  { %6429 = vmatpush1.msra.mxu1 %v6184_v0  ;;  %v8005_v0 = vld [vmem:[%s12172_s29 + $0x390] sm:$0xff] }
0x104f   :  { %6430 = vmatprep.subr.mxu1 %v6183_v7  ;;  %v8004_v7 = vld [vmem:[%s12172_s29 + $0x388] sm:$0xff] }
0x1050   :  { %6431 = vmatpush1.msra.mxu1 %v6182_v56  ;;  %v8003_v56 = vld [vmem:[%s12172_s29 + $0x380] sm:$0xff] }
0x1051   :  { %6432 = vmatprep.subr.mxu1 %v6181_v43  ;;  %v11518_v43 = vld [vmem:[%s12174_s8 + $0x78] sm:$0xff] }
0x1052   :  { %6433 = vmatpush1.msra.mxu1 %v6180_v3  ;;  %v11521_v3 = vld [vmem:[%s12174_s8 + $0x70] sm:$0xff] }
0x1053   :  { %6434 = vmatprep.subr.mxu1 %v6179_v45  ;;  %v11526_v45 = vld [vmem:[%s12174_s8 + $0x68] sm:$0xff] }
0x1054   :  { %6435 = vmatpush1.msra.mxu1 %v6178_v52  ;;  %v11531_v52 = vld [vmem:[%s12174_s8 + $0x60] sm:$0xff] }
0x1055   :  { %6436 = vmatprep.subr.mxu1 %v6177_v55  ;;  %v11536_v55 = vld [vmem:[%s12174_s8 + $0x58] sm:$0xff] }
0x1056   :  { %6437 = vmatpush1.msra.mxu1 %v6176_v8  ;;  %v11541_v8 = vld [vmem:[%s12174_s8 + $0x50] sm:$0xff] }
0x1057   :  { %6438 = vmatprep.subr.mxu1 %v6175_v51  ;;  %v11546_v51 = vld [vmem:[%s12174_s8 + $0x48] sm:$0xff] }
0x1058   :  { %6439 = vmatpush1.msra.mxu1 %v6174_v39  ;;  %v11551_v39 = vld [vmem:[%s12174_s8 + $0x40] sm:$0xff] }
0x1059   :  { %6464 = vmatprep.subr.mxu1 %v6213_v22  ;;  %v11556_v22 = vld [vmem:[%s12174_s8 + $0x38] sm:$0xff] }
0x105a   :  { %6465 = vmatpush2.msra.mxu1 %v6212_v54  ;;  %v11561_v54 = vld [vmem:[%s12174_s8 + $0x30] sm:$0xff] }
0x105b   :  { %6466 = vmatprep.subr.mxu1 %v6211_v63  ;;  %v11566_v63 = vld [vmem:[%s12174_s8 + $0x28] sm:$0xff] }
0x105c   :  { %6467 = vmatpush2.msra.mxu1 %v6210_v37  ;;  %v11571_v37 = vld [vmem:[%s12174_s8 + $0x20] sm:$0xff] }
0x105d   :  { %6468 = vmatprep.subr.mxu1 %v6209_v44  ;;  %v11576_v44 = vld [vmem:[%s12174_s8 + $0x18] sm:$0xff] }
0x105e   :  { %6469 = vmatpush2.msra.mxu1 %v6208_v21  ;;  %v11581_v21 = vld [vmem:[%s12174_s8 + $0x10] sm:$0xff] }
0x105f   :  { %6470 = vmatprep.subr.mxu1 %v6207_v59 }
0x1060   :  { %6471 = vmatpush2.msra.mxu1 %v6206_v5 }
0x1061   :  { %6691 = vmatprep.subr.mxu1 %v12084_v33 }
0x10f5   :  { %v6169_v53 = vpop.f32.mrf.mxu1 }
0x10f7   :  { %v6171_v27 = vpop.f32.mrf.mxu1 }
0x10f8   :  { %7966 = vmatprep.mubr.msk.f32.mxu1 %vm1453_vm4, %v6171_v27 }
0x10f9   :  { %v6285_v34 = vpop.f32.mrf.mxu1  ;;  %6473 = vmatmul.mubr.f32.vlgmr.msra.gmra.mxu1 %v6169_v53 }
0x10fa   :  { %6692 = vmatpush1.msra.mxu1 %v11518_v43 }
0x10fb   :  { %v6287_v36 = vpop.f32.mrf.mxu1  ;;  %6693 = vmatprep.subr.mxu1 %v12084_v33 }
0x10fc   :  { %7965 = vmatprep.mubr.msk.f32.mxu0 %vm1453_vm4, %v6287_v36  ;;  %6694 = vmatpush1.msra.mxu1 %v11521_v3  ;;  %v11599_v36 = vld [vmem:[%s12174_s8] sm:$0xff] }
0x10fd   :  { %6399 = vmatmul.mubr.f32.vlgmr.msra.gmra.mxu0 %v6285_v34  ;;  %6695 = vmatprep.subr.mxu1 %v12084_v33  ;;  %v11594_v34 = vld [vmem:[%s12174_s8 + $0x8] sm:$0xff] }
0x10fe   :  { %7969 = vmatpush1.msk.msra.mxu0 %vm3427_vm8, %v11405_v20  ;;  %6548 = vmatprep.mubr.f32.mxu0 %v12084_v33  ;;  %v7991_v20 = vld [vmem:[%s12172_s29 + $0x320] sm:$0xff] }
0x10ff   :  { %6514 = vmatprep.subr.mxu0 %v11407_v1  ;;  %v7990_v1 = vld [vmem:[%s12172_s29 + $0x318] sm:$0xff]  ;;  %6696 = vmatpush1.msra.mxu1 %v11526_v45 }
0x1100   :  { %6515 = vmatpush1.msra.mxu0 %v11411_v17  ;;  %v7989_v17 = vld [vmem:[%s12172_s29 + $0x310] sm:$0xff]  ;;  %6697 = vmatprep.subr.mxu1 %v12084_v33 }
0x1101   :  { %7970 = vmatmul.mubr.msk.f32.vlgmr.msra.gmra.mxu0 %vm6093_vm15, %v7967_v46  ;;  %6599 = vmatprep.subr.mxu0 %v8002_v11  ;;  %v11604_v46 = vld [vmem:[%s12174_s8 + $0xb8] sm:$0xff]  ;;  %v11609_v11 = vld [vmem:[%s12174_s8 + $0xb0] sm:$0xff] }
0x1102   :  { %6600 = vmatpush1.msra.mxu0 %v8001_v30  ;;  %6698 = vmatpush1.msra.mxu1 %v11531_v52  ;;  %v11614_v30 = vld [vmem:[%s12174_s8 + $0xa8] sm:$0xff] }
0x1103   :  { %6601 = vmatprep.subr.mxu0 %v8000_v41  ;;  %6699 = vmatprep.subr.mxu1 %v12084_v33  ;;  %v11619_v41 = vld [vmem:[%s12174_s8 + $0xa0] sm:$0xff] }
0x1104   :  { %6602 = vmatpush1.msra.mxu0 %v7999_v2  ;;  %6700 = vmatpush1.msra.mxu1 %v11536_v55  ;;  %v11624_v2 = vld [vmem:[%s12174_s8 + $0x98] sm:$0xff] }
0x1105   :  { %6603 = vmatprep.subr.mxu0 %v7998_v50  ;;  %6701 = vmatprep.subr.mxu1 %v12084_v33  ;;  %v11627_v50 = vld [vmem:[%s12174_s8 + $0x90] sm:$0xff] }
0x1106   :  { %6604 = vmatpush1.msra.mxu0 %v7997_v61  ;;  %6702 = vmatpush1.msra.mxu1 %v11541_v8  ;;  %v11632_v61 = vld [vmem:[%s12174_s8 + $0x88] sm:$0xff] }
0x1107   :  { %6605 = vmatprep.subr.mxu0 %v7996_v6  ;;  %6703 = vmatprep.subr.mxu1 %v12084_v33  ;;  %v11637_v6 = vld [vmem:[%s12174_s8 + $0x80] sm:$0xff] }
0x1108   :  { %6606 = vmatpush1.msra.mxu0 %v7995_v32  ;;  %6704 = vmatpush1.msra.mxu1 %v11546_v51  ;;  %v11641_v32 = vld [vmem:[%s12175_s14 + $0x78] sm:$0xff] }
0x1109   :  { %6607 = vmatprep.subr.mxu0 %v7994_v13  ;;  %6705 = vmatprep.subr.mxu1 %v12084_v33  ;;  %v11644_v13 = vld [vmem:[%s12175_s14 + $0x70] sm:$0xff] }
0x110a   :  { %6608 = vmatpush1.msra.mxu0 %v7993_v48  ;;  %6706 = vmatpush1.msra.mxu1 %v11551_v39  ;;  %v11647_v48 = vld [vmem:[%s12175_s14 + $0x68] sm:$0xff] }
0x110b   :  { %6609 = vmatprep.subr.mxu0 %v7992_v40  ;;  %6707 = vmatprep.subr.mxu1 %v12084_v33  ;;  %v11652_v40 = vld [vmem:[%s12175_s14 + $0x60] sm:$0xff] }
0x110c   :  { %6610 = vmatpush1.msra.mxu0 %v7991_v20  ;;  %6708 = vmatpush1.msra.mxu1 %v11556_v22  ;;  %v11657_v20 = vld [vmem:[%s12175_s14 + $0x58] sm:$0xff] }
0x110d   :  { %6611 = vmatprep.subr.mxu0 %v7990_v1  ;;  %6709 = vmatprep.subr.mxu1 %v12084_v33  ;;  %v11661_v1 = vld [vmem:[%s12175_s14 + $0x50] sm:$0xff] }
0x110e   :  { %6612 = vmatpush1.msra.mxu0 %v7989_v17  ;;  %6710 = vmatpush1.msra.mxu1 %v11561_v54  ;;  %v11666_v17 = vld [vmem:[%s12175_s14 + $0x48] sm:$0xff] }
0x110f   :  { %6613 = vmatprep.subr.mxu0 %v7988_v24  ;;  %6711 = vmatprep.subr.mxu1 %v12084_v33  ;;  %v11670_v24 = vld [vmem:[%s12175_s14 + $0x40] sm:$0xff] }
0x1110   :  { %6614 = vmatpush1.msra.mxu0 %v7987_v4  ;;  %6712 = vmatpush1.msra.mxu1 %v11566_v63  ;;  %v11674_v4 = vld [vmem:[%s12175_s14 + $0x38] sm:$0xff] }
0x1111   :  { %6615 = vmatprep.subr.mxu0 %v7986_v49  ;;  %6713 = vmatprep.subr.mxu1 %v12084_v33  ;;  %v11678_v49 = vld [vmem:[%s12175_s14 + $0x30] sm:$0xff] }
0x1112   :  { %6616 = vmatpush1.msra.mxu0 %v7985_v35  ;;  %6714 = vmatpush1.msra.mxu1 %v11571_v37  ;;  %v11682_v35 = vld [vmem:[%s12175_s14 + $0x28] sm:$0xff] }
0x1113   :  { %6617 = vmatprep.subr.mxu0 %v7984_v38  ;;  %6715 = vmatprep.subr.mxu1 %v12084_v33  ;;  %v11686_v38 = vld [vmem:[%s12175_s14 + $0x20] sm:$0xff] }
0x1114   :  { %6618 = vmatpush1.msra.mxu0 %v7983_v14  ;;  %6716 = vmatpush1.msra.mxu1 %v11576_v44  ;;  %v11690_v14 = vld [vmem:[%s12175_s14 + $0x18] sm:$0xff] }
0x1115   :  { %6619 = vmatprep.subr.mxu0 %v7982_v57  ;;  %6717 = vmatprep.subr.mxu1 %v12084_v33 }
0x1116   :  { %6620 = vmatpush1.msra.mxu0 %v7981_v47  ;;  %6718 = vmatpush1.msra.mxu1 %v11581_v21 }
0x1117   :  { %6621 = vmatprep.subr.mxu0 %v7980_v29  ;;  %6719 = vmatprep.subr.mxu1 %v12084_v33 }
0x1118   :  { %6622 = vmatpush1.msra.mxu0 %v7979_v12  ;;  %6720 = vmatpush1.msra.mxu1 %v11594_v34 }
0x1119   :  { %6623 = vmatprep.subr.mxu0 %v7978_v16  ;;  %6721 = vmatprep.subr.mxu1 %v12084_v33 }
0x111a   :  { %6624 = vmatpush1.msra.mxu0 %v7977_v42  ;;  %6722 = vmatpush1.msra.mxu1 %v11599_v36 }
0x111b   :  { %6625 = vmatprep.subr.mxu0 %v7976_v28  ;;  %6739 = vmatprep.subr.mxu1 %v12084_v33 }
0x111c   :  { %6626 = vmatpush1.msra.mxu0 %v7975_v9  ;;  %6740 = vmatpush2.msra.mxu1 %v11604_v46 }
0x111d   :  { %6627 = vmatprep.subr.mxu0 %v7974_v18  ;;  %6741 = vmatprep.subr.mxu1 %v12084_v33 }
0x111e   :  { %6628 = vmatpush1.msra.mxu0 %v7973_v25  ;;  %6742 = vmatpush2.msra.mxu1 %v11609_v11 }
0x111f   :  { %6629 = vmatprep.subr.mxu0 %v7972_v58  ;;  %6743 = vmatprep.subr.mxu1 %v12084_v33 }
0x1120   :  { %6630 = vmatpush1.msra.mxu0 %v7971_v62  ;;  %6744 = vmatpush2.msra.mxu1 %v11614_v30 }
0x1121   :  { %6655 = vmatprep.subr.mxu0 %v8010_v19  ;;  %6745 = vmatprep.subr.mxu1 %v12084_v33 }
0x1122   :  { %6656 = vmatpush2.msra.mxu0 %v8009_v23  ;;  %6746 = vmatpush2.msra.mxu1 %v11619_v41 }
0x1123   :  { %6657 = vmatprep.subr.mxu0 %v8008_v10  ;;  %6747 = vmatprep.subr.mxu1 %v12084_v33 }
0x1124   :  { %6658 = vmatpush2.msra.mxu0 %v8007_v26  ;;  %6748 = vmatpush2.msra.mxu1 %v11624_v2 }
0x1125   :  { %6659 = vmatprep.subr.mxu0 %v8006_v60  ;;  %6749 = vmatprep.subr.mxu1 %v12084_v33 }
0x1126   :  { %6660 = vmatpush2.msra.mxu0 %v8005_v0  ;;  %6750 = vmatpush2.msra.mxu1 %v11627_v50 }
0x1127   :  { %6661 = vmatprep.subr.mxu0 %v8004_v7  ;;  %6751 = vmatprep.subr.mxu1 %v12084_v33 }
0x1128   :  { %6662 = vmatpush2.msra.mxu0 %v8003_v56  ;;  %6752 = vmatpush2.msra.mxu1 %v11632_v61 }
0x1129   :  { %6753 = vmatprep.subr.mxu1 %v12084_v33  ;;  %6781 = vmatprep.subr.mxu0 %v11641_v32 }
0x112a   :  { %6754 = vmatpush2.msra.mxu1 %v11637_v6 }
0x112b   :  { %6865 = vmatprep.subr.mxu1 %v12084_v33 }
0x11b9   :  { %v6474_v57 = vpop.f32.mrf.mxu1 }
0x11bb   :  { %v6476_v29 = vpop.f32.mrf.mxu1 }
0x11bd   :  { %v11587_v59 = vpop.f32.mrf.mxu0 }
0x11be   :  { %v6475_v47 = vadd.f32 %v6474_v57, %v11587_v59  ;;  %v7317_v57 = vld [vmem:[%s8739_s12 + $0x48] sm:$0xff] }
0x11bf   :  { %v11589_v5 = vpop.f32.mrf.mxu0 }
0x11c0   :  { %v6477_v16 = vadd.f32 %v6476_v29, %v11589_v5  ;;  %v7315_v29 = vld [vmem:[%s8739_s12 + $0x38] sm:$0xff] }
0x11c1   :  { %v6550_v53 = vpop.f32.mrf.mxu0 }
0x11c3   :  { %v6552_v27 = vpop.f32.mrf.mxu0 }
0x11c4   :  { %8011 = vmatprep.mubr.msk.f32.mxu0 %vm1453_vm4, %v6552_v27 }
0x11c5   :  { %6664 = vmatmul.mubr.f32.vlgmr.msra.gmra.mxu0 %v6550_v53 }
0x11c6   :  { %6829 = vmatprep.mubr.f32.mxu0 %v12084_v33  ;;  %6782 = vmatpush1.msra.mxu0 %v11644_v13 }
0x11c7   :  { %6783 = vmatprep.subr.mxu0 %v11647_v48 }
0x11c8   :  { %6784 = vmatpush1.msra.mxu0 %v11652_v40 }
0x11c9   :  { %6785 = vmatprep.subr.mxu0 %v11657_v20 }
0x11ca   :  { %6786 = vmatpush1.msra.mxu0 %v11661_v1 }
0x11cb   :  { %6787 = vmatprep.subr.mxu0 %v11666_v17 }
0x11cc   :  { %6788 = vmatpush1.msra.mxu0 %v11670_v24 }
0x11cd   :  { %6789 = vmatprep.subr.mxu0 %v11674_v4 }
0x11ce   :  { %6790 = vmatpush1.msra.mxu0 %v11678_v49 }
0x11cf   :  { %6791 = vmatprep.subr.mxu0 %v11682_v35 }
0x11d0   :  { %6792 = vmatpush1.msra.mxu0 %v11686_v38 }
0x11d1   :  { %6793 = vmatprep.subr.mxu0 %v11690_v14 }
0x1285   :  { %v6665_v12 = vpop.f32.mrf.mxu0 }
0x1286   :  { %v11697_v42 = vadd.f32 %v6665_v12, %v6475_v47  ;;  %v7316_v47 = vld [vmem:[%s8739_s12 + $0x40] sm:$0xff]  ;;  %v7314_v12 = vld [vmem:[%s8739_s12 + $0x30] sm:$0xff] }
0x1287   :  { %v6667_v28 = vpop.f32.mrf.mxu0 }
0x1288   :  { %v6672_v9 = vsel %vm4472_vm12, %v11697_v42, 0.0  ;;  %v11701_v18 = vadd.f32 %v6667_v28, %v6477_v16  ;;  %v7313_v16 = vld [vmem:[%s8739_s12 + $0x28] sm:$0xff]  ;;  %v7311_v28 = vld [vmem:[%s8739_s12 + $0x18] sm:$0xff] }
0x1289   :  { %v6673_v25 = vrot.slane %v6672_v9, 4 }
0x128a   :  { %v6680_v58 = vsel %vm6679_vm1, %v11701_v18, 0.0 }
0x128b   :  { %v6674_v62 = vadd.f32 %v6673_v25, %v6672_v9  ;;  %v6681_v19 = vrot.slane %v6680_v58, 4  ;;  %v7310_v9 = vld [vmem:[%s8739_s12 + $0x10] sm:$0xff]  ;;  %v7308_v25 = vld [vmem:[%s8739_s12] sm:$0xff] }
0x128d   :  { %v6675_v23 = vrot.slane %v6674_v62, 2  ;;  %v6682_v10 = vadd.f32 %v6681_v19, %v6680_v58  ;;  %v7331_v58 = vld [vmem:[%s8739_s12 + $0xb8] sm:$0xff]  ;;  %v7329_v19 = vld [vmem:[%s8739_s12 + $0xa8] sm:$0xff] }
0x128f   :  { %v6676_v26 = vadd.f32 %v6675_v23, %v6674_v62  ;;  %v6683_v60 = vrot.slane %v6682_v10, 2  ;;  %v7330_v62 = vld [vmem:[%s8739_s12 + $0xb0] sm:$0xff]  ;;  %v7022_v23 = vld [vmem:[%s12176_s19] sm:$0x3] }
0x1291   :  { %v6684_v0 = vadd.f32 %v6683_v60, %v6682_v10  ;;  %v6677_v7 = vrot.slane %v6676_v26, 1  ;;  %v7027_v60 = vrot.slane %v7022_v23, %v12156_v15 }
0x1293   :  { %v6685_v56 = vrot.slane %v6684_v0, 1  ;;  %v6678_v5 = vadd.f32 %v6677_v7, %v6676_v26 }
0x1295   :  { %v6686_v59 = vadd.f32 %v6685_v56, %v6684_v0  ;;  %v7036_v0 = vld [vmem:[%s12177_s24] sm:$0x3] }
0x1297   :  { %8012 = vmatprep.mubr.msk.f32.mxu1 %vm6687_vm2, %v6686_v59 }
0x1298   :  { %6756 = vmatmul.mubr.f32.vlgmr.msra.gmra.mxu1 %v6678_v5  ;;  %v7031_v5 = vrot.slane %v7022_v23, %v12168_v31 }
0x1299   :  { %6866 = vmatpush1.msra.mxu1 %v11518_v43  ;;  %v6078_v43 = vld [vmem:[%s12175_s14 + $0x10] sm:$0xff] }
0x129a   :  { %6867 = vmatprep.subr.mxu1 %v12084_v33  ;;  %6794 = vmatpush1.msra.mxu0 %v6078_v43 }
0x129b   :  { %6868 = vmatpush1.msra.mxu1 %v11521_v3  ;;  %v6077_v3 = vld [vmem:[%s12175_s14 + $0x8] sm:$0xff] }
0x129c   :  { %6869 = vmatprep.subr.mxu1 %v12084_v33  ;;  %6795 = vmatprep.subr.mxu0 %v6077_v3 }
0x129d   :  { %6870 = vmatpush1.msra.mxu1 %v11526_v45  ;;  %v6076_v45 = vld [vmem:[%s12175_s14] sm:$0xff] }
0x129e   :  { %6871 = vmatprep.subr.mxu1 %v12084_v33  ;;  %6796 = vmatpush1.msra.mxu0 %v6076_v45 }
0x129f   :  { %6872 = vmatpush1.msra.mxu1 %v11531_v52  ;;  %6957 = vmatprep.subr.mxu0 %v11641_v32 }
0x12a0   :  { %6873 = vmatprep.subr.mxu1 %v12084_v33 }
0x12a1   :  { %6874 = vmatpush1.msra.mxu1 %v11536_v55 }
0x12a2   :  { %6875 = vmatprep.subr.mxu1 %v12084_v33 }
0x12a3   :  { %6876 = vmatpush1.msra.mxu1 %v11541_v8 }
0x12a4   :  { %6877 = vmatprep.subr.mxu1 %v12084_v33 }
0x12a5   :  { %6878 = vmatpush1.msra.mxu1 %v11546_v51 }
0x12a6   :  { %6879 = vmatprep.subr.mxu1 %v12084_v33 }
0x12a7   :  { %6880 = vmatpush1.msra.mxu1 %v11551_v39 }
0x12a8   :  { %6881 = vmatprep.subr.mxu1 %v12084_v33 }
0x12a9   :  { %6882 = vmatpush1.msra.mxu1 %v11556_v22 }
0x12aa   :  { %6883 = vmatprep.subr.mxu1 %v12084_v33 }
0x12ab   :  { %6884 = vmatpush1.msra.mxu1 %v11561_v54 }
0x12ac   :  { %6885 = vmatprep.subr.mxu1 %v12084_v33 }
0x12ad   :  { %6886 = vmatpush1.msra.mxu1 %v11566_v63 }
0x12ae   :  { %6887 = vmatprep.subr.mxu1 %v12084_v33 }
0x12af   :  { %6888 = vmatpush1.msra.mxu1 %v11571_v37 }
0x12b0   :  { %6889 = vmatprep.subr.mxu1 %v12084_v33 }
0x12b1   :  { %6890 = vmatpush1.msra.mxu1 %v11576_v44 }
0x12b2   :  { %6891 = vmatprep.subr.mxu1 %v12084_v33 }
0x12b3   :  { %6892 = vmatpush1.msra.mxu1 %v11581_v21 }
0x12b4   :  { %6893 = vmatprep.subr.mxu1 %v12084_v33 }
0x12b5   :  { %6894 = vmatpush1.msra.mxu1 %v11594_v34 }
0x12b6   :  { %6895 = vmatprep.subr.mxu1 %v12084_v33 }
0x12b7   :  { %6896 = vmatpush1.msra.mxu1 %v11599_v36 }
0x12b8   :  { %6913 = vmatprep.subr.mxu1 %v12084_v33 }
0x12b9   :  { %6914 = vmatpush2.msra.mxu1 %v11604_v46 }
0x12ba   :  { %6915 = vmatprep.subr.mxu1 %v12084_v33 }
0x12bb   :  { %6916 = vmatpush2.msra.mxu1 %v11609_v11 }
0x12bc   :  { %6917 = vmatprep.subr.mxu1 %v12084_v33 }
0x12bd   :  { %6918 = vmatpush2.msra.mxu1 %v11614_v30 }
0x12be   :  { %6919 = vmatprep.subr.mxu1 %v12084_v33 }
0x12bf   :  { %6920 = vmatpush2.msra.mxu1 %v11619_v41 }
0x12c0   :  { %6921 = vmatprep.subr.mxu1 %v12084_v33 }
0x12c1   :  { %6922 = vmatpush2.msra.mxu1 %v11624_v2 }
0x12c2   :  { %6923 = vmatprep.subr.mxu1 %v12084_v33 }
0x12c3   :  { %6924 = vmatpush2.msra.mxu1 %v11627_v50 }
0x12c4   :  { %6925 = vmatprep.subr.mxu1 %v12084_v33 }
0x12c5   :  { %6926 = vmatpush2.msra.mxu1 %v11632_v61 }
0x12c6   :  { %6927 = vmatprep.subr.mxu1 %v12084_v33 }
0x12c7   :  { %6928 = vmatpush2.msra.mxu1 %v11637_v6 }
0x12c8   :  { %7332 = vmatprep.subr.mxu1 %v12084_v33 }
0x1358   :  { %v6757_v52 = vpop.f32.mrf.mxu1 }
0x1359   :  { %v6761_v55 = vmul.f32 0.055555556, %v6757_v52  ;;  %v7045_v52 = vrot.slane %v7036_v0, %v12168_v31  ;;  %v7226_v31 = vld [vmem:[%s12180_s7 + $0x78] sm:$0xff] }
0x135a   :  { %v6759_v8 = vpop.f32.mrf.mxu1 }
0x135b   :  { %8013 = vmatmul.mubr.msk.f32.vlgmr.msra.gmra.mxu0 %vm6687_vm2, %v6761_v55 }
0x135c   :  { %6958 = vmatpush1.msra.mxu0 %v11644_v13  ;;  %7005 = vmatprep.mubr.f32.mxu0 %v12084_v33 }
0x135d   :  { %6959 = vmatprep.subr.mxu0 %v11647_v48 }
0x135e   :  { %6960 = vmatpush1.msra.mxu0 %v11652_v40 }
0x135f   :  { %6961 = vmatprep.subr.mxu0 %v11657_v20 }
0x1360   :  { %6962 = vmatpush1.msra.mxu0 %v11661_v1 }
0x1361   :  { %6963 = vmatprep.subr.mxu0 %v11666_v17 }
0x1362   :  { %6964 = vmatpush1.msra.mxu0 %v11670_v24  ;;  %v7323_v24 = vld [vmem:[%s8739_s12 + $0x78] sm:$0xff] }
0x1363   :  { %6965 = vmatprep.subr.mxu0 %v11674_v4  ;;  %v7322_v4 = vld [vmem:[%s8739_s12 + $0x70] sm:$0xff] }
0x1364   :  { %6966 = vmatpush1.msra.mxu0 %v11678_v49  ;;  %v7321_v49 = vld [vmem:[%s8739_s12 + $0x68] sm:$0xff] }
0x1365   :  { %6967 = vmatprep.subr.mxu0 %v11682_v35  ;;  %v7320_v35 = vld [vmem:[%s8739_s12 + $0x60] sm:$0xff] }
0x1366   :  { %6968 = vmatpush1.msra.mxu0 %v11686_v38  ;;  %v7319_v38 = vld [vmem:[%s8739_s12 + $0x58] sm:$0xff] }
0x1367   :  { %6969 = vmatprep.subr.mxu0 %v11690_v14  ;;  %v7318_v14 = vld [vmem:[%s8739_s12 + $0x50] sm:$0xff] }
0x1368   :  { %6970 = vmatpush1.msra.mxu0 %v6078_v43  ;;  %v7041_v43 = vrot.slane %v7036_v0, %v12156_v15 }
0x1369   :  { %6971 = vmatprep.subr.mxu0 %v6077_v3 }
0x136a   :  { %6972 = vmatpush1.msra.mxu0 %v6076_v45 }
0x141b   :  { %v6831_v51 = vpop.f32.mrf.mxu0 }
0x141c   :  { %v6839_v39 = vrot.slane %v6831_v51, %v12156_v15 }
0x141d   :  { %v6833_v22 = vpop.f32.mrf.mxu0 }
0x141e   :  { %v11774_v54 = vsub.f32 %v11697_v42, %v6839_v39  ;;  %v6843_v63 = vrot.slane %v6833_v22, %v12156_v15  ;;  %v7312_v42 = vld [vmem:[%s8739_s12 + $0x20] sm:$0xff] }
0x1420   :  { %v6846_v37 = vmul.f32 %v11774_v54, %v11774_v54  ;;  %v11780_v44 = vsub.f32 %v11701_v18, %v6843_v63  ;;  %v7309_v18 = vld [vmem:[%s8739_s12 + $0x8] sm:$0xff]  ;;  %v7225_v63 = vld [vmem:[%s12180_s7 + $0x70] sm:$0xff] }
0x1422   :  { %v6848_v21 = vsel %vm4472_vm12, %v6846_v37, 0.0  ;;  %v6847_v53 = vmul.f32 %v11780_v44, %v11780_v44  ;;  %v7224_v37 = vld [vmem:[%s12180_s7 + $0x68] sm:$0xff] }
0x1423   :  { %v6849_v27 = vrot.slane %v6848_v21, 4 }
0x1424   :  { %v6855_v34 = vsel %vm6679_vm1, %v6847_v53, 0.0  ;;  %v7221_v53 = vld [vmem:[%s12180_s7 + $0x50] sm:$0xff] }
0x1425   :  { %v6850_v36 = vadd.f32 %v6849_v27, %v6848_v21  ;;  %v6856_v46 = vrot.slane %v6855_v34, 4  ;;  %v7222_v21 = vld [vmem:[%s12180_s7 + $0x58] sm:$0xff]  ;;  %v7220_v27 = vld [vmem:[%s12180_s7 + $0x48] sm:$0xff] }
0x1427   :  { %v6851_v11 = vrot.slane %v6850_v36, 2  ;;  %v6857_v30 = vadd.f32 %v6856_v46, %v6855_v34  ;;  %v7219_v34 = vld [vmem:[%s12180_s7 + $0x40] sm:$0xff]  ;;  %v7217_v46 = vld [vmem:[%s12180_s7 + $0x30] sm:$0xff] }
0x1429   :  { %v6852_v41 = vadd.f32 %v6851_v11, %v6850_v36  ;;  %v6858_v2 = vrot.slane %v6857_v30, 2  ;;  %v7218_v36 = vld [vmem:[%s12180_s7 + $0x38] sm:$0xff]  ;;  %v7216_v11 = vld [vmem:[%s12180_s7 + $0x28] sm:$0xff] }
0x142b   :  { %v6859_v50 = vadd.f32 %v6858_v2, %v6857_v30  ;;  %v6853_v61 = vrot.slane %v6852_v41, 1  ;;  %v7215_v30 = vld [vmem:[%s12180_s7 + $0x20] sm:$0xff]  ;;  %v7213_v2 = vld [vmem:[%s12180_s7 + $0x10] sm:$0xff] }
0x142d   :  { %v6860_v6 = vrot.slane %v6859_v50, 1  ;;  %v6854_v13 = vadd.f32 %v6853_v61, %v6852_v41  ;;  %v7214_v41 = vld [vmem:[%s12180_s7 + $0x18] sm:$0xff]  ;;  %v7211_v61 = vld [vmem:[%s12180_s7] sm:$0xff] }
0x142f   :  { %v6861_v32 = vadd.f32 %v6860_v6, %v6859_v50  ;;  %v7212_v50 = vld [vmem:[%s12180_s7 + $0x8] sm:$0xff]  ;;  %v7234_v6 = vld [vmem:[%s12180_s7 + $0xb8] sm:$0xff] }
0x1431   :  { %8014 = vmatprep.mubr.msk.f32.mxu1 %vm6687_vm2, %v6861_v32  ;;  %v7233_v32 = vld [vmem:[%s12180_s7 + $0xb0] sm:$0xff] }
0x1432   :  { %6930 = vmatmul.mubr.f32.vlgmr.msra.gmra.mxu1 %v6854_v13  ;;  %v7232_v13 = vld [vmem:[%s12180_s7 + $0xa8] sm:$0xff] }
0x1433   :  { %7333 = vmatpush1.msra.mxu1 %v7323_v24  ;;  %v7326_v24 = vld [vmem:[%s8739_s12 + $0x90] sm:$0xff] }
0x1434   :  { %7334 = vmatprep.subr.mxu1 %v12084_v33 }
0x1435   :  { %7335 = vmatpush1.msra.mxu1 %v7322_v4  ;;  %v7228_v4 = vld [vmem:[%s12180_s7 + $0x88] sm:$0xff] }
0x1436   :  { %7336 = vmatprep.subr.mxu1 %v12084_v33 }
0x1437   :  { %7337 = vmatpush1.msra.mxu1 %v7321_v49  ;;  %v7325_v49 = vld [vmem:[%s8739_s12 + $0x88] sm:$0xff] }
0x1438   :  { %7338 = vmatprep.subr.mxu1 %v12084_v33 }
0x1439   :  { %7339 = vmatpush1.msra.mxu1 %v7320_v35  ;;  %v7227_v35 = vld [vmem:[%s12180_s7 + $0x80] sm:$0xff] }
0x143a   :  { %7340 = vmatprep.subr.mxu1 %v12084_v33 }
0x143b   :  { %7341 = vmatpush1.msra.mxu1 %v7319_v38  ;;  %v7324_v38 = vld [vmem:[%s8739_s12 + $0x80] sm:$0xff] }
0x143c   :  { %7342 = vmatprep.subr.mxu1 %v12084_v33 }
0x143d   :  { %7343 = vmatpush1.msra.mxu1 %v7318_v14 }
0x143e   :  { %7344 = vmatprep.subr.mxu1 %v12084_v33 }
0x143f   :  { %7345 = vmatpush1.msra.mxu1 %v7317_v57 }
0x1440   :  { %7346 = vmatprep.subr.mxu1 %v12084_v33 }
0x1441   :  { %7347 = vmatpush1.msra.mxu1 %v7316_v47 }
0x1442   :  { %7348 = vmatprep.subr.mxu1 %v12084_v33 }
0x1443   :  { %7349 = vmatpush1.msra.mxu1 %v7315_v29 }
0x1444   :  { %7350 = vmatprep.subr.mxu1 %v12084_v33 }
0x1445   :  { %7351 = vmatpush1.msra.mxu1 %v7314_v12 }
0x1446   :  { %7352 = vmatprep.subr.mxu1 %v12084_v33 }
0x1447   :  { %7353 = vmatpush1.msra.mxu1 %v7313_v16 }
0x1448   :  { %7354 = vmatprep.subr.mxu1 %v12084_v33 }
0x1449   :  { %7355 = vmatpush1.msra.mxu1 %v7312_v42  ;;  %v7410_v42 = vld [vmem:[%s8744_s20 + $0x38] sm:$0xff] }
0x144a   :  { %7356 = vmatprep.subr.mxu1 %v12084_v33 }
0x144b   :  { %7357 = vmatpush1.msra.mxu1 %v7311_v28  ;;  %v7409_v28 = vld [vmem:[%s8744_s20 + $0x30] sm:$0xff] }
0x144c   :  { %7358 = vmatprep.subr.mxu1 %v12084_v33 }
0x144d   :  { %7359 = vmatpush1.msra.mxu1 %v7310_v9  ;;  %v7408_v9 = vld [vmem:[%s8744_s20 + $0x28] sm:$0xff] }
0x144e   :  { %7360 = vmatprep.subr.mxu1 %v12084_v33 }
0x144f   :  { %7361 = vmatpush1.msra.mxu1 %v7309_v18  ;;  %v7407_v18 = vld [vmem:[%s8744_s20 + $0x20] sm:$0xff] }
0x1450   :  { %7362 = vmatprep.subr.mxu1 %v12084_v33 }
0x1451   :  { %7363 = vmatpush1.msra.mxu1 %v7308_v25  ;;  %v7406_v25 = vld [vmem:[%s8744_s20 + $0x18] sm:$0xff] }
0x1452   :  { %7380 = vmatprep.subr.mxu1 %v12084_v33 }
0x1453   :  { %7381 = vmatpush2.msra.mxu1 %v7331_v58  ;;  %v7405_v58 = vld [vmem:[%s8744_s20 + $0x10] sm:$0xff] }
0x1454   :  { %7382 = vmatprep.subr.mxu1 %v12084_v33 }
0x1455   :  { %7383 = vmatpush2.msra.mxu1 %v7330_v62  ;;  %v7404_v62 = vld [vmem:[%s8744_s20 + $0x8] sm:$0xff] }
0x1456   :  { %7384 = vmatprep.subr.mxu1 %v12084_v33 }
0x1457   :  { %7385 = vmatpush2.msra.mxu1 %v7329_v19  ;;  %v7403_v19 = vld [vmem:[%s8744_s20] sm:$0xff] }
0x1458   :  { %7386 = vmatprep.subr.mxu1 %v12084_v33 }
0x14f2   :  { %v6931_v48 = vpop.f32.mrf.mxu1 }
0x14f3   :  { %v6935_v40 = vmul.f32 0.055555556, %v6931_v48  ;;  %v7231_v48 = vld [vmem:[%s12180_s7 + $0xa0] sm:$0xff] }
0x14f4   :  { %v6933_v20 = vpop.f32.mrf.mxu1 }
0x14f5   :  { %v6936_v1 = vadd.f32 1e-05, %v6935_v40  ;;  %v7328_v40 = vld [vmem:[%s8739_s12 + $0xa0] sm:$0xff]  ;;  %v7230_v20 = vld [vmem:[%s12180_s7 + $0x98] sm:$0xff] }
0x14f6   :  { %7387 = vmatpush2.msra.mxu1 %v7328_v40 }
0x14f7   :  { %8521 = vrsqrt.f32 %v6936_v1  ;;  %7388 = vmatprep.subr.mxu1 %v12084_v33  ;;  %v7327_v1 = vld [vmem:[%s8739_s12 + $0x98] sm:$0xff]  ;;  %s8580_s12 = smov [#allocation2]  }
0x14f8   :  { %7389 = vmatpush2.msra.mxu1 %v7327_v1  ;;  %s7499_s10 = sshll.u32 %s8580_s12, 4  ;;  %s7500_s10 = int_to_ptr.vmem [resolvable:$true] %s7499_s10 }
0x14f9   :  { %7390 = vmatprep.subr.mxu1 %v12084_v33  ;;  %s8523_s20 = scalar_lea.vmem %s7500_s10, 32  ;;  %p8528_p1 = scmp.lt.s32.totalorder %s7500_s10, %s7500_s10 }
0x14fa   :  { %7391 = vmatpush2.msra.mxu1 %v7326_v24  ;;  %p8524_p0 = scmp.ne.s32.totalorder %s7500_s10, %s8523_s20  ;;  %p8529_p2 = scmp.lt.s32.totalorder %s8523_s20, %s8523_s20 }
0x14fb   :  { %7392 = vmatprep.subr.mxu1 %v12084_v33 }
0x14fc   :  { %7393 = vmatpush2.msra.mxu1 %v7325_v49  ;;  %p8530_p3 = por %p8529_p2, %p8528_p1 }
0x14fd   :  { %7394 = vmatprep.subr.mxu1 %v12084_v33 }
0x14fe   :  { %7395 = vmatpush2.msra.mxu1 %v7324_v38  ;;  %p8531_p4 = pnand %p8530_p3, %p8524_p0 }
0x1504   :  { %v8522_v17 = vpop.eup %8521 }
0x1505   :  { %8015 = vmatmul.mubr.msk.f32.vlgmr.msra.gmra.mxu0 %vm6687_vm2, %v8522_v17  ;;  %v7229_v17 = vld [vmem:[%s12180_s7 + $0x90] sm:$0xff] }
0x1506   :  { %7127 = vmatprep.mubr.f32.mxu0 %v12084_v33 }
0x15c5   :  { %v7007_v10 = vpop.f32.mrf.mxu0 }
0x15c6   :  { %v7015_v26 = vrot.slane %v7007_v10, %v12156_v15 }
0x15c7   :  { %v7009_v7 = vpop.f32.mrf.mxu0 }
0x15c8   :  { %v7020_v56 = vmul.f32 %v7015_v26, %v11774_v54  ;;  %v7019_v59 = vrot.slane %v7009_v7, %v12156_v15  ;;  %v7052_v54 = vld [vmem:[%s12178_s30] sm:$0x3] }
0x15c9   :  { %v7134_v15 = vld [vmem:[%s12179_s6] sm:$0x3] }
0x15ca   :  { %v7034_v3 = vmul.f32 %v7027_v60, %v7020_v56  ;;  %v7021_v45 = vmul.f32 %v7019_v59, %v11780_v44  ;;  %v7223_v44 = vld [vmem:[%s12180_s7 + $0x60] sm:$0xff] }
0x15cb   :  { %v8024_v7 = vld [vmem:[%s8749_s27] ss:$0 sm:$0xff] }
0x15cc   :  { %v7035_v55 = vmul.f32 %v7031_v5, %v7021_v45  ;;  %v7048_v8 = vadd.f32 %v7041_v43, %v7034_v3 }
0x15ce   :  { %v7049_v51 = vadd.f32 %v7045_v52, %v7035_v55  ;;  %v7050_v22 = vmax.f32 %v7048_v8, 0.0 }
0x15d0   :  { %v7051_v39 = vmax.f32 %v7049_v51, 0.0 }
0x15d2   :  { %8016 = vmatprep.subr.msk.mxu0 %vm4472_vm12, %v7051_v39 }
0x15d3   :  { %8017 = vmatpush1.msk.msra.mxu0 %vm4472_vm12, %v7050_v22 }
0x15d4   :  { %8018 = vmatmul.mubr.msk.f32.vlgmr.msra.gmra.mxu0 %vm7053_vm3, %v7052_v54  ;;  %8019 = vmatprep.subr.msk.mxu0 %vm4472_vm12, %v7051_v39 }
0x15d5   :  { %8020 = vmatpush1.msk.msra.mxu0 %vm4472_vm12, %v7050_v22  ;;  %7202 = vmatprep.mubr.f32.mxu0 %v12084_v33 }
0x15d6   :  { %7238 = vmatprep.subr.mxu0 %v12084_v33 }
0x15d8   :  { %8021 = vmatmul.mubr.msk.f32.vlgmr.msra.gmra.mxu0 %vm7053_vm3, %v7134_v15 }
0x15d9   :  { %7239 = vmatpush1.msra.mxu0 %v7226_v31 }
0x15da   :  { %7240 = vmatprep.subr.mxu0 %v12084_v33 }
0x15db   :  { %7241 = vmatpush1.msra.mxu0 %v7225_v63 }
0x15dc   :  { %7242 = vmatprep.subr.mxu0 %v12084_v33 }
0x15dd   :  { %7243 = vmatpush1.msra.mxu0 %v7224_v37 }
0x15de   :  { %7244 = vmatprep.subr.mxu0 %v12084_v33 }
0x15df   :  { %7245 = vmatpush1.msra.mxu0 %v7223_v44 }
0x15e0   :  { %7246 = vmatprep.subr.mxu0 %v12084_v33 }
0x15e1   :  { %7247 = vmatpush1.msra.mxu0 %v7222_v21 }
0x15e2   :  { %7248 = vmatprep.subr.mxu0 %v12084_v33 }
0x15e3   :  { %7249 = vmatpush1.msra.mxu0 %v7221_v53 }
0x15e4   :  { %7250 = vmatprep.subr.mxu0 %v12084_v33 }
0x15e5   :  { %7251 = vmatpush1.msra.mxu0 %v7220_v27 }
0x15e6   :  { %7252 = vmatprep.subr.mxu0 %v12084_v33 }
0x15e7   :  { %7253 = vmatpush1.msra.mxu0 %v7219_v34 }
0x15e8   :  { %7254 = vmatprep.subr.mxu0 %v12084_v33 }
0x15e9   :  { %7255 = vmatpush1.msra.mxu0 %v7218_v36 }
0x15ea   :  { %7256 = vmatprep.subr.mxu0 %v12084_v33 }
0x15eb   :  { %7257 = vmatpush1.msra.mxu0 %v7217_v46 }
0x15ec   :  { %7258 = vmatprep.subr.mxu0 %v12084_v33 }
0x15ed   :  { %7259 = vmatpush1.msra.mxu0 %v7216_v11 }
0x15ee   :  { %7260 = vmatprep.subr.mxu0 %v12084_v33 }
0x15ef   :  { %7261 = vmatpush1.msra.mxu0 %v7215_v30 }
0x15f0   :  { %7262 = vmatprep.subr.mxu0 %v12084_v33 }
0x15f1   :  { %7263 = vmatpush1.msra.mxu0 %v7214_v41 }
0x15f2   :  { %7264 = vmatprep.subr.mxu0 %v12084_v33 }
0x15f3   :  { %7265 = vmatpush1.msra.mxu0 %v7213_v2 }
0x15f4   :  { %7266 = vmatprep.subr.mxu0 %v12084_v33 }
0x15f5   :  { %7267 = vmatpush1.msra.mxu0 %v7212_v50 }
0x15f6   :  { %7268 = vmatprep.subr.mxu0 %v12084_v33 }
0x15f7   :  { %7269 = vmatpush1.msra.mxu0 %v7211_v61 }
0x15f8   :  { %7286 = vmatprep.subr.mxu0 %v12084_v33 }
0x15f9   :  { %7287 = vmatpush2.msra.mxu0 %v7234_v6 }
0x15fa   :  { %7288 = vmatprep.subr.mxu0 %v12084_v33 }
0x15fb   :  { %7289 = vmatpush2.msra.mxu0 %v7233_v32 }
0x15fc   :  { %7290 = vmatprep.subr.mxu0 %v12084_v33 }
0x15fd   :  { %7291 = vmatpush2.msra.mxu0 %v7232_v13 }
0x15fe   :  { %7292 = vmatprep.subr.mxu0 %v12084_v33 }
0x15ff   :  { %7293 = vmatpush2.msra.mxu0 %v7231_v48 }
0x1600   :  { %7294 = vmatprep.subr.mxu0 %v12084_v33 }
0x1601   :  { %7295 = vmatpush2.msra.mxu0 %v7230_v20 }
0x1602   :  { %7296 = vmatprep.subr.mxu0 %v12084_v33 }
0x1603   :  { %7297 = vmatpush2.msra.mxu0 %v7229_v17 }
0x1604   :  { %7298 = vmatprep.subr.mxu0 %v12084_v33 }
0x1605   :  { %7299 = vmatpush2.msra.mxu0 %v7228_v4 }
0x1606   :  { %7300 = vmatprep.subr.mxu0 %v12084_v33 }
0x1607   :  { %7301 = vmatpush2.msra.mxu0 %v7227_v35 }
0x1608   :  { %8462 = vmatprep.subr.mxu0 %v12084_v33 }
0x1694   :  { %v7129_v14 = vpop.f32.mrf.mxu0 }
0x1696   :  { %v7131_v57 = vpop.f32.mrf.mxu0 }
0x1698   :  { %v7204_v47 = vpop.f32.mrf.mxu0 }
0x1699   :  { %v7209_v16 = vmax.f32 %v7129_v14, %v7204_v47 }
0x169a   :  { %v7206_v29 = vpop.f32.mrf.mxu0 }
0x169b   :  { %v7210_v12 = vmax.f32 %v7131_v57, %v7206_v29 }
0x169d   :  { %8022 = vmatprep.mubr.msk.f32.mxu0 %vm6687_vm2, %v7210_v12  ;;  %8023 = vmatprep.mubr.msk.f32.mxu1 %vm6687_vm2, %v7210_v12 }
0x169e   :  { %7303 = vmatmul.mubr.f32.vlgmr.msra.gmra.mxu0 %v7209_v16  ;;  %7397 = vmatmul.mubr.f32.vlgmr.msra.gmra.mxu1 %v7209_v16 }
0x169f   :  { %8463 = vmatpush3.msra.mxu0 %v7410_v42  ;;  %8478 = vmatprep.mubr.msk.f32.mxu0 %vm8579_vm0, %v12084_v33  ;;  %vm7491_vm0 = vcmask 74752  }
0x16a0   :  { %8464 = vmatprep.subr.mxu0 %v12084_v33 }
0x16a1   :  { %8465 = vmatpush3.msra.mxu0 %v7409_v28 }
0x16a2   :  { %8466 = vmatprep.subr.mxu0 %v12084_v33 }
0x16a3   :  { %8467 = vmatpush3.msra.mxu0 %v7408_v9 }
0x16a4   :  { %8468 = vmatprep.subr.mxu0 %v12084_v33 }
0x16a5   :  { %8469 = vmatpush3.msra.mxu0 %v7407_v18 }
0x16a6   :  { %8470 = vmatprep.subr.mxu0 %v12084_v33 }
0x16a7   :  { %8471 = vmatpush3.msra.mxu0 %v7406_v25 }
0x16a8   :  { %8472 = vmatprep.subr.mxu0 %v12084_v33 }
0x16a9   :  { %8473 = vmatpush3.msra.mxu0 %v7405_v58 }
0x16aa   :  { %8474 = vmatprep.subr.mxu0 %v12084_v33 }
0x16ab   :  { %8475 = vmatpush3.msra.mxu0 %v7404_v62 }
0x16ac   :  { %8476 = vmatprep.subr.mxu0 %v12084_v33 }
0x16ad   :  { %8477 = vmatpush3.msra.mxu0 %v7403_v19 }
0x175e   :  { %v7304_v23 = vpop.f32.mrf.mxu0  ;;  %v7398_v10 = vpop.f32.mrf.mxu1 }
0x175f   :  { %v7402_v26 = vmax.f32 %v7304_v23, %v7398_v10 }
0x1760   :  { %v7306_v60 = vpop.f32.mrf.mxu0  ;;  %v7400_v0 = vpop.f32.mrf.mxu1 }
0x1761   :  { %8479 = vmatmul.mubr.msk.f32.vlgmr.msra.gmra.mxu0 %vm6687_vm2, %v7402_v26 }
0x1821   :  { %v7487_v56 = vpop.f32.mrf.mxu0 }
0x1822   :  { %v7488_v59 = vadd.f32 %v8024_v7, %v7487_v56 }
0x1823   :  { %v8480_v5 = vpop.f32.mrf.mxu0 }
0x1824   :  { %7492 = vst.msk [vmem:[#allocation2] sm:$0x3] %vm7491_vm0, %v7488_v59 }
0x1825   :  { %8534 = shalt.err (!%p8531_p4)
}
0x1826   :  { %7502 = dma.vmem_to_hbm [thread:$0]  %s7500_s10, 32, %s8754_s4, [#allocation3]  }
0x1827   :  { %8543 = dma.done.wait [#allocation3], 32  }
0x1828   :  { %8544 = vsyncadd [#allocation3], 4294967264 }
0x1829   :  { %7506 = vsyncpa [#allocation3], 1 }

</bundles_post_ra>
